<compile_context>
chip_gen: v6e
topology: v6e:2x2x1
jax: 0.10.0
libtpu: 0.0.40
codegen_flags: <defaults>
</compile_context>

<pallas_src>
import math

import jax
import jax.numpy as jnp
from jax.experimental import pallas as pl
from jax.experimental.pallas import tpu as pltpu

NUM_LAYERS = 3
HIDDEN = 32
FEATURES = 4
KMER = 8            # seq_len / kmer_size
BATCH = 2
PAD = 4 * HIDDEN    # padded hidden/lane width = 128 (one full vreg lane group)
GATE_W = 3 * PAD    # padded gate width: [n | z | r] blocks of 128 lanes = 384


def aggr_att_rnn_kernel(x_ref, h0_ref, wih_ref, whh_ref, bi_ref, bhn_ref,
                        fcw_ref, fcb_ref, out_ref, seq_ref):
    """Inputs:
         x_ref   (T*B, P)   time-major rows (t*B + b), features zero-padded
         h0_ref  (L, B, P)  per-layer [h0_fwd | h0_bwd | 0]
         wih_ref (L, P, G)  packed input weights (zero rows for padding)
         whh_ref (L, P, G)  packed block-diagonal recurrent weights
         bi_ref  (L, 1, G)  b_ih (plus b_hh for r,z) pre-summed
         bhn_ref (L, 1, P)  b_hh of the n gate [fwd | bwd | 0]
         fcw_ref (1, P), fcb_ref (1, 1)
       Output: out_ref (B, 1).  Scratch: seq_ref (T*B, P)."""
    B = h0_ref.shape[1]
    P = h0_ref.shape[2]           # padded lane width (128)
    H = HIDDEN
    H2 = 2 * H
    TB = x_ref.shape[0]
    T = TB // B
    G = wih_ref.shape[2]          # 3 * P

    # fwd/bwd column mask over gate columns, built once at full (B, G) shape
    # (avoids per-iteration broadcast_in_dim).  Pad columns fall into the bwd
    # branch; their gi values are exactly zero either way.
    lane = jax.lax.broadcasted_iota(jnp.int32, (B, G), 1)
    fwd_col = (lane % P) < H

    # Zero the scratch once so pad lanes (H2..P) stay zero across all layers.
    seq_ref[...] = jnp.zeros_like(seq_ref)

    seq_val = x_ref[...]          # layer-0 input (T*B, P)
    h = h0_ref[0]
    for l in range(NUM_LAYERS):
        whh = whh_ref[l]          # (P, G)  block-diagonal fwd/bwd
        bhn = jnp.broadcast_to(bhn_ref[l], (B, P))   # hoisted broadcast

        # ---- hoisted input-path projection: all timesteps, both directions
        gi = jnp.dot(seq_val, wih_ref[l],
                     preferred_element_type=jnp.float32) + bi_ref[l]   # (T*B, G)

        h = h0_ref[l]             # (B, P) = [h_fwd | h_bwd | 0]
        for s in range(T):        # static unroll; only h carries the serial dep
            tf, tb = s, T - 1 - s
            # Input-path gates for this step: fwd cols from time tf, bwd cols
            # from time tb.  Independent of h -> off the recurrence crit-path.
            gi_s = jnp.where(fwd_col,
                             gi[B * tf:B * tf + B, :],
                             gi[B * tb:B * tb + B, :])                 # (B, G)

            # Single fused recurrent matmul (all gates, both directions).
            gh = jnp.dot(h, whh, preferred_element_type=jnp.float32)  # (B, G)

            # All slices below are 128-lane aligned -> no lane shuffles.
            zr = jax.nn.sigmoid(gi_s[:, P:3 * P] + gh[:, P:3 * P])    # (B,2P)=[z|r]
            z = zr[:, 0:P]
            r = zr[:, P:2 * P]
            omz = 1.0 - z                                             # off tanh path
            zh = z * h                                                # off tanh path
            n = jnp.tanh(gi_s[:, 0:P] + r * (gh[:, 0:P] + bhn))       # (B, P)
            h = n * omz + zh                                          # (1-z)*n + z*h

            # Scatter layer output in place: fwd half at tf, bwd half at tb.
            seq_ref[B * tf:B * tf + B, 0:H] = h[:, 0:H]
            seq_ref[B * tb:B * tb + B, H:H2] = h[:, H:H2]

        seq_val = seq_ref[...]    # (T*B, P): next layer's input / att values

    # After the last step h = [h_fwd(T-1) | h_bwd(0) | 0] of the last layer,
    # which equals h_n.reshape(L,2,B,H)[-1].transpose(0,1).reshape(B, 2H)
    # (padded with zeros beyond 2H; those lanes contribute nothing below).
    query = h                                                          # (B, P)
    seq = seq_val                                                      # (T*B, P)

    # ---- scaled dot-product attention, softmax over time, per batch element
    scale = 1.0 / math.sqrt(float(H2))
    row = jax.lax.broadcasted_iota(jnp.int32, (TB, 1), 0)
    lin_rows = []
    for b in range(B):                       # B is tiny; masked-row formulation
        own = (row % B) == b
        e = jnp.sum(seq * query[b:b + 1, :], axis=-1, keepdims=True) * scale   # (T*B,1)
        e = jnp.where(own, e, -1e30)
        m = jnp.max(e, axis=0, keepdims=True)
        w = jnp.where(own, jnp.exp(e - m), 0.0)                                # (T*B,1)
        num = jnp.sum(w * seq, axis=0, keepdims=True)                          # (1, P)
        den = jnp.sum(w, axis=0, keepdims=True)                                # (1, 1)
        lin_rows.append(num / den)
    lin = jnp.concatenate(lin_rows, axis=0)                                    # (B, P)

    # dropout(p=0) == identity; fc1 as a lane reduction + sigmoid
    logits = jnp.sum(lin * fcw_ref[...], axis=-1, keepdims=True) + fcb_ref[...]
    out_ref[...] = jax.nn.sigmoid(logits)


def pack_params(gru_params, fc_w, fc_b):
    """Pack per-gate (Din,H)/(H,H) weights into lane-dense 128-aligned slabs.
    Column layout (width GATE_W = 3*128): blocks [n | z | r], each 128 lanes,
    with [fwd(0:H) | bwd(H:2H) | pad(2H:128)] inside every block."""
    H = HIDDEN
    H2 = 2 * H
    P = PAD
    wih_all, whh_all, bi_all, bhn_all = [], [], [], []
    for l in range(NUM_LAYERS):
        in_dim = FEATURES if l == 0 else H2
        (wih_f, whh_f, bih_f, bhh_f,
         wih_b, whh_b, bih_b, bhh_b) = gru_params[8 * l:8 * l + 8]
        # gate index convention in the raw params: 0 = r, 1 = z, 2 = n
        wih = jnp.zeros((P, GATE_W), jnp.float32)
        wih = wih.at[:in_dim, 0 * P + 0:0 * P + H].set(wih_f[2])
        wih = wih.at[:in_dim, 0 * P + H:0 * P + H2].set(wih_b[2])
        wih = wih.at[:in_dim, 1 * P + 0:1 * P + H].set(wih_f[1])
        wih = wih.at[:in_dim, 1 * P + H:1 * P + H2].set(wih_b[1])
        wih = wih.at[:in_dim, 2 * P + 0:2 * P + H].set(wih_f[0])
        wih = wih.at[:in_dim, 2 * P + H:2 * P + H2].set(wih_b[0])

        whh = jnp.zeros((P, GATE_W), jnp.float32)      # block-diagonal fwd/bwd
        whh = whh.at[0:H, 0 * P + 0:0 * P + H].set(whh_f[2])
        whh = whh.at[0:H, 1 * P + 0:1 * P + H].set(whh_f[1])
        whh = whh.at[0:H, 2 * P + 0:2 * P + H].set(whh_f[0])
        whh = whh.at[H:H2, 0 * P + H:0 * P + H2].set(whh_b[2])
        whh = whh.at[H:H2, 1 * P + H:1 * P + H2].set(whh_b[1])
        whh = whh.at[H:H2, 2 * P + H:2 * P + H2].set(whh_b[0])

        bi = jnp.zeros((1, GATE_W), jnp.float32)
        bi = bi.at[:, 0 * P + 0:0 * P + H].set(bih_f[2])                 # n: b_ih only
        bi = bi.at[:, 0 * P + H:0 * P + H2].set(bih_b[2])
        bi = bi.at[:, 1 * P + 0:1 * P + H].set(bih_f[1] + bhh_f[1])      # z: b_ih + b_hh
        bi = bi.at[:, 1 * P + H:1 * P + H2].set(bih_b[1] + bhh_b[1])
        bi = bi.at[:, 2 * P + 0:2 * P + H].set(bih_f[0] + bhh_f[0])      # r: b_ih + b_hh
        bi = bi.at[:, 2 * P + H:2 * P + H2].set(bih_b[0] + bhh_b[0])

        bhn = jnp.zeros((1, P), jnp.float32)
        bhn = bhn.at[:, 0:H].set(bhh_f[2])
        bhn = bhn.at[:, H:H2].set(bhh_b[2])

        wih_all.append(wih); whh_all.append(whh)
        bi_all.append(bi); bhn_all.append(bhn)

    fcw = jnp.zeros((1, P), jnp.float32).at[:, :H2].set(fc_w.reshape(1, H2))
    return (jnp.stack(wih_all), jnp.stack(whh_all),
            jnp.stack(bi_all), jnp.stack(bhn_all),
            fcw, fc_b.reshape(1, 1))


def aggr_att_rnn(x_btf, h0, gru_params, fc_w, fc_b):
    """x_btf: (B, T, F) batch-first, like the PyTorch module. h0: (2L, B, H)."""
    B, T, F = x_btf.shape
    wih_all, whh_all, bi_all, bhn_all, fcw_row, fcb = pack_params(gru_params, fc_w, fc_b)

    # time-major flat input, features zero-padded to PAD lanes
    x_flat = jnp.transpose(x_btf, (1, 0, 2)).reshape(T * B, F)
    x_pad = jnp.zeros((T * B, PAD), jnp.float32).at[:, :F].set(x_flat)

    # per-layer [h0_fwd | h0_bwd | 0] padded to PAD lanes
    h0_r = h0.reshape(NUM_LAYERS, 2, B, HIDDEN)
    h0_cat = jnp.zeros((NUM_LAYERS, B, PAD), jnp.float32)
    h0_cat = h0_cat.at[:, :, 0:HIDDEN].set(h0_r[:, 0])
    h0_cat = h0_cat.at[:, :, HIDDEN:2 * HIDDEN].set(h0_r[:, 1])

    inputs = [x_pad, h0_cat, wih_all, whh_all, bi_all, bhn_all, fcw_row, fcb]
    return pl.pallas_call(
        aggr_att_rnn_kernel,
        out_shape=jax.ShapeDtypeStruct((B, 1), jnp.float32),
        in_specs=[pl.BlockSpec(memory_space=pltpu.MemorySpace.VMEM)] * len(inputs),
        out_specs=pl.BlockSpec(memory_space=pltpu.MemorySpace.VMEM),
        scratch_shapes=[pltpu.VMEM((T * B, PAD), jnp.float32)],
    )(*inputs)


def init_params(key):
    """Deterministic synthetic parameters matching PyTorch shapes/init ranges.
    Per layer, per direction: wih (3,Din,H), whh (3,H,H), bih (3,1,H), bhh (3,1,H)
    with gate index 0=r, 1=z, 2=n (weights stored transposed vs. PyTorch)."""
    k = 1.0 / math.sqrt(HIDDEN)
    keys = jax.random.split(key, 4 * 2 * NUM_LAYERS + 2)
    ki = 0
    params = []
    for l in range(NUM_LAYERS):
        in_dim = FEATURES if l == 0 else 2 * HIDDEN
        for _d in range(2):  # forward, backward
            wih = jax.random.uniform(keys[ki], (3, in_dim, HIDDEN), jnp.float32, -k, k); ki += 1
            whh = jax.random.uniform(keys[ki], (3, HIDDEN, HIDDEN), jnp.float32, -k, k); ki += 1
            bih = jax.random.uniform(keys[ki], (3, 1, HIDDEN), jnp.float32, -k, k); ki += 1
            bhh = jax.random.uniform(keys[ki], (3, 1, HIDDEN), jnp.float32, -k, k); ki += 1
            params += [wih, whh, bih, bhh]
    kf = 1.0 / math.sqrt(2 * HIDDEN)
    fc_w = jax.random.uniform(keys[ki], (2 * HIDDEN, 1), jnp.float32, -kf, kf); ki += 1
    fc_b = jax.random.uniform(keys[ki], (1, 1), jnp.float32, -kf, kf); ki += 1
    return params, fc_w, fc_b


def aggr_att_rnn_ref(x_btf, h0, gru_params, fc_w, fc_b):
    """Pure-JAX reference with the original per-gate math (for validation)."""
    B, T, _ = x_btf.shape
    seq = jnp.transpose(x_btf, (1, 0, 2))          # (T, B, F)

    def gru_dir(seq, h, wih, whh, bih, bhh, reverse):
        outs = [None] * T
        order = range(T - 1, -1, -1) if reverse else range(T)
        for t in order:
            xt = seq[t]
            r = jax.nn.sigmoid(xt @ wih[0] + bih[0] + h @ whh[0] + bhh[0])
            z = jax.nn.sigmoid(xt @ wih[1] + bih[1] + h @ whh[1] + bhh[1])
            n = jnp.tanh(xt @ wih[2] + bih[2] + r * (h @ whh[2] + bhh[2]))
            h = (1.0 - z) * n + z * h
            outs[t] = h
        return jnp.stack(outs, 0), h

    hf = hb = None
    for l in range(NUM_LAYERS):
        p = gru_params[8 * l:8 * l + 8]
        of, hf = gru_dir(seq, h0[2 * l], p[0], p[1], p[2], p[3], False)
        ob, hb = gru_dir(seq, h0[2 * l + 1], p[4], p[5], p[6], p[7], True)
        seq = jnp.concatenate([of, ob], axis=-1)
    query = jnp.concatenate([hf, hb], axis=-1)     # (B, 2H)
    scale = 1.0 / math.sqrt(2.0 * HIDDEN)
    e = jnp.sum(query[None] * seq, axis=-1) * scale
    w = jax.nn.softmax(e, axis=0)
    lin = jnp.sum(w[:, :, None] * seq, axis=0)
    return jax.nn.sigmoid(lin @ fc_w + fc_b)


if __name__ == "__main__":
    key = jax.random.PRNGKey(0)
    kx, kh, kp = jax.random.split(key, 3)

    # fwd_x: (batch, kmer_size, num_features)
    x = jax.random.normal(kx, (BATCH, KMER, FEATURES), jnp.float32)
    # deterministic stand-in for PyTorch's per-call torch.randn init_hidden
    h0 = jax.random.normal(kh, (NUM_LAYERS * 2, BATCH, HIDDEN), jnp.float32)

    gru_params, fc_w, fc_b = init_params(kp)

    out = aggr_att_rnn(x, h0, gru_params, fc_w, fc_b)
    out = jax.block_until_ready(out)
    ref = aggr_att_rnn_ref(x, h0, gru_params, fc_w, fc_b)

    assert out.shape == (BATCH, 1)
    assert bool(jnp.all(jnp.isfinite(out)))
    assert bool(jnp.all((out >= 0.0) & (out <= 1.0)))
    assert bool(jnp.allclose(out, ref, atol=1e-3, rtol=1e-3))
    print("KERNEL_OK")
</pallas_src>

<mosaic_0001>
module attributes {stable_mosaic.version = 11 : i64} {
  func.func @aggr_att_rnn_kernel(%arg0: memref<16x128xf32, #tpu.memory_space<vmem>>, %arg1: memref<3x2x128xf32, #tpu.memory_space<vmem>>, %arg2: memref<3x128x384xf32, #tpu.memory_space<vmem>>, %arg3: memref<3x128x384xf32, #tpu.memory_space<vmem>>, %arg4: memref<3x1x384xf32, #tpu.memory_space<vmem>>, %arg5: memref<3x1x128xf32, #tpu.memory_space<vmem>>, %arg6: memref<1x128xf32, #tpu.memory_space<vmem>>, %arg7: memref<1x1xf32, #tpu.memory_space<vmem>>, %arg8: memref<2x1xf32, #tpu.memory_space<vmem>>, %arg9: memref<16x128xf32, #tpu.memory_space<vmem>>) attributes {dimension_semantics = [], scalar_prefetch = 0 : i64, scratch_operands = 1 : i64, tpu.core_type = #tpu.core_type<tc>} {
    %0 = tpu.iota {dimensions = array<i32: 1>} : vector<2x384xi32>
    %c128_i32 = arith.constant 128 : i32
    %c0_i32 = arith.constant 0 : i32
    %1 = arith.cmpi eq, %c128_i32, %c0_i32 : i32
    %c1_i32 = arith.constant 1 : i32
    %2 = arith.select %1, %c1_i32, %c128_i32 : i32
    %3 = vector.broadcast %2 : i32 to vector<2x384xi32>
    %4 = arith.remsi %0, %3 : vector<2x384xi32>
    %c0_i32_0 = arith.constant 0 : i32
    %5 = vector.broadcast %c0_i32_0 : i32 to vector<2x384xi32>
    %6 = arith.cmpi ne, %4, %5 : vector<2x384xi32>
    %c0_i32_1 = arith.constant 0 : i32
    %7 = vector.broadcast %c0_i32_1 : i32 to vector<2x384xi32>
    %8 = arith.cmpi slt, %4, %7 : vector<2x384xi32>
    %c0_i32_2 = arith.constant 0 : i32
    %9 = arith.cmpi slt, %2, %c0_i32_2 : i32
    %10 = vector.broadcast %9 : i1 to vector<2x384xi1>
    %11 = vector.broadcast %10 : vector<2x384xi1> to vector<2x384xi1>
    %12 = arith.xori %8, %11 : vector<2x384xi1>
    %13 = arith.andi %12, %6 : vector<2x384xi1>
    %14 = vector.broadcast %2 : i32 to vector<2x384xi32>
    %15 = arith.addi %4, %14 : vector<2x384xi32>
    %16 = arith.select %13, %15, %4 : vector<2x384xi1>, vector<2x384xi32>
    %c32_i32 = arith.constant 32 : i32
    %17 = vector.broadcast %c32_i32 : i32 to vector<2x384xi32>
    %18 = arith.cmpi slt, %16, %17 : vector<2x384xi32>
    %cst = arith.constant 0.000000e+00 : f32
    %19 = vector.broadcast %cst : f32 to vector<16x128xf32>
    %c0 = arith.constant 0 : index
    %c0_3 = arith.constant 0 : index
    %20 = vector.load %arg9[%c0, %c0_3] : memref<16x128xf32, #tpu.memory_space<vmem>>, vector<16x128xf32>
    tpu.vector_store %arg9[%c0, %c0_3], %19 {strides = array<i32>} : memref<16x128xf32, #tpu.memory_space<vmem>>, vector<16x128xf32>,
    %c0_4 = arith.constant 0 : index
    %c0_5 = arith.constant 0 : index
    %21 = vector.load %arg0[%c0_4, %c0_5] : memref<16x128xf32, #tpu.memory_space<vmem>>, vector<16x128xf32>
    %c0_6 = arith.constant 0 : index
    %c0_7 = arith.constant 0 : index
    %c0_8 = arith.constant 0 : index
    %22 = vector.load %arg3[%c0_6, %c0_7, %c0_8] : memref<3x128x384xf32, #tpu.memory_space<vmem>>, vector<1x128x384xf32>
    %23 = vector.shape_cast %22 : vector<1x128x384xf32> to vector<128x384xf32>
    %c0_9 = arith.constant 0 : index
    %c0_10 = arith.constant 0 : index
    %c0_11 = arith.constant 0 : index
    %24 = vector.load %arg5[%c0_9, %c0_10, %c0_11] : memref<3x1x128xf32, #tpu.memory_space<vmem>>, vector<1x1x128xf32>
    %25 = vector.shape_cast %24 : vector<1x1x128xf32> to vector<1x128xf32>
    %26 = vector.shape_cast %25 : vector<1x128xf32> to vector<1x128xf32>
    %27 = vector.broadcast %26 : vector<1x128xf32> to vector<2x128xf32>
    %c0_12 = arith.constant 0 : index
    %c0_13 = arith.constant 0 : index
    %c0_14 = arith.constant 0 : index
    %28 = vector.load %arg2[%c0_12, %c0_13, %c0_14] : memref<3x128x384xf32, #tpu.memory_space<vmem>>, vector<1x128x384xf32>
    %29 = vector.shape_cast %28 : vector<1x128x384xf32> to vector<128x384xf32>
    %cst_15 = arith.constant dense<0.000000e+00> : vector<16x384xf32>
    %30 = tpu.matmul %21, %29, %cst_15 {dimension_numbers = #tpu.dot_dimension_numbers<[1], [0], [0], [1], [0, 0, 1, 1], [], []>} : vector<16x128xf32>, vector<128x384xf32>, vector<16x384xf32> -> vector<16x384xf32>
    %c0_16 = arith.constant 0 : index
    %c0_17 = arith.constant 0 : index
    %c0_18 = arith.constant 0 : index
    %31 = vector.load %arg4[%c0_16, %c0_17, %c0_18] : memref<3x1x384xf32, #tpu.memory_space<vmem>>, vector<1x1x384xf32>
    %32 = vector.shape_cast %31 : vector<1x1x384xf32> to vector<1x384xf32>
    %33 = vector.broadcast %32 : vector<1x384xf32> to vector<16x384xf32>
    %34 = arith.addf %30, %33 : vector<16x384xf32>
    %c0_19 = arith.constant 0 : index
    %c0_20 = arith.constant 0 : index
    %c0_21 = arith.constant 0 : index
    %35 = vector.load %arg1[%c0_19, %c0_20, %c0_21] : memref<3x2x128xf32, #tpu.memory_space<vmem>>, vector<1x2x128xf32>
    %36 = vector.shape_cast %35 : vector<1x2x128xf32> to vector<2x128xf32>
    %37 = vector.extract_strided_slice %34 {offsets = [0, 0], sizes = [2, 384], strides = [1, 1]} : vector<16x384xf32> to vector<2x384xf32>
    %38 = vector.extract_strided_slice %34 {offsets = [14, 0], sizes = [2, 384], strides = [1, 1]} : vector<16x384xf32> to vector<2x384xf32>
    %39 = arith.select %18, %37, %38 : vector<2x384xi1>, vector<2x384xf32>
    %cst_22 = arith.constant dense<0.000000e+00> : vector<2x384xf32>
    %40 = tpu.matmul %36, %23, %cst_22 {dimension_numbers = #tpu.dot_dimension_numbers<[1], [0], [0], [1], [0, 0, 1, 1], [], []>} : vector<2x128xf32>, vector<128x384xf32>, vector<2x384xf32> -> vector<2x384xf32>
    %41 = vector.extract_strided_slice %39 {offsets = [0, 128], sizes = [2, 256], strides = [1, 1]} : vector<2x384xf32> to vector<2x256xf32>
    %42 = vector.extract_strided_slice %40 {offsets = [0, 128], sizes = [2, 256], strides = [1, 1]} : vector<2x384xf32> to vector<2x256xf32>
    %43 = arith.addf %41, %42 : vector<2x256xf32>
    %44 = arith.negf %43 : vector<2x256xf32>
    %45 = math.exp %44 : vector<2x256xf32>
    %cst_23 = arith.constant 1.000000e+00 : f32
    %46 = vector.broadcast %cst_23 : f32 to vector<2x256xf32>
    %47 = arith.addf %46, %45 : vector<2x256xf32>
    %48 = arith.divf %46, %47 : vector<2x256xf32>
    %49 = vector.extract_strided_slice %48 {offsets = [0, 0], sizes = [2, 128], strides = [1, 1]} : vector<2x256xf32> to vector<2x128xf32>
    %50 = vector.extract_strided_slice %48 {offsets = [0, 128], sizes = [2, 128], strides = [1, 1]} : vector<2x256xf32> to vector<2x128xf32>
    %cst_24 = arith.constant 1.000000e+00 : f32
    %51 = vector.broadcast %cst_24 : f32 to vector<2x128xf32>
    %52 = arith.subf %51, %49 : vector<2x128xf32>
    %53 = arith.mulf %49, %36 : vector<2x128xf32>
    %54 = vector.extract_strided_slice %39 {offsets = [0, 0], sizes = [2, 128], strides = [1, 1]} : vector<2x384xf32> to vector<2x128xf32>
    %55 = vector.extract_strided_slice %40 {offsets = [0, 0], sizes = [2, 128], strides = [1, 1]} : vector<2x384xf32> to vector<2x128xf32>
    %56 = arith.addf %55, %27 : vector<2x128xf32>
    %57 = arith.mulf %50, %56 : vector<2x128xf32>
    %58 = arith.addf %54, %57 : vector<2x128xf32>
    %59 = math.tanh %58 : vector<2x128xf32>
    %60 = arith.mulf %59, %52 : vector<2x128xf32>
    %61 = arith.addf %60, %53 : vector<2x128xf32>
    %62 = vector.extract_strided_slice %61 {offsets = [0, 0], sizes = [2, 32], strides = [1, 1]} : vector<2x128xf32> to vector<2x32xf32>
    %c0_25 = arith.constant 0 : index
    %c0_26 = arith.constant 0 : index
    %63 = vector.load %arg9[%c0_25, %c0_26] : memref<16x128xf32, #tpu.memory_space<vmem>>, vector<2x32xf32>
    tpu.vector_store %arg9[%c0_25, %c0_26], %62 {strides = array<i32>} : memref<16x128xf32, #tpu.memory_space<vmem>>, vector<2x32xf32>,
    %64 = vector.extract_strided_slice %61 {offsets = [0, 32], sizes = [2, 32], strides = [1, 1]} : vector<2x128xf32> to vector<2x32xf32>
    %c14 = arith.constant 14 : index
    %c32 = arith.constant 32 : index
    %65 = vector.load %arg9[%c14, %c32] : memref<16x128xf32, #tpu.memory_space<vmem>>, vector<2x32xf32>
    tpu.vector_store %arg9[%c14, %c32], %64 {strides = array<i32>} : memref<16x128xf32, #tpu.memory_space<vmem>>, vector<2x32xf32>,
    %66 = vector.extract_strided_slice %34 {offsets = [2, 0], sizes = [2, 384], strides = [1, 1]} : vector<16x384xf32> to vector<2x384xf32>
    %67 = vector.extract_strided_slice %34 {offsets = [12, 0], sizes = [2, 384], strides = [1, 1]} : vector<16x384xf32> to vector<2x384xf32>
    %68 = arith.select %18, %66, %67 : vector<2x384xi1>, vector<2x384xf32>
    %cst_27 = arith.constant dense<0.000000e+00> : vector<2x384xf32>
    %69 = tpu.matmul %61, %23, %cst_27 {dimension_numbers = #tpu.dot_dimension_numbers<[1], [0], [0], [1], [0, 0, 1, 1], [], []>} : vector<2x128xf32>, vector<128x384xf32>, vector<2x384xf32> -> vector<2x384xf32>
    %70 = vector.extract_strided_slice %68 {offsets = [0, 128], sizes = [2, 256], strides = [1, 1]} : vector<2x384xf32> to vector<2x256xf32>
    %71 = vector.extract_strided_slice %69 {offsets = [0, 128], sizes = [2, 256], strides = [1, 1]} : vector<2x384xf32> to vector<2x256xf32>
    %72 = arith.addf %70, %71 : vector<2x256xf32>
    %73 = arith.negf %72 : vector<2x256xf32>
    %74 = math.exp %73 : vector<2x256xf32>
    %cst_28 = arith.constant 1.000000e+00 : f32
    %75 = vector.broadcast %cst_28 : f32 to vector<2x256xf32>
    %76 = arith.addf %75, %74 : vector<2x256xf32>
    %77 = arith.divf %75, %76 : vector<2x256xf32>
    %78 = vector.extract_strided_slice %77 {offsets = [0, 0], sizes = [2, 128], strides = [1, 1]} : vector<2x256xf32> to vector<2x128xf32>
    %79 = vector.extract_strided_slice %77 {offsets = [0, 128], sizes = [2, 128], strides = [1, 1]} : vector<2x256xf32> to vector<2x128xf32>
    %cst_29 = arith.constant 1.000000e+00 : f32
    %80 = vector.broadcast %cst_29 : f32 to vector<2x128xf32>
    %81 = arith.subf %80, %78 : vector<2x128xf32>
    %82 = arith.mulf %78, %61 : vector<2x128xf32>
    %83 = vector.extract_strided_slice %68 {offsets = [0, 0], sizes = [2, 128], strides = [1, 1]} : vector<2x384xf32> to vector<2x128xf32>
    %84 = vector.extract_strided_slice %69 {offsets = [0, 0], sizes = [2, 128], strides = [1, 1]} : vector<2x384xf32> to vector<2x128xf32>
    %85 = arith.addf %84, %27 : vector<2x128xf32>
    %86 = arith.mulf %79, %85 : vector<2x128xf32>
    %87 = arith.addf %83, %86 : vector<2x128xf32>
    %88 = math.tanh %87 : vector<2x128xf32>
    %89 = arith.mulf %88, %81 : vector<2x128xf32>
    %90 = arith.addf %89, %82 : vector<2x128xf32>
    %91 = vector.extract_strided_slice %90 {offsets = [0, 0], sizes = [2, 32], strides = [1, 1]} : vector<2x128xf32> to vector<2x32xf32>
    %c2 = arith.constant 2 : index
    %c0_30 = arith.constant 0 : index
    %92 = vector.load %arg9[%c2, %c0_30] : memref<16x128xf32, #tpu.memory_space<vmem>>, vector<2x32xf32>
    tpu.vector_store %arg9[%c2, %c0_30], %91 {strides = array<i32>} : memref<16x128xf32, #tpu.memory_space<vmem>>, vector<2x32xf32>,
    %93 = vector.extract_strided_slice %90 {offsets = [0, 32], sizes = [2, 32], strides = [1, 1]} : vector<2x128xf32> to vector<2x32xf32>
    %c12 = arith.constant 12 : index
    %c32_31 = arith.constant 32 : index
    %94 = vector.load %arg9[%c12, %c32_31] : memref<16x128xf32, #tpu.memory_space<vmem>>, vector<2x32xf32>
    tpu.vector_store %arg9[%c12, %c32_31], %93 {strides = array<i32>} : memref<16x128xf32, #tpu.memory_space<vmem>>, vector<2x32xf32>,
    %95 = vector.extract_strided_slice %34 {offsets = [4, 0], sizes = [2, 384], strides = [1, 1]} : vector<16x384xf32> to vector<2x384xf32>
    %96 = vector.extract_strided_slice %34 {offsets = [10, 0], sizes = [2, 384], strides = [1, 1]} : vector<16x384xf32> to vector<2x384xf32>
    %97 = arith.select %18, %95, %96 : vector<2x384xi1>, vector<2x384xf32>
    %cst_32 = arith.constant dense<0.000000e+00> : vector<2x384xf32>
    %98 = tpu.matmul %90, %23, %cst_32 {dimension_numbers = #tpu.dot_dimension_numbers<[1], [0], [0], [1], [0, 0, 1, 1], [], []>} : vector<2x128xf32>, vector<128x384xf32>, vector<2x384xf32> -> vector<2x384xf32>
    %99 = vector.extract_strided_slice %97 {offsets = [0, 128], sizes = [2, 256], strides = [1, 1]} : vector<2x384xf32> to vector<2x256xf32>
    %100 = vector.extract_strided_slice %98 {offsets = [0, 128], sizes = [2, 256], strides = [1, 1]} : vector<2x384xf32> to vector<2x256xf32>
    %101 = arith.addf %99, %100 : vector<2x256xf32>
    %102 = arith.negf %101 : vector<2x256xf32>
    %103 = math.exp %102 : vector<2x256xf32>
    %cst_33 = arith.constant 1.000000e+00 : f32
    %104 = vector.broadcast %cst_33 : f32 to vector<2x256xf32>
    %105 = arith.addf %104, %103 : vector<2x256xf32>
    %106 = arith.divf %104, %105 : vector<2x256xf32>
    %107 = vector.extract_strided_slice %106 {offsets = [0, 0], sizes = [2, 128], strides = [1, 1]} : vector<2x256xf32> to vector<2x128xf32>
    %108 = vector.extract_strided_slice %106 {offsets = [0, 128], sizes = [2, 128], strides = [1, 1]} : vector<2x256xf32> to vector<2x128xf32>
    %cst_34 = arith.constant 1.000000e+00 : f32
    %109 = vector.broadcast %cst_34 : f32 to vector<2x128xf32>
    %110 = arith.subf %109, %107 : vector<2x128xf32>
    %111 = arith.mulf %107, %90 : vector<2x128xf32>
    %112 = vector.extract_strided_slice %97 {offsets = [0, 0], sizes = [2, 128], strides = [1, 1]} : vector<2x384xf32> to vector<2x128xf32>
    %113 = vector.extract_strided_slice %98 {offsets = [0, 0], sizes = [2, 128], strides = [1, 1]} : vector<2x384xf32> to vector<2x128xf32>
    %114 = arith.addf %113, %27 : vector<2x128xf32>
    %115 = arith.mulf %108, %114 : vector<2x128xf32>
    %116 = arith.addf %112, %115 : vector<2x128xf32>
    %117 = math.tanh %116 : vector<2x128xf32>
    %118 = arith.mulf %117, %110 : vector<2x128xf32>
    %119 = arith.addf %118, %111 : vector<2x128xf32>
    %120 = vector.extract_strided_slice %119 {offsets = [0, 0], sizes = [2, 32], strides = [1, 1]} : vector<2x128xf32> to vector<2x32xf32>
    %c4 = arith.constant 4 : index
    %c0_35 = arith.constant 0 : index
    %121 = vector.load %arg9[%c4, %c0_35] : memref<16x128xf32, #tpu.memory_space<vmem>>, vector<2x32xf32>
    tpu.vector_store %arg9[%c4, %c0_35], %120 {strides = array<i32>} : memref<16x128xf32, #tpu.memory_space<vmem>>, vector<2x32xf32>,
    %122 = vector.extract_strided_slice %119 {offsets = [0, 32], sizes = [2, 32], strides = [1, 1]} : vector<2x128xf32> to vector<2x32xf32>
    %c10 = arith.constant 10 : index
    %c32_36 = arith.constant 32 : index
    %123 = vector.load %arg9[%c10, %c32_36] : memref<16x128xf32, #tpu.memory_space<vmem>>, vector<2x32xf32>
    tpu.vector_store %arg9[%c10, %c32_36], %122 {strides = array<i32>} : memref<16x128xf32, #tpu.memory_space<vmem>>, vector<2x32xf32>,
    %124 = vector.extract_strided_slice %34 {offsets = [6, 0], sizes = [2, 384], strides = [1, 1]} : vector<16x384xf32> to vector<2x384xf32>
    %125 = vector.extract_strided_slice %34 {offsets = [8, 0], sizes = [2, 384], strides = [1, 1]} : vector<16x384xf32> to vector<2x384xf32>
    %126 = arith.select %18, %124, %125 : vector<2x384xi1>, vector<2x384xf32>
    %cst_37 = arith.constant dense<0.000000e+00> : vector<2x384xf32>
    %127 = tpu.matmul %119, %23, %cst_37 {dimension_numbers = #tpu.dot_dimension_numbers<[1], [0], [0], [1], [0, 0, 1, 1], [], []>} : vector<2x128xf32>, vector<128x384xf32>, vector<2x384xf32> -> vector<2x384xf32>
    %128 = vector.extract_strided_slice %126 {offsets = [0, 128], sizes = [2, 256], strides = [1, 1]} : vector<2x384xf32> to vector<2x256xf32>
    %129 = vector.extract_strided_slice %127 {offsets = [0, 128], sizes = [2, 256], strides = [1, 1]} : vector<2x384xf32> to vector<2x256xf32>
    %130 = arith.addf %128, %129 : vector<2x256xf32>
    %131 = arith.negf %130 : vector<2x256xf32>
    %132 = math.exp %131 : vector<2x256xf32>
    %cst_38 = arith.constant 1.000000e+00 : f32
    %133 = vector.broadcast %cst_38 : f32 to vector<2x256xf32>
    %134 = arith.addf %133, %132 : vector<2x256xf32>
    %135 = arith.divf %133, %134 : vector<2x256xf32>
    %136 = vector.extract_strided_slice %135 {offsets = [0, 0], sizes = [2, 128], strides = [1, 1]} : vector<2x256xf32> to vector<2x128xf32>
    %137 = vector.extract_strided_slice %135 {offsets = [0, 128], sizes = [2, 128], strides = [1, 1]} : vector<2x256xf32> to vector<2x128xf32>
    %cst_39 = arith.constant 1.000000e+00 : f32
    %138 = vector.broadcast %cst_39 : f32 to vector<2x128xf32>
    %139 = arith.subf %138, %136 : vector<2x128xf32>
    %140 = arith.mulf %136, %119 : vector<2x128xf32>
    %141 = vector.extract_strided_slice %126 {offsets = [0, 0], sizes = [2, 128], strides = [1, 1]} : vector<2x384xf32> to vector<2x128xf32>
    %142 = vector.extract_strided_slice %127 {offsets = [0, 0], sizes = [2, 128], strides = [1, 1]} : vector<2x384xf32> to vector<2x128xf32>
    %143 = arith.addf %142, %27 : vector<2x128xf32>
    %144 = arith.mulf %137, %143 : vector<2x128xf32>
    %145 = arith.addf %141, %144 : vector<2x128xf32>
    %146 = math.tanh %145 : vector<2x128xf32>
    %147 = arith.mulf %146, %139 : vector<2x128xf32>
    %148 = arith.addf %147, %140 : vector<2x128xf32>
    %149 = vector.extract_strided_slice %148 {offsets = [0, 0], sizes = [2, 32], strides = [1, 1]} : vector<2x128xf32> to vector<2x32xf32>
    %c6 = arith.constant 6 : index
    %c0_40 = arith.constant 0 : index
    %150 = vector.load %arg9[%c6, %c0_40] : memref<16x128xf32, #tpu.memory_space<vmem>>, vector<2x32xf32>
    tpu.vector_store %arg9[%c6, %c0_40], %149 {strides = array<i32>} : memref<16x128xf32, #tpu.memory_space<vmem>>, vector<2x32xf32>,
    %151 = vector.extract_strided_slice %148 {offsets = [0, 32], sizes = [2, 32], strides = [1, 1]} : vector<2x128xf32> to vector<2x32xf32>
    %c8 = arith.constant 8 : index
    %c32_41 = arith.constant 32 : index
    %152 = vector.load %arg9[%c8, %c32_41] : memref<16x128xf32, #tpu.memory_space<vmem>>, vector<2x32xf32>
    tpu.vector_store %arg9[%c8, %c32_41], %151 {strides = array<i32>} : memref<16x128xf32, #tpu.memory_space<vmem>>, vector<2x32xf32>,
    %153 = vector.extract_strided_slice %34 {offsets = [8, 0], sizes = [2, 384], strides = [1, 1]} : vector<16x384xf32> to vector<2x384xf32>
    %154 = vector.extract_strided_slice %34 {offsets = [6, 0], sizes = [2, 384], strides = [1, 1]} : vector<16x384xf32> to vector<2x384xf32>
    %155 = arith.select %18, %153, %154 : vector<2x384xi1>, vector<2x384xf32>
    %cst_42 = arith.constant dense<0.000000e+00> : vector<2x384xf32>
    %156 = tpu.matmul %148, %23, %cst_42 {dimension_numbers = #tpu.dot_dimension_numbers<[1], [0], [0], [1], [0, 0, 1, 1], [], []>} : vector<2x128xf32>, vector<128x384xf32>, vector<2x384xf32> -> vector<2x384xf32>
    %157 = vector.extract_strided_slice %155 {offsets = [0, 128], sizes = [2, 256], strides = [1, 1]} : vector<2x384xf32> to vector<2x256xf32>
    %158 = vector.extract_strided_slice %156 {offsets = [0, 128], sizes = [2, 256], strides = [1, 1]} : vector<2x384xf32> to vector<2x256xf32>
    %159 = arith.addf %157, %158 : vector<2x256xf32>
    %160 = arith.negf %159 : vector<2x256xf32>
    %161 = math.exp %160 : vector<2x256xf32>
    %cst_43 = arith.constant 1.000000e+00 : f32
    %162 = vector.broadcast %cst_43 : f32 to vector<2x256xf32>
    %163 = arith.addf %162, %161 : vector<2x256xf32>
    %164 = arith.divf %162, %163 : vector<2x256xf32>
    %165 = vector.extract_strided_slice %164 {offsets = [0, 0], sizes = [2, 128], strides = [1, 1]} : vector<2x256xf32> to vector<2x128xf32>
    %166 = vector.extract_strided_slice %164 {offsets = [0, 128], sizes = [2, 128], strides = [1, 1]} : vector<2x256xf32> to vector<2x128xf32>
    %cst_44 = arith.constant 1.000000e+00 : f32
    %167 = vector.broadcast %cst_44 : f32 to vector<2x128xf32>
    %168 = arith.subf %167, %165 : vector<2x128xf32>
    %169 = arith.mulf %165, %148 : vector<2x128xf32>
    %170 = vector.extract_strided_slice %155 {offsets = [0, 0], sizes = [2, 128], strides = [1, 1]} : vector<2x384xf32> to vector<2x128xf32>
    %171 = vector.extract_strided_slice %156 {offsets = [0, 0], sizes = [2, 128], strides = [1, 1]} : vector<2x384xf32> to vector<2x128xf32>
    %172 = arith.addf %171, %27 : vector<2x128xf32>
    %173 = arith.mulf %166, %172 : vector<2x128xf32>
    %174 = arith.addf %170, %173 : vector<2x128xf32>
    %175 = math.tanh %174 : vector<2x128xf32>
    %176 = arith.mulf %175, %168 : vector<2x128xf32>
    %177 = arith.addf %176, %169 : vector<2x128xf32>
    %178 = vector.extract_strided_slice %177 {offsets = [0, 0], sizes = [2, 32], strides = [1, 1]} : vector<2x128xf32> to vector<2x32xf32>
    %c8_45 = arith.constant 8 : index
    %c0_46 = arith.constant 0 : index
    %179 = vector.load %arg9[%c8_45, %c0_46] : memref<16x128xf32, #tpu.memory_space<vmem>>, vector<2x32xf32>
    tpu.vector_store %arg9[%c8_45, %c0_46], %178 {strides = array<i32>} : memref<16x128xf32, #tpu.memory_space<vmem>>, vector<2x32xf32>,
    %180 = vector.extract_strided_slice %177 {offsets = [0, 32], sizes = [2, 32], strides = [1, 1]} : vector<2x128xf32> to vector<2x32xf32>
    %c6_47 = arith.constant 6 : index
    %c32_48 = arith.constant 32 : index
    %181 = vector.load %arg9[%c6_47, %c32_48] : memref<16x128xf32, #tpu.memory_space<vmem>>, vector<2x32xf32>
    tpu.vector_store %arg9[%c6_47, %c32_48], %180 {strides = array<i32>} : memref<16x128xf32, #tpu.memory_space<vmem>>, vector<2x32xf32>,
    %182 = vector.extract_strided_slice %34 {offsets = [10, 0], sizes = [2, 384], strides = [1, 1]} : vector<16x384xf32> to vector<2x384xf32>
    %183 = vector.extract_strided_slice %34 {offsets = [4, 0], sizes = [2, 384], strides = [1, 1]} : vector<16x384xf32> to vector<2x384xf32>
    %184 = arith.select %18, %182, %183 : vector<2x384xi1>, vector<2x384xf32>
    %cst_49 = arith.constant dense<0.000000e+00> : vector<2x384xf32>
    %185 = tpu.matmul %177, %23, %cst_49 {dimension_numbers = #tpu.dot_dimension_numbers<[1], [0], [0], [1], [0, 0, 1, 1], [], []>} : vector<2x128xf32>, vector<128x384xf32>, vector<2x384xf32> -> vector<2x384xf32>
    %186 = vector.extract_strided_slice %184 {offsets = [0, 128], sizes = [2, 256], strides = [1, 1]} : vector<2x384xf32> to vector<2x256xf32>
    %187 = vector.extract_strided_slice %185 {offsets = [0, 128], sizes = [2, 256], strides = [1, 1]} : vector<2x384xf32> to vector<2x256xf32>
    %188 = arith.addf %186, %187 : vector<2x256xf32>
    %189 = arith.negf %188 : vector<2x256xf32>
    %190 = math.exp %189 : vector<2x256xf32>
    %cst_50 = arith.constant 1.000000e+00 : f32
    %191 = vector.broadcast %cst_50 : f32 to vector<2x256xf32>
    %192 = arith.addf %191, %190 : vector<2x256xf32>
    %193 = arith.divf %191, %192 : vector<2x256xf32>
    %194 = vector.extract_strided_slice %193 {offsets = [0, 0], sizes = [2, 128], strides = [1, 1]} : vector<2x256xf32> to vector<2x128xf32>
    %195 = vector.extract_strided_slice %193 {offsets = [0, 128], sizes = [2, 128], strides = [1, 1]} : vector<2x256xf32> to vector<2x128xf32>
    %cst_51 = arith.constant 1.000000e+00 : f32
    %196 = vector.broadcast %cst_51 : f32 to vector<2x128xf32>
    %197 = arith.subf %196, %194 : vector<2x128xf32>
    %198 = arith.mulf %194, %177 : vector<2x128xf32>
    %199 = vector.extract_strided_slice %184 {offsets = [0, 0], sizes = [2, 128], strides = [1, 1]} : vector<2x384xf32> to vector<2x128xf32>
    %200 = vector.extract_strided_slice %185 {offsets = [0, 0], sizes = [2, 128], strides = [1, 1]} : vector<2x384xf32> to vector<2x128xf32>
    %201 = arith.addf %200, %27 : vector<2x128xf32>
    %202 = arith.mulf %195, %201 : vector<2x128xf32>
    %203 = arith.addf %199, %202 : vector<2x128xf32>
    %204 = math.tanh %203 : vector<2x128xf32>
    %205 = arith.mulf %204, %197 : vector<2x128xf32>
    %206 = arith.addf %205, %198 : vector<2x128xf32>
    %207 = vector.extract_strided_slice %206 {offsets = [0, 0], sizes = [2, 32], strides = [1, 1]} : vector<2x128xf32> to vector<2x32xf32>
    %c10_52 = arith.constant 10 : index
    %c0_53 = arith.constant 0 : index
    %208 = vector.load %arg9[%c10_52, %c0_53] : memref<16x128xf32, #tpu.memory_space<vmem>>, vector<2x32xf32>
    tpu.vector_store %arg9[%c10_52, %c0_53], %207 {strides = array<i32>} : memref<16x128xf32, #tpu.memory_space<vmem>>, vector<2x32xf32>,
    %209 = vector.extract_strided_slice %206 {offsets = [0, 32], sizes = [2, 32], strides = [1, 1]} : vector<2x128xf32> to vector<2x32xf32>
    %c4_54 = arith.constant 4 : index
    %c32_55 = arith.constant 32 : index
    %210 = vector.load %arg9[%c4_54, %c32_55] : memref<16x128xf32, #tpu.memory_space<vmem>>, vector<2x32xf32>
    tpu.vector_store %arg9[%c4_54, %c32_55], %209 {strides = array<i32>} : memref<16x128xf32, #tpu.memory_space<vmem>>, vector<2x32xf32>,
    %211 = vector.extract_strided_slice %34 {offsets = [12, 0], sizes = [2, 384], strides = [1, 1]} : vector<16x384xf32> to vector<2x384xf32>
    %212 = vector.extract_strided_slice %34 {offsets = [2, 0], sizes = [2, 384], strides = [1, 1]} : vector<16x384xf32> to vector<2x384xf32>
    %213 = arith.select %18, %211, %212 : vector<2x384xi1>, vector<2x384xf32>
    %cst_56 = arith.constant dense<0.000000e+00> : vector<2x384xf32>
    %214 = tpu.matmul %206, %23, %cst_56 {dimension_numbers = #tpu.dot_dimension_numbers<[1], [0], [0], [1], [0, 0, 1, 1], [], []>} : vector<2x128xf32>, vector<128x384xf32>, vector<2x384xf32> -> vector<2x384xf32>
    %215 = vector.extract_strided_slice %213 {offsets = [0, 128], sizes = [2, 256], strides = [1, 1]} : vector<2x384xf32> to vector<2x256xf32>
    %216 = vector.extract_strided_slice %214 {offsets = [0, 128], sizes = [2, 256], strides = [1, 1]} : vector<2x384xf32> to vector<2x256xf32>
    %217 = arith.addf %215, %216 : vector<2x256xf32>
    %218 = arith.negf %217 : vector<2x256xf32>
    %219 = math.exp %218 : vector<2x256xf32>
    %cst_57 = arith.constant 1.000000e+00 : f32
    %220 = vector.broadcast %cst_57 : f32 to vector<2x256xf32>
    %221 = arith.addf %220, %219 : vector<2x256xf32>
    %222 = arith.divf %220, %221 : vector<2x256xf32>
    %223 = vector.extract_strided_slice %222 {offsets = [0, 0], sizes = [2, 128], strides = [1, 1]} : vector<2x256xf32> to vector<2x128xf32>
    %224 = vector.extract_strided_slice %222 {offsets = [0, 128], sizes = [2, 128], strides = [1, 1]} : vector<2x256xf32> to vector<2x128xf32>
    %cst_58 = arith.constant 1.000000e+00 : f32
    %225 = vector.broadcast %cst_58 : f32 to vector<2x128xf32>
    %226 = arith.subf %225, %223 : vector<2x128xf32>
    %227 = arith.mulf %223, %206 : vector<2x128xf32>
    %228 = vector.extract_strided_slice %213 {offsets = [0, 0], sizes = [2, 128], strides = [1, 1]} : vector<2x384xf32> to vector<2x128xf32>
    %229 = vector.extract_strided_slice %214 {offsets = [0, 0], sizes = [2, 128], strides = [1, 1]} : vector<2x384xf32> to vector<2x128xf32>
    %230 = arith.addf %229, %27 : vector<2x128xf32>
    %231 = arith.mulf %224, %230 : vector<2x128xf32>
    %232 = arith.addf %228, %231 : vector<2x128xf32>
    %233 = math.tanh %232 : vector<2x128xf32>
    %234 = arith.mulf %233, %226 : vector<2x128xf32>
    %235 = arith.addf %234, %227 : vector<2x128xf32>
    %236 = vector.extract_strided_slice %235 {offsets = [0, 0], sizes = [2, 32], strides = [1, 1]} : vector<2x128xf32> to vector<2x32xf32>
    %c12_59 = arith.constant 12 : index
    %c0_60 = arith.constant 0 : index
    %237 = vector.load %arg9[%c12_59, %c0_60] : memref<16x128xf32, #tpu.memory_space<vmem>>, vector<2x32xf32>
    tpu.vector_store %arg9[%c12_59, %c0_60], %236 {strides = array<i32>} : memref<16x128xf32, #tpu.memory_space<vmem>>, vector<2x32xf32>,
    %238 = vector.extract_strided_slice %235 {offsets = [0, 32], sizes = [2, 32], strides = [1, 1]} : vector<2x128xf32> to vector<2x32xf32>
    %c2_61 = arith.constant 2 : index
    %c32_62 = arith.constant 32 : index
    %239 = vector.load %arg9[%c2_61, %c32_62] : memref<16x128xf32, #tpu.memory_space<vmem>>, vector<2x32xf32>
    tpu.vector_store %arg9[%c2_61, %c32_62], %238 {strides = array<i32>} : memref<16x128xf32, #tpu.memory_space<vmem>>, vector<2x32xf32>,
    %240 = vector.extract_strided_slice %34 {offsets = [14, 0], sizes = [2, 384], strides = [1, 1]} : vector<16x384xf32> to vector<2x384xf32>
    %241 = vector.extract_strided_slice %34 {offsets = [0, 0], sizes = [2, 384], strides = [1, 1]} : vector<16x384xf32> to vector<2x384xf32>
    %242 = arith.select %18, %240, %241 : vector<2x384xi1>, vector<2x384xf32>
    %cst_63 = arith.constant dense<0.000000e+00> : vector<2x384xf32>
    %243 = tpu.matmul %235, %23, %cst_63 {dimension_numbers = #tpu.dot_dimension_numbers<[1], [0], [0], [1], [0, 0, 1, 1], [], []>} : vector<2x128xf32>, vector<128x384xf32>, vector<2x384xf32> -> vector<2x384xf32>
    %244 = vector.extract_strided_slice %242 {offsets = [0, 128], sizes = [2, 256], strides = [1, 1]} : vector<2x384xf32> to vector<2x256xf32>
    %245 = vector.extract_strided_slice %243 {offsets = [0, 128], sizes = [2, 256], strides = [1, 1]} : vector<2x384xf32> to vector<2x256xf32>
    %246 = arith.addf %244, %245 : vector<2x256xf32>
    %247 = arith.negf %246 : vector<2x256xf32>
    %248 = math.exp %247 : vector<2x256xf32>
    %cst_64 = arith.constant 1.000000e+00 : f32
    %249 = vector.broadcast %cst_64 : f32 to vector<2x256xf32>
    %250 = arith.addf %249, %248 : vector<2x256xf32>
    %251 = arith.divf %249, %250 : vector<2x256xf32>
    %252 = vector.extract_strided_slice %251 {offsets = [0, 0], sizes = [2, 128], strides = [1, 1]} : vector<2x256xf32> to vector<2x128xf32>
    %253 = vector.extract_strided_slice %251 {offsets = [0, 128], sizes = [2, 128], strides = [1, 1]} : vector<2x256xf32> to vector<2x128xf32>
    %cst_65 = arith.constant 1.000000e+00 : f32
    %254 = vector.broadcast %cst_65 : f32 to vector<2x128xf32>
    %255 = arith.subf %254, %252 : vector<2x128xf32>
    %256 = arith.mulf %252, %235 : vector<2x128xf32>
    %257 = vector.extract_strided_slice %242 {offsets = [0, 0], sizes = [2, 128], strides = [1, 1]} : vector<2x384xf32> to vector<2x128xf32>
    %258 = vector.extract_strided_slice %243 {offsets = [0, 0], sizes = [2, 128], strides = [1, 1]} : vector<2x384xf32> to vector<2x128xf32>
    %259 = arith.addf %258, %27 : vector<2x128xf32>
    %260 = arith.mulf %253, %259 : vector<2x128xf32>
    %261 = arith.addf %257, %260 : vector<2x128xf32>
    %262 = math.tanh %261 : vector<2x128xf32>
    %263 = arith.mulf %262, %255 : vector<2x128xf32>
    %264 = arith.addf %263, %256 : vector<2x128xf32>
    %265 = vector.extract_strided_slice %264 {offsets = [0, 0], sizes = [2, 32], strides = [1, 1]} : vector<2x128xf32> to vector<2x32xf32>
    %c14_66 = arith.constant 14 : index
    %c0_67 = arith.constant 0 : index
    %266 = vector.load %arg9[%c14_66, %c0_67] : memref<16x128xf32, #tpu.memory_space<vmem>>, vector<2x32xf32>
    tpu.vector_store %arg9[%c14_66, %c0_67], %265 {strides = array<i32>} : memref<16x128xf32, #tpu.memory_space<vmem>>, vector<2x32xf32>,
    %267 = vector.extract_strided_slice %264 {offsets = [0, 32], sizes = [2, 32], strides = [1, 1]} : vector<2x128xf32> to vector<2x32xf32>
    %c0_68 = arith.constant 0 : index
    %c32_69 = arith.constant 32 : index
    %268 = vector.load %arg9[%c0_68, %c32_69] : memref<16x128xf32, #tpu.memory_space<vmem>>, vector<2x32xf32>
    tpu.vector_store %arg9[%c0_68, %c32_69], %267 {strides = array<i32>} : memref<16x128xf32, #tpu.memory_space<vmem>>, vector<2x32xf32>,
    %c0_70 = arith.constant 0 : index
    %c0_71 = arith.constant 0 : index
    %269 = vector.load %arg9[%c0_70, %c0_71] : memref<16x128xf32, #tpu.memory_space<vmem>>, vector<16x128xf32>
    %c1 = arith.constant 1 : index
    %c0_72 = arith.constant 0 : index
    %c0_73 = arith.constant 0 : index
    %270 = vector.load %arg3[%c1, %c0_72, %c0_73] : memref<3x128x384xf32, #tpu.memory_space<vmem>>, vector<1x128x384xf32>
    %271 = vector.shape_cast %270 : vector<1x128x384xf32> to vector<128x384xf32>
    %c1_74 = arith.constant 1 : index
    %c0_75 = arith.constant 0 : index
    %c0_76 = arith.constant 0 : index
    %272 = vector.load %arg5[%c1_74, %c0_75, %c0_76] : memref<3x1x128xf32, #tpu.memory_space<vmem>>, vector<1x1x128xf32>
    %273 = vector.shape_cast %272 : vector<1x1x128xf32> to vector<1x128xf32>
    %274 = vector.shape_cast %273 : vector<1x128xf32> to vector<1x128xf32>
    %275 = vector.broadcast %274 : vector<1x128xf32> to vector<2x128xf32>
    %c1_77 = arith.constant 1 : index
    %c0_78 = arith.constant 0 : index
    %c0_79 = arith.constant 0 : index
    %276 = vector.load %arg2[%c1_77, %c0_78, %c0_79] : memref<3x128x384xf32, #tpu.memory_space<vmem>>, vector<1x128x384xf32>
    %277 = vector.shape_cast %276 : vector<1x128x384xf32> to vector<128x384xf32>
    %cst_80 = arith.constant dense<0.000000e+00> : vector<16x384xf32>
    %278 = tpu.matmul %269, %277, %cst_80 {dimension_numbers = #tpu.dot_dimension_numbers<[1], [0], [0], [1], [0, 0, 1, 1], [], []>} : vector<16x128xf32>, vector<128x384xf32>, vector<16x384xf32> -> vector<16x384xf32>
    %c1_81 = arith.constant 1 : index
    %c0_82 = arith.constant 0 : index
    %c0_83 = arith.constant 0 : index
    %279 = vector.load %arg4[%c1_81, %c0_82, %c0_83] : memref<3x1x384xf32, #tpu.memory_space<vmem>>, vector<1x1x384xf32>
    %280 = vector.shape_cast %279 : vector<1x1x384xf32> to vector<1x384xf32>
    %281 = vector.broadcast %280 : vector<1x384xf32> to vector<16x384xf32>
    %282 = arith.addf %278, %281 : vector<16x384xf32>
    %c1_84 = arith.constant 1 : index
    %c0_85 = arith.constant 0 : index
    %c0_86 = arith.constant 0 : index
    %283 = vector.load %arg1[%c1_84, %c0_85, %c0_86] : memref<3x2x128xf32, #tpu.memory_space<vmem>>, vector<1x2x128xf32>
    %284 = vector.shape_cast %283 : vector<1x2x128xf32> to vector<2x128xf32>
    %285 = vector.extract_strided_slice %282 {offsets = [0, 0], sizes = [2, 384], strides = [1, 1]} : vector<16x384xf32> to vector<2x384xf32>
    %286 = vector.extract_strided_slice %282 {offsets = [14, 0], sizes = [2, 384], strides = [1, 1]} : vector<16x384xf32> to vector<2x384xf32>
    %287 = arith.select %18, %285, %286 : vector<2x384xi1>, vector<2x384xf32>
    %cst_87 = arith.constant dense<0.000000e+00> : vector<2x384xf32>
    %288 = tpu.matmul %284, %271, %cst_87 {dimension_numbers = #tpu.dot_dimension_numbers<[1], [0], [0], [1], [0, 0, 1, 1], [], []>} : vector<2x128xf32>, vector<128x384xf32>, vector<2x384xf32> -> vector<2x384xf32>
    %289 = vector.extract_strided_slice %287 {offsets = [0, 128], sizes = [2, 256], strides = [1, 1]} : vector<2x384xf32> to vector<2x256xf32>
    %290 = vector.extract_strided_slice %288 {offsets = [0, 128], sizes = [2, 256], strides = [1, 1]} : vector<2x384xf32> to vector<2x256xf32>
    %291 = arith.addf %289, %290 : vector<2x256xf32>
    %292 = arith.negf %291 : vector<2x256xf32>
    %293 = math.exp %292 : vector<2x256xf32>
    %cst_88 = arith.constant 1.000000e+00 : f32
    %294 = vector.broadcast %cst_88 : f32 to vector<2x256xf32>
    %295 = arith.addf %294, %293 : vector<2x256xf32>
    %296 = arith.divf %294, %295 : vector<2x256xf32>
    %297 = vector.extract_strided_slice %296 {offsets = [0, 0], sizes = [2, 128], strides = [1, 1]} : vector<2x256xf32> to vector<2x128xf32>
    %298 = vector.extract_strided_slice %296 {offsets = [0, 128], sizes = [2, 128], strides = [1, 1]} : vector<2x256xf32> to vector<2x128xf32>
    %cst_89 = arith.constant 1.000000e+00 : f32
    %299 = vector.broadcast %cst_89 : f32 to vector<2x128xf32>
    %300 = arith.subf %299, %297 : vector<2x128xf32>
    %301 = arith.mulf %297, %284 : vector<2x128xf32>
    %302 = vector.extract_strided_slice %287 {offsets = [0, 0], sizes = [2, 128], strides = [1, 1]} : vector<2x384xf32> to vector<2x128xf32>
    %303 = vector.extract_strided_slice %288 {offsets = [0, 0], sizes = [2, 128], strides = [1, 1]} : vector<2x384xf32> to vector<2x128xf32>
    %304 = arith.addf %303, %275 : vector<2x128xf32>
    %305 = arith.mulf %298, %304 : vector<2x128xf32>
    %306 = arith.addf %302, %305 : vector<2x128xf32>
    %307 = math.tanh %306 : vector<2x128xf32>
    %308 = arith.mulf %307, %300 : vector<2x128xf32>
    %309 = arith.addf %308, %301 : vector<2x128xf32>
    %310 = vector.extract_strided_slice %309 {offsets = [0, 0], sizes = [2, 32], strides = [1, 1]} : vector<2x128xf32> to vector<2x32xf32>
    %c0_90 = arith.constant 0 : index
    %c0_91 = arith.constant 0 : index
    %311 = vector.load %arg9[%c0_90, %c0_91] : memref<16x128xf32, #tpu.memory_space<vmem>>, vector<2x32xf32>
    tpu.vector_store %arg9[%c0_90, %c0_91], %310 {strides = array<i32>} : memref<16x128xf32, #tpu.memory_space<vmem>>, vector<2x32xf32>,
    %312 = vector.extract_strided_slice %309 {offsets = [0, 32], sizes = [2, 32], strides = [1, 1]} : vector<2x128xf32> to vector<2x32xf32>
    %c14_92 = arith.constant 14 : index
    %c32_93 = arith.constant 32 : index
    %313 = vector.load %arg9[%c14_92, %c32_93] : memref<16x128xf32, #tpu.memory_space<vmem>>, vector<2x32xf32>
    tpu.vector_store %arg9[%c14_92, %c32_93], %312 {strides = array<i32>} : memref<16x128xf32, #tpu.memory_space<vmem>>, vector<2x32xf32>,
    %314 = vector.extract_strided_slice %282 {offsets = [2, 0], sizes = [2, 384], strides = [1, 1]} : vector<16x384xf32> to vector<2x384xf32>
    %315 = vector.extract_strided_slice %282 {offsets = [12, 0], sizes = [2, 384], strides = [1, 1]} : vector<16x384xf32> to vector<2x384xf32>
    %316 = arith.select %18, %314, %315 : vector<2x384xi1>, vector<2x384xf32>
    %cst_94 = arith.constant dense<0.000000e+00> : vector<2x384xf32>
    %317 = tpu.matmul %309, %271, %cst_94 {dimension_numbers = #tpu.dot_dimension_numbers<[1], [0], [0], [1], [0, 0, 1, 1], [], []>} : vector<2x128xf32>, vector<128x384xf32>, vector<2x384xf32> -> vector<2x384xf32>
    %318 = vector.extract_strided_slice %316 {offsets = [0, 128], sizes = [2, 256], strides = [1, 1]} : vector<2x384xf32> to vector<2x256xf32>
    %319 = vector.extract_strided_slice %317 {offsets = [0, 128], sizes = [2, 256], strides = [1, 1]} : vector<2x384xf32> to vector<2x256xf32>
    %320 = arith.addf %318, %319 : vector<2x256xf32>
    %321 = arith.negf %320 : vector<2x256xf32>
    %322 = math.exp %321 : vector<2x256xf32>
    %cst_95 = arith.constant 1.000000e+00 : f32
    %323 = vector.broadcast %cst_95 : f32 to vector<2x256xf32>
    %324 = arith.addf %323, %322 : vector<2x256xf32>
    %325 = arith.divf %323, %324 : vector<2x256xf32>
    %326 = vector.extract_strided_slice %325 {offsets = [0, 0], sizes = [2, 128], strides = [1, 1]} : vector<2x256xf32> to vector<2x128xf32>
    %327 = vector.extract_strided_slice %325 {offsets = [0, 128], sizes = [2, 128], strides = [1, 1]} : vector<2x256xf32> to vector<2x128xf32>
    %cst_96 = arith.constant 1.000000e+00 : f32
    %328 = vector.broadcast %cst_96 : f32 to vector<2x128xf32>
    %329 = arith.subf %328, %326 : vector<2x128xf32>
    %330 = arith.mulf %326, %309 : vector<2x128xf32>
    %331 = vector.extract_strided_slice %316 {offsets = [0, 0], sizes = [2, 128], strides = [1, 1]} : vector<2x384xf32> to vector<2x128xf32>
    %332 = vector.extract_strided_slice %317 {offsets = [0, 0], sizes = [2, 128], strides = [1, 1]} : vector<2x384xf32> to vector<2x128xf32>
    %333 = arith.addf %332, %275 : vector<2x128xf32>
    %334 = arith.mulf %327, %333 : vector<2x128xf32>
    %335 = arith.addf %331, %334 : vector<2x128xf32>
    %336 = math.tanh %335 : vector<2x128xf32>
    %337 = arith.mulf %336, %329 : vector<2x128xf32>
    %338 = arith.addf %337, %330 : vector<2x128xf32>
    %339 = vector.extract_strided_slice %338 {offsets = [0, 0], sizes = [2, 32], strides = [1, 1]} : vector<2x128xf32> to vector<2x32xf32>
    %c2_97 = arith.constant 2 : index
    %c0_98 = arith.constant 0 : index
    %340 = vector.load %arg9[%c2_97, %c0_98] : memref<16x128xf32, #tpu.memory_space<vmem>>, vector<2x32xf32>
    tpu.vector_store %arg9[%c2_97, %c0_98], %339 {strides = array<i32>} : memref<16x128xf32, #tpu.memory_space<vmem>>, vector<2x32xf32>,
    %341 = vector.extract_strided_slice %338 {offsets = [0, 32], sizes = [2, 32], strides = [1, 1]} : vector<2x128xf32> to vector<2x32xf32>
    %c12_99 = arith.constant 12 : index
    %c32_100 = arith.constant 32 : index
    %342 = vector.load %arg9[%c12_99, %c32_100] : memref<16x128xf32, #tpu.memory_space<vmem>>, vector<2x32xf32>
    tpu.vector_store %arg9[%c12_99, %c32_100], %341 {strides = array<i32>} : memref<16x128xf32, #tpu.memory_space<vmem>>, vector<2x32xf32>,
    %343 = vector.extract_strided_slice %282 {offsets = [4, 0], sizes = [2, 384], strides = [1, 1]} : vector<16x384xf32> to vector<2x384xf32>
    %344 = vector.extract_strided_slice %282 {offsets = [10, 0], sizes = [2, 384], strides = [1, 1]} : vector<16x384xf32> to vector<2x384xf32>
    %345 = arith.select %18, %343, %344 : vector<2x384xi1>, vector<2x384xf32>
    %cst_101 = arith.constant dense<0.000000e+00> : vector<2x384xf32>
    %346 = tpu.matmul %338, %271, %cst_101 {dimension_numbers = #tpu.dot_dimension_numbers<[1], [0], [0], [1], [0, 0, 1, 1], [], []>} : vector<2x128xf32>, vector<128x384xf32>, vector<2x384xf32> -> vector<2x384xf32>
    %347 = vector.extract_strided_slice %345 {offsets = [0, 128], sizes = [2, 256], strides = [1, 1]} : vector<2x384xf32> to vector<2x256xf32>
    %348 = vector.extract_strided_slice %346 {offsets = [0, 128], sizes = [2, 256], strides = [1, 1]} : vector<2x384xf32> to vector<2x256xf32>
    %349 = arith.addf %347, %348 : vector<2x256xf32>
    %350 = arith.negf %349 : vector<2x256xf32>
    %351 = math.exp %350 : vector<2x256xf32>
    %cst_102 = arith.constant 1.000000e+00 : f32
    %352 = vector.broadcast %cst_102 : f32 to vector<2x256xf32>
    %353 = arith.addf %352, %351 : vector<2x256xf32>
    %354 = arith.divf %352, %353 : vector<2x256xf32>
    %355 = vector.extract_strided_slice %354 {offsets = [0, 0], sizes = [2, 128], strides = [1, 1]} : vector<2x256xf32> to vector<2x128xf32>
    %356 = vector.extract_strided_slice %354 {offsets = [0, 128], sizes = [2, 128], strides = [1, 1]} : vector<2x256xf32> to vector<2x128xf32>
    %cst_103 = arith.constant 1.000000e+00 : f32
    %357 = vector.broadcast %cst_103 : f32 to vector<2x128xf32>
    %358 = arith.subf %357, %355 : vector<2x128xf32>
    %359 = arith.mulf %355, %338 : vector<2x128xf32>
    %360 = vector.extract_strided_slice %345 {offsets = [0, 0], sizes = [2, 128], strides = [1, 1]} : vector<2x384xf32> to vector<2x128xf32>
    %361 = vector.extract_strided_slice %346 {offsets = [0, 0], sizes = [2, 128], strides = [1, 1]} : vector<2x384xf32> to vector<2x128xf32>
    %362 = arith.addf %361, %275 : vector<2x128xf32>
    %363 = arith.mulf %356, %362 : vector<2x128xf32>
    %364 = arith.addf %360, %363 : vector<2x128xf32>
    %365 = math.tanh %364 : vector<2x128xf32>
    %366 = arith.mulf %365, %358 : vector<2x128xf32>
    %367 = arith.addf %366, %359 : vector<2x128xf32>
    %368 = vector.extract_strided_slice %367 {offsets = [0, 0], sizes = [2, 32], strides = [1, 1]} : vector<2x128xf32> to vector<2x32xf32>
    %c4_104 = arith.constant 4 : index
    %c0_105 = arith.constant 0 : index
    %369 = vector.load %arg9[%c4_104, %c0_105] : memref<16x128xf32, #tpu.memory_space<vmem>>, vector<2x32xf32>
    tpu.vector_store %arg9[%c4_104, %c0_105], %368 {strides = array<i32>} : memref<16x128xf32, #tpu.memory_space<vmem>>, vector<2x32xf32>,
    %370 = vector.extract_strided_slice %367 {offsets = [0, 32], sizes = [2, 32], strides = [1, 1]} : vector<2x128xf32> to vector<2x32xf32>
    %c10_106 = arith.constant 10 : index
    %c32_107 = arith.constant 32 : index
    %371 = vector.load %arg9[%c10_106, %c32_107] : memref<16x128xf32, #tpu.memory_space<vmem>>, vector<2x32xf32>
    tpu.vector_store %arg9[%c10_106, %c32_107], %370 {strides = array<i32>} : memref<16x128xf32, #tpu.memory_space<vmem>>, vector<2x32xf32>,
    %372 = vector.extract_strided_slice %282 {offsets = [6, 0], sizes = [2, 384], strides = [1, 1]} : vector<16x384xf32> to vector<2x384xf32>
    %373 = vector.extract_strided_slice %282 {offsets = [8, 0], sizes = [2, 384], strides = [1, 1]} : vector<16x384xf32> to vector<2x384xf32>
    %374 = arith.select %18, %372, %373 : vector<2x384xi1>, vector<2x384xf32>
    %cst_108 = arith.constant dense<0.000000e+00> : vector<2x384xf32>
    %375 = tpu.matmul %367, %271, %cst_108 {dimension_numbers = #tpu.dot_dimension_numbers<[1], [0], [0], [1], [0, 0, 1, 1], [], []>} : vector<2x128xf32>, vector<128x384xf32>, vector<2x384xf32> -> vector<2x384xf32>
    %376 = vector.extract_strided_slice %374 {offsets = [0, 128], sizes = [2, 256], strides = [1, 1]} : vector<2x384xf32> to vector<2x256xf32>
    %377 = vector.extract_strided_slice %375 {offsets = [0, 128], sizes = [2, 256], strides = [1, 1]} : vector<2x384xf32> to vector<2x256xf32>
    %378 = arith.addf %376, %377 : vector<2x256xf32>
    %379 = arith.negf %378 : vector<2x256xf32>
    %380 = math.exp %379 : vector<2x256xf32>
    %cst_109 = arith.constant 1.000000e+00 : f32
    %381 = vector.broadcast %cst_109 : f32 to vector<2x256xf32>
    %382 = arith.addf %381, %380 : vector<2x256xf32>
    %383 = arith.divf %381, %382 : vector<2x256xf32>
    %384 = vector.extract_strided_slice %383 {offsets = [0, 0], sizes = [2, 128], strides = [1, 1]} : vector<2x256xf32> to vector<2x128xf32>
    %385 = vector.extract_strided_slice %383 {offsets = [0, 128], sizes = [2, 128], strides = [1, 1]} : vector<2x256xf32> to vector<2x128xf32>
    %cst_110 = arith.constant 1.000000e+00 : f32
    %386 = vector.broadcast %cst_110 : f32 to vector<2x128xf32>
    %387 = arith.subf %386, %384 : vector<2x128xf32>
    %388 = arith.mulf %384, %367 : vector<2x128xf32>
    %389 = vector.extract_strided_slice %374 {offsets = [0, 0], sizes = [2, 128], strides = [1, 1]} : vector<2x384xf32> to vector<2x128xf32>
    %390 = vector.extract_strided_slice %375 {offsets = [0, 0], sizes = [2, 128], strides = [1, 1]} : vector<2x384xf32> to vector<2x128xf32>
    %391 = arith.addf %390, %275 : vector<2x128xf32>
    %392 = arith.mulf %385, %391 : vector<2x128xf32>
    %393 = arith.addf %389, %392 : vector<2x128xf32>
    %394 = math.tanh %393 : vector<2x128xf32>
    %395 = arith.mulf %394, %387 : vector<2x128xf32>
    %396 = arith.addf %395, %388 : vector<2x128xf32>
    %397 = vector.extract_strided_slice %396 {offsets = [0, 0], sizes = [2, 32], strides = [1, 1]} : vector<2x128xf32> to vector<2x32xf32>
    %c6_111 = arith.constant 6 : index
    %c0_112 = arith.constant 0 : index
    %398 = vector.load %arg9[%c6_111, %c0_112] : memref<16x128xf32, #tpu.memory_space<vmem>>, vector<2x32xf32>
    tpu.vector_store %arg9[%c6_111, %c0_112], %397 {strides = array<i32>} : memref<16x128xf32, #tpu.memory_space<vmem>>, vector<2x32xf32>,
    %399 = vector.extract_strided_slice %396 {offsets = [0, 32], sizes = [2, 32], strides = [1, 1]} : vector<2x128xf32> to vector<2x32xf32>
    %c8_113 = arith.constant 8 : index
    %c32_114 = arith.constant 32 : index
    %400 = vector.load %arg9[%c8_113, %c32_114] : memref<16x128xf32, #tpu.memory_space<vmem>>, vector<2x32xf32>
    tpu.vector_store %arg9[%c8_113, %c32_114], %399 {strides = array<i32>} : memref<16x128xf32, #tpu.memory_space<vmem>>, vector<2x32xf32>,
    %401 = vector.extract_strided_slice %282 {offsets = [8, 0], sizes = [2, 384], strides = [1, 1]} : vector<16x384xf32> to vector<2x384xf32>
    %402 = vector.extract_strided_slice %282 {offsets = [6, 0], sizes = [2, 384], strides = [1, 1]} : vector<16x384xf32> to vector<2x384xf32>
    %403 = arith.select %18, %401, %402 : vector<2x384xi1>, vector<2x384xf32>
    %cst_115 = arith.constant dense<0.000000e+00> : vector<2x384xf32>
    %404 = tpu.matmul %396, %271, %cst_115 {dimension_numbers = #tpu.dot_dimension_numbers<[1], [0], [0], [1], [0, 0, 1, 1], [], []>} : vector<2x128xf32>, vector<128x384xf32>, vector<2x384xf32> -> vector<2x384xf32>
    %405 = vector.extract_strided_slice %403 {offsets = [0, 128], sizes = [2, 256], strides = [1, 1]} : vector<2x384xf32> to vector<2x256xf32>
    %406 = vector.extract_strided_slice %404 {offsets = [0, 128], sizes = [2, 256], strides = [1, 1]} : vector<2x384xf32> to vector<2x256xf32>
    %407 = arith.addf %405, %406 : vector<2x256xf32>
    %408 = arith.negf %407 : vector<2x256xf32>
    %409 = math.exp %408 : vector<2x256xf32>
    %cst_116 = arith.constant 1.000000e+00 : f32
    %410 = vector.broadcast %cst_116 : f32 to vector<2x256xf32>
    %411 = arith.addf %410, %409 : vector<2x256xf32>
    %412 = arith.divf %410, %411 : vector<2x256xf32>
    %413 = vector.extract_strided_slice %412 {offsets = [0, 0], sizes = [2, 128], strides = [1, 1]} : vector<2x256xf32> to vector<2x128xf32>
    %414 = vector.extract_strided_slice %412 {offsets = [0, 128], sizes = [2, 128], strides = [1, 1]} : vector<2x256xf32> to vector<2x128xf32>
    %cst_117 = arith.constant 1.000000e+00 : f32
    %415 = vector.broadcast %cst_117 : f32 to vector<2x128xf32>
    %416 = arith.subf %415, %413 : vector<2x128xf32>
    %417 = arith.mulf %413, %396 : vector<2x128xf32>
    %418 = vector.extract_strided_slice %403 {offsets = [0, 0], sizes = [2, 128], strides = [1, 1]} : vector<2x384xf32> to vector<2x128xf32>
    %419 = vector.extract_strided_slice %404 {offsets = [0, 0], sizes = [2, 128], strides = [1, 1]} : vector<2x384xf32> to vector<2x128xf32>
    %420 = arith.addf %419, %275 : vector<2x128xf32>
    %421 = arith.mulf %414, %420 : vector<2x128xf32>
    %422 = arith.addf %418, %421 : vector<2x128xf32>
    %423 = math.tanh %422 : vector<2x128xf32>
    %424 = arith.mulf %423, %416 : vector<2x128xf32>
    %425 = arith.addf %424, %417 : vector<2x128xf32>
    %426 = vector.extract_strided_slice %425 {offsets = [0, 0], sizes = [2, 32], strides = [1, 1]} : vector<2x128xf32> to vector<2x32xf32>
    %c8_118 = arith.constant 8 : index
    %c0_119 = arith.constant 0 : index
    %427 = vector.load %arg9[%c8_118, %c0_119] : memref<16x128xf32, #tpu.memory_space<vmem>>, vector<2x32xf32>
    tpu.vector_store %arg9[%c8_118, %c0_119], %426 {strides = array<i32>} : memref<16x128xf32, #tpu.memory_space<vmem>>, vector<2x32xf32>,
    %428 = vector.extract_strided_slice %425 {offsets = [0, 32], sizes = [2, 32], strides = [1, 1]} : vector<2x128xf32> to vector<2x32xf32>
    %c6_120 = arith.constant 6 : index
    %c32_121 = arith.constant 32 : index
    %429 = vector.load %arg9[%c6_120, %c32_121] : memref<16x128xf32, #tpu.memory_space<vmem>>, vector<2x32xf32>
    tpu.vector_store %arg9[%c6_120, %c32_121], %428 {strides = array<i32>} : memref<16x128xf32, #tpu.memory_space<vmem>>, vector<2x32xf32>,
    %430 = vector.extract_strided_slice %282 {offsets = [10, 0], sizes = [2, 384], strides = [1, 1]} : vector<16x384xf32> to vector<2x384xf32>
    %431 = vector.extract_strided_slice %282 {offsets = [4, 0], sizes = [2, 384], strides = [1, 1]} : vector<16x384xf32> to vector<2x384xf32>
    %432 = arith.select %18, %430, %431 : vector<2x384xi1>, vector<2x384xf32>
    %cst_122 = arith.constant dense<0.000000e+00> : vector<2x384xf32>
    %433 = tpu.matmul %425, %271, %cst_122 {dimension_numbers = #tpu.dot_dimension_numbers<[1], [0], [0], [1], [0, 0, 1, 1], [], []>} : vector<2x128xf32>, vector<128x384xf32>, vector<2x384xf32> -> vector<2x384xf32>
    %434 = vector.extract_strided_slice %432 {offsets = [0, 128], sizes = [2, 256], strides = [1, 1]} : vector<2x384xf32> to vector<2x256xf32>
    %435 = vector.extract_strided_slice %433 {offsets = [0, 128], sizes = [2, 256], strides = [1, 1]} : vector<2x384xf32> to vector<2x256xf32>
    %436 = arith.addf %434, %435 : vector<2x256xf32>
    %437 = arith.negf %436 : vector<2x256xf32>
    %438 = math.exp %437 : vector<2x256xf32>
    %cst_123 = arith.constant 1.000000e+00 : f32
    %439 = vector.broadcast %cst_123 : f32 to vector<2x256xf32>
    %440 = arith.addf %439, %438 : vector<2x256xf32>
    %441 = arith.divf %439, %440 : vector<2x256xf32>
    %442 = vector.extract_strided_slice %441 {offsets = [0, 0], sizes = [2, 128], strides = [1, 1]} : vector<2x256xf32> to vector<2x128xf32>
    %443 = vector.extract_strided_slice %441 {offsets = [0, 128], sizes = [2, 128], strides = [1, 1]} : vector<2x256xf32> to vector<2x128xf32>
    %cst_124 = arith.constant 1.000000e+00 : f32
    %444 = vector.broadcast %cst_124 : f32 to vector<2x128xf32>
    %445 = arith.subf %444, %442 : vector<2x128xf32>
    %446 = arith.mulf %442, %425 : vector<2x128xf32>
    %447 = vector.extract_strided_slice %432 {offsets = [0, 0], sizes = [2, 128], strides = [1, 1]} : vector<2x384xf32> to vector<2x128xf32>
    %448 = vector.extract_strided_slice %433 {offsets = [0, 0], sizes = [2, 128], strides = [1, 1]} : vector<2x384xf32> to vector<2x128xf32>
    %449 = arith.addf %448, %275 : vector<2x128xf32>
    %450 = arith.mulf %443, %449 : vector<2x128xf32>
    %451 = arith.addf %447, %450 : vector<2x128xf32>
    %452 = math.tanh %451 : vector<2x128xf32>
    %453 = arith.mulf %452, %445 : vector<2x128xf32>
    %454 = arith.addf %453, %446 : vector<2x128xf32>
    %455 = vector.extract_strided_slice %454 {offsets = [0, 0], sizes = [2, 32], strides = [1, 1]} : vector<2x128xf32> to vector<2x32xf32>
    %c10_125 = arith.constant 10 : index
    %c0_126 = arith.constant 0 : index
    %456 = vector.load %arg9[%c10_125, %c0_126] : memref<16x128xf32, #tpu.memory_space<vmem>>, vector<2x32xf32>
    tpu.vector_store %arg9[%c10_125, %c0_126], %455 {strides = array<i32>} : memref<16x128xf32, #tpu.memory_space<vmem>>, vector<2x32xf32>,
    %457 = vector.extract_strided_slice %454 {offsets = [0, 32], sizes = [2, 32], strides = [1, 1]} : vector<2x128xf32> to vector<2x32xf32>
    %c4_127 = arith.constant 4 : index
    %c32_128 = arith.constant 32 : index
    %458 = vector.load %arg9[%c4_127, %c32_128] : memref<16x128xf32, #tpu.memory_space<vmem>>, vector<2x32xf32>
    tpu.vector_store %arg9[%c4_127, %c32_128], %457 {strides = array<i32>} : memref<16x128xf32, #tpu.memory_space<vmem>>, vector<2x32xf32>,
    %459 = vector.extract_strided_slice %282 {offsets = [12, 0], sizes = [2, 384], strides = [1, 1]} : vector<16x384xf32> to vector<2x384xf32>
    %460 = vector.extract_strided_slice %282 {offsets = [2, 0], sizes = [2, 384], strides = [1, 1]} : vector<16x384xf32> to vector<2x384xf32>
    %461 = arith.select %18, %459, %460 : vector<2x384xi1>, vector<2x384xf32>
    %cst_129 = arith.constant dense<0.000000e+00> : vector<2x384xf32>
    %462 = tpu.matmul %454, %271, %cst_129 {dimension_numbers = #tpu.dot_dimension_numbers<[1], [0], [0], [1], [0, 0, 1, 1], [], []>} : vector<2x128xf32>, vector<128x384xf32>, vector<2x384xf32> -> vector<2x384xf32>
    %463 = vector.extract_strided_slice %461 {offsets = [0, 128], sizes = [2, 256], strides = [1, 1]} : vector<2x384xf32> to vector<2x256xf32>
    %464 = vector.extract_strided_slice %462 {offsets = [0, 128], sizes = [2, 256], strides = [1, 1]} : vector<2x384xf32> to vector<2x256xf32>
    %465 = arith.addf %463, %464 : vector<2x256xf32>
    %466 = arith.negf %465 : vector<2x256xf32>
    %467 = math.exp %466 : vector<2x256xf32>
    %cst_130 = arith.constant 1.000000e+00 : f32
    %468 = vector.broadcast %cst_130 : f32 to vector<2x256xf32>
    %469 = arith.addf %468, %467 : vector<2x256xf32>
    %470 = arith.divf %468, %469 : vector<2x256xf32>
    %471 = vector.extract_strided_slice %470 {offsets = [0, 0], sizes = [2, 128], strides = [1, 1]} : vector<2x256xf32> to vector<2x128xf32>
    %472 = vector.extract_strided_slice %470 {offsets = [0, 128], sizes = [2, 128], strides = [1, 1]} : vector<2x256xf32> to vector<2x128xf32>
    %cst_131 = arith.constant 1.000000e+00 : f32
    %473 = vector.broadcast %cst_131 : f32 to vector<2x128xf32>
    %474 = arith.subf %473, %471 : vector<2x128xf32>
    %475 = arith.mulf %471, %454 : vector<2x128xf32>
    %476 = vector.extract_strided_slice %461 {offsets = [0, 0], sizes = [2, 128], strides = [1, 1]} : vector<2x384xf32> to vector<2x128xf32>
    %477 = vector.extract_strided_slice %462 {offsets = [0, 0], sizes = [2, 128], strides = [1, 1]} : vector<2x384xf32> to vector<2x128xf32>
    %478 = arith.addf %477, %275 : vector<2x128xf32>
    %479 = arith.mulf %472, %478 : vector<2x128xf32>
    %480 = arith.addf %476, %479 : vector<2x128xf32>
    %481 = math.tanh %480 : vector<2x128xf32>
    %482 = arith.mulf %481, %474 : vector<2x128xf32>
    %483 = arith.addf %482, %475 : vector<2x128xf32>
    %484 = vector.extract_strided_slice %483 {offsets = [0, 0], sizes = [2, 32], strides = [1, 1]} : vector<2x128xf32> to vector<2x32xf32>
    %c12_132 = arith.constant 12 : index
    %c0_133 = arith.constant 0 : index
    %485 = vector.load %arg9[%c12_132, %c0_133] : memref<16x128xf32, #tpu.memory_space<vmem>>, vector<2x32xf32>
    tpu.vector_store %arg9[%c12_132, %c0_133], %484 {strides = array<i32>} : memref<16x128xf32, #tpu.memory_space<vmem>>, vector<2x32xf32>,
    %486 = vector.extract_strided_slice %483 {offsets = [0, 32], sizes = [2, 32], strides = [1, 1]} : vector<2x128xf32> to vector<2x32xf32>
    %c2_134 = arith.constant 2 : index
    %c32_135 = arith.constant 32 : index
    %487 = vector.load %arg9[%c2_134, %c32_135] : memref<16x128xf32, #tpu.memory_space<vmem>>, vector<2x32xf32>
    tpu.vector_store %arg9[%c2_134, %c32_135], %486 {strides = array<i32>} : memref<16x128xf32, #tpu.memory_space<vmem>>, vector<2x32xf32>,
    %488 = vector.extract_strided_slice %282 {offsets = [14, 0], sizes = [2, 384], strides = [1, 1]} : vector<16x384xf32> to vector<2x384xf32>
    %489 = vector.extract_strided_slice %282 {offsets = [0, 0], sizes = [2, 384], strides = [1, 1]} : vector<16x384xf32> to vector<2x384xf32>
    %490 = arith.select %18, %488, %489 : vector<2x384xi1>, vector<2x384xf32>
    %cst_136 = arith.constant dense<0.000000e+00> : vector<2x384xf32>
    %491 = tpu.matmul %483, %271, %cst_136 {dimension_numbers = #tpu.dot_dimension_numbers<[1], [0], [0], [1], [0, 0, 1, 1], [], []>} : vector<2x128xf32>, vector<128x384xf32>, vector<2x384xf32> -> vector<2x384xf32>
    %492 = vector.extract_strided_slice %490 {offsets = [0, 128], sizes = [2, 256], strides = [1, 1]} : vector<2x384xf32> to vector<2x256xf32>
    %493 = vector.extract_strided_slice %491 {offsets = [0, 128], sizes = [2, 256], strides = [1, 1]} : vector<2x384xf32> to vector<2x256xf32>
    %494 = arith.addf %492, %493 : vector<2x256xf32>
    %495 = arith.negf %494 : vector<2x256xf32>
    %496 = math.exp %495 : vector<2x256xf32>
    %cst_137 = arith.constant 1.000000e+00 : f32
    %497 = vector.broadcast %cst_137 : f32 to vector<2x256xf32>
    %498 = arith.addf %497, %496 : vector<2x256xf32>
    %499 = arith.divf %497, %498 : vector<2x256xf32>
    %500 = vector.extract_strided_slice %499 {offsets = [0, 0], sizes = [2, 128], strides = [1, 1]} : vector<2x256xf32> to vector<2x128xf32>
    %501 = vector.extract_strided_slice %499 {offsets = [0, 128], sizes = [2, 128], strides = [1, 1]} : vector<2x256xf32> to vector<2x128xf32>
    %cst_138 = arith.constant 1.000000e+00 : f32
    %502 = vector.broadcast %cst_138 : f32 to vector<2x128xf32>
    %503 = arith.subf %502, %500 : vector<2x128xf32>
    %504 = arith.mulf %500, %483 : vector<2x128xf32>
    %505 = vector.extract_strided_slice %490 {offsets = [0, 0], sizes = [2, 128], strides = [1, 1]} : vector<2x384xf32> to vector<2x128xf32>
    %506 = vector.extract_strided_slice %491 {offsets = [0, 0], sizes = [2, 128], strides = [1, 1]} : vector<2x384xf32> to vector<2x128xf32>
    %507 = arith.addf %506, %275 : vector<2x128xf32>
    %508 = arith.mulf %501, %507 : vector<2x128xf32>
    %509 = arith.addf %505, %508 : vector<2x128xf32>
    %510 = math.tanh %509 : vector<2x128xf32>
    %511 = arith.mulf %510, %503 : vector<2x128xf32>
    %512 = arith.addf %511, %504 : vector<2x128xf32>
    %513 = vector.extract_strided_slice %512 {offsets = [0, 0], sizes = [2, 32], strides = [1, 1]} : vector<2x128xf32> to vector<2x32xf32>
    %c14_139 = arith.constant 14 : index
    %c0_140 = arith.constant 0 : index
    %514 = vector.load %arg9[%c14_139, %c0_140] : memref<16x128xf32, #tpu.memory_space<vmem>>, vector<2x32xf32>
    tpu.vector_store %arg9[%c14_139, %c0_140], %513 {strides = array<i32>} : memref<16x128xf32, #tpu.memory_space<vmem>>, vector<2x32xf32>,
    %515 = vector.extract_strided_slice %512 {offsets = [0, 32], sizes = [2, 32], strides = [1, 1]} : vector<2x128xf32> to vector<2x32xf32>
    %c0_141 = arith.constant 0 : index
    %c32_142 = arith.constant 32 : index
    %516 = vector.load %arg9[%c0_141, %c32_142] : memref<16x128xf32, #tpu.memory_space<vmem>>, vector<2x32xf32>
    tpu.vector_store %arg9[%c0_141, %c32_142], %515 {strides = array<i32>} : memref<16x128xf32, #tpu.memory_space<vmem>>, vector<2x32xf32>,
    %c0_143 = arith.constant 0 : index
    %c0_144 = arith.constant 0 : index
    %517 = vector.load %arg9[%c0_143, %c0_144] : memref<16x128xf32, #tpu.memory_space<vmem>>, vector<16x128xf32>
    %c2_145 = arith.constant 2 : index
    %c0_146 = arith.constant 0 : index
    %c0_147 = arith.constant 0 : index
    %518 = vector.load %arg3[%c2_145, %c0_146, %c0_147] : memref<3x128x384xf32, #tpu.memory_space<vmem>>, vector<1x128x384xf32>
    %519 = vector.shape_cast %518 : vector<1x128x384xf32> to vector<128x384xf32>
    %c2_148 = arith.constant 2 : index
    %c0_149 = arith.constant 0 : index
    %c0_150 = arith.constant 0 : index
    %520 = vector.load %arg5[%c2_148, %c0_149, %c0_150] : memref<3x1x128xf32, #tpu.memory_space<vmem>>, vector<1x1x128xf32>
    %521 = vector.shape_cast %520 : vector<1x1x128xf32> to vector<1x128xf32>
    %522 = vector.shape_cast %521 : vector<1x128xf32> to vector<1x128xf32>
    %523 = vector.broadcast %522 : vector<1x128xf32> to vector<2x128xf32>
    %c2_151 = arith.constant 2 : index
    %c0_152 = arith.constant 0 : index
    %c0_153 = arith.constant 0 : index
    %524 = vector.load %arg2[%c2_151, %c0_152, %c0_153] : memref<3x128x384xf32, #tpu.memory_space<vmem>>, vector<1x128x384xf32>
    %525 = vector.shape_cast %524 : vector<1x128x384xf32> to vector<128x384xf32>
    %cst_154 = arith.constant dense<0.000000e+00> : vector<16x384xf32>
    %526 = tpu.matmul %517, %525, %cst_154 {dimension_numbers = #tpu.dot_dimension_numbers<[1], [0], [0], [1], [0, 0, 1, 1], [], []>} : vector<16x128xf32>, vector<128x384xf32>, vector<16x384xf32> -> vector<16x384xf32>
    %c2_155 = arith.constant 2 : index
    %c0_156 = arith.constant 0 : index
    %c0_157 = arith.constant 0 : index
    %527 = vector.load %arg4[%c2_155, %c0_156, %c0_157] : memref<3x1x384xf32, #tpu.memory_space<vmem>>, vector<1x1x384xf32>
    %528 = vector.shape_cast %527 : vector<1x1x384xf32> to vector<1x384xf32>
    %529 = vector.broadcast %528 : vector<1x384xf32> to vector<16x384xf32>
    %530 = arith.addf %526, %529 : vector<16x384xf32>
    %c2_158 = arith.constant 2 : index
    %c0_159 = arith.constant 0 : index
    %c0_160 = arith.constant 0 : index
    %531 = vector.load %arg1[%c2_158, %c0_159, %c0_160] : memref<3x2x128xf32, #tpu.memory_space<vmem>>, vector<1x2x128xf32>
    %532 = vector.shape_cast %531 : vector<1x2x128xf32> to vector<2x128xf32>
    %533 = vector.extract_strided_slice %530 {offsets = [0, 0], sizes = [2, 384], strides = [1, 1]} : vector<16x384xf32> to vector<2x384xf32>
    %534 = vector.extract_strided_slice %530 {offsets = [14, 0], sizes = [2, 384], strides = [1, 1]} : vector<16x384xf32> to vector<2x384xf32>
    %535 = arith.select %18, %533, %534 : vector<2x384xi1>, vector<2x384xf32>
    %cst_161 = arith.constant dense<0.000000e+00> : vector<2x384xf32>
    %536 = tpu.matmul %532, %519, %cst_161 {dimension_numbers = #tpu.dot_dimension_numbers<[1], [0], [0], [1], [0, 0, 1, 1], [], []>} : vector<2x128xf32>, vector<128x384xf32>, vector<2x384xf32> -> vector<2x384xf32>
    %537 = vector.extract_strided_slice %535 {offsets = [0, 128], sizes = [2, 256], strides = [1, 1]} : vector<2x384xf32> to vector<2x256xf32>
    %538 = vector.extract_strided_slice %536 {offsets = [0, 128], sizes = [2, 256], strides = [1, 1]} : vector<2x384xf32> to vector<2x256xf32>
    %539 = arith.addf %537, %538 : vector<2x256xf32>
    %540 = arith.negf %539 : vector<2x256xf32>
    %541 = math.exp %540 : vector<2x256xf32>
    %cst_162 = arith.constant 1.000000e+00 : f32
    %542 = vector.broadcast %cst_162 : f32 to vector<2x256xf32>
    %543 = arith.addf %542, %541 : vector<2x256xf32>
    %544 = arith.divf %542, %543 : vector<2x256xf32>
    %545 = vector.extract_strided_slice %544 {offsets = [0, 0], sizes = [2, 128], strides = [1, 1]} : vector<2x256xf32> to vector<2x128xf32>
    %546 = vector.extract_strided_slice %544 {offsets = [0, 128], sizes = [2, 128], strides = [1, 1]} : vector<2x256xf32> to vector<2x128xf32>
    %cst_163 = arith.constant 1.000000e+00 : f32
    %547 = vector.broadcast %cst_163 : f32 to vector<2x128xf32>
    %548 = arith.subf %547, %545 : vector<2x128xf32>
    %549 = arith.mulf %545, %532 : vector<2x128xf32>
    %550 = vector.extract_strided_slice %535 {offsets = [0, 0], sizes = [2, 128], strides = [1, 1]} : vector<2x384xf32> to vector<2x128xf32>
    %551 = vector.extract_strided_slice %536 {offsets = [0, 0], sizes = [2, 128], strides = [1, 1]} : vector<2x384xf32> to vector<2x128xf32>
    %552 = arith.addf %551, %523 : vector<2x128xf32>
    %553 = arith.mulf %546, %552 : vector<2x128xf32>
    %554 = arith.addf %550, %553 : vector<2x128xf32>
    %555 = math.tanh %554 : vector<2x128xf32>
    %556 = arith.mulf %555, %548 : vector<2x128xf32>
    %557 = arith.addf %556, %549 : vector<2x128xf32>
    %558 = vector.extract_strided_slice %557 {offsets = [0, 0], sizes = [2, 32], strides = [1, 1]} : vector<2x128xf32> to vector<2x32xf32>
    %c0_164 = arith.constant 0 : index
    %c0_165 = arith.constant 0 : index
    %559 = vector.load %arg9[%c0_164, %c0_165] : memref<16x128xf32, #tpu.memory_space<vmem>>, vector<2x32xf32>
    tpu.vector_store %arg9[%c0_164, %c0_165], %558 {strides = array<i32>} : memref<16x128xf32, #tpu.memory_space<vmem>>, vector<2x32xf32>,
    %560 = vector.extract_strided_slice %557 {offsets = [0, 32], sizes = [2, 32], strides = [1, 1]} : vector<2x128xf32> to vector<2x32xf32>
    %c14_166 = arith.constant 14 : index
    %c32_167 = arith.constant 32 : index
    %561 = vector.load %arg9[%c14_166, %c32_167] : memref<16x128xf32, #tpu.memory_space<vmem>>, vector<2x32xf32>
    tpu.vector_store %arg9[%c14_166, %c32_167], %560 {strides = array<i32>} : memref<16x128xf32, #tpu.memory_space<vmem>>, vector<2x32xf32>,
    %562 = vector.extract_strided_slice %530 {offsets = [2, 0], sizes = [2, 384], strides = [1, 1]} : vector<16x384xf32> to vector<2x384xf32>
    %563 = vector.extract_strided_slice %530 {offsets = [12, 0], sizes = [2, 384], strides = [1, 1]} : vector<16x384xf32> to vector<2x384xf32>
    %564 = arith.select %18, %562, %563 : vector<2x384xi1>, vector<2x384xf32>
    %cst_168 = arith.constant dense<0.000000e+00> : vector<2x384xf32>
    %565 = tpu.matmul %557, %519, %cst_168 {dimension_numbers = #tpu.dot_dimension_numbers<[1], [0], [0], [1], [0, 0, 1, 1], [], []>} : vector<2x128xf32>, vector<128x384xf32>, vector<2x384xf32> -> vector<2x384xf32>
    %566 = vector.extract_strided_slice %564 {offsets = [0, 128], sizes = [2, 256], strides = [1, 1]} : vector<2x384xf32> to vector<2x256xf32>
    %567 = vector.extract_strided_slice %565 {offsets = [0, 128], sizes = [2, 256], strides = [1, 1]} : vector<2x384xf32> to vector<2x256xf32>
    %568 = arith.addf %566, %567 : vector<2x256xf32>
    %569 = arith.negf %568 : vector<2x256xf32>
    %570 = math.exp %569 : vector<2x256xf32>
    %cst_169 = arith.constant 1.000000e+00 : f32
    %571 = vector.broadcast %cst_169 : f32 to vector<2x256xf32>
    %572 = arith.addf %571, %570 : vector<2x256xf32>
    %573 = arith.divf %571, %572 : vector<2x256xf32>
    %574 = vector.extract_strided_slice %573 {offsets = [0, 0], sizes = [2, 128], strides = [1, 1]} : vector<2x256xf32> to vector<2x128xf32>
    %575 = vector.extract_strided_slice %573 {offsets = [0, 128], sizes = [2, 128], strides = [1, 1]} : vector<2x256xf32> to vector<2x128xf32>
    %cst_170 = arith.constant 1.000000e+00 : f32
    %576 = vector.broadcast %cst_170 : f32 to vector<2x128xf32>
    %577 = arith.subf %576, %574 : vector<2x128xf32>
    %578 = arith.mulf %574, %557 : vector<2x128xf32>
    %579 = vector.extract_strided_slice %564 {offsets = [0, 0], sizes = [2, 128], strides = [1, 1]} : vector<2x384xf32> to vector<2x128xf32>
    %580 = vector.extract_strided_slice %565 {offsets = [0, 0], sizes = [2, 128], strides = [1, 1]} : vector<2x384xf32> to vector<2x128xf32>
    %581 = arith.addf %580, %523 : vector<2x128xf32>
    %582 = arith.mulf %575, %581 : vector<2x128xf32>
    %583 = arith.addf %579, %582 : vector<2x128xf32>
    %584 = math.tanh %583 : vector<2x128xf32>
    %585 = arith.mulf %584, %577 : vector<2x128xf32>
    %586 = arith.addf %585, %578 : vector<2x128xf32>
    %587 = vector.extract_strided_slice %586 {offsets = [0, 0], sizes = [2, 32], strides = [1, 1]} : vector<2x128xf32> to vector<2x32xf32>
    %c2_171 = arith.constant 2 : index
    %c0_172 = arith.constant 0 : index
    %588 = vector.load %arg9[%c2_171, %c0_172] : memref<16x128xf32, #tpu.memory_space<vmem>>, vector<2x32xf32>
    tpu.vector_store %arg9[%c2_171, %c0_172], %587 {strides = array<i32>} : memref<16x128xf32, #tpu.memory_space<vmem>>, vector<2x32xf32>,
    %589 = vector.extract_strided_slice %586 {offsets = [0, 32], sizes = [2, 32], strides = [1, 1]} : vector<2x128xf32> to vector<2x32xf32>
    %c12_173 = arith.constant 12 : index
    %c32_174 = arith.constant 32 : index
    %590 = vector.load %arg9[%c12_173, %c32_174] : memref<16x128xf32, #tpu.memory_space<vmem>>, vector<2x32xf32>
    tpu.vector_store %arg9[%c12_173, %c32_174], %589 {strides = array<i32>} : memref<16x128xf32, #tpu.memory_space<vmem>>, vector<2x32xf32>,
    %591 = vector.extract_strided_slice %530 {offsets = [4, 0], sizes = [2, 384], strides = [1, 1]} : vector<16x384xf32> to vector<2x384xf32>
    %592 = vector.extract_strided_slice %530 {offsets = [10, 0], sizes = [2, 384], strides = [1, 1]} : vector<16x384xf32> to vector<2x384xf32>
    %593 = arith.select %18, %591, %592 : vector<2x384xi1>, vector<2x384xf32>
    %cst_175 = arith.constant dense<0.000000e+00> : vector<2x384xf32>
    %594 = tpu.matmul %586, %519, %cst_175 {dimension_numbers = #tpu.dot_dimension_numbers<[1], [0], [0], [1], [0, 0, 1, 1], [], []>} : vector<2x128xf32>, vector<128x384xf32>, vector<2x384xf32> -> vector<2x384xf32>
    %595 = vector.extract_strided_slice %593 {offsets = [0, 128], sizes = [2, 256], strides = [1, 1]} : vector<2x384xf32> to vector<2x256xf32>
    %596 = vector.extract_strided_slice %594 {offsets = [0, 128], sizes = [2, 256], strides = [1, 1]} : vector<2x384xf32> to vector<2x256xf32>
    %597 = arith.addf %595, %596 : vector<2x256xf32>
    %598 = arith.negf %597 : vector<2x256xf32>
    %599 = math.exp %598 : vector<2x256xf32>
    %cst_176 = arith.constant 1.000000e+00 : f32
    %600 = vector.broadcast %cst_176 : f32 to vector<2x256xf32>
    %601 = arith.addf %600, %599 : vector<2x256xf32>
    %602 = arith.divf %600, %601 : vector<2x256xf32>
    %603 = vector.extract_strided_slice %602 {offsets = [0, 0], sizes = [2, 128], strides = [1, 1]} : vector<2x256xf32> to vector<2x128xf32>
    %604 = vector.extract_strided_slice %602 {offsets = [0, 128], sizes = [2, 128], strides = [1, 1]} : vector<2x256xf32> to vector<2x128xf32>
    %cst_177 = arith.constant 1.000000e+00 : f32
    %605 = vector.broadcast %cst_177 : f32 to vector<2x128xf32>
    %606 = arith.subf %605, %603 : vector<2x128xf32>
    %607 = arith.mulf %603, %586 : vector<2x128xf32>
    %608 = vector.extract_strided_slice %593 {offsets = [0, 0], sizes = [2, 128], strides = [1, 1]} : vector<2x384xf32> to vector<2x128xf32>
    %609 = vector.extract_strided_slice %594 {offsets = [0, 0], sizes = [2, 128], strides = [1, 1]} : vector<2x384xf32> to vector<2x128xf32>
    %610 = arith.addf %609, %523 : vector<2x128xf32>
    %611 = arith.mulf %604, %610 : vector<2x128xf32>
    %612 = arith.addf %608, %611 : vector<2x128xf32>
    %613 = math.tanh %612 : vector<2x128xf32>
    %614 = arith.mulf %613, %606 : vector<2x128xf32>
    %615 = arith.addf %614, %607 : vector<2x128xf32>
    %616 = vector.extract_strided_slice %615 {offsets = [0, 0], sizes = [2, 32], strides = [1, 1]} : vector<2x128xf32> to vector<2x32xf32>
    %c4_178 = arith.constant 4 : index
    %c0_179 = arith.constant 0 : index
    %617 = vector.load %arg9[%c4_178, %c0_179] : memref<16x128xf32, #tpu.memory_space<vmem>>, vector<2x32xf32>
    tpu.vector_store %arg9[%c4_178, %c0_179], %616 {strides = array<i32>} : memref<16x128xf32, #tpu.memory_space<vmem>>, vector<2x32xf32>,
    %618 = vector.extract_strided_slice %615 {offsets = [0, 32], sizes = [2, 32], strides = [1, 1]} : vector<2x128xf32> to vector<2x32xf32>
    %c10_180 = arith.constant 10 : index
    %c32_181 = arith.constant 32 : index
    %619 = vector.load %arg9[%c10_180, %c32_181] : memref<16x128xf32, #tpu.memory_space<vmem>>, vector<2x32xf32>
    tpu.vector_store %arg9[%c10_180, %c32_181], %618 {strides = array<i32>} : memref<16x128xf32, #tpu.memory_space<vmem>>, vector<2x32xf32>,
    %620 = vector.extract_strided_slice %530 {offsets = [6, 0], sizes = [2, 384], strides = [1, 1]} : vector<16x384xf32> to vector<2x384xf32>
    %621 = vector.extract_strided_slice %530 {offsets = [8, 0], sizes = [2, 384], strides = [1, 1]} : vector<16x384xf32> to vector<2x384xf32>
    %622 = arith.select %18, %620, %621 : vector<2x384xi1>, vector<2x384xf32>
    %cst_182 = arith.constant dense<0.000000e+00> : vector<2x384xf32>
    %623 = tpu.matmul %615, %519, %cst_182 {dimension_numbers = #tpu.dot_dimension_numbers<[1], [0], [0], [1], [0, 0, 1, 1], [], []>} : vector<2x128xf32>, vector<128x384xf32>, vector<2x384xf32> -> vector<2x384xf32>
    %624 = vector.extract_strided_slice %622 {offsets = [0, 128], sizes = [2, 256], strides = [1, 1]} : vector<2x384xf32> to vector<2x256xf32>
    %625 = vector.extract_strided_slice %623 {offsets = [0, 128], sizes = [2, 256], strides = [1, 1]} : vector<2x384xf32> to vector<2x256xf32>
    %626 = arith.addf %624, %625 : vector<2x256xf32>
    %627 = arith.negf %626 : vector<2x256xf32>
    %628 = math.exp %627 : vector<2x256xf32>
    %cst_183 = arith.constant 1.000000e+00 : f32
    %629 = vector.broadcast %cst_183 : f32 to vector<2x256xf32>
    %630 = arith.addf %629, %628 : vector<2x256xf32>
    %631 = arith.divf %629, %630 : vector<2x256xf32>
    %632 = vector.extract_strided_slice %631 {offsets = [0, 0], sizes = [2, 128], strides = [1, 1]} : vector<2x256xf32> to vector<2x128xf32>
    %633 = vector.extract_strided_slice %631 {offsets = [0, 128], sizes = [2, 128], strides = [1, 1]} : vector<2x256xf32> to vector<2x128xf32>
    %cst_184 = arith.constant 1.000000e+00 : f32
    %634 = vector.broadcast %cst_184 : f32 to vector<2x128xf32>
    %635 = arith.subf %634, %632 : vector<2x128xf32>
    %636 = arith.mulf %632, %615 : vector<2x128xf32>
    %637 = vector.extract_strided_slice %622 {offsets = [0, 0], sizes = [2, 128], strides = [1, 1]} : vector<2x384xf32> to vector<2x128xf32>
    %638 = vector.extract_strided_slice %623 {offsets = [0, 0], sizes = [2, 128], strides = [1, 1]} : vector<2x384xf32> to vector<2x128xf32>
    %639 = arith.addf %638, %523 : vector<2x128xf32>
    %640 = arith.mulf %633, %639 : vector<2x128xf32>
    %641 = arith.addf %637, %640 : vector<2x128xf32>
    %642 = math.tanh %641 : vector<2x128xf32>
    %643 = arith.mulf %642, %635 : vector<2x128xf32>
    %644 = arith.addf %643, %636 : vector<2x128xf32>
    %645 = vector.extract_strided_slice %644 {offsets = [0, 0], sizes = [2, 32], strides = [1, 1]} : vector<2x128xf32> to vector<2x32xf32>
    %c6_185 = arith.constant 6 : index
    %c0_186 = arith.constant 0 : index
    %646 = vector.load %arg9[%c6_185, %c0_186] : memref<16x128xf32, #tpu.memory_space<vmem>>, vector<2x32xf32>
    tpu.vector_store %arg9[%c6_185, %c0_186], %645 {strides = array<i32>} : memref<16x128xf32, #tpu.memory_space<vmem>>, vector<2x32xf32>,
    %647 = vector.extract_strided_slice %644 {offsets = [0, 32], sizes = [2, 32], strides = [1, 1]} : vector<2x128xf32> to vector<2x32xf32>
    %c8_187 = arith.constant 8 : index
    %c32_188 = arith.constant 32 : index
    %648 = vector.load %arg9[%c8_187, %c32_188] : memref<16x128xf32, #tpu.memory_space<vmem>>, vector<2x32xf32>
    tpu.vector_store %arg9[%c8_187, %c32_188], %647 {strides = array<i32>} : memref<16x128xf32, #tpu.memory_space<vmem>>, vector<2x32xf32>,
    %649 = vector.extract_strided_slice %530 {offsets = [8, 0], sizes = [2, 384], strides = [1, 1]} : vector<16x384xf32> to vector<2x384xf32>
    %650 = vector.extract_strided_slice %530 {offsets = [6, 0], sizes = [2, 384], strides = [1, 1]} : vector<16x384xf32> to vector<2x384xf32>
    %651 = arith.select %18, %649, %650 : vector<2x384xi1>, vector<2x384xf32>
    %cst_189 = arith.constant dense<0.000000e+00> : vector<2x384xf32>
    %652 = tpu.matmul %644, %519, %cst_189 {dimension_numbers = #tpu.dot_dimension_numbers<[1], [0], [0], [1], [0, 0, 1, 1], [], []>} : vector<2x128xf32>, vector<128x384xf32>, vector<2x384xf32> -> vector<2x384xf32>
    %653 = vector.extract_strided_slice %651 {offsets = [0, 128], sizes = [2, 256], strides = [1, 1]} : vector<2x384xf32> to vector<2x256xf32>
    %654 = vector.extract_strided_slice %652 {offsets = [0, 128], sizes = [2, 256], strides = [1, 1]} : vector<2x384xf32> to vector<2x256xf32>
    %655 = arith.addf %653, %654 : vector<2x256xf32>
    %656 = arith.negf %655 : vector<2x256xf32>
    %657 = math.exp %656 : vector<2x256xf32>
    %cst_190 = arith.constant 1.000000e+00 : f32
    %658 = vector.broadcast %cst_190 : f32 to vector<2x256xf32>
    %659 = arith.addf %658, %657 : vector<2x256xf32>
    %660 = arith.divf %658, %659 : vector<2x256xf32>
    %661 = vector.extract_strided_slice %660 {offsets = [0, 0], sizes = [2, 128], strides = [1, 1]} : vector<2x256xf32> to vector<2x128xf32>
    %662 = vector.extract_strided_slice %660 {offsets = [0, 128], sizes = [2, 128], strides = [1, 1]} : vector<2x256xf32> to vector<2x128xf32>
    %cst_191 = arith.constant 1.000000e+00 : f32
    %663 = vector.broadcast %cst_191 : f32 to vector<2x128xf32>
    %664 = arith.subf %663, %661 : vector<2x128xf32>
    %665 = arith.mulf %661, %644 : vector<2x128xf32>
    %666 = vector.extract_strided_slice %651 {offsets = [0, 0], sizes = [2, 128], strides = [1, 1]} : vector<2x384xf32> to vector<2x128xf32>
    %667 = vector.extract_strided_slice %652 {offsets = [0, 0], sizes = [2, 128], strides = [1, 1]} : vector<2x384xf32> to vector<2x128xf32>
    %668 = arith.addf %667, %523 : vector<2x128xf32>
    %669 = arith.mulf %662, %668 : vector<2x128xf32>
    %670 = arith.addf %666, %669 : vector<2x128xf32>
    %671 = math.tanh %670 : vector<2x128xf32>
    %672 = arith.mulf %671, %664 : vector<2x128xf32>
    %673 = arith.addf %672, %665 : vector<2x128xf32>
    %674 = vector.extract_strided_slice %673 {offsets = [0, 0], sizes = [2, 32], strides = [1, 1]} : vector<2x128xf32> to vector<2x32xf32>
    %c8_192 = arith.constant 8 : index
    %c0_193 = arith.constant 0 : index
    %675 = vector.load %arg9[%c8_192, %c0_193] : memref<16x128xf32, #tpu.memory_space<vmem>>, vector<2x32xf32>
    tpu.vector_store %arg9[%c8_192, %c0_193], %674 {strides = array<i32>} : memref<16x128xf32, #tpu.memory_space<vmem>>, vector<2x32xf32>,
    %676 = vector.extract_strided_slice %673 {offsets = [0, 32], sizes = [2, 32], strides = [1, 1]} : vector<2x128xf32> to vector<2x32xf32>
    %c6_194 = arith.constant 6 : index
    %c32_195 = arith.constant 32 : index
    %677 = vector.load %arg9[%c6_194, %c32_195] : memref<16x128xf32, #tpu.memory_space<vmem>>, vector<2x32xf32>
    tpu.vector_store %arg9[%c6_194, %c32_195], %676 {strides = array<i32>} : memref<16x128xf32, #tpu.memory_space<vmem>>, vector<2x32xf32>,
    %678 = vector.extract_strided_slice %530 {offsets = [10, 0], sizes = [2, 384], strides = [1, 1]} : vector<16x384xf32> to vector<2x384xf32>
    %679 = vector.extract_strided_slice %530 {offsets = [4, 0], sizes = [2, 384], strides = [1, 1]} : vector<16x384xf32> to vector<2x384xf32>
    %680 = arith.select %18, %678, %679 : vector<2x384xi1>, vector<2x384xf32>
    %cst_196 = arith.constant dense<0.000000e+00> : vector<2x384xf32>
    %681 = tpu.matmul %673, %519, %cst_196 {dimension_numbers = #tpu.dot_dimension_numbers<[1], [0], [0], [1], [0, 0, 1, 1], [], []>} : vector<2x128xf32>, vector<128x384xf32>, vector<2x384xf32> -> vector<2x384xf32>
    %682 = vector.extract_strided_slice %680 {offsets = [0, 128], sizes = [2, 256], strides = [1, 1]} : vector<2x384xf32> to vector<2x256xf32>
    %683 = vector.extract_strided_slice %681 {offsets = [0, 128], sizes = [2, 256], strides = [1, 1]} : vector<2x384xf32> to vector<2x256xf32>
    %684 = arith.addf %682, %683 : vector<2x256xf32>
    %685 = arith.negf %684 : vector<2x256xf32>
    %686 = math.exp %685 : vector<2x256xf32>
    %cst_197 = arith.constant 1.000000e+00 : f32
    %687 = vector.broadcast %cst_197 : f32 to vector<2x256xf32>
    %688 = arith.addf %687, %686 : vector<2x256xf32>
    %689 = arith.divf %687, %688 : vector<2x256xf32>
    %690 = vector.extract_strided_slice %689 {offsets = [0, 0], sizes = [2, 128], strides = [1, 1]} : vector<2x256xf32> to vector<2x128xf32>
    %691 = vector.extract_strided_slice %689 {offsets = [0, 128], sizes = [2, 128], strides = [1, 1]} : vector<2x256xf32> to vector<2x128xf32>
    %cst_198 = arith.constant 1.000000e+00 : f32
    %692 = vector.broadcast %cst_198 : f32 to vector<2x128xf32>
    %693 = arith.subf %692, %690 : vector<2x128xf32>
    %694 = arith.mulf %690, %673 : vector<2x128xf32>
    %695 = vector.extract_strided_slice %680 {offsets = [0, 0], sizes = [2, 128], strides = [1, 1]} : vector<2x384xf32> to vector<2x128xf32>
    %696 = vector.extract_strided_slice %681 {offsets = [0, 0], sizes = [2, 128], strides = [1, 1]} : vector<2x384xf32> to vector<2x128xf32>
    %697 = arith.addf %696, %523 : vector<2x128xf32>
    %698 = arith.mulf %691, %697 : vector<2x128xf32>
    %699 = arith.addf %695, %698 : vector<2x128xf32>
    %700 = math.tanh %699 : vector<2x128xf32>
    %701 = arith.mulf %700, %693 : vector<2x128xf32>
    %702 = arith.addf %701, %694 : vector<2x128xf32>
    %703 = vector.extract_strided_slice %702 {offsets = [0, 0], sizes = [2, 32], strides = [1, 1]} : vector<2x128xf32> to vector<2x32xf32>
    %c10_199 = arith.constant 10 : index
    %c0_200 = arith.constant 0 : index
    %704 = vector.load %arg9[%c10_199, %c0_200] : memref<16x128xf32, #tpu.memory_space<vmem>>, vector<2x32xf32>
    tpu.vector_store %arg9[%c10_199, %c0_200], %703 {strides = array<i32>} : memref<16x128xf32, #tpu.memory_space<vmem>>, vector<2x32xf32>,
    %705 = vector.extract_strided_slice %702 {offsets = [0, 32], sizes = [2, 32], strides = [1, 1]} : vector<2x128xf32> to vector<2x32xf32>
    %c4_201 = arith.constant 4 : index
    %c32_202 = arith.constant 32 : index
    %706 = vector.load %arg9[%c4_201, %c32_202] : memref<16x128xf32, #tpu.memory_space<vmem>>, vector<2x32xf32>
    tpu.vector_store %arg9[%c4_201, %c32_202], %705 {strides = array<i32>} : memref<16x128xf32, #tpu.memory_space<vmem>>, vector<2x32xf32>,
    %707 = vector.extract_strided_slice %530 {offsets = [12, 0], sizes = [2, 384], strides = [1, 1]} : vector<16x384xf32> to vector<2x384xf32>
    %708 = vector.extract_strided_slice %530 {offsets = [2, 0], sizes = [2, 384], strides = [1, 1]} : vector<16x384xf32> to vector<2x384xf32>
    %709 = arith.select %18, %707, %708 : vector<2x384xi1>, vector<2x384xf32>
    %cst_203 = arith.constant dense<0.000000e+00> : vector<2x384xf32>
    %710 = tpu.matmul %702, %519, %cst_203 {dimension_numbers = #tpu.dot_dimension_numbers<[1], [0], [0], [1], [0, 0, 1, 1], [], []>} : vector<2x128xf32>, vector<128x384xf32>, vector<2x384xf32> -> vector<2x384xf32>
    %711 = vector.extract_strided_slice %709 {offsets = [0, 128], sizes = [2, 256], strides = [1, 1]} : vector<2x384xf32> to vector<2x256xf32>
    %712 = vector.extract_strided_slice %710 {offsets = [0, 128], sizes = [2, 256], strides = [1, 1]} : vector<2x384xf32> to vector<2x256xf32>
    %713 = arith.addf %711, %712 : vector<2x256xf32>
    %714 = arith.negf %713 : vector<2x256xf32>
    %715 = math.exp %714 : vector<2x256xf32>
    %cst_204 = arith.constant 1.000000e+00 : f32
    %716 = vector.broadcast %cst_204 : f32 to vector<2x256xf32>
    %717 = arith.addf %716, %715 : vector<2x256xf32>
    %718 = arith.divf %716, %717 : vector<2x256xf32>
    %719 = vector.extract_strided_slice %718 {offsets = [0, 0], sizes = [2, 128], strides = [1, 1]} : vector<2x256xf32> to vector<2x128xf32>
    %720 = vector.extract_strided_slice %718 {offsets = [0, 128], sizes = [2, 128], strides = [1, 1]} : vector<2x256xf32> to vector<2x128xf32>
    %cst_205 = arith.constant 1.000000e+00 : f32
    %721 = vector.broadcast %cst_205 : f32 to vector<2x128xf32>
    %722 = arith.subf %721, %719 : vector<2x128xf32>
    %723 = arith.mulf %719, %702 : vector<2x128xf32>
    %724 = vector.extract_strided_slice %709 {offsets = [0, 0], sizes = [2, 128], strides = [1, 1]} : vector<2x384xf32> to vector<2x128xf32>
    %725 = vector.extract_strided_slice %710 {offsets = [0, 0], sizes = [2, 128], strides = [1, 1]} : vector<2x384xf32> to vector<2x128xf32>
    %726 = arith.addf %725, %523 : vector<2x128xf32>
    %727 = arith.mulf %720, %726 : vector<2x128xf32>
    %728 = arith.addf %724, %727 : vector<2x128xf32>
    %729 = math.tanh %728 : vector<2x128xf32>
    %730 = arith.mulf %729, %722 : vector<2x128xf32>
    %731 = arith.addf %730, %723 : vector<2x128xf32>
    %732 = vector.extract_strided_slice %731 {offsets = [0, 0], sizes = [2, 32], strides = [1, 1]} : vector<2x128xf32> to vector<2x32xf32>
    %c12_206 = arith.constant 12 : index
    %c0_207 = arith.constant 0 : index
    %733 = vector.load %arg9[%c12_206, %c0_207] : memref<16x128xf32, #tpu.memory_space<vmem>>, vector<2x32xf32>
    tpu.vector_store %arg9[%c12_206, %c0_207], %732 {strides = array<i32>} : memref<16x128xf32, #tpu.memory_space<vmem>>, vector<2x32xf32>,
    %734 = vector.extract_strided_slice %731 {offsets = [0, 32], sizes = [2, 32], strides = [1, 1]} : vector<2x128xf32> to vector<2x32xf32>
    %c2_208 = arith.constant 2 : index
    %c32_209 = arith.constant 32 : index
    %735 = vector.load %arg9[%c2_208, %c32_209] : memref<16x128xf32, #tpu.memory_space<vmem>>, vector<2x32xf32>
    tpu.vector_store %arg9[%c2_208, %c32_209], %734 {strides = array<i32>} : memref<16x128xf32, #tpu.memory_space<vmem>>, vector<2x32xf32>,
    %736 = vector.extract_strided_slice %530 {offsets = [14, 0], sizes = [2, 384], strides = [1, 1]} : vector<16x384xf32> to vector<2x384xf32>
    %737 = vector.extract_strided_slice %530 {offsets = [0, 0], sizes = [2, 384], strides = [1, 1]} : vector<16x384xf32> to vector<2x384xf32>
    %738 = arith.select %18, %736, %737 : vector<2x384xi1>, vector<2x384xf32>
    %cst_210 = arith.constant dense<0.000000e+00> : vector<2x384xf32>
    %739 = tpu.matmul %731, %519, %cst_210 {dimension_numbers = #tpu.dot_dimension_numbers<[1], [0], [0], [1], [0, 0, 1, 1], [], []>} : vector<2x128xf32>, vector<128x384xf32>, vector<2x384xf32> -> vector<2x384xf32>
    %740 = vector.extract_strided_slice %738 {offsets = [0, 128], sizes = [2, 256], strides = [1, 1]} : vector<2x384xf32> to vector<2x256xf32>
    %741 = vector.extract_strided_slice %739 {offsets = [0, 128], sizes = [2, 256], strides = [1, 1]} : vector<2x384xf32> to vector<2x256xf32>
    %742 = arith.addf %740, %741 : vector<2x256xf32>
    %743 = arith.negf %742 : vector<2x256xf32>
    %744 = math.exp %743 : vector<2x256xf32>
    %cst_211 = arith.constant 1.000000e+00 : f32
    %745 = vector.broadcast %cst_211 : f32 to vector<2x256xf32>
    %746 = arith.addf %745, %744 : vector<2x256xf32>
    %747 = arith.divf %745, %746 : vector<2x256xf32>
    %748 = vector.extract_strided_slice %747 {offsets = [0, 0], sizes = [2, 128], strides = [1, 1]} : vector<2x256xf32> to vector<2x128xf32>
    %749 = vector.extract_strided_slice %747 {offsets = [0, 128], sizes = [2, 128], strides = [1, 1]} : vector<2x256xf32> to vector<2x128xf32>
    %cst_212 = arith.constant 1.000000e+00 : f32
    %750 = vector.broadcast %cst_212 : f32 to vector<2x128xf32>
    %751 = arith.subf %750, %748 : vector<2x128xf32>
    %752 = arith.mulf %748, %731 : vector<2x128xf32>
    %753 = vector.extract_strided_slice %738 {offsets = [0, 0], sizes = [2, 128], strides = [1, 1]} : vector<2x384xf32> to vector<2x128xf32>
    %754 = vector.extract_strided_slice %739 {offsets = [0, 0], sizes = [2, 128], strides = [1, 1]} : vector<2x384xf32> to vector<2x128xf32>
    %755 = arith.addf %754, %523 : vector<2x128xf32>
    %756 = arith.mulf %749, %755 : vector<2x128xf32>
    %757 = arith.addf %753, %756 : vector<2x128xf32>
    %758 = math.tanh %757 : vector<2x128xf32>
    %759 = arith.mulf %758, %751 : vector<2x128xf32>
    %760 = arith.addf %759, %752 : vector<2x128xf32>
    %761 = vector.extract_strided_slice %760 {offsets = [0, 0], sizes = [2, 32], strides = [1, 1]} : vector<2x128xf32> to vector<2x32xf32>
    %c14_213 = arith.constant 14 : index
    %c0_214 = arith.constant 0 : index
    %762 = vector.load %arg9[%c14_213, %c0_214] : memref<16x128xf32, #tpu.memory_space<vmem>>, vector<2x32xf32>
    tpu.vector_store %arg9[%c14_213, %c0_214], %761 {strides = array<i32>} : memref<16x128xf32, #tpu.memory_space<vmem>>, vector<2x32xf32>,
    %763 = vector.extract_strided_slice %760 {offsets = [0, 32], sizes = [2, 32], strides = [1, 1]} : vector<2x128xf32> to vector<2x32xf32>
    %c0_215 = arith.constant 0 : index
    %c32_216 = arith.constant 32 : index
    %764 = vector.load %arg9[%c0_215, %c32_216] : memref<16x128xf32, #tpu.memory_space<vmem>>, vector<2x32xf32>
    tpu.vector_store %arg9[%c0_215, %c32_216], %763 {strides = array<i32>} : memref<16x128xf32, #tpu.memory_space<vmem>>, vector<2x32xf32>,
    %c0_217 = arith.constant 0 : index
    %c0_218 = arith.constant 0 : index
    %765 = vector.load %arg9[%c0_217, %c0_218] : memref<16x128xf32, #tpu.memory_space<vmem>>, vector<16x128xf32>
    %766 = tpu.iota {dimensions = array<i32: 0>} : vector<16x1xi32>
    %c2_i32 = arith.constant 2 : i32
    %c0_i32_219 = arith.constant 0 : i32
    %767 = arith.cmpi eq, %c2_i32, %c0_i32_219 : i32
    %c1_i32_220 = arith.constant 1 : i32
    %768 = arith.select %767, %c1_i32_220, %c2_i32 : i32
    %769 = vector.broadcast %768 : i32 to vector<16x1xi32>
    %770 = arith.remsi %766, %769 : vector<16x1xi32>
    %c0_i32_221 = arith.constant 0 : i32
    %771 = vector.broadcast %c0_i32_221 : i32 to vector<16x1xi32>
    %772 = arith.cmpi ne, %770, %771 : vector<16x1xi32>
    %c0_i32_222 = arith.constant 0 : i32
    %773 = vector.broadcast %c0_i32_222 : i32 to vector<16x1xi32>
    %774 = arith.cmpi slt, %770, %773 : vector<16x1xi32>
    %c0_i32_223 = arith.constant 0 : i32
    %775 = arith.cmpi slt, %768, %c0_i32_223 : i32
    %776 = vector.broadcast %775 : i1 to vector<16x1xi1>
    %777 = vector.broadcast %776 : vector<16x1xi1> to vector<16x1xi1>
    %778 = arith.xori %774, %777 : vector<16x1xi1>
    %779 = arith.andi %778, %772 : vector<16x1xi1>
    %780 = vector.broadcast %768 : i32 to vector<16x1xi32>
    %781 = arith.addi %770, %780 : vector<16x1xi32>
    %782 = arith.select %779, %781, %770 : vector<16x1xi1>, vector<16x1xi32>
    %c0_i32_224 = arith.constant 0 : i32
    %783 = vector.broadcast %c0_i32_224 : i32 to vector<16x1xi32>
    %784 = arith.cmpi eq, %782, %783 : vector<16x1xi32>
    %785 = vector.extract_strided_slice %760 {offsets = [0, 0], sizes = [1, 128], strides = [1, 1]} : vector<2x128xf32> to vector<1x128xf32>
    %786 = vector.broadcast %785 : vector<1x128xf32> to vector<16x128xf32>
    %787 = arith.mulf %765, %786 : vector<16x128xf32>
    %cst_225 = arith.constant dense<0.000000e+00> : vector<16xf32>
    %788 = vector.multi_reduction <add>, %787, %cst_225 [1] : vector<16x128xf32> to vector<16xf32>
    %789 = vector.shape_cast %788 : vector<16xf32> to vector<16x1xf32>
    %cst_226 = arith.constant 1.250000e-01 : f32
    %790 = vector.broadcast %cst_226 : f32 to vector<16x1xf32>
    %791 = arith.mulf %789, %790 : vector<16x1xf32>
    %cst_227 = arith.constant -1.000000e+30 : f32
    %792 = vector.broadcast %cst_227 : f32 to vector<16x1xf32>
    %793 = arith.select %784, %791, %792 : vector<16x1xi1>, vector<16x1xf32>
    %cst_228 = arith.constant dense<0xFF800000> : vector<1xf32>
    %794 = vector.multi_reduction <maximumf>, %793, %cst_228 [0] : vector<16x1xf32> to vector<1xf32>
    %795 = vector.shape_cast %794 : vector<1xf32> to vector<1x1xf32>
    %796 = vector.broadcast %795 : vector<1x1xf32> to vector<16x1xf32>
    %797 = arith.subf %793, %796 : vector<16x1xf32>
    %798 = math.exp %797 : vector<16x1xf32>
    %cst_229 = arith.constant 0.000000e+00 : f32
    %799 = vector.broadcast %cst_229 : f32 to vector<16x1xf32>
    %800 = arith.select %784, %798, %799 : vector<16x1xi1>, vector<16x1xf32>
    %801 = vector.broadcast %800 : vector<16x1xf32> to vector<16x128xf32>
    %802 = arith.mulf %801, %765 : vector<16x128xf32>
    %cst_230 = arith.constant dense<0.000000e+00> : vector<128xf32>
    %803 = vector.multi_reduction <add>, %802, %cst_230 [0] : vector<16x128xf32> to vector<128xf32>
    %804 = vector.shape_cast %803 : vector<128xf32> to vector<1x128xf32>
    %cst_231 = arith.constant dense<0.000000e+00> : vector<1xf32>
    %805 = vector.multi_reduction <add>, %800, %cst_231 [0] : vector<16x1xf32> to vector<1xf32>
    %806 = vector.shape_cast %805 : vector<1xf32> to vector<1x1xf32>
    %807 = vector.broadcast %806 : vector<1x1xf32> to vector<1x128xf32>
    %808 = arith.divf %804, %807 : vector<1x128xf32>
    %c2_i32_232 = arith.constant 2 : i32
    %c0_i32_233 = arith.constant 0 : i32
    %809 = arith.cmpi eq, %c2_i32_232, %c0_i32_233 : i32
    %c1_i32_234 = arith.constant 1 : i32
    %810 = arith.select %809, %c1_i32_234, %c2_i32_232 : i32
    %811 = vector.broadcast %810 : i32 to vector<16x1xi32>
    %812 = arith.remsi %766, %811 : vector<16x1xi32>
    %c0_i32_235 = arith.constant 0 : i32
    %813 = vector.broadcast %c0_i32_235 : i32 to vector<16x1xi32>
    %814 = arith.cmpi ne, %812, %813 : vector<16x1xi32>
    %c0_i32_236 = arith.constant 0 : i32
    %815 = vector.broadcast %c0_i32_236 : i32 to vector<16x1xi32>
    %816 = arith.cmpi slt, %812, %815 : vector<16x1xi32>
    %c0_i32_237 = arith.constant 0 : i32
    %817 = arith.cmpi slt, %810, %c0_i32_237 : i32
    %818 = vector.broadcast %817 : i1 to vector<16x1xi1>
    %819 = vector.broadcast %818 : vector<16x1xi1> to vector<16x1xi1>
    %820 = arith.xori %816, %819 : vector<16x1xi1>
    %821 = arith.andi %820, %814 : vector<16x1xi1>
    %822 = vector.broadcast %810 : i32 to vector<16x1xi32>
    %823 = arith.addi %812, %822 : vector<16x1xi32>
    %824 = arith.select %821, %823, %812 : vector<16x1xi1>, vector<16x1xi32>
    %c1_i32_238 = arith.constant 1 : i32
    %825 = vector.broadcast %c1_i32_238 : i32 to vector<16x1xi32>
    %826 = arith.cmpi eq, %824, %825 : vector<16x1xi32>
    %827 = vector.extract_strided_slice %760 {offsets = [1, 0], sizes = [1, 128], strides = [1, 1]} : vector<2x128xf32> to vector<1x128xf32>
    %828 = vector.broadcast %827 : vector<1x128xf32> to vector<16x128xf32>
    %829 = arith.mulf %765, %828 : vector<16x128xf32>
    %cst_239 = arith.constant dense<0.000000e+00> : vector<16xf32>
    %830 = vector.multi_reduction <add>, %829, %cst_239 [1] : vector<16x128xf32> to vector<16xf32>
    %831 = vector.shape_cast %830 : vector<16xf32> to vector<16x1xf32>
    %cst_240 = arith.constant 1.250000e-01 : f32
    %832 = vector.broadcast %cst_240 : f32 to vector<16x1xf32>
    %833 = arith.mulf %831, %832 : vector<16x1xf32>
    %cst_241 = arith.constant -1.000000e+30 : f32
    %834 = vector.broadcast %cst_241 : f32 to vector<16x1xf32>
    %835 = arith.select %826, %833, %834 : vector<16x1xi1>, vector<16x1xf32>
    %cst_242 = arith.constant dense<0xFF800000> : vector<1xf32>
    %836 = vector.multi_reduction <maximumf>, %835, %cst_242 [0] : vector<16x1xf32> to vector<1xf32>
    %837 = vector.shape_cast %836 : vector<1xf32> to vector<1x1xf32>
    %838 = vector.broadcast %837 : vector<1x1xf32> to vector<16x1xf32>
    %839 = arith.subf %835, %838 : vector<16x1xf32>
    %840 = math.exp %839 : vector<16x1xf32>
    %cst_243 = arith.constant 0.000000e+00 : f32
    %841 = vector.broadcast %cst_243 : f32 to vector<16x1xf32>
    %842 = arith.select %826, %840, %841 : vector<16x1xi1>, vector<16x1xf32>
    %843 = vector.broadcast %842 : vector<16x1xf32> to vector<16x128xf32>
    %844 = arith.mulf %843, %765 : vector<16x128xf32>
    %cst_244 = arith.constant dense<0.000000e+00> : vector<128xf32>
    %845 = vector.multi_reduction <add>, %844, %cst_244 [0] : vector<16x128xf32> to vector<128xf32>
    %846 = vector.shape_cast %845 : vector<128xf32> to vector<1x128xf32>
    %cst_245 = arith.constant dense<0.000000e+00> : vector<1xf32>
    %847 = vector.multi_reduction <add>, %842, %cst_245 [0] : vector<16x1xf32> to vector<1xf32>
    %848 = vector.shape_cast %847 : vector<1xf32> to vector<1x1xf32>
    %849 = vector.broadcast %848 : vector<1x1xf32> to vector<1x128xf32>
    %850 = arith.divf %846, %849 : vector<1x128xf32>
    %851 = tpu.concatenate %808, %850 in 0 : vector<1x128xf32>, vector<1x128xf32> -> vector<2x128xf32>
    %c0_246 = arith.constant 0 : index
    %c0_247 = arith.constant 0 : index
    %852 = vector.load %arg6[%c0_246, %c0_247] : memref<1x128xf32, #tpu.memory_space<vmem>>, vector<1x128xf32>
    %853 = vector.broadcast %852 : vector<1x128xf32> to vector<2x128xf32>
    %854 = arith.mulf %851, %853 : vector<2x128xf32>
    %cst_248 = arith.constant dense<0.000000e+00> : vector<2xf32>
    %855 = vector.multi_reduction <add>, %854, %cst_248 [1] : vector<2x128xf32> to vector<2xf32>
    %856 = vector.shape_cast %855 : vector<2xf32> to vector<2x1xf32>
    %c0_249 = arith.constant 0 : index
    %c0_250 = arith.constant 0 : index
    %857 = vector.load %arg7[%c0_249, %c0_250] : memref<1x1xf32, #tpu.memory_space<vmem>>, vector<1x1xf32>
    %858 = vector.broadcast %857 : vector<1x1xf32> to vector<2x1xf32>
    %859 = arith.addf %856, %858 : vector<2x1xf32>
    %860 = arith.negf %859 : vector<2x1xf32>
    %861 = math.exp %860 : vector<2x1xf32>
    %cst_251 = arith.constant 1.000000e+00 : f32
    %862 = vector.broadcast %cst_251 : f32 to vector<2x1xf32>
    %863 = arith.addf %862, %861 : vector<2x1xf32>
    %864 = arith.divf %862, %863 : vector<2x1xf32>
    %c0_252 = arith.constant 0 : index
    %c0_253 = arith.constant 0 : index
    %865 = vector.load %arg8[%c0_252, %c0_253] : memref<2x1xf32, #tpu.memory_space<vmem>>, vector<2x1xf32>
    tpu.vector_store %arg8[%c0_252, %c0_253], %864 {strides = array<i32>} : memref<2x1xf32, #tpu.memory_space<vmem>>, vector<2x1xf32>,
    return
  }
}

</mosaic_0001>

<bundles_post_ra>
// kernel: tpu_custom_call.1
= control target key start
LH: loop header
LB: loop body
LE: loop exit
PB: predicated region body
PF: predicated region fallthrough
CT: control target
= control target key end

     0   :  { %s10273_s0 = inlined_call_operand.hbm [shape: f32[16,128], index: 0, kind: input, shape index: {}]   ;;  %s10274_s1 = inlined_call_operand.hbm [shape: f32[3,2,128], index: 1, kind: input, shape index: {}]   ;;  %s10275_s2 = inlined_call_operand.hbm [shape: f32[3,128,384], index: 2, kind: input, shape index: {}]   ;;  %s10276_s3 = inlined_call_operand.hbm [shape: f32[3,128,384], index: 3, kind: input, shape index: {}]   ;;  %s10277_s4 = inlined_call_operand.vmem [shape: f32[3,1,384], index: 4, kind: input, shape index: {}]   ;;  %s10278_s5 = inlined_call_operand.hbm [shape: f32[3,1,128], index: 5, kind: input, shape index: {}]   ;;  %s10279_s6 = inlined_call_operand.vmem [shape: f32[1,128], index: 6, kind: input, shape index: {}]   ;;  %s10280_s7 = inlined_call_operand.<no memory space> [shape: f32[1,1], index: 7, kind: input, shape index: {}]   ;;  %s10281_s8 = inlined_call_operand.vmem [shape: f32[2,1], index: 8, kind: output, shape index: {}]  }
   0x1   :  { %v13_v0 = vstv %s10280_s7 }
   0x2   :  { %14 = vst [vmem:[#allocation3] sm:$0x1] %v13_v0 }
   0x3   :  { %15 = vsyncpa [#allocation5], 0 }
   0x4   :  { %16 = vsyncpa [#allocation7], 0 }
   0x5   :  { %17 = vsyncpa [#allocation10], 0  ;;  %s7473_s29 = smov [#allocation6]  }
   0x6   :  { %s35_s30 = sshll.u32 %s7473_s29, 4  ;;  %s36_s30 = int_to_ptr.vmem [resolvable:$true] %s35_s30 }
   0x7   :  { %s7375_s9 = scalar_lea.vmem %s36_s30, 96  ;;  %p7380_p1 = scmp.lt.s32.totalorder %s36_s30, %s36_s30 }
   0x8   :  { %p7376_p0 = scmp.ne.s32.totalorder %s36_s30, %s7375_s9  ;;  %p7381_p2 = scmp.lt.s32.totalorder %s7375_s9, %s7375_s9 }
   0xa   :  { %p7382_p3 = por %p7381_p2, %p7380_p1 }
   0xc   :  { %p7383_p4 = pnand %p7382_p3, %p7376_p0 }
   0xe   :  { %7386 = shalt.err (!%p7383_p4)
}
   0xf   :  { %s7474_s10 = smov 32   ;;  %s7475_s11 = smov 2  }
  0x10   :  { %41 = dma.hbm_to_vmem [thread:$0]  %s10274_s1, 96, %s36_s30, [#allocation7], %s7474_s10, %s7474_s10, %s7475_s11  }
  0x11   :  { %s7476_s7 = smov [#allocation9]   ;;  %s7477_s15 = smov [#allocation4]  }
  0x12   :  { %s59_s14 = sshll.u32 %s7476_s7, 4  ;;  %s23_s16 = sshll.u32 %s7477_s15, 4  ;;  %s60_s14 = int_to_ptr.vmem [resolvable:$true] %s59_s14  ;;  %s24_s16 = int_to_ptr.vmem [resolvable:$true] %s23_s16 }
  0x13   :  { %s7395_s17 = scalar_lea.vmem %s60_s14, 18432  ;;  %p7400_p6 = scmp.lt.s32.totalorder %s60_s14, %s60_s14 }
  0x14   :  { %p7396_p5 = scmp.ne.s32.totalorder %s60_s14, %s7395_s17  ;;  %p7401_p7 = scmp.lt.s32.totalorder %s7395_s17, %s7395_s17 }
  0x16   :  { %p7402_p8 = por %p7401_p7, %p7400_p6 }
  0x18   :  { %p7403_p9 = pnand %p7402_p8, %p7396_p5 }
  0x1a   :  { %7406 = shalt.err (!%p7403_p9)
}
  0x1b   :  { %s7478_s18 = smov 384   ;;  %s7479_s19 = smov 24  }
  0x1c   :  { %65 = dma.hbm_to_vmem [thread:$0]  %s10276_s3, 18432, %s60_s14, [#allocation10], %s7478_s18, %s7478_s18, %s7479_s19  }
  0x1d   :  { %s7415_s1 = scalar_lea.vmem %s24_s16, 256  ;;  %p7420_p11 = scmp.lt.s32.totalorder %s24_s16, %s24_s16 }
  0x1e   :  { %p7416_p10 = scmp.ne.s32.totalorder %s24_s16, %s7415_s1  ;;  %p7421_p12 = scmp.lt.s32.totalorder %s7415_s1, %s7415_s1 }
  0x20   :  { %p7422_p13 = por %p7421_p12, %p7420_p11 }
  0x22   :  { %p7423_p0 = pnand %p7422_p13, %p7416_p10 }
  0x24   :  { %7426 = shalt.err (!%p7423_p0)
}
  0x25   :  { %s7480_s22 = smov 128   ;;  %s7481_s23 = smov 8  }
  0x26   :  { %29 = dma.hbm_to_vmem [thread:$0]  %s10273_s0, 256, %s24_s16, [#allocation5], %s7480_s22, %s7480_s22, %s7481_s23  }
  0x27   :  { %s7482_s26 = smov [#allocation8]   ;;  %s7483_s28 = smov [#allocation11]  }
  0x28   :  { %s47_s27 = sshll.u32 %s7482_s26, 4  ;;  %s73_s29 = sshll.u32 %s7483_s28, 4  ;;  %s48_s27 = int_to_ptr.vmem [resolvable:$true] %s47_s27  ;;  %s74_s29 = int_to_ptr.vmem [resolvable:$true] %s73_s29 }
  0x29   :  { %s7435_s3 = scalar_lea.vmem %s48_s27, 18432  ;;  %p7440_p2 = scmp.lt.s32.totalorder %s48_s27, %s48_s27 }
  0x2a   :  { %p7436_p1 = scmp.ne.s32.totalorder %s48_s27, %s7435_s3  ;;  %p7441_p3 = scmp.lt.s32.totalorder %s7435_s3, %s7435_s3 }
  0x2c   :  { %p7442_p4 = por %p7441_p3, %p7440_p2 }
  0x2e   :  { %p7443_p5 = pnand %p7442_p4, %p7436_p1 }
  0x30   :  { %7446 = shalt.err (!%p7443_p5)
}
  0x31   :  { %53 = dma.hbm_to_vmem [thread:$0]  %s10275_s2, 18432, %s48_s27, [#allocation7], %s7478_s18, %s7478_s18, %s7479_s19  }
  0x32   :  { %s7455_s10 = scalar_lea.vmem %s74_s29, 48  ;;  %s7459_s0 = scalar_lea.vmem %s74_s29, 64 }
  0x33   :  { %p7456_p6 = scmp.ne.s32.totalorder %s74_s29, %s7455_s10  ;;  %p7460_p7 = scmp.lt.s32.totalorder %s74_s29, %s74_s29 }
  0x34   :  { %p7461_p8 = scmp.lt.s32.totalorder %s7459_s0, %s7455_s10 }
  0x36   :  { %p7462_p9 = por %p7461_p8, %p7460_p7 }
  0x38   :  { %p7463_p10 = pnand %p7462_p9, %p7456_p6 }
  0x3a   :  { %7466 = shalt.err (!%p7463_p10)
}
  0x3b   :  { %s7484_s11 = smov 16   ;;  %s7485_s12 = smov 1  }
  0x3c   :  { %79 = dma.hbm_to_vmem [thread:$0]  %s10278_s5, 48, %s74_s29, [#allocation10], %s7484_s11, %s7484_s11, %s7485_s12  }
  0x3d   :  { %7467 = dma.done.wait [#allocation5], 256  }
  0x3e   :  { %7468 = vsyncadd [#allocation5], 4294967040 }
  0x3f   :  { %7469 = dma.done.wait [#allocation7], 18528  }
  0x40   :  { %7470 = vsyncadd [#allocation7], 4294948768 }
  0x41   :  { %7471 = dma.done.wait [#allocation10], 18480  }
  0x42   :  { %7472 = vsyncadd [#allocation10], 4294948816  ;;  %v10282_v1 = vmov 0.0   ;;  %v247_v2 = vld [vmem:[#allocation8 + $0x170] sm:$0xff]  ;;  %v248_v3 = vld [vmem:[#allocation8 + $0x178] sm:$0xff]  ;;  %vm7487_vm0 = vmmov 0  }
  0x43   :  { %330 = vmatprep.mubr.f32.mxu0 %v10282_v1  ;;  %142 = vst [vmem:[#allocation2] sm:$0xff] %v10282_v1  ;;  %143 = vst [vmem:[#allocation2 + $0x8] sm:$0xff] %v10282_v1  ;;  %v246_v4 = vld [vmem:[#allocation8 + $0x168] sm:$0xff]  ;;  %266 = vmatprep.subr.mxu0 %v247_v2  ;;  %v244_v5 = vld [vmem:[#allocation8 + $0x158] sm:$0xff]  ;;  %vm594_vm4 = vcmask 254976   ;;  %vm596_vm5 = vcmask 517376  }
  0x44   :  { %6004 = vmatprep.subr.mxu1 %v248_v3  ;;  %v245_v6 = vld [vmem:[#allocation8 + $0x160] sm:$0xff]  ;;  %v243_v7 = vld [vmem:[#allocation8 + $0x150] sm:$0xff]  ;;  %267 = vmatpush1.msra.mxu0 %v246_v4  ;;  %v242_v9 = vld [vmem:[#allocation8 + $0x148] sm:$0xff]  ;;  %vm782_vm6 = vcmask 257026   ;;  %vm784_vm7 = vcmask 519426   ;;  %vm963_vm8 = vcmask 259076  }
  0x45   :  { %6005 = vmatpush3.msra.mxu1 %v248_v3  ;;  %v241_v8 = vld [vmem:[#allocation8 + $0x140] sm:$0xff]  ;;  %268 = vmatprep.subr.mxu0 %v244_v5  ;;  %v240_v10 = vld [vmem:[#allocation8 + $0x138] sm:$0xff]  ;;  %v238_v11 = vld [vmem:[#allocation8 + $0x128] sm:$0xff]  ;;  %vm965_vm9 = vcmask 521476   ;;  %vm1144_vm10 = vcmask 261126   ;;  %vm1146_vm11 = vcmask 523526  }
  0x46   :  { %6006 = vmatprep.subr.mxu1 %v245_v6  ;;  %269 = vmatpush1.msra.mxu0 %v243_v7  ;;  %v239_v12 = vld [vmem:[#allocation8 + $0x130] sm:$0xff]  ;;  %v237_v13 = vld [vmem:[#allocation8 + $0x120] sm:$0xff]  ;;  %v236_v15 = vld [vmem:[#allocation8 + $0x118] sm:$0xff] }
  0x47   :  { %6007 = vmatpush3.msra.mxu1 %v245_v6  ;;  %270 = vmatprep.subr.mxu0 %v241_v8  ;;  %v235_v14 = vld [vmem:[#allocation8 + $0x110] sm:$0xff]  ;;  %v234_v16 = vld [vmem:[#allocation8 + $0x108] sm:$0xff]  ;;  %v232_v17 = vld [vmem:[#allocation8 + $0xf8] sm:$0xff] }
  0x48   :  { %6008 = vmatprep.subr.mxu1 %v242_v9  ;;  %271 = vmatpush1.msra.mxu0 %v240_v10  ;;  %v233_v18 = vld [vmem:[#allocation8 + $0x100] sm:$0xff]  ;;  %v231_v19 = vld [vmem:[#allocation8 + $0xf0] sm:$0xff]  ;;  %v230_v21 = vld [vmem:[#allocation8 + $0xe8] sm:$0xff] }
  0x49   :  { %6009 = vmatpush3.msra.mxu1 %v242_v9  ;;  %272 = vmatprep.subr.mxu0 %v238_v11  ;;  %v229_v20 = vld [vmem:[#allocation8 + $0xe0] sm:$0xff]  ;;  %v228_v22 = vld [vmem:[#allocation8 + $0xd8] sm:$0xff]  ;;  %v226_v23 = vld [vmem:[#allocation8 + $0xc8] sm:$0xff] }
  0x4a   :  { %6010 = vmatprep.subr.mxu1 %v239_v12  ;;  %273 = vmatpush1.msra.mxu0 %v237_v13  ;;  %v227_v24 = vld [vmem:[#allocation8 + $0xd0] sm:$0xff]  ;;  %v225_v25 = vld [vmem:[#allocation8 + $0xc0] sm:$0xff]  ;;  %v224_v27 = vld [vmem:[#allocation8 + $0xb8] sm:$0xff] }
  0x4b   :  { %6011 = vmatpush3.msra.mxu1 %v239_v12  ;;  %274 = vmatprep.subr.mxu0 %v235_v14  ;;  %v223_v26 = vld [vmem:[#allocation8 + $0xb0] sm:$0xff]  ;;  %v222_v28 = vld [vmem:[#allocation8 + $0xa8] sm:$0xff]  ;;  %v220_v29 = vld [vmem:[#allocation8 + $0x98] sm:$0xff] }
  0x4c   :  { %6012 = vmatprep.subr.mxu1 %v236_v15  ;;  %275 = vmatpush1.msra.mxu0 %v234_v16  ;;  %v221_v30 = vld [vmem:[#allocation8 + $0xa0] sm:$0xff]  ;;  %v219_v31 = vld [vmem:[#allocation8 + $0x90] sm:$0xff]  ;;  %v218_v33 = vld [vmem:[#allocation8 + $0x88] sm:$0xff] }
  0x4d   :  { %6013 = vmatpush3.msra.mxu1 %v236_v15  ;;  %276 = vmatprep.subr.mxu0 %v232_v17  ;;  %v217_v32 = vld [vmem:[#allocation8 + $0x80] sm:$0xff]  ;;  %v216_v34 = vld [vmem:[#allocation8 + $0x78] sm:$0xff]  ;;  %v214_v35 = vld [vmem:[#allocation8 + $0x68] sm:$0xff] }
  0x4e   :  { %6014 = vmatprep.subr.mxu1 %v233_v18  ;;  %277 = vmatpush1.msra.mxu0 %v231_v19  ;;  %v215_v36 = vld [vmem:[#allocation8 + $0x70] sm:$0xff]  ;;  %v213_v37 = vld [vmem:[#allocation8 + $0x60] sm:$0xff]  ;;  %v212_v39 = vld [vmem:[#allocation8 + $0x58] sm:$0xff] }
  0x4f   :  { %6015 = vmatpush3.msra.mxu1 %v233_v18  ;;  %278 = vmatprep.subr.mxu0 %v229_v20  ;;  %v211_v38 = vld [vmem:[#allocation8 + $0x50] sm:$0xff]  ;;  %v210_v40 = vld [vmem:[#allocation8 + $0x48] sm:$0xff]  ;;  %v208_v41 = vld [vmem:[#allocation8 + $0x38] sm:$0xff] }
  0x50   :  { %6016 = vmatprep.subr.mxu1 %v230_v21  ;;  %279 = vmatpush1.msra.mxu0 %v228_v22  ;;  %v209_v42 = vld [vmem:[#allocation8 + $0x40] sm:$0xff]  ;;  %v207_v43 = vld [vmem:[#allocation8 + $0x30] sm:$0xff]  ;;  %v206_v45 = vld [vmem:[#allocation8 + $0x28] sm:$0xff] }
  0x51   :  { %6017 = vmatpush3.msra.mxu1 %v230_v21  ;;  %280 = vmatprep.subr.mxu0 %v226_v23  ;;  %v205_v44 = vld [vmem:[#allocation8 + $0x20] sm:$0xff]  ;;  %v204_v46 = vld [vmem:[#allocation8 + $0x18] sm:$0xff]  ;;  %v202_v47 = vld [vmem:[#allocation8 + $0x8] sm:$0xff] }
  0x52   :  { %6018 = vmatprep.subr.mxu1 %v227_v24  ;;  %281 = vmatpush1.msra.mxu0 %v225_v25  ;;  %v203_v48 = vld [vmem:[#allocation8 + $0x10] sm:$0xff]  ;;  %v201_v49 = vld [vmem:[#allocation8] sm:$0xff]  ;;  %v7556_v53 = vld [vmem:[#allocation9 + $0x178] sm:$0xff] }
  0x53   :  { %6019 = vmatpush3.msra.mxu1 %v227_v24  ;;  %282 = vmatprep.subr.mxu0 %v223_v26  ;;  %v144_v50 = vld [vmem:[#allocation4] sm:$0xff]  ;;  %v145_v52 = vld [vmem:[#allocation4 + $0x8] sm:$0xff]  ;;  %v7564_v56 = vld [vmem:[#allocation9 + $0x160] sm:$0xff] }
  0x54   :  { %6020 = vmatprep.subr.mxu1 %v224_v27  ;;  %283 = vmatpush1.msra.mxu0 %v222_v28  ;;  %v7554_v51 = vld [vmem:[#allocation9 + $0x170] sm:$0xff]  ;;  %v7559_v54 = vld [vmem:[#allocation9 + $0x168] sm:$0xff]  ;;  %v7562_v55 = vld [vmem:[#allocation9 + $0x158] sm:$0xff] }
  0x55   :  { %6021 = vmatpush3.msra.mxu1 %v224_v27  ;;  %284 = vmatprep.subr.mxu0 %v220_v29  ;;  %10418 = vst [vmem:[#allocation15_spill] sm:$0xff] %v7554_v51  ;;  %v7567_v57 = vld [vmem:[#allocation9 + $0x150] sm:$0xff]  ;;  %v7571_v58 = vld [vmem:[#allocation9 + $0x140] sm:$0xff]  ;;  %v7573_v59 = vld [vmem:[#allocation9 + $0x148] sm:$0xff] }
  0x56   :  { %6022 = vmatprep.subr.mxu1 %v221_v30  ;;  %285 = vmatpush1.msra.mxu0 %v219_v31  ;;  %v7577_v60 = vld [vmem:[#allocation9 + $0x138] sm:$0xff]  ;;  %v7581_v61 = vld [vmem:[#allocation9 + $0x128] sm:$0xff]  ;;  %v7583_v62 = vld [vmem:[#allocation9 + $0x130] sm:$0xff] }
  0x57   :  { %6023 = vmatpush3.msra.mxu1 %v221_v30  ;;  %286 = vmatprep.subr.mxu0 %v217_v32  ;;  %v7587_v63 = vld [vmem:[#allocation9 + $0x120] sm:$0xff]  ;;  %v7591_v0 = vld [vmem:[#allocation9 + $0x110] sm:$0xff]  ;;  %v7593_v2 = vld [vmem:[#allocation9 + $0x118] sm:$0xff] }
  0x58   :  { %6024 = vmatprep.subr.mxu1 %v218_v33  ;;  %287 = vmatpush1.msra.mxu0 %v216_v34  ;;  %v7597_v3 = vld [vmem:[#allocation9 + $0x108] sm:$0xff]  ;;  %v7601_v4 = vld [vmem:[#allocation9 + $0xf8] sm:$0xff]  ;;  %v7605_v5 = vld [vmem:[#allocation9 + $0x100] sm:$0xff] }
  0x59   :  { %6025 = vmatpush3.msra.mxu1 %v218_v33  ;;  %288 = vmatprep.subr.mxu0 %v214_v35  ;;  %v7609_v6 = vld [vmem:[#allocation9 + $0xf0] sm:$0xff]  ;;  %v7613_v7 = vld [vmem:[#allocation9 + $0xe0] sm:$0xff]  ;;  %v7615_v8 = vld [vmem:[#allocation9 + $0xe8] sm:$0xff] }
  0x5a   :  { %6026 = vmatprep.subr.mxu1 %v215_v36  ;;  %289 = vmatpush1.msra.mxu0 %v213_v37  ;;  %v7618_v9 = vld [vmem:[#allocation9 + $0xd8] sm:$0xff]  ;;  %v7622_v10 = vld [vmem:[#allocation9 + $0xc8] sm:$0xff]  ;;  %v7624_v11 = vld [vmem:[#allocation9 + $0xd0] sm:$0xff] }
  0x5b   :  { %6027 = vmatpush3.msra.mxu1 %v215_v36  ;;  %290 = vmatprep.subr.mxu0 %v211_v38  ;;  %v7628_v12 = vld [vmem:[#allocation9 + $0xc0] sm:$0xff]  ;;  %v7632_v13 = vld [vmem:[#allocation9 + $0xb0] sm:$0xff]  ;;  %v7634_v14 = vld [vmem:[#allocation9 + $0xb8] sm:$0xff]  ;;  %v99_v38 = vlaneseq }
  0x5c   :  { %6028 = vmatprep.subr.mxu1 %v212_v39  ;;  %291 = vmatpush1.msra.mxu0 %v210_v40  ;;  %v7638_v15 = vld [vmem:[#allocation9 + $0xa8] sm:$0xff]  ;;  %v7642_v16 = vld [vmem:[#allocation9 + $0x98] sm:$0xff]  ;;  %v7644_v17 = vld [vmem:[#allocation9 + $0xa0] sm:$0xff] }
  0x5d   :  { %6029 = vmatpush3.msra.mxu1 %v212_v39  ;;  %292 = vmatprep.subr.mxu0 %v208_v41  ;;  %v7648_v18 = vld [vmem:[#allocation9 + $0x90] sm:$0xff]  ;;  %v7652_v19 = vld [vmem:[#allocation9 + $0x80] sm:$0xff]  ;;  %v7654_v20 = vld [vmem:[#allocation9 + $0x88] sm:$0xff]  ;;  %v7791_v39 = vshrl.u32 %v99_v38, 7  ;;  %v7793_v40 = vand.u32 127, %v99_v38 }
  0x5e   :  { %6030 = vmatprep.subr.mxu1 %v209_v42  ;;  %293 = vmatpush1.msra.mxu0 %v207_v43  ;;  %v7658_v21 = vld [vmem:[#allocation9 + $0x78] sm:$0xff]  ;;  %v7662_v22 = vld [vmem:[#allocation9 + $0x68] sm:$0xff]  ;;  %v7664_v23 = vld [vmem:[#allocation9 + $0x70] sm:$0xff] }
  0x5f   :  { %6031 = vmatpush3.msra.mxu1 %v209_v42  ;;  %294 = vmatprep.subr.mxu0 %v205_v44  ;;  %v7668_v24 = vld [vmem:[#allocation9 + $0x60] sm:$0xff]  ;;  %v7672_v25 = vld [vmem:[#allocation9 + $0x50] sm:$0xff]  ;;  %v7674_v26 = vld [vmem:[#allocation9 + $0x58] sm:$0xff]  ;;  %10426 = vst [vmem:[#allocation23_spill] sm:$0xff] %v7791_v39  ;;  %v7796_v41 = vsub.s32 2, %v7791_v39  ;;  %v102_v43 = vadd.s32 256, %v7793_v40 }
  0x60   :  { %6032 = vmatprep.subr.mxu1 %v206_v45  ;;  %295 = vmatpush1.msra.mxu0 %v204_v46  ;;  %v7678_v27 = vld [vmem:[#allocation9 + $0x48] sm:$0xff]  ;;  %v7682_v28 = vld [vmem:[#allocation9 + $0x38] sm:$0xff]  ;;  %v7684_v29 = vld [vmem:[#allocation9 + $0x40] sm:$0xff]  ;;  %10427 = vst [vmem:[#allocation24_spill] sm:$0xff] %v7793_v40  ;;  %vm139_vm2 = vcmp.lt.s32.totalorder %v7793_v40, 32 }
  0x61   :  { %6033 = vmatpush3.msra.mxu1 %v206_v45  ;;  %296 = vmatprep.subr.mxu0 %v202_v47  ;;  %10419 = vst [vmem:[#allocation16_spill] sm:$0xff] %v7684_v29  ;;  %v7688_v30 = vld [vmem:[#allocation9 + $0x30] sm:$0xff]  ;;  %v7692_v31 = vld [vmem:[#allocation9 + $0x20] sm:$0xff]  ;;  %v7694_v32 = vld [vmem:[#allocation9 + $0x28] sm:$0xff]  ;;  %v121_v45 = vand.u32 127, %v102_v43 }
  0x62   :  { %6034 = vmatprep.subr.mxu1 %v203_v48  ;;  %297 = vmatpush1.msra.mxu0 %v201_v49  ;;  %10420 = vst [vmem:[#allocation17_spill] sm:$0xff] %v7692_v31  ;;  %10421 = vst [vmem:[#allocation18_spill] sm:$0xff] %v7694_v32  ;;  %v7698_v33 = vld [vmem:[#allocation9 + $0x18] sm:$0xff]  ;;  %v7702_v34 = vld [vmem:[#allocation9 + $0x8] sm:$0xff] }
  0x63   :  { %6035 = vmatpush3.msra.mxu1 %v203_v48  ;;  %6036 = vmatprep.mubr.f32.mxu1 %v144_v50  ;;  %10422 = vst [vmem:[#allocation19_spill] sm:$0xff] %v7698_v33  ;;  %10423 = vst [vmem:[#allocation20_spill] sm:$0xff] %v7702_v34  ;;  %v7706_v35 = vld [vmem:[#allocation9] sm:$0xff]  ;;  %v7708_v36 = vld [vmem:[#allocation9 + $0x10] sm:$0xff]  ;;  %v7804_v48 = vsub.s32 0, %v7791_v39  ;;  %vm7806_vm1 = vcmp.lt.s32.totalorder %v121_v45, 32 }
  0x64   :  { %431 = vmatprep.subr.mxu0 %v7554_v51  ;;  %6037 = vmatmul.mubr.f32.vlgmr.msra.gmra.mxu1 %v145_v52  ;;  %10424 = vst [vmem:[#allocation21_spill] sm:$0xff] %v7706_v35  ;;  %10425 = vst [vmem:[#allocation22_spill] sm:$0xff] %v7708_v36  ;;  %v7712_v37 = vld [vmem:[#allocation6] sm:$0x3] }
  0x65   :  { %6039 = vmatprep.subr.mxu1 %v10282_v1  ;;  %331 = vmatmul.mubr.f32.vlgmr.msra.gmra.mxu0 %v144_v50  ;;  %10428 = vst [vmem:[#allocation25_spill] sm:$0xff] %v7796_v41  ;;  %v249_v42 = vld [vmem:[%s10277_s4] sm:$0x7]  ;;  %10429 = vst [vmem:[#allocation26_spill] sm:$0xff] %v7804_v48  ;;  %v10430_v50 = vmov 0 }
  0x66   :  { %6040 = vmatpush3.msra.mxu1 %v7556_v53  ;;  %432 = vmatpush1.msra.mxu0 %v7559_v54  ;;  %v262_v44 = vrot.slane %v249_v42, %v7796_v41  ;;  %v10431_v50 = vsel %vm7806_vm1, 4294967295, %v10430_v50 }
  0x67   :  { %6041 = vmatprep.subr.mxu1 %v10282_v1  ;;  %433 = vmatprep.subr.mxu0 %v7562_v55  ;;  %10432 = vst [vmem:[#allocation27_spill] sm:$0xff] %v10431_v50 }
  0x68   :  { %6042 = vmatpush3.msra.mxu1 %v7564_v56  ;;  %434 = vmatpush1.msra.mxu0 %v7567_v57 }
  0x69   :  { %6043 = vmatprep.subr.mxu1 %v10282_v1  ;;  %435 = vmatprep.subr.mxu0 %v7571_v58 }
  0x6a   :  { %6044 = vmatpush3.msra.mxu1 %v7573_v59  ;;  %436 = vmatpush1.msra.mxu0 %v7577_v60 }
  0x6b   :  { %6045 = vmatprep.subr.mxu1 %v10282_v1  ;;  %437 = vmatprep.subr.mxu0 %v7581_v61 }
  0x6c   :  { %6046 = vmatpush3.msra.mxu1 %v7583_v62  ;;  %438 = vmatpush1.msra.mxu0 %v7587_v63 }
  0x6d   :  { %6047 = vmatprep.subr.mxu1 %v10282_v1  ;;  %439 = vmatprep.subr.mxu0 %v7591_v0 }
  0x6e   :  { %6048 = vmatpush3.msra.mxu1 %v7593_v2  ;;  %440 = vmatpush1.msra.mxu0 %v7597_v3 }
  0x6f   :  { %336 = vmatprep.mubr.f32.mxu0 %v10282_v1  ;;  %441 = vmatprep.subr.mxu0 %v7601_v4 }
  0x70   :  { %6049 = vmatprep.subr.mxu1 %v10282_v1  ;;  %337 = vmatmul.mubr.f32.gmra.mxu0 %v145_v52 }
  0x71   :  { %6050 = vmatpush3.msra.mxu1 %v7605_v5  ;;  %442 = vmatpush1.msra.mxu0 %v7609_v6 }
  0x72   :  { %6051 = vmatprep.subr.mxu1 %v10282_v1  ;;  %443 = vmatprep.subr.mxu0 %v7613_v7 }
  0x73   :  { %6052 = vmatpush3.msra.mxu1 %v7615_v8  ;;  %444 = vmatpush1.msra.mxu0 %v7618_v9 }
  0x74   :  { %6053 = vmatprep.subr.mxu1 %v10282_v1  ;;  %445 = vmatprep.subr.mxu0 %v7622_v10 }
  0x75   :  { %6054 = vmatpush3.msra.mxu1 %v7624_v11  ;;  %446 = vmatpush1.msra.mxu0 %v7628_v12 }
  0x76   :  { %6055 = vmatprep.subr.mxu1 %v10282_v1  ;;  %447 = vmatprep.subr.mxu0 %v7632_v13 }
  0x77   :  { %6056 = vmatpush3.msra.mxu1 %v7634_v14  ;;  %448 = vmatpush1.msra.mxu0 %v7638_v15 }
  0x78   :  { %6057 = vmatprep.subr.mxu1 %v10282_v1  ;;  %449 = vmatprep.subr.mxu0 %v7642_v16 }
  0x79   :  { %6058 = vmatpush3.msra.mxu1 %v7644_v17  ;;  %450 = vmatpush1.msra.mxu0 %v7648_v18 }
  0x7a   :  { %6059 = vmatprep.subr.mxu1 %v10282_v1  ;;  %451 = vmatprep.subr.mxu0 %v7652_v19 }
  0x7b   :  { %6060 = vmatpush3.msra.mxu1 %v7654_v20  ;;  %452 = vmatpush1.msra.mxu0 %v7658_v21 }
  0x7c   :  { %6061 = vmatprep.subr.mxu1 %v10282_v1  ;;  %453 = vmatprep.subr.mxu0 %v7662_v22 }
  0x7d   :  { %6062 = vmatpush3.msra.mxu1 %v7664_v23  ;;  %454 = vmatpush1.msra.mxu0 %v7668_v24 }
  0x7e   :  { %6063 = vmatprep.subr.mxu1 %v10282_v1  ;;  %455 = vmatprep.subr.mxu0 %v7672_v25 }
  0x7f   :  { %6064 = vmatpush3.msra.mxu1 %v7674_v26  ;;  %456 = vmatpush1.msra.mxu0 %v7678_v27 }
  0x80   :  { %6065 = vmatprep.subr.mxu1 %v10282_v1  ;;  %457 = vmatprep.subr.mxu0 %v7682_v28 }
  0x81   :  { %6066 = vmatpush3.msra.mxu1 %v7684_v29  ;;  %458 = vmatpush1.msra.mxu0 %v7688_v30 }
  0x82   :  { %6067 = vmatprep.subr.mxu1 %v10282_v1  ;;  %459 = vmatprep.subr.mxu0 %v7692_v31 }
  0x83   :  { %6068 = vmatpush3.msra.mxu1 %v7694_v32  ;;  %460 = vmatpush1.msra.mxu0 %v7698_v33 }
  0x84   :  { %6069 = vmatprep.subr.mxu1 %v10282_v1  ;;  %461 = vmatprep.subr.mxu0 %v7702_v34 }
  0x85   :  { %495 = vmatprep.mubr.f32.mxu0 %v10282_v1  ;;  %462 = vmatpush1.msra.mxu0 %v7706_v35 }
  0x86   :  { %6070 = vmatpush3.msra.mxu1 %v7708_v36  ;;  %6071 = vmatprep.mubr.msk.f32.mxu1 %vm7487_vm0, %v10282_v1 }
  0x87   :  { %496 = vmatmul.mubr.f32.vlgmr.msra.gmra.mxu0 %v7712_v37  ;;  %6072 = vmatmul.mubr.f32.vlgmr.msra.gmra.mxu1 %v7712_v37 }
  0x88   :  { %607 = vmatprep.subr.mxu0 %v7554_v51  ;;  %6074 = vmatprep.subr.mxu1 %v10282_v1 }
  0x89   :  { %608 = vmatpush1.msra.mxu0 %v7559_v54  ;;  %6075 = vmatpush3.msra.mxu1 %v7556_v53 }
  0x8a   :  { %609 = vmatprep.subr.mxu0 %v7562_v55  ;;  %6076 = vmatprep.subr.mxu1 %v10282_v1 }
  0x8b   :  { %610 = vmatpush1.msra.mxu0 %v7567_v57  ;;  %6077 = vmatpush3.msra.mxu1 %v7564_v56 }
  0x8c   :  { %611 = vmatprep.subr.mxu0 %v7571_v58  ;;  %6078 = vmatprep.subr.mxu1 %v10282_v1 }
  0x8d   :  { %612 = vmatpush1.msra.mxu0 %v7577_v60  ;;  %6079 = vmatpush3.msra.mxu1 %v7573_v59 }
  0x8e   :  { %613 = vmatprep.subr.mxu0 %v7581_v61  ;;  %6080 = vmatprep.subr.mxu1 %v10282_v1 }
  0x8f   :  { %614 = vmatpush1.msra.mxu0 %v7587_v63  ;;  %6081 = vmatpush3.msra.mxu1 %v7583_v62 }
  0x90   :  { %615 = vmatprep.subr.mxu0 %v7591_v0  ;;  %6082 = vmatprep.subr.mxu1 %v10282_v1 }
  0x91   :  { %616 = vmatpush1.msra.mxu0 %v7597_v3  ;;  %6083 = vmatpush3.msra.mxu1 %v7593_v2 }
  0x92   :  { %617 = vmatprep.subr.mxu0 %v7601_v4  ;;  %6084 = vmatprep.subr.mxu1 %v10282_v1 }
  0x93   :  { %618 = vmatpush1.msra.mxu0 %v7609_v6  ;;  %6085 = vmatpush3.msra.mxu1 %v7605_v5 }
  0x94   :  { %619 = vmatprep.subr.mxu0 %v7613_v7  ;;  %6086 = vmatprep.subr.mxu1 %v10282_v1 }
  0x95   :  { %620 = vmatpush1.msra.mxu0 %v7618_v9  ;;  %6087 = vmatpush3.msra.mxu1 %v7615_v8 }
  0x96   :  { %621 = vmatprep.subr.mxu0 %v7622_v10  ;;  %6088 = vmatprep.subr.mxu1 %v10282_v1 }
  0x97   :  { %622 = vmatpush1.msra.mxu0 %v7628_v12  ;;  %6089 = vmatpush3.msra.mxu1 %v7624_v11 }
  0x98   :  { %623 = vmatprep.subr.mxu0 %v7632_v13  ;;  %6090 = vmatprep.subr.mxu1 %v10282_v1 }
  0x99   :  { %624 = vmatpush1.msra.mxu0 %v7638_v15  ;;  %6091 = vmatpush3.msra.mxu1 %v7634_v14 }
  0x9a   :  { %625 = vmatprep.subr.mxu0 %v7642_v16  ;;  %6092 = vmatprep.subr.mxu1 %v10282_v1 }
  0x9b   :  { %626 = vmatpush1.msra.mxu0 %v7648_v18  ;;  %6093 = vmatpush3.msra.mxu1 %v7644_v17 }
  0x9c   :  { %627 = vmatprep.subr.mxu0 %v7652_v19  ;;  %6094 = vmatprep.subr.mxu1 %v10282_v1 }
  0x9d   :  { %628 = vmatpush1.msra.mxu0 %v7658_v21  ;;  %6095 = vmatpush3.msra.mxu1 %v7654_v20 }
  0x9e   :  { %629 = vmatprep.subr.mxu0 %v7662_v22  ;;  %6096 = vmatprep.subr.mxu1 %v10282_v1 }
  0x9f   :  { %630 = vmatpush1.msra.mxu0 %v7668_v24  ;;  %6097 = vmatpush3.msra.mxu1 %v7664_v23 }
  0xa0   :  { %631 = vmatprep.subr.mxu0 %v7672_v25  ;;  %6098 = vmatprep.subr.mxu1 %v10282_v1 }
  0xa1   :  { %632 = vmatpush1.msra.mxu0 %v7678_v27  ;;  %6099 = vmatpush3.msra.mxu1 %v7674_v26 }
  0xa2   :  { %633 = vmatprep.subr.mxu0 %v7682_v28  ;;  %6100 = vmatprep.subr.mxu1 %v10282_v1 }
  0xa3   :  { %634 = vmatpush1.msra.mxu0 %v7688_v30  ;;  %6101 = vmatpush3.msra.mxu1 %v7684_v29 }
  0xa4   :  { %635 = vmatprep.subr.mxu0 %v7692_v31  ;;  %6102 = vmatprep.subr.mxu1 %v10282_v1 }
  0xa5   :  { %636 = vmatpush1.msra.mxu0 %v7698_v33  ;;  %6103 = vmatpush3.msra.mxu1 %v7694_v32 }
  0xa6   :  { %637 = vmatprep.subr.mxu0 %v7702_v34  ;;  %6104 = vmatprep.subr.mxu1 %v10282_v1 }
  0xa7   :  { %638 = vmatpush1.msra.mxu0 %v7706_v35  ;;  %671 = vmatprep.mubr.f32.mxu0 %v10282_v1 }
  0xa8   :  { %6105 = vmatpush3.msra.mxu1 %v7708_v36  ;;  %6106 = vmatprep.mubr.msk.f32.mxu1 %vm7487_vm0, %v10282_v1  ;;  %v254_v36 = vrot.slane %v249_v42, %v7804_v48  ;;  %v101_v48 = vadd.s32 128, %v7793_v40 }
  0xa9   :  { %789 = vmatprep.subr.mxu0 %v7554_v51  ;;  %6109 = vmatprep.subr.mxu1 %v10282_v1  ;;  %v7811_v51 = vsub.s32 1, %v7791_v39 }
  0xaa   :  { %v114_v31 = vand.u32 127, %v101_v48 }
  0xab   :  { %10433 = vst [vmem:[#allocation28_spill] sm:$0xff] %v7811_v51 }
  0xac   :  { %vm7841_vm3 = vcmp.lt.s32.totalorder %v114_v31, 32 }
 0x124   :  { %v6038_v46 = vpop.f32.mrf.mxu1 }
 0x125   :  { %v415_v47 = vadd.f32 %v6038_v46, %v262_v44  ;;  %v332_v1 = vpop.f32.mrf.mxu0 }
 0x126   :  { %v409_v49 = vpop.f32.mrf.mxu1  ;;  %v333_v35 = vadd.f32 %v332_v1, %v254_v36 }
 0x127   :  { %v410_v52 = vadd.f32 %v409_v49, %v262_v44  ;;  %v600_v38 = vrot.slane %v415_v47, 2  ;;  %v258_v49 = vrot.slane %v249_v42, %v7811_v51  ;;  %v334_v39 = vpop.f32.mrf.mxu0 }
 0x128   :  { %v1151_v32 = vrot.slane %v333_v35, 6 }
 0x129   :  { %v7816_v43 = vsel %vm7806_vm1, %v410_v52, %v600_v38  ;;  %v1153_v46 = vrot.slane %v410_v52, 6  ;;  %v1330_v41 = vrot.slane %v410_v52, 2  ;;  %v335_v34 = vadd.f32 %v334_v39, %v258_v49 }
 0x12a   :  { %10434 = vst [vmem:[#allocation29_spill] sm:$0xff] %v7816_v43  ;;  %v1328_v38 = vrot.slane %v333_v35, 2 }
 0x12b   :  { %v7820_v45 = vsel %vm7806_vm1, %v415_v47, %v1153_v46  ;;  %v7824_v44 = vsel %vm7806_vm1, %v415_v47, %v1330_v41  ;;  %v1152_v46 = vrot.slane %v335_v34, 6 }
 0x12c   :  { %10435 = vst [vmem:[#allocation30_spill] sm:$0xff] %v7820_v45  ;;  %10436 = vst [vmem:[#allocation31_spill] sm:$0xff] %v7824_v44  ;;  %v1329_v45 = vrot.slane %v335_v34, 2 }
 0x130   :  { %v338_v43 = vpop.f32.mrf.mxu0 }
 0x131   :  { %v339_v33 = vadd.f32 %v338_v43, %v254_v36  ;;  %v10440_v36 = vmov 0 }
 0x132   :  { %v340_v1 = vpop.f32.mrf.mxu0  ;;  %v10441_v36 = vsel %vm7841_vm3, 4294967295, %v10440_v36 }
 0x133   :  { %v598_v29 = vrot.slane %v339_v33, 2  ;;  %v7831_v41 = vsel %vm139_vm2, %v339_v33, %v1151_v32  ;;  %v7835_v42 = vsel %vm139_vm2, %v339_v33, %v1328_v38  ;;  %v341_v39 = vadd.f32 %v340_v1, %v258_v49  ;;  %10442 = vst [vmem:[#allocation35_spill] sm:$0xff] %v10441_v36 }
 0x134   :  { %10437 = vst [vmem:[#allocation32_spill] sm:$0xff] %v7831_v41  ;;  %10438 = vst [vmem:[#allocation33_spill] sm:$0xff] %v7835_v42  ;;  %v424_v38 = vrot.slane %v415_v47, 6 }
 0x135   :  { %v7839_v51 = vsel %vm139_vm2, %v333_v35, %v598_v29  ;;  %v599_v48 = vrot.slane %v341_v39, 2  ;;  %v7847_v43 = vsel %vm7841_vm3, %v341_v39, %v1152_v46  ;;  %v7851_v32 = vsel %vm7841_vm3, %v341_v39, %v1329_v45 }
 0x136   :  { %10439 = vst [vmem:[#allocation34_spill] sm:$0xff] %v7839_v51  ;;  %10443 = vst [vmem:[#allocation36_spill] sm:$0xff] %v7847_v43  ;;  %v7859_v31 = vsel %vm7806_vm1, %v410_v52, %v424_v38  ;;  %v423_v44 = vrot.slane %v341_v39, 6  ;;  %v7867_v38 = vld [vmem:[#allocation11] ss:$0 sm:$0xff]  ;;  %v422_v39 = vrot.slane %v339_v33, 6 }
 0x137   :  { %10444 = vst [vmem:[#allocation37_spill] sm:$0xff] %v7851_v32  ;;  %v7855_v49 = vsel %vm7841_vm3, %v335_v34, %v599_v48  ;;  %10446 = vst [vmem:[#allocation39_spill] sm:$0xff] %v7859_v31 }
 0x138   :  { %10445 = vst [vmem:[#allocation38_spill] sm:$0xff] %v7855_v49  ;;  %v7864_v45 = vsel %vm7841_vm3, %v335_v34, %v423_v44  ;;  %v7872_v34 = vsel %vm139_vm2, %v333_v35, %v422_v39  ;;  %v10449_v35 = vmov 0.0   ;;  %v10454_v39 = vld [vmem:[#allocation20_spill] sm:$0xff] }
 0x139   :  { %10447 = vst [vmem:[#allocation40_spill] sm:$0xff] %v7864_v45  ;;  %10448 = vst [vmem:[#allocation41_spill] sm:$0xff] %v7872_v34 }
 0x147   :  { %v497_v29 = vpop.f32.mrf.mxu0  ;;  %v568_v1 = vpop.f32.mrf.mxu1 }
 0x148   :  { %v573_v42 = vadd.f32 %v568_v1, %v7859_v31 }
 0x149   :  { %v6073_v46 = vpop.f32.mrf.mxu1  ;;  %v499_v43 = vpop.f32.mrf.mxu0 }
 0x14a   :  { %v5488_v41 = vmul.f32 -1.442695, %v573_v42  ;;  %v572_v48 = vadd.f32 %v499_v43, %v7864_v45  ;;  %v588_v42 = vadd.f32 %v7867_v38, %v497_v29  ;;  %v10451_v29 = vld [vmem:[#allocation17_spill] sm:$0xff] }
 0x14c   :  { %6964 = vpow2.f32 %v5488_v41  ;;  %v5487_v47 = vmul.f32 -1.442695, %v572_v48 }
 0x14e   :  { %6966 = vpow2.f32 %v5487_v47 }
 0x159   :  { %v6965_v32 = vpop.eup %6964 }
 0x15a   :  { %v581_v50 = vadd.f32 1.0, %v6965_v32 }
 0x15b   :  { %v6967_v52 = vpop.eup %6966 }
 0x15c   :  { %6968 = vrcp.f32 %v581_v50  ;;  %v580_v1 = vadd.f32 1.0, %v6967_v52  ;;  %v10452_v52 = vld [vmem:[#allocation19_spill] sm:$0xff] }
 0x15e   :  { %6970 = vrcp.f32 %v580_v1  ;;  %v10453_v1 = vld [vmem:[#allocation18_spill] sm:$0xff] }
 0x169   :  { %v6969_v46 = vpop.eup %6968 }
 0x16a   :  { %v589_v41 = vmul.f32 %v6969_v46, %v588_v42  ;;  %v10455_v42 = vld [vmem:[#allocation21_spill] sm:$0xff]  ;;  %v10456_v46 = vld [vmem:[#allocation22_spill] sm:$0xff] }
 0x16b   :  { %v6971_v43 = vpop.eup %6970 }
 0x16c   :  { %v590_v44 = vadd.f32 %v589_v41, %v7872_v34  ;;  %v586_v32 = vsub.f32 1.0, %v6971_v43  ;;  %v587_v48 = vmul.f32 %v6971_v43, %v7712_v37  ;;  %v10450_v37 = vld [vmem:[#allocation16_spill] sm:$0xff]  ;;  %v10457_v41 = vld [vmem:[#allocation15_spill] sm:$0xff] }
 0x16e   :  { %6972 = vtanh.f32 %v590_v44 }
 0x17b   :  { %v6973_v50 = vpop.eup %6972 }
 0x17c   :  { %v592_v47 = vmul.f32 %v6973_v50, %v586_v32 }
 0x17e   :  { %v7876_v33 = vadd.f32 %v592_v47, %v587_v48  ;;  %v10458_v47 = vld [vmem:[#allocation29_spill] sm:$0xff] }
 0x180   :  { %672 = vmatmul.mubr.f32.vlgmr.msra.gmra.mxu0 %v7876_v33  ;;  %6107 = vmatmul.mubr.f32.vlgmr.msra.gmra.mxu1 %v7876_v33  ;;  %595 = vst.msk [vmem:[#allocation2] sm:$0x3] %vm594_vm4, %v7876_v33 }
 0x181   :  { %597 = vst.msk [vmem:[#allocation2 + $0xe] sm:$0x3] %vm596_vm5, %v7876_v33  ;;  %790 = vmatpush1.msra.mxu0 %v7559_v54  ;;  %6110 = vmatpush3.msra.mxu1 %v7556_v53 }
 0x182   :  { %791 = vmatprep.subr.mxu0 %v7562_v55  ;;  %6111 = vmatprep.subr.mxu1 %v10449_v35 }
 0x183   :  { %792 = vmatpush1.msra.mxu0 %v7567_v57  ;;  %6112 = vmatpush3.msra.mxu1 %v7564_v56 }
 0x184   :  { %793 = vmatprep.subr.mxu0 %v7571_v58  ;;  %6113 = vmatprep.subr.mxu1 %v10449_v35 }
 0x185   :  { %794 = vmatpush1.msra.mxu0 %v7577_v60  ;;  %6114 = vmatpush3.msra.mxu1 %v7573_v59 }
 0x186   :  { %795 = vmatprep.subr.mxu0 %v7581_v61  ;;  %6115 = vmatprep.subr.mxu1 %v10449_v35 }
 0x187   :  { %796 = vmatpush1.msra.mxu0 %v7587_v63  ;;  %6116 = vmatpush3.msra.mxu1 %v7583_v62 }
 0x188   :  { %797 = vmatprep.subr.mxu0 %v7591_v0  ;;  %6117 = vmatprep.subr.mxu1 %v10449_v35 }
 0x189   :  { %798 = vmatpush1.msra.mxu0 %v7597_v3  ;;  %6118 = vmatpush3.msra.mxu1 %v7593_v2 }
 0x18a   :  { %799 = vmatprep.subr.mxu0 %v7601_v4  ;;  %6119 = vmatprep.subr.mxu1 %v10449_v35 }
 0x18b   :  { %800 = vmatpush1.msra.mxu0 %v7609_v6  ;;  %6120 = vmatpush3.msra.mxu1 %v7605_v5 }
 0x18c   :  { %801 = vmatprep.subr.mxu0 %v7613_v7  ;;  %6121 = vmatprep.subr.mxu1 %v10449_v35 }
 0x18d   :  { %802 = vmatpush1.msra.mxu0 %v7618_v9  ;;  %6122 = vmatpush3.msra.mxu1 %v7615_v8 }
 0x18e   :  { %803 = vmatprep.subr.mxu0 %v7622_v10  ;;  %6123 = vmatprep.subr.mxu1 %v10449_v35 }
 0x18f   :  { %804 = vmatpush1.msra.mxu0 %v7628_v12  ;;  %6124 = vmatpush3.msra.mxu1 %v7624_v11 }
 0x190   :  { %805 = vmatprep.subr.mxu0 %v7632_v13  ;;  %6125 = vmatprep.subr.mxu1 %v10449_v35 }
 0x191   :  { %806 = vmatpush1.msra.mxu0 %v7638_v15  ;;  %6126 = vmatpush3.msra.mxu1 %v7634_v14 }
 0x192   :  { %807 = vmatprep.subr.mxu0 %v7642_v16  ;;  %6127 = vmatprep.subr.mxu1 %v10449_v35 }
 0x193   :  { %808 = vmatpush1.msra.mxu0 %v7648_v18  ;;  %6128 = vmatpush3.msra.mxu1 %v7644_v17 }
 0x194   :  { %809 = vmatprep.subr.mxu0 %v7652_v19  ;;  %6129 = vmatprep.subr.mxu1 %v10449_v35 }
 0x195   :  { %810 = vmatpush1.msra.mxu0 %v7658_v21  ;;  %6130 = vmatpush3.msra.mxu1 %v7654_v20 }
 0x196   :  { %811 = vmatprep.subr.mxu0 %v7662_v22  ;;  %6131 = vmatprep.subr.mxu1 %v10449_v35 }
 0x197   :  { %812 = vmatpush1.msra.mxu0 %v7668_v24  ;;  %6132 = vmatpush3.msra.mxu1 %v7664_v23 }
 0x198   :  { %813 = vmatprep.subr.mxu0 %v7672_v25  ;;  %6133 = vmatprep.subr.mxu1 %v10449_v35 }
 0x199   :  { %814 = vmatpush1.msra.mxu0 %v7678_v27  ;;  %6134 = vmatpush3.msra.mxu1 %v7674_v26 }
 0x19a   :  { %815 = vmatprep.subr.mxu0 %v7682_v28  ;;  %6135 = vmatprep.subr.mxu1 %v10449_v35 }
 0x19b   :  { %816 = vmatpush1.msra.mxu0 %v7688_v30  ;;  %6136 = vmatpush3.msra.mxu1 %v10450_v37 }
 0x19c   :  { %817 = vmatprep.subr.mxu0 %v10451_v29  ;;  %6137 = vmatprep.subr.mxu1 %v10449_v35 }
 0x19d   :  { %818 = vmatpush1.msra.mxu0 %v10452_v52  ;;  %6138 = vmatpush3.msra.mxu1 %v10453_v1 }
 0x19e   :  { %819 = vmatprep.subr.mxu0 %v10454_v39  ;;  %6139 = vmatprep.subr.mxu1 %v10449_v35 }
 0x19f   :  { %820 = vmatpush1.msra.mxu0 %v10455_v42  ;;  %853 = vmatprep.mubr.f32.mxu0 %v10449_v35 }
 0x1a0   :  { %6140 = vmatpush3.msra.mxu1 %v10456_v46  ;;  %6141 = vmatprep.mubr.msk.f32.mxu1 %vm7487_vm0, %v10449_v35 }
 0x1a1   :  { %970 = vmatprep.subr.mxu0 %v10457_v41  ;;  %6144 = vmatprep.subr.mxu1 %v10449_v35 }
 0x240   :  { %v673_v44 = vpop.f32.mrf.mxu0  ;;  %v744_v43 = vpop.f32.mrf.mxu1 }
 0x241   :  { %v751_v32 = vrot.slane %v744_v43, 6  ;;  %v773_v39 = vadd.f32 %v7867_v38, %v673_v44  ;;  %v10465_v44 = vld [vmem:[#allocation15_spill] sm:$0xff] }
 0x242   :  { %v675_v50 = vpop.f32.mrf.mxu0  ;;  %v6108_v48 = vpop.f32.mrf.mxu1 }
 0x243   :  { %v755_v36 = vadd.f32 %v751_v32, %v10458_v47  ;;  %v750_v34 = vrot.slane %v675_v50, 6  ;;  %v775_v52 = vrot.slane %v773_v39, 6  ;;  %v10462_v39 = vld [vmem:[#allocation20_spill] sm:$0xff] }
 0x245   :  { %v5490_v40 = vmul.f32 -1.442695, %v755_v36  ;;  %v754_v45 = vadd.f32 %v750_v34, %v7855_v49  ;;  %v770_v34 = vrot.slane %v7876_v33, 6  ;;  %v10459_v33 = vld [vmem:[#allocation17_spill] sm:$0xff] }
 0x247   :  { %6974 = vpow2.f32 %v5490_v40  ;;  %v5489_v31 = vmul.f32 -1.442695, %v754_v45 }
 0x249   :  { %6976 = vpow2.f32 %v5489_v31 }
 0x254   :  { %v6975_v46 = vpop.eup %6974 }
 0x255   :  { %v763_v42 = vadd.f32 1.0, %v6975_v46  ;;  %v10463_v46 = vld [vmem:[#allocation21_spill] sm:$0xff] }
 0x256   :  { %v6977_v41 = vpop.eup %6976 }
 0x257   :  { %6978 = vrcp.f32 %v763_v42  ;;  %v762_v1 = vadd.f32 1.0, %v6977_v41  ;;  %v10464_v41 = vld [vmem:[#allocation22_spill] sm:$0xff] }
 0x259   :  { %6980 = vrcp.f32 %v762_v1  ;;  %v10461_v1 = vld [vmem:[#allocation18_spill] sm:$0xff] }
 0x264   :  { %v6979_v43 = vpop.eup %6978 }
 0x265   :  { %v777_v29 = vmul.f32 %v6979_v43, %v775_v52  ;;  %v10460_v52 = vld [vmem:[#allocation19_spill] sm:$0xff] }
 0x266   :  { %v6981_v36 = vpop.eup %6980 }
 0x267   :  { %v778_v32 = vadd.f32 %v777_v29, %v7839_v51  ;;  %v768_v40 = vsub.f32 1.0, %v6981_v36  ;;  %v772_v31 = vmul.f32 %v6981_v36, %v770_v34  ;;  %v10466_v34 = vld [vmem:[#allocation39_spill] sm:$0xff] }
 0x269   :  { %6982 = vtanh.f32 %v778_v32 }
 0x276   :  { %v6983_v45 = vpop.eup %6982 }
 0x277   :  { %v780_v50 = vmul.f32 %v6983_v45, %v768_v40 }
 0x279   :  { %v7956_v42 = vadd.f32 %v780_v50, %v772_v31 }
 0x27b   :  { %783 = vst.msk [vmem:[#allocation2] sm:$0xc] %vm782_vm6, %v7956_v42  ;;  %v787_v29 = vrot.slane %v7956_v42, 2 }
 0x27c   :  { %785 = vst.msk [vmem:[#allocation2 + $0xa] sm:$0xc] %vm784_vm7, %v7956_v42 }
 0x27d   :  { %854 = vmatmul.mubr.f32.vlgmr.msra.gmra.mxu0 %v787_v29  ;;  %6142 = vmatmul.mubr.f32.vlgmr.msra.gmra.mxu1 %v787_v29  ;;  %v10467_v29 = vld [vmem:[#allocation40_spill] sm:$0xff] }
 0x27e   :  { %971 = vmatpush1.msra.mxu0 %v7559_v54  ;;  %6145 = vmatpush3.msra.mxu1 %v7556_v53 }
 0x27f   :  { %972 = vmatprep.subr.mxu0 %v7562_v55  ;;  %6146 = vmatprep.subr.mxu1 %v10449_v35 }
 0x280   :  { %973 = vmatpush1.msra.mxu0 %v7567_v57  ;;  %6147 = vmatpush3.msra.mxu1 %v7564_v56 }
 0x281   :  { %974 = vmatprep.subr.mxu0 %v7571_v58  ;;  %6148 = vmatprep.subr.mxu1 %v10449_v35 }
 0x282   :  { %975 = vmatpush1.msra.mxu0 %v7577_v60  ;;  %6149 = vmatpush3.msra.mxu1 %v7573_v59 }
 0x283   :  { %976 = vmatprep.subr.mxu0 %v7581_v61  ;;  %6150 = vmatprep.subr.mxu1 %v10449_v35 }
 0x284   :  { %977 = vmatpush1.msra.mxu0 %v7587_v63  ;;  %6151 = vmatpush3.msra.mxu1 %v7583_v62 }
 0x285   :  { %978 = vmatprep.subr.mxu0 %v7591_v0  ;;  %6152 = vmatprep.subr.mxu1 %v10449_v35 }
 0x286   :  { %979 = vmatpush1.msra.mxu0 %v7597_v3  ;;  %6153 = vmatpush3.msra.mxu1 %v7593_v2 }
 0x287   :  { %980 = vmatprep.subr.mxu0 %v7601_v4  ;;  %6154 = vmatprep.subr.mxu1 %v10449_v35 }
 0x288   :  { %981 = vmatpush1.msra.mxu0 %v7609_v6  ;;  %6155 = vmatpush3.msra.mxu1 %v7605_v5 }
 0x289   :  { %982 = vmatprep.subr.mxu0 %v7613_v7  ;;  %6156 = vmatprep.subr.mxu1 %v10449_v35 }
 0x28a   :  { %983 = vmatpush1.msra.mxu0 %v7618_v9  ;;  %6157 = vmatpush3.msra.mxu1 %v7615_v8 }
 0x28b   :  { %984 = vmatprep.subr.mxu0 %v7622_v10  ;;  %6158 = vmatprep.subr.mxu1 %v10449_v35 }
 0x28c   :  { %985 = vmatpush1.msra.mxu0 %v7628_v12  ;;  %6159 = vmatpush3.msra.mxu1 %v7624_v11 }
 0x28d   :  { %986 = vmatprep.subr.mxu0 %v7632_v13  ;;  %6160 = vmatprep.subr.mxu1 %v10449_v35 }
 0x28e   :  { %987 = vmatpush1.msra.mxu0 %v7638_v15  ;;  %6161 = vmatpush3.msra.mxu1 %v7634_v14 }
 0x28f   :  { %988 = vmatprep.subr.mxu0 %v7642_v16  ;;  %6162 = vmatprep.subr.mxu1 %v10449_v35 }
 0x290   :  { %989 = vmatpush1.msra.mxu0 %v7648_v18  ;;  %6163 = vmatpush3.msra.mxu1 %v7644_v17 }
 0x291   :  { %990 = vmatprep.subr.mxu0 %v7652_v19  ;;  %6164 = vmatprep.subr.mxu1 %v10449_v35 }
 0x292   :  { %991 = vmatpush1.msra.mxu0 %v7658_v21  ;;  %6165 = vmatpush3.msra.mxu1 %v7654_v20 }
 0x293   :  { %992 = vmatprep.subr.mxu0 %v7662_v22  ;;  %6166 = vmatprep.subr.mxu1 %v10449_v35 }
 0x294   :  { %993 = vmatpush1.msra.mxu0 %v7668_v24  ;;  %6167 = vmatpush3.msra.mxu1 %v7664_v23 }
 0x295   :  { %994 = vmatprep.subr.mxu0 %v7672_v25  ;;  %6168 = vmatprep.subr.mxu1 %v10449_v35 }
 0x296   :  { %995 = vmatpush1.msra.mxu0 %v7678_v27  ;;  %6169 = vmatpush3.msra.mxu1 %v7674_v26 }
 0x297   :  { %996 = vmatprep.subr.mxu0 %v7682_v28  ;;  %6170 = vmatprep.subr.mxu1 %v10449_v35 }
 0x298   :  { %997 = vmatpush1.msra.mxu0 %v7688_v30  ;;  %6171 = vmatpush3.msra.mxu1 %v10450_v37 }
 0x299   :  { %998 = vmatprep.subr.mxu0 %v10459_v33  ;;  %6172 = vmatprep.subr.mxu1 %v10449_v35 }
 0x29a   :  { %999 = vmatpush1.msra.mxu0 %v10460_v52  ;;  %6173 = vmatpush3.msra.mxu1 %v10461_v1 }
 0x29b   :  { %1000 = vmatprep.subr.mxu0 %v10462_v39  ;;  %6174 = vmatprep.subr.mxu1 %v10449_v35 }
 0x29c   :  { %1001 = vmatpush1.msra.mxu0 %v10463_v46  ;;  %1034 = vmatprep.mubr.f32.mxu0 %v10449_v35 }
 0x29d   :  { %6175 = vmatpush3.msra.mxu1 %v10464_v41  ;;  %6176 = vmatprep.mubr.msk.f32.mxu1 %vm7487_vm0, %v10449_v35 }
 0x29e   :  { %1163 = vmatprep.subr.mxu0 %v10465_v44  ;;  %6179 = vmatprep.subr.mxu1 %v10449_v35 }
 0x33d   :  { %v855_v48 = vpop.f32.mrf.mxu0  ;;  %v926_v43 = vpop.f32.mrf.mxu1 }
 0x33e   :  { %v933_v32 = vrot.slane %v926_v43, 4  ;;  %v954_v46 = vadd.f32 %v7867_v38, %v855_v48  ;;  %v8158_v48 = vld [vmem:[#allocation9 + $0x110] sm:$0xff] }
 0x33f   :  { %v857_v36 = vpop.f32.mrf.mxu0  ;;  %v6143_v40 = vpop.f32.mrf.mxu1 }
 0x340   :  { %v937_v45 = vadd.f32 %v933_v32, %v10466_v34  ;;  %v932_v50 = vrot.slane %v857_v36, 4  ;;  %v956_v1 = vrot.slane %v954_v46, 4  ;;  %v10468_v40 = vld [vmem:[#allocation41_spill] sm:$0xff]  ;;  %v8152_v46 = vld [vmem:[#allocation9 + $0x120] sm:$0xff] }
 0x342   :  { %v5492_v31 = vmul.f32 -1.442695, %v937_v45  ;;  %v936_v51 = vadd.f32 %v932_v50, %v10467_v29  ;;  %v951_v45 = vrot.slane %v7956_v42, 6  ;;  %v8138_v42 = vld [vmem:[#allocation9 + $0x140] sm:$0xff]  ;;  %v8162_v50 = vld [vmem:[#allocation9 + $0x108] sm:$0xff]  ;;  %v8165_v29 = vld [vmem:[#allocation9 + $0x118] sm:$0xff] }
 0x344   :  { %6984 = vpow2.f32 %v5492_v31  ;;  %v5491_v49 = vmul.f32 -1.442695, %v936_v51 }
 0x346   :  { %6986 = vpow2.f32 %v5491_v49 }
 0x351   :  { %v6985_v47 = vpop.eup %6984 }
 0x352   :  { %v945_v41 = vadd.f32 1.0, %v6985_v47 }
 0x353   :  { %v6987_v44 = vpop.eup %6986 }
 0x354   :  { %6988 = vrcp.f32 %v945_v41  ;;  %v944_v39 = vadd.f32 1.0, %v6987_v44  ;;  %v8155_v41 = vld [vmem:[#allocation9 + $0x130] sm:$0xff]  ;;  %v8168_v44 = vld [vmem:[#allocation9 + $0xf8] sm:$0xff] }
 0x356   :  { %6990 = vrcp.f32 %v944_v39  ;;  %v8148_v39 = vld [vmem:[#allocation9 + $0x128] sm:$0xff] }
 0x361   :  { %v6989_v43 = vpop.eup %6988 }
 0x362   :  { %v958_v52 = vmul.f32 %v6989_v43, %v956_v1  ;;  %v8145_v1 = vld [vmem:[#allocation9 + $0x148] sm:$0xff]  ;;  %v8172_v43 = vld [vmem:[#allocation9 + $0xf0] sm:$0xff] }
 0x363   :  { %v6991_v36 = vpop.eup %6990 }
 0x364   :  { %v959_v32 = vadd.f32 %v958_v52, %v10468_v40  ;;  %v950_v34 = vsub.f32 1.0, %v6991_v36  ;;  %v953_v49 = vmul.f32 %v6991_v36, %v951_v45  ;;  %v8175_v40 = vld [vmem:[#allocation9 + $0x100] sm:$0xff]  ;;  %v8182_v36 = vld [vmem:[#allocation9 + $0xd8] sm:$0xff]  ;;  %v8188_v45 = vld [vmem:[#allocation9 + $0xc8] sm:$0xff] }
 0x366   :  { %6992 = vtanh.f32 %v959_v32  ;;  %v8178_v32 = vld [vmem:[#allocation9 + $0xe0] sm:$0xff] }
 0x373   :  { %v6993_v51 = vpop.eup %6992 }
 0x374   :  { %v961_v31 = vmul.f32 %v6993_v51, %v950_v34  ;;  %v8185_v34 = vld [vmem:[#allocation9 + $0xe8] sm:$0xff]  ;;  %v8192_v51 = vld [vmem:[#allocation9 + $0xc0] sm:$0xff] }
 0x376   :  { %v8035_v47 = vadd.f32 %v961_v31, %v953_v49  ;;  %v8195_v49 = vld [vmem:[#allocation9 + $0xd0] sm:$0xff] }
 0x377   :  { %v8198_v31 = vld [vmem:[#allocation9 + $0xb0] sm:$0xff] }
 0x378   :  { %964 = vst.msk [vmem:[#allocation2] sm:$0x30] %vm963_vm8, %v8035_v47  ;;  %v968_v52 = vrot.slane %v8035_v47, 4 }
 0x379   :  { %966 = vst.msk [vmem:[#allocation2 + $0x6] sm:$0x30] %vm965_vm9, %v8035_v47 }
 0x37a   :  { %1035 = vmatmul.mubr.f32.vlgmr.msra.gmra.mxu0 %v968_v52  ;;  %6177 = vmatmul.mubr.f32.vlgmr.msra.gmra.mxu1 %v968_v52  ;;  %v8205_v52 = vld [vmem:[#allocation9 + $0xb8] sm:$0xff] }
 0x37b   :  { %1164 = vmatpush1.msra.mxu0 %v7559_v54  ;;  %6180 = vmatpush3.msra.mxu1 %v7556_v53  ;;  %v10469_v53 = vld [vmem:[#allocation19_spill] sm:$0xff]  ;;  %v10470_v54 = vld [vmem:[#allocation18_spill] sm:$0xff] }
 0x37c   :  { %1165 = vmatprep.subr.mxu0 %v7562_v55  ;;  %6181 = vmatprep.subr.mxu1 %v10449_v35  ;;  %v10471_v55 = vld [vmem:[#allocation20_spill] sm:$0xff] }
 0x37d   :  { %1166 = vmatpush1.msra.mxu0 %v7567_v57  ;;  %6182 = vmatpush3.msra.mxu1 %v7564_v56  ;;  %v10472_v56 = vld [vmem:[#allocation21_spill] sm:$0xff]  ;;  %v10473_v57 = vld [vmem:[#allocation22_spill] sm:$0xff] }
 0x37e   :  { %1167 = vmatprep.subr.mxu0 %v7571_v58  ;;  %6183 = vmatprep.subr.mxu1 %v10449_v35  ;;  %v8107_v58 = vld [vmem:[#allocation9 + $0x170] sm:$0xff] }
 0x37f   :  { %1168 = vmatpush1.msra.mxu0 %v7577_v60  ;;  %6184 = vmatpush3.msra.mxu1 %v7573_v59  ;;  %10474 = vst [vmem:[#allocation16_spill] sm:$0xff] %v8107_v58 }
 0x380   :  { %1169 = vmatprep.subr.mxu0 %v7581_v61  ;;  %6185 = vmatprep.subr.mxu1 %v10449_v35 }
 0x381   :  { %1170 = vmatpush1.msra.mxu0 %v7587_v63  ;;  %6186 = vmatpush3.msra.mxu1 %v7583_v62 }
 0x382   :  { %1171 = vmatprep.subr.mxu0 %v7591_v0  ;;  %6187 = vmatprep.subr.mxu1 %v10449_v35  ;;  %v10475_v0 = vld [vmem:[#allocation29_spill] sm:$0xff] }
 0x383   :  { %1172 = vmatpush1.msra.mxu0 %v7597_v3  ;;  %6188 = vmatpush3.msra.mxu1 %v7593_v2 }
 0x384   :  { %1173 = vmatprep.subr.mxu0 %v7601_v4  ;;  %6189 = vmatprep.subr.mxu1 %v10449_v35 }
 0x385   :  { %1174 = vmatpush1.msra.mxu0 %v7609_v6  ;;  %6190 = vmatpush3.msra.mxu1 %v7605_v5  ;;  %v10476_v5 = vld [vmem:[#allocation38_spill] sm:$0xff] }
 0x386   :  { %1175 = vmatprep.subr.mxu0 %v7613_v7  ;;  %6191 = vmatprep.subr.mxu1 %v10449_v35 }
 0x387   :  { %1176 = vmatpush1.msra.mxu0 %v7618_v9  ;;  %6192 = vmatpush3.msra.mxu1 %v7615_v8 }
 0x388   :  { %1177 = vmatprep.subr.mxu0 %v7622_v10  ;;  %6193 = vmatprep.subr.mxu1 %v10449_v35 }
 0x389   :  { %1178 = vmatpush1.msra.mxu0 %v7628_v12  ;;  %6194 = vmatpush3.msra.mxu1 %v7624_v11 }
 0x38a   :  { %1179 = vmatprep.subr.mxu0 %v7632_v13  ;;  %6195 = vmatprep.subr.mxu1 %v10449_v35 }
 0x38b   :  { %1180 = vmatpush1.msra.mxu0 %v7638_v15  ;;  %6196 = vmatpush3.msra.mxu1 %v7634_v14 }
 0x38c   :  { %1181 = vmatprep.subr.mxu0 %v7642_v16  ;;  %6197 = vmatprep.subr.mxu1 %v10449_v35  ;;  %v10477_v16 = vld [vmem:[#allocation34_spill] sm:$0xff] }
 0x38d   :  { %1182 = vmatpush1.msra.mxu0 %v7648_v18  ;;  %6198 = vmatpush3.msra.mxu1 %v7644_v17 }
 0x38e   :  { %1183 = vmatprep.subr.mxu0 %v7652_v19  ;;  %6199 = vmatprep.subr.mxu1 %v10449_v35 }
 0x38f   :  { %1184 = vmatpush1.msra.mxu0 %v7658_v21  ;;  %6200 = vmatpush3.msra.mxu1 %v7654_v20  ;;  %v1132_v20 = vrot.slane %v8035_v47, 6  ;;  %v8202_v47 = vld [vmem:[#allocation9 + $0xa8] sm:$0xff] }
 0x390   :  { %1185 = vmatprep.subr.mxu0 %v7662_v22  ;;  %6201 = vmatprep.subr.mxu1 %v10449_v35 }
 0x391   :  { %1186 = vmatpush1.msra.mxu0 %v7668_v24  ;;  %6202 = vmatpush3.msra.mxu1 %v7664_v23 }
 0x392   :  { %1187 = vmatprep.subr.mxu0 %v7672_v25  ;;  %6203 = vmatprep.subr.mxu1 %v10449_v35 }
 0x393   :  { %1188 = vmatpush1.msra.mxu0 %v7678_v27  ;;  %6204 = vmatpush3.msra.mxu1 %v7674_v26  ;;  %v8122_v26 = vld [vmem:[#allocation9 + $0x168] sm:$0xff]  ;;  %v8125_v27 = vld [vmem:[#allocation9 + $0x178] sm:$0xff] }
 0x394   :  { %1189 = vmatprep.subr.mxu0 %v7682_v28  ;;  %6205 = vmatprep.subr.mxu1 %v10449_v35  ;;  %v8128_v28 = vld [vmem:[#allocation9 + $0x158] sm:$0xff] }
 0x395   :  { %1190 = vmatpush1.msra.mxu0 %v7688_v30  ;;  %6206 = vmatpush3.msra.mxu1 %v10450_v37  ;;  %v8132_v30 = vld [vmem:[#allocation9 + $0x150] sm:$0xff]  ;;  %v8135_v37 = vld [vmem:[#allocation9 + $0x160] sm:$0xff] }
 0x396   :  { %1191 = vmatprep.subr.mxu0 %v10459_v33  ;;  %6207 = vmatprep.subr.mxu1 %v10449_v35  ;;  %v8142_v33 = vld [vmem:[#allocation9 + $0x138] sm:$0xff] }
 0x397   :  { %1192 = vmatpush1.msra.mxu0 %v10469_v53  ;;  %6208 = vmatpush3.msra.mxu1 %v10470_v54  ;;  %v8208_v53 = vld [vmem:[#allocation9 + $0x98] sm:$0xff]  ;;  %v8212_v54 = vld [vmem:[#allocation9 + $0x90] sm:$0xff] }
 0x398   :  { %1193 = vmatprep.subr.mxu0 %v10471_v55  ;;  %6209 = vmatprep.subr.mxu1 %v10449_v35  ;;  %v8215_v55 = vld [vmem:[#allocation9 + $0xa0] sm:$0xff] }
 0x399   :  { %1194 = vmatpush1.msra.mxu0 %v10472_v56  ;;  %1227 = vmatprep.mubr.f32.mxu0 %v10449_v35  ;;  %v8218_v56 = vld [vmem:[#allocation9 + $0x80] sm:$0xff] }
 0x39a   :  { %6210 = vmatpush3.msra.mxu1 %v10473_v57  ;;  %6211 = vmatprep.mubr.msk.f32.mxu1 %vm7487_vm0, %v10449_v35  ;;  %v8222_v57 = vld [vmem:[#allocation9 + $0x78] sm:$0xff] }
 0x39b   :  { %1337 = vmatprep.subr.mxu0 %v8107_v58  ;;  %6214 = vmatprep.subr.mxu1 %v10449_v35 }
 0x43a   :  { %v1036_v59 = vpop.f32.mrf.mxu0  ;;  %v1107_v60 = vpop.f32.mrf.mxu1 }
 0x43b   :  { %v1114_v61 = vrot.slane %v1107_v60, 2  ;;  %v1135_v11 = vadd.f32 %v7867_v38, %v1036_v59  ;;  %v8225_v59 = vld [vmem:[#allocation9 + $0x88] sm:$0xff] }
 0x43c   :  { %v1038_v62 = vpop.f32.mrf.mxu0  ;;  %v6178_v63 = vpop.f32.mrf.mxu1  ;;  %v8228_v60 = vld [vmem:[#allocation9 + $0x68] sm:$0xff] }
 0x43d   :  { %v1118_v2 = vadd.f32 %v1114_v61, %v10475_v0  ;;  %v1113_v4 = vrot.slane %v1038_v62, 2  ;;  %v1137_v13 = vrot.slane %v1135_v11, 2  ;;  %v8232_v61 = vld [vmem:[#allocation9 + $0x60] sm:$0xff]  ;;  %v8235_v62 = vld [vmem:[#allocation9 + $0x70] sm:$0xff]  ;;  %v8242_v0 = vld [vmem:[#allocation9 + $0x48] sm:$0xff] }
 0x43e   :  { %v8238_v63 = vld [vmem:[#allocation9 + $0x50] sm:$0xff] }
 0x43f   :  { %v5494_v3 = vmul.f32 -1.442695, %v1118_v2  ;;  %v1117_v6 = vadd.f32 %v1113_v4, %v10476_v5  ;;  %v8245_v2 = vld [vmem:[#allocation9 + $0x58] sm:$0xff]  ;;  %v8252_v4 = vld [vmem:[#allocation9 + $0x30] sm:$0xff]  ;;  %v8255_v5 = vld [vmem:[#allocation9 + $0x40] sm:$0xff] }
 0x440   :  { %v8276_v11 = vld [vmem:[#allocation9 + $0x10] sm:$0xff] }
 0x441   :  { %6994 = vpow2.f32 %v5494_v3  ;;  %v5493_v7 = vmul.f32 -1.442695, %v1117_v6  ;;  %v8248_v3 = vld [vmem:[#allocation9 + $0x38] sm:$0xff]  ;;  %v8258_v6 = vld [vmem:[#allocation9 + $0x20] sm:$0xff]  ;;  %10481 = vst [vmem:[#allocation40_spill] sm:$0xff] %v8276_v11 }
 0x443   :  { %6996 = vpow2.f32 %v5493_v7  ;;  %v8262_v7 = vld [vmem:[#allocation9 + $0x18] sm:$0xff] }
 0x44e   :  { %v6995_v8 = vpop.eup %6994 }
 0x44f   :  { %v1126_v9 = vadd.f32 1.0, %v6995_v8  ;;  %v8265_v8 = vld [vmem:[#allocation9 + $0x28] sm:$0xff] }
 0x450   :  { %v6997_v10 = vpop.eup %6996  ;;  %10478 = vst [vmem:[#allocation17_spill] sm:$0xff] %v8265_v8 }
 0x451   :  { %6998 = vrcp.f32 %v1126_v9  ;;  %v1125_v12 = vadd.f32 1.0, %v6997_v10  ;;  %v8268_v9 = vld [vmem:[#allocation9 + $0x8] sm:$0xff]  ;;  %v8272_v10 = vld [vmem:[#allocation9] sm:$0xff] }
 0x452   :  { %10479 = vst [vmem:[#allocation15_spill] sm:$0xff] %v8268_v9  ;;  %10480 = vst [vmem:[#allocation39_spill] sm:$0xff] %v8272_v10 }
 0x453   :  { %7000 = vrcp.f32 %v1125_v12 }
 0x45e   :  { %v6999_v14 = vpop.eup %6998 }
 0x45f   :  { %v1139_v15 = vmul.f32 %v6999_v14, %v1137_v13  ;;  %v10482_v14 = vld [vmem:[#allocation30_spill] sm:$0xff] }
 0x460   :  { %v7001_v18 = vpop.eup %7000 }
 0x461   :  { %v1140_v17 = vadd.f32 %v1139_v15, %v10477_v16  ;;  %v1131_v19 = vsub.f32 1.0, %v7001_v18  ;;  %v1134_v22 = vmul.f32 %v7001_v18, %v1132_v20 }
 0x463   :  { %7002 = vtanh.f32 %v1140_v17 }
 0x470   :  { %v7003_v21 = vpop.eup %7002 }
 0x471   :  { %v1142_v23 = vmul.f32 %v7003_v21, %v1131_v19  ;;  %v10483_v19 = vld [vmem:[#allocation36_spill] sm:$0xff] }
 0x473   :  { %v1143_v24 = vadd.f32 %v1142_v23, %v1134_v22 }
 0x475   :  { %1145 = vst.msk [vmem:[#allocation2] sm:$0xc0] %vm1144_vm10, %v1143_v24  ;;  %v8118_v25 = vrot.slane %v1143_v24, 6 }
 0x476   :  { %1147 = vst.msk [vmem:[#allocation2 + $0x2] sm:$0xc0] %vm1146_vm11, %v1143_v24 }
 0x477   :  { %1228 = vmatmul.mubr.f32.vlgmr.msra.gmra.mxu0 %v8118_v25  ;;  %6212 = vmatmul.mubr.f32.vlgmr.msra.gmra.mxu1 %v8118_v25 }
 0x478   :  { %1338 = vmatpush1.msra.mxu0 %v8122_v26  ;;  %6215 = vmatpush3.msra.mxu1 %v8125_v27 }
 0x479   :  { %1339 = vmatprep.subr.mxu0 %v8128_v28  ;;  %6216 = vmatprep.subr.mxu1 %v10449_v35 }
 0x47a   :  { %1340 = vmatpush1.msra.mxu0 %v8132_v30  ;;  %6217 = vmatpush3.msra.mxu1 %v8135_v37 }
 0x47b   :  { %1341 = vmatprep.subr.mxu0 %v8138_v42  ;;  %6218 = vmatprep.subr.mxu1 %v10449_v35 }
 0x47c   :  { %1342 = vmatpush1.msra.mxu0 %v8142_v33  ;;  %6219 = vmatpush3.msra.mxu1 %v8145_v1 }
 0x47d   :  { %1343 = vmatprep.subr.mxu0 %v8148_v39  ;;  %6220 = vmatprep.subr.mxu1 %v10449_v35 }
 0x47e   :  { %1344 = vmatpush1.msra.mxu0 %v8152_v46  ;;  %6221 = vmatpush3.msra.mxu1 %v8155_v41 }
 0x47f   :  { %1345 = vmatprep.subr.mxu0 %v8158_v48  ;;  %6222 = vmatprep.subr.mxu1 %v10449_v35 }
 0x480   :  { %1346 = vmatpush1.msra.mxu0 %v8162_v50  ;;  %6223 = vmatpush3.msra.mxu1 %v8165_v29 }
 0x481   :  { %1347 = vmatprep.subr.mxu0 %v8168_v44  ;;  %6224 = vmatprep.subr.mxu1 %v10449_v35 }
 0x482   :  { %1348 = vmatpush1.msra.mxu0 %v8172_v43  ;;  %6225 = vmatpush3.msra.mxu1 %v8175_v40 }
 0x483   :  { %1349 = vmatprep.subr.mxu0 %v8178_v32  ;;  %6226 = vmatprep.subr.mxu1 %v10449_v35 }
 0x484   :  { %1350 = vmatpush1.msra.mxu0 %v8182_v36  ;;  %6227 = vmatpush3.msra.mxu1 %v8185_v34 }
 0x485   :  { %1351 = vmatprep.subr.mxu0 %v8188_v45  ;;  %6228 = vmatprep.subr.mxu1 %v10449_v35 }
 0x486   :  { %1352 = vmatpush1.msra.mxu0 %v8192_v51  ;;  %6229 = vmatpush3.msra.mxu1 %v8195_v49 }
 0x487   :  { %1353 = vmatprep.subr.mxu0 %v8198_v31  ;;  %6230 = vmatprep.subr.mxu1 %v10449_v35 }
 0x488   :  { %1354 = vmatpush1.msra.mxu0 %v8202_v47  ;;  %6231 = vmatpush3.msra.mxu1 %v8205_v52 }
 0x489   :  { %1355 = vmatprep.subr.mxu0 %v8208_v53  ;;  %6232 = vmatprep.subr.mxu1 %v10449_v35 }
 0x48a   :  { %1356 = vmatpush1.msra.mxu0 %v8212_v54  ;;  %6233 = vmatpush3.msra.mxu1 %v8215_v55 }
 0x48b   :  { %1357 = vmatprep.subr.mxu0 %v8218_v56  ;;  %6234 = vmatprep.subr.mxu1 %v10449_v35 }
 0x48c   :  { %1358 = vmatpush1.msra.mxu0 %v8222_v57  ;;  %6235 = vmatpush3.msra.mxu1 %v8225_v59 }
 0x48d   :  { %1359 = vmatprep.subr.mxu0 %v8228_v60  ;;  %6236 = vmatprep.subr.mxu1 %v10449_v35 }
 0x48e   :  { %1360 = vmatpush1.msra.mxu0 %v8232_v61  ;;  %6237 = vmatpush3.msra.mxu1 %v8235_v62 }
 0x48f   :  { %1361 = vmatprep.subr.mxu0 %v8238_v63  ;;  %6238 = vmatprep.subr.mxu1 %v10449_v35 }
 0x490   :  { %1362 = vmatpush1.msra.mxu0 %v8242_v0  ;;  %6239 = vmatpush3.msra.mxu1 %v8245_v2 }
 0x491   :  { %1363 = vmatprep.subr.mxu0 %v8248_v3  ;;  %6240 = vmatprep.subr.mxu1 %v10449_v35 }
 0x492   :  { %1364 = vmatpush1.msra.mxu0 %v8252_v4  ;;  %6241 = vmatpush3.msra.mxu1 %v8255_v5 }
 0x493   :  { %1365 = vmatprep.subr.mxu0 %v8258_v6  ;;  %6242 = vmatprep.subr.mxu1 %v10449_v35 }
 0x494   :  { %1366 = vmatpush1.msra.mxu0 %v8262_v7  ;;  %6243 = vmatpush3.msra.mxu1 %v8265_v8  ;;  %v10484_v8 = vld [vmem:[#allocation32_spill] sm:$0xff] }
 0x495   :  { %1367 = vmatprep.subr.mxu0 %v8268_v9  ;;  %6244 = vmatprep.subr.mxu1 %v10449_v35 }
 0x496   :  { %1368 = vmatpush1.msra.mxu0 %v8272_v10  ;;  %1401 = vmatprep.mubr.f32.mxu0 %v10449_v35 }
 0x497   :  { %6245 = vmatpush3.msra.mxu1 %v8276_v11  ;;  %6246 = vmatprep.mubr.msk.f32.mxu1 %vm7487_vm0, %v10449_v35 }
 0x498   :  { %1517 = vmatprep.subr.mxu0 %v8107_v58  ;;  %6249 = vmatprep.subr.mxu1 %v10449_v35 }
 0x537   :  { %v1229_v12 = vpop.f32.mrf.mxu0  ;;  %v1300_v13 = vpop.f32.mrf.mxu1 }
 0x538   :  { %v1305_v15 = vadd.f32 %v1300_v13, %v10482_v14  ;;  %v1320_v58 = vadd.f32 %v7867_v38, %v1229_v12  ;;  %v10485_v38 = vld [vmem:[#allocation17_spill] sm:$0xff] }
 0x539   :  { %v6213_v16 = vpop.f32.mrf.mxu1  ;;  %v1231_v18 = vpop.f32.mrf.mxu0 }
 0x53a   :  { %v5496_v17 = vmul.f32 -1.442695, %v1305_v15  ;;  %v1304_v20 = vadd.f32 %v1231_v18, %v10483_v19 }
 0x53c   :  { %7004 = vpow2.f32 %v5496_v17  ;;  %v5495_v21 = vmul.f32 -1.442695, %v1304_v20 }
 0x53e   :  { %7006 = vpow2.f32 %v5495_v21 }
 0x549   :  { %v7005_v22 = vpop.eup %7004 }
 0x54a   :  { %v1313_v23 = vadd.f32 1.0, %v7005_v22 }
 0x54b   :  { %v7007_v24 = vpop.eup %7006 }
 0x54c   :  { %7008 = vrcp.f32 %v1313_v23  ;;  %v1312_v11 = vadd.f32 1.0, %v7007_v24 }
 0x54e   :  { %7010 = vrcp.f32 %v1312_v11 }
 0x559   :  { %v7009_v10 = vpop.eup %7008 }
 0x55a   :  { %v1321_v9 = vmul.f32 %v7009_v10, %v1320_v58  ;;  %v10486_v58 = vld [vmem:[#allocation15_spill] sm:$0xff]  ;;  %v10489_v10 = vld [vmem:[#allocation16_spill] sm:$0xff] }
 0x55b   :  { %v7011_v15 = vpop.eup %7010 }
 0x55c   :  { %v1322_v13 = vadd.f32 %v1321_v9, %v10484_v8  ;;  %v1318_v16 = vsub.f32 1.0, %v7011_v15  ;;  %v1319_v18 = vmul.f32 %v7011_v15, %v8118_v25  ;;  %v10487_v25 = vld [vmem:[#allocation39_spill] sm:$0xff]  ;;  %v10488_v9 = vld [vmem:[#allocation40_spill] sm:$0xff] }
 0x55e   :  { %7012 = vtanh.f32 %v1322_v13  ;;  %v10490_v13 = vld [vmem:[#allocation31_spill] sm:$0xff] }
 0x56b   :  { %v7013_v17 = vpop.eup %7012 }
 0x56c   :  { %v1324_v20 = vmul.f32 %v7013_v17, %v1318_v16 }
 0x56e   :  { %v8288_v21 = vadd.f32 %v1324_v20, %v1319_v18  ;;  %v10491_v18 = vld [vmem:[#allocation37_spill] sm:$0xff] }
 0x570   :  { %1326 = vst.msk [vmem:[#allocation2 + $0x8] sm:$0x3] %vm594_vm4, %v8288_v21  ;;  %1402 = vmatmul.mubr.f32.vlgmr.msra.gmra.mxu0 %v8288_v21  ;;  %6247 = vmatmul.mubr.f32.vlgmr.msra.gmra.mxu1 %v8288_v21 }
 0x571   :  { %1327 = vst.msk [vmem:[#allocation2 + $0x6] sm:$0x3] %vm596_vm5, %v8288_v21  ;;  %1518 = vmatpush1.msra.mxu0 %v8122_v26  ;;  %6250 = vmatpush3.msra.mxu1 %v8125_v27 }
 0x572   :  { %1519 = vmatprep.subr.mxu0 %v8128_v28  ;;  %6251 = vmatprep.subr.mxu1 %v10449_v35 }
 0x573   :  { %1520 = vmatpush1.msra.mxu0 %v8132_v30  ;;  %6252 = vmatpush3.msra.mxu1 %v8135_v37 }
 0x574   :  { %1521 = vmatprep.subr.mxu0 %v8138_v42  ;;  %6253 = vmatprep.subr.mxu1 %v10449_v35 }
 0x575   :  { %1522 = vmatpush1.msra.mxu0 %v8142_v33  ;;  %6254 = vmatpush3.msra.mxu1 %v8145_v1 }
 0x576   :  { %1523 = vmatprep.subr.mxu0 %v8148_v39  ;;  %6255 = vmatprep.subr.mxu1 %v10449_v35 }
 0x577   :  { %1524 = vmatpush1.msra.mxu0 %v8152_v46  ;;  %6256 = vmatpush3.msra.mxu1 %v8155_v41 }
 0x578   :  { %1525 = vmatprep.subr.mxu0 %v8158_v48  ;;  %6257 = vmatprep.subr.mxu1 %v10449_v35 }
 0x579   :  { %1526 = vmatpush1.msra.mxu0 %v8162_v50  ;;  %6258 = vmatpush3.msra.mxu1 %v8165_v29 }
 0x57a   :  { %1527 = vmatprep.subr.mxu0 %v8168_v44  ;;  %6259 = vmatprep.subr.mxu1 %v10449_v35 }
 0x57b   :  { %1528 = vmatpush1.msra.mxu0 %v8172_v43  ;;  %6260 = vmatpush3.msra.mxu1 %v8175_v40 }
 0x57c   :  { %1529 = vmatprep.subr.mxu0 %v8178_v32  ;;  %6261 = vmatprep.subr.mxu1 %v10449_v35 }
 0x57d   :  { %1530 = vmatpush1.msra.mxu0 %v8182_v36  ;;  %6262 = vmatpush3.msra.mxu1 %v8185_v34 }
 0x57e   :  { %1531 = vmatprep.subr.mxu0 %v8188_v45  ;;  %6263 = vmatprep.subr.mxu1 %v10449_v35 }
 0x57f   :  { %1532 = vmatpush1.msra.mxu0 %v8192_v51  ;;  %6264 = vmatpush3.msra.mxu1 %v8195_v49 }
 0x580   :  { %1533 = vmatprep.subr.mxu0 %v8198_v31  ;;  %6265 = vmatprep.subr.mxu1 %v10449_v35 }
 0x581   :  { %1534 = vmatpush1.msra.mxu0 %v8202_v47  ;;  %6266 = vmatpush3.msra.mxu1 %v8205_v52 }
 0x582   :  { %1535 = vmatprep.subr.mxu0 %v8208_v53  ;;  %6267 = vmatprep.subr.mxu1 %v10449_v35 }
 0x583   :  { %1536 = vmatpush1.msra.mxu0 %v8212_v54  ;;  %6268 = vmatpush3.msra.mxu1 %v8215_v55 }
 0x584   :  { %1537 = vmatprep.subr.mxu0 %v8218_v56  ;;  %6269 = vmatprep.subr.mxu1 %v10449_v35 }
 0x585   :  { %1538 = vmatpush1.msra.mxu0 %v8222_v57  ;;  %6270 = vmatpush3.msra.mxu1 %v8225_v59 }
 0x586   :  { %1539 = vmatprep.subr.mxu0 %v8228_v60  ;;  %6271 = vmatprep.subr.mxu1 %v10449_v35 }
 0x587   :  { %1540 = vmatpush1.msra.mxu0 %v8232_v61  ;;  %6272 = vmatpush3.msra.mxu1 %v8235_v62 }
 0x588   :  { %1541 = vmatprep.subr.mxu0 %v8238_v63  ;;  %6273 = vmatprep.subr.mxu1 %v10449_v35 }
 0x589   :  { %1542 = vmatpush1.msra.mxu0 %v8242_v0  ;;  %6274 = vmatpush3.msra.mxu1 %v8245_v2 }
 0x58a   :  { %1543 = vmatprep.subr.mxu0 %v8248_v3  ;;  %6275 = vmatprep.subr.mxu1 %v10449_v35 }
 0x58b   :  { %1544 = vmatpush1.msra.mxu0 %v8252_v4  ;;  %6276 = vmatpush3.msra.mxu1 %v8255_v5 }
 0x58c   :  { %1545 = vmatprep.subr.mxu0 %v8258_v6  ;;  %6277 = vmatprep.subr.mxu1 %v10449_v35 }
 0x58d   :  { %1546 = vmatpush1.msra.mxu0 %v8262_v7  ;;  %6278 = vmatpush3.msra.mxu1 %v10485_v38 }
 0x58e   :  { %1547 = vmatprep.subr.mxu0 %v10486_v58  ;;  %6279 = vmatprep.subr.mxu1 %v10449_v35 }
 0x58f   :  { %1548 = vmatpush1.msra.mxu0 %v10487_v25  ;;  %1581 = vmatprep.mubr.f32.mxu0 %v10449_v35 }
 0x590   :  { %6280 = vmatpush3.msra.mxu1 %v10488_v9  ;;  %6281 = vmatprep.mubr.msk.f32.mxu1 %vm7487_vm0, %v10449_v35  ;;  %v8365_v9 = vld [vmem:[#allocation11] ss:$0 sm:$0xff] }
 0x591   :  { %1696 = vmatprep.subr.mxu0 %v10489_v10  ;;  %6284 = vmatprep.subr.mxu1 %v10449_v35 }
 0x630   :  { %v1403_v11 = vpop.f32.mrf.mxu0  ;;  %v1474_v12 = vpop.f32.mrf.mxu1 }
 0x631   :  { %v1481_v22 = vrot.slane %v1474_v12, 6  ;;  %v1503_v25 = vadd.f32 %v8365_v9, %v1403_v11  ;;  %v1966_v11 = vld [vmem:[#allocation8 + $0x290] sm:$0xff] }
 0x632   :  { %v1405_v23 = vpop.f32.mrf.mxu0  ;;  %v6248_v24 = vpop.f32.mrf.mxu1 }
 0x633   :  { %v1485_v15 = vadd.f32 %v1481_v22, %v10490_v13  ;;  %v1480_v17 = vrot.slane %v1405_v23, 6  ;;  %v1505_v58 = vrot.slane %v1503_v25, 6  ;;  %v10492_v22 = vld [vmem:[#allocation33_spill] sm:$0xff] }
 0x634   :  { %v1970_v25 = vld [vmem:[#allocation8 + $0x2b0] sm:$0xff] }
 0x635   :  { %v5498_v16 = vmul.f32 -1.442695, %v1485_v15  ;;  %v1484_v20 = vadd.f32 %v1480_v17, %v10491_v18 }
 0x637   :  { %7014 = vpow2.f32 %v5498_v16  ;;  %v5497_v8 = vmul.f32 -1.442695, %v1484_v20 }
 0x639   :  { %7016 = vpow2.f32 %v5497_v8  ;;  %v1500_v8 = vrot.slane %v8288_v21, 6  ;;  %v1969_v21 = vld [vmem:[#allocation8 + $0x2a8] sm:$0xff] }
 0x644   :  { %v7015_v19 = vpop.eup %7014 }
 0x645   :  { %v1493_v14 = vadd.f32 1.0, %v7015_v19 }
 0x646   :  { %v7017_v10 = vpop.eup %7016 }
 0x647   :  { %7018 = vrcp.f32 %v1493_v14  ;;  %v1492_v12 = vadd.f32 1.0, %v7017_v10  ;;  %v1965_v10 = vld [vmem:[#allocation8 + $0x288] sm:$0xff] }
 0x649   :  { %7020 = vrcp.f32 %v1492_v12  ;;  %v1967_v12 = vld [vmem:[#allocation8 + $0x298] sm:$0xff] }
 0x654   :  { %v7019_v24 = vpop.eup %7018 }
 0x655   :  { %v1507_v38 = vmul.f32 %v7019_v24, %v1505_v58  ;;  %v1963_v24 = vld [vmem:[#allocation8 + $0x278] sm:$0xff] }
 0x656   :  { %v7021_v15 = vpop.eup %7020 }
 0x657   :  { %v1508_v23 = vadd.f32 %v1507_v38, %v10492_v22  ;;  %v1498_v16 = vsub.f32 1.0, %v7021_v15  ;;  %v1502_v19 = vmul.f32 %v7021_v15, %v1500_v8  ;;  %v1968_v38 = vld [vmem:[#allocation8 + $0x2a0] sm:$0xff]  ;;  %v1959_v8 = vld [vmem:[#allocation8 + $0x258] sm:$0xff] }
 0x658   :  { %v1964_v15 = vld [vmem:[#allocation8 + $0x280] sm:$0xff] }
 0x659   :  { %7022 = vtanh.f32 %v1508_v23  ;;  %v1962_v23 = vld [vmem:[#allocation8 + $0x270] sm:$0xff] }
 0x666   :  { %v7023_v17 = vpop.eup %7022 }
 0x667   :  { %v1510_v14 = vmul.f32 %v7023_v17, %v1498_v16  ;;  %v1960_v16 = vld [vmem:[#allocation8 + $0x260] sm:$0xff]  ;;  %v1961_v17 = vld [vmem:[#allocation8 + $0x268] sm:$0xff] }
 0x669   :  { %v8370_v20 = vadd.f32 %v1510_v14, %v1502_v19  ;;  %v1957_v19 = vld [vmem:[#allocation8 + $0x248] sm:$0xff]  ;;  %v1956_v14 = vld [vmem:[#allocation8 + $0x240] sm:$0xff] }
 0x66b   :  { %1512 = vst.msk [vmem:[#allocation2 + $0x8] sm:$0xc] %vm782_vm6, %v8370_v20  ;;  %v1515_v58 = vrot.slane %v8370_v20, 2 }
 0x66c   :  { %1513 = vst.msk [vmem:[#allocation2 + $0x2] sm:$0xc] %vm784_vm7, %v8370_v20 }
 0x66d   :  { %1582 = vmatmul.mubr.f32.vlgmr.msra.gmra.mxu0 %v1515_v58  ;;  %6282 = vmatmul.mubr.f32.vlgmr.msra.gmra.mxu1 %v1515_v58  ;;  %v1954_v58 = vld [vmem:[#allocation8 + $0x230] sm:$0xff] }
 0x66e   :  { %1697 = vmatpush1.msra.mxu0 %v8122_v26  ;;  %6285 = vmatpush3.msra.mxu1 %v8125_v27  ;;  %v10493_v26 = vld [vmem:[#allocation17_spill] sm:$0xff]  ;;  %v10494_v27 = vld [vmem:[#allocation15_spill] sm:$0xff] }
 0x66f   :  { %1698 = vmatprep.subr.mxu0 %v8128_v28  ;;  %6286 = vmatprep.subr.mxu1 %v10449_v35  ;;  %v10495_v28 = vld [vmem:[#allocation39_spill] sm:$0xff] }
 0x670   :  { %1699 = vmatpush1.msra.mxu0 %v8132_v30  ;;  %6287 = vmatpush3.msra.mxu1 %v8135_v37  ;;  %v10496_v30 = vld [vmem:[#allocation40_spill] sm:$0xff] }
 0x671   :  { %1700 = vmatprep.subr.mxu0 %v8138_v42  ;;  %6288 = vmatprep.subr.mxu1 %v10449_v35 }
 0x672   :  { %1701 = vmatpush1.msra.mxu0 %v8142_v33  ;;  %6289 = vmatpush3.msra.mxu1 %v8145_v1 }
 0x673   :  { %1702 = vmatprep.subr.mxu0 %v8148_v39  ;;  %6290 = vmatprep.subr.mxu1 %v10449_v35 }
 0x674   :  { %1703 = vmatpush1.msra.mxu0 %v8152_v46  ;;  %6291 = vmatpush3.msra.mxu1 %v8155_v41  ;;  %v10497_v46 = vld [vmem:[#allocation30_spill] sm:$0xff] }
 0x675   :  { %1704 = vmatprep.subr.mxu0 %v8158_v48  ;;  %6292 = vmatprep.subr.mxu1 %v10449_v35 }
 0x676   :  { %1705 = vmatpush1.msra.mxu0 %v8162_v50  ;;  %6293 = vmatpush3.msra.mxu1 %v8165_v29  ;;  %v10498_v29 = vld [vmem:[#allocation36_spill] sm:$0xff] }
 0x677   :  { %1706 = vmatprep.subr.mxu0 %v8168_v44  ;;  %6294 = vmatprep.subr.mxu1 %v10449_v35 }
 0x678   :  { %1707 = vmatpush1.msra.mxu0 %v8172_v43  ;;  %6295 = vmatpush3.msra.mxu1 %v8175_v40 }
 0x679   :  { %1708 = vmatprep.subr.mxu0 %v8178_v32  ;;  %6296 = vmatprep.subr.mxu1 %v10449_v35 }
 0x67a   :  { %1709 = vmatpush1.msra.mxu0 %v8182_v36  ;;  %6297 = vmatpush3.msra.mxu1 %v8185_v34 }
 0x67b   :  { %1710 = vmatprep.subr.mxu0 %v8188_v45  ;;  %6298 = vmatprep.subr.mxu1 %v10449_v35 }
 0x67c   :  { %1711 = vmatpush1.msra.mxu0 %v8192_v51  ;;  %6299 = vmatpush3.msra.mxu1 %v8195_v49 }
 0x67d   :  { %1712 = vmatprep.subr.mxu0 %v8198_v31  ;;  %6300 = vmatprep.subr.mxu1 %v10449_v35 }
 0x67e   :  { %1713 = vmatpush1.msra.mxu0 %v8202_v47  ;;  %6301 = vmatpush3.msra.mxu1 %v8205_v52  ;;  %v10499_v47 = vld [vmem:[#allocation32_spill] sm:$0xff] }
 0x67f   :  { %1714 = vmatprep.subr.mxu0 %v8208_v53  ;;  %6302 = vmatprep.subr.mxu1 %v10449_v35 }
 0x680   :  { %1715 = vmatpush1.msra.mxu0 %v8212_v54  ;;  %6303 = vmatpush3.msra.mxu1 %v8215_v55  ;;  %v1679_v55 = vrot.slane %v8370_v20, 6  ;;  %v1958_v20 = vld [vmem:[#allocation8 + $0x250] sm:$0xff] }
 0x681   :  { %1716 = vmatprep.subr.mxu0 %v8218_v56  ;;  %6304 = vmatprep.subr.mxu1 %v10449_v35 }
 0x682   :  { %1717 = vmatpush1.msra.mxu0 %v8222_v57  ;;  %6305 = vmatpush3.msra.mxu1 %v8225_v59 }
 0x683   :  { %1718 = vmatprep.subr.mxu0 %v8228_v60  ;;  %6306 = vmatprep.subr.mxu1 %v10449_v35 }
 0x684   :  { %1719 = vmatpush1.msra.mxu0 %v8232_v61  ;;  %6307 = vmatpush3.msra.mxu1 %v8235_v62  ;;  %v1978_v62 = vld [vmem:[#allocation8 + $0x2f0] sm:$0xff] }
 0x685   :  { %1720 = vmatprep.subr.mxu0 %v8238_v63  ;;  %6308 = vmatprep.subr.mxu1 %v10449_v35  ;;  %v1977_v63 = vld [vmem:[#allocation8 + $0x2e8] sm:$0xff] }
 0x686   :  { %1721 = vmatpush1.msra.mxu0 %v8242_v0  ;;  %6309 = vmatpush3.msra.mxu1 %v8245_v2  ;;  %v1979_v0 = vld [vmem:[#allocation8 + $0x2f8] sm:$0xff] }
 0x687   :  { %1722 = vmatprep.subr.mxu0 %v8248_v3  ;;  %6310 = vmatprep.subr.mxu1 %v10449_v35  ;;  %v1975_v2 = vld [vmem:[#allocation8 + $0x2d8] sm:$0xff]  ;;  %v1974_v3 = vld [vmem:[#allocation8 + $0x2d0] sm:$0xff] }
 0x688   :  { %1723 = vmatpush1.msra.mxu0 %v8252_v4  ;;  %6311 = vmatpush3.msra.mxu1 %v8255_v5  ;;  %v1976_v4 = vld [vmem:[#allocation8 + $0x2e0] sm:$0xff] }
 0x689   :  { %1724 = vmatprep.subr.mxu0 %v8258_v6  ;;  %6312 = vmatprep.subr.mxu1 %v10449_v35  ;;  %v1972_v5 = vld [vmem:[#allocation8 + $0x2c0] sm:$0xff]  ;;  %v1971_v6 = vld [vmem:[#allocation8 + $0x2b8] sm:$0xff] }
 0x68a   :  { %1725 = vmatpush1.msra.mxu0 %v8262_v7  ;;  %6313 = vmatpush3.msra.mxu1 %v10493_v26  ;;  %v1973_v7 = vld [vmem:[#allocation8 + $0x2c8] sm:$0xff] }
 0x68b   :  { %1726 = vmatprep.subr.mxu0 %v10494_v27  ;;  %6314 = vmatprep.subr.mxu1 %v10449_v35  ;;  %v1953_v26 = vld [vmem:[#allocation8 + $0x228] sm:$0xff]  ;;  %v1955_v27 = vld [vmem:[#allocation8 + $0x238] sm:$0xff] }
 0x68c   :  { %1727 = vmatpush1.msra.mxu0 %v10495_v28  ;;  %1760 = vmatprep.mubr.f32.mxu0 %v10449_v35  ;;  %v1951_v28 = vld [vmem:[#allocation8 + $0x218] sm:$0xff] }
 0x68d   :  { %6315 = vmatpush3.msra.mxu1 %v10496_v30  ;;  %6316 = vmatprep.mubr.msk.f32.mxu1 %vm7487_vm0, %v10449_v35  ;;  %v1950_v30 = vld [vmem:[#allocation8 + $0x210] sm:$0xff] }
 0x68e   :  { %1998 = vmatprep.subr.mxu0 %v1978_v62  ;;  %6319 = vmatprep.subr.mxu1 %v1979_v0 }
 0x72d   :  { %v1583_v37 = vpop.f32.mrf.mxu0  ;;  %v1654_v42 = vpop.f32.mrf.mxu1 }
 0x72e   :  { %v1661_v33 = vrot.slane %v1654_v42, 4  ;;  %v1682_v34 = vadd.f32 %v8365_v9, %v1583_v37  ;;  %v1952_v37 = vld [vmem:[#allocation8 + $0x220] sm:$0xff] }
 0x72f   :  { %v1585_v1 = vpop.f32.mrf.mxu0  ;;  %v6283_v39 = vpop.f32.mrf.mxu1  ;;  %v1948_v42 = vld [vmem:[#allocation8 + $0x200] sm:$0xff] }
 0x730   :  { %v1665_v41 = vadd.f32 %v1661_v33, %v10497_v46  ;;  %v1660_v50 = vrot.slane %v1585_v1, 4  ;;  %v1684_v51 = vrot.slane %v1682_v34, 4  ;;  %v1947_v33 = vld [vmem:[#allocation8 + $0x1f8] sm:$0xff]  ;;  %v1949_v1 = vld [vmem:[#allocation8 + $0x208] sm:$0xff]  ;;  %v1944_v46 = vld [vmem:[#allocation8 + $0x1e0] sm:$0xff] }
 0x731   :  { %v1945_v39 = vld [vmem:[#allocation8 + $0x1e8] sm:$0xff] }
 0x732   :  { %v5500_v48 = vmul.f32 -1.442695, %v1665_v41  ;;  %v1664_v44 = vadd.f32 %v1660_v50, %v10498_v29  ;;  %v1946_v41 = vld [vmem:[#allocation8 + $0x1f0] sm:$0xff]  ;;  %v1941_v50 = vld [vmem:[#allocation8 + $0x1c8] sm:$0xff]  ;;  %v1943_v29 = vld [vmem:[#allocation8 + $0x1d8] sm:$0xff] }
 0x733   :  { %v1937_v34 = vld [vmem:[#allocation8 + $0x1a8] sm:$0xff] }
 0x734   :  { %7024 = vpow2.f32 %v5500_v48  ;;  %v5499_v43 = vmul.f32 -1.442695, %v1664_v44  ;;  %v1942_v48 = vld [vmem:[#allocation8 + $0x1d0] sm:$0xff]  ;;  %v1939_v44 = vld [vmem:[#allocation8 + $0x1b8] sm:$0xff] }
 0x736   :  { %7026 = vpow2.f32 %v5499_v43  ;;  %v1938_v43 = vld [vmem:[#allocation8 + $0x1b0] sm:$0xff] }
 0x741   :  { %v7025_v40 = vpop.eup %7024 }
 0x742   :  { %v1673_v32 = vadd.f32 1.0, %v7025_v40  ;;  %v1940_v40 = vld [vmem:[#allocation8 + $0x1c0] sm:$0xff] }
 0x743   :  { %v7027_v36 = vpop.eup %7026 }
 0x744   :  { %7028 = vrcp.f32 %v1673_v32  ;;  %v1672_v45 = vadd.f32 1.0, %v7027_v36  ;;  %v1936_v32 = vld [vmem:[#allocation8 + $0x1a0] sm:$0xff]  ;;  %v1935_v36 = vld [vmem:[#allocation8 + $0x198] sm:$0xff] }
 0x746   :  { %7030 = vrcp.f32 %v1672_v45  ;;  %v1933_v45 = vld [vmem:[#allocation8 + $0x188] sm:$0xff] }
 0x751   :  { %v7029_v49 = vpop.eup %7028 }
 0x752   :  { %v1686_v31 = vmul.f32 %v7029_v49, %v1684_v51  ;;  %v1932_v51 = vld [vmem:[#allocation8 + $0x180] sm:$0xff]  ;;  %v1934_v49 = vld [vmem:[#allocation8 + $0x190] sm:$0xff] }
 0x753   :  { %v7031_v53 = vpop.eup %7030 }
 0x754   :  { %v1687_v52 = vadd.f32 %v1686_v31, %v10499_v47  ;;  %v1678_v54 = vsub.f32 1.0, %v7031_v53  ;;  %v1681_v57 = vmul.f32 %v7031_v53, %v1679_v55  ;;  %v8455_v31 = vld [vmem:[#allocation9 + $0x2f0] sm:$0xff] }
 0x755   :  { %10500 = vst [vmem:[#allocation41_spill] sm:$0xff] %v8455_v31 }
 0x756   :  { %7032 = vtanh.f32 %v1687_v52 }
 0x763   :  { %v7033_v56 = vpop.eup %7032 }
 0x764   :  { %v1689_v59 = vmul.f32 %v7033_v56, %v1678_v54 }
 0x766   :  { %v8447_v60 = vadd.f32 %v1689_v59, %v1681_v57 }
 0x768   :  { %1691 = vst.msk [vmem:[#allocation2 + $0x8] sm:$0x30] %vm963_vm8, %v8447_v60  ;;  %v1694_v61 = vrot.slane %v8447_v60, 4 }
 0x769   :  { %1692 = vst.msk [vmem:[#allocation2 - $0x2] sm:$0x30] %vm965_vm9, %v8447_v60 }
 0x76a   :  { %1761 = vmatmul.mubr.f32.vlgmr.msra.gmra.mxu0 %v1694_v61  ;;  %6317 = vmatmul.mubr.f32.vlgmr.msra.gmra.mxu1 %v1694_v61 }
 0x76b   :  { %2062 = vmatprep.mubr.f32.mxu0 %v10449_v35  ;;  %1999 = vmatpush1.msra.mxu0 %v1977_v63 }
 0x76c   :  { %2000 = vmatprep.subr.mxu0 %v1975_v2  ;;  %6320 = vmatpush3.msra.mxu1 %v1979_v0 }
 0x76d   :  { %2001 = vmatpush1.msra.mxu0 %v1974_v3  ;;  %6321 = vmatprep.subr.mxu1 %v1976_v4 }
 0x76e   :  { %2002 = vmatprep.subr.mxu0 %v1972_v5  ;;  %6322 = vmatpush3.msra.mxu1 %v1976_v4 }
 0x76f   :  { %2003 = vmatpush1.msra.mxu0 %v1971_v6  ;;  %6323 = vmatprep.subr.mxu1 %v1973_v7 }
 0x770   :  { %2004 = vmatprep.subr.mxu0 %v1969_v21  ;;  %6324 = vmatpush3.msra.mxu1 %v1973_v7 }
 0x771   :  { %2005 = vmatpush1.msra.mxu0 %v1968_v38  ;;  %6325 = vmatprep.subr.mxu1 %v1970_v25 }
 0x772   :  { %2006 = vmatprep.subr.mxu0 %v1966_v11  ;;  %6326 = vmatpush3.msra.mxu1 %v1970_v25 }
 0x773   :  { %2007 = vmatpush1.msra.mxu0 %v1965_v10  ;;  %6327 = vmatprep.subr.mxu1 %v1967_v12 }
 0x774   :  { %2008 = vmatprep.subr.mxu0 %v1963_v24  ;;  %6328 = vmatpush3.msra.mxu1 %v1967_v12  ;;  %v8468_v24 = vld [vmem:[#allocation9 + $0x2d8] sm:$0xff] }
 0x775   :  { %2009 = vmatpush1.msra.mxu0 %v1962_v23  ;;  %6329 = vmatprep.subr.mxu1 %v1964_v15 }
 0x776   :  { %2010 = vmatprep.subr.mxu0 %v1960_v16  ;;  %6330 = vmatpush3.msra.mxu1 %v1964_v15  ;;  %v8472_v16 = vld [vmem:[#allocation9 + $0x2d0] sm:$0xff] }
 0x777   :  { %2011 = vmatpush1.msra.mxu0 %v1959_v8  ;;  %6331 = vmatprep.subr.mxu1 %v1961_v17  ;;  %v8479_v8 = vld [vmem:[#allocation9 + $0x2e0] sm:$0xff] }
 0x778   :  { %2012 = vmatprep.subr.mxu0 %v1957_v19  ;;  %6332 = vmatpush3.msra.mxu1 %v1961_v17  ;;  %v8483_v17 = vld [vmem:[#allocation9 + $0x2b8] sm:$0xff]  ;;  %v8487_v19 = vld [vmem:[#allocation9 + $0x2a8] sm:$0xff] }
 0x779   :  { %2013 = vmatpush1.msra.mxu0 %v1956_v14  ;;  %6333 = vmatprep.subr.mxu1 %v1958_v20  ;;  %v8489_v14 = vld [vmem:[#allocation9 + $0x2c8] sm:$0xff] }
 0x77a   :  { %2014 = vmatprep.subr.mxu0 %v1954_v58  ;;  %6334 = vmatpush3.msra.mxu1 %v1958_v20  ;;  %v8492_v20 = vld [vmem:[#allocation9 + $0x2a0] sm:$0xff]  ;;  %v8496_v58 = vld [vmem:[#allocation9 + $0x290] sm:$0xff] }
 0x77b   :  { %2015 = vmatpush1.msra.mxu0 %v1953_v26  ;;  %6335 = vmatprep.subr.mxu1 %v1955_v27  ;;  %v8498_v26 = vld [vmem:[#allocation9 + $0x2b0] sm:$0xff] }
 0x77c   :  { %2016 = vmatprep.subr.mxu0 %v1951_v28  ;;  %6336 = vmatpush3.msra.mxu1 %v1955_v27  ;;  %v8502_v27 = vld [vmem:[#allocation9 + $0x288] sm:$0xff]  ;;  %v8506_v28 = vld [vmem:[#allocation9 + $0x278] sm:$0xff] }
 0x77d   :  { %2017 = vmatpush1.msra.mxu0 %v1950_v30  ;;  %6337 = vmatprep.subr.mxu1 %v1952_v37  ;;  %v8508_v30 = vld [vmem:[#allocation9 + $0x298] sm:$0xff] }
 0x77e   :  { %2018 = vmatprep.subr.mxu0 %v1948_v42  ;;  %6338 = vmatpush3.msra.mxu1 %v1952_v37  ;;  %v8512_v37 = vld [vmem:[#allocation9 + $0x270] sm:$0xff]  ;;  %v8516_v42 = vld [vmem:[#allocation9 + $0x260] sm:$0xff] }
 0x77f   :  { %2019 = vmatpush1.msra.mxu0 %v1947_v33  ;;  %6339 = vmatprep.subr.mxu1 %v1949_v1  ;;  %v8518_v33 = vld [vmem:[#allocation9 + $0x280] sm:$0xff] }
 0x780   :  { %2020 = vmatprep.subr.mxu0 %v1945_v39  ;;  %6340 = vmatpush3.msra.mxu1 %v1949_v1  ;;  %v8522_v1 = vld [vmem:[#allocation9 + $0x258] sm:$0xff]  ;;  %v8526_v39 = vld [vmem:[#allocation9 + $0x248] sm:$0xff] }
 0x781   :  { %2021 = vmatpush1.msra.mxu0 %v1944_v46  ;;  %6341 = vmatprep.subr.mxu1 %v1946_v41  ;;  %v8528_v46 = vld [vmem:[#allocation9 + $0x268] sm:$0xff] }
 0x782   :  { %2022 = vmatprep.subr.mxu0 %v1942_v48  ;;  %6342 = vmatpush3.msra.mxu1 %v1946_v41  ;;  %v8532_v41 = vld [vmem:[#allocation9 + $0x240] sm:$0xff]  ;;  %v8536_v48 = vld [vmem:[#allocation9 + $0x230] sm:$0xff] }
 0x783   :  { %2023 = vmatpush1.msra.mxu0 %v1941_v50  ;;  %6343 = vmatprep.subr.mxu1 %v1943_v29  ;;  %v8538_v50 = vld [vmem:[#allocation9 + $0x250] sm:$0xff] }
 0x784   :  { %2024 = vmatprep.subr.mxu0 %v1939_v44  ;;  %6344 = vmatpush3.msra.mxu1 %v1943_v29  ;;  %v8542_v29 = vld [vmem:[#allocation9 + $0x228] sm:$0xff]  ;;  %v8546_v44 = vld [vmem:[#allocation9 + $0x218] sm:$0xff] }
 0x785   :  { %2025 = vmatpush1.msra.mxu0 %v1938_v43  ;;  %6345 = vmatprep.subr.mxu1 %v1940_v40  ;;  %v8548_v43 = vld [vmem:[#allocation9 + $0x238] sm:$0xff] }
 0x786   :  { %2026 = vmatprep.subr.mxu0 %v1936_v32  ;;  %6346 = vmatpush3.msra.mxu1 %v1940_v40  ;;  %v8552_v40 = vld [vmem:[#allocation9 + $0x210] sm:$0xff]  ;;  %v8556_v32 = vld [vmem:[#allocation9 + $0x200] sm:$0xff] }
 0x787   :  { %2027 = vmatpush1.msra.mxu0 %v1935_v36  ;;  %6347 = vmatprep.subr.mxu1 %v1937_v34  ;;  %v8558_v36 = vld [vmem:[#allocation9 + $0x220] sm:$0xff] }
 0x788   :  { %2028 = vmatprep.subr.mxu0 %v1933_v45  ;;  %6348 = vmatpush3.msra.mxu1 %v1937_v34  ;;  %v8562_v34 = vld [vmem:[#allocation9 + $0x1f8] sm:$0xff]  ;;  %v8566_v45 = vld [vmem:[#allocation9 + $0x1e8] sm:$0xff] }
 0x789   :  { %2029 = vmatpush1.msra.mxu0 %v1932_v51  ;;  %6349 = vmatprep.subr.mxu1 %v1934_v49  ;;  %v8568_v51 = vld [vmem:[#allocation9 + $0x208] sm:$0xff] }
 0x78a   :  { %6350 = vmatpush3.msra.mxu1 %v1934_v49  ;;  %2164 = vmatprep.subr.mxu0 %v8455_v31  ;;  %v8572_v49 = vld [vmem:[#allocation9 + $0x1e0] sm:$0xff] }
 0x78b   :  { %6354 = vmatprep.subr.mxu1 %v10449_v35 }
 0x82a   :  { %v1762_v47 = vpop.f32.mrf.mxu0  ;;  %v1833_v52 = vpop.f32.mrf.mxu1 }
 0x82b   :  { %v1840_v53 = vrot.slane %v1833_v52, 2  ;;  %v1861_v3 = vadd.f32 %v8365_v9, %v1762_v47  ;;  %v8466_v9 = vld [vmem:[#allocation9 + $0x2e8] sm:$0xff]  ;;  %v8576_v47 = vld [vmem:[#allocation9 + $0x1d0] sm:$0xff] }
 0x82c   :  { %v1764_v54 = vpop.f32.mrf.mxu0  ;;  %v6318_v55 = vpop.f32.mrf.mxu1  ;;  %v8578_v52 = vld [vmem:[#allocation9 + $0x1f0] sm:$0xff] }
 0x82d   :  { %v1844_v56 = vadd.f32 %v1840_v53, %v10490_v13  ;;  %v1839_v59 = vrot.slane %v1764_v54, 2  ;;  %v1863_v5 = vrot.slane %v1861_v3, 2  ;;  %v8582_v53 = vld [vmem:[#allocation9 + $0x1c8] sm:$0xff]  ;;  %v8586_v54 = vld [vmem:[#allocation9 + $0x1b8] sm:$0xff]  ;;  %v8620_v3 = vld [vmem:[#allocation9 + $0x190] sm:$0xff] }
 0x82e   :  { %v8588_v55 = vld [vmem:[#allocation9 + $0x1d8] sm:$0xff]  ;;  %10508 = vst [vmem:[#allocation34_spill] sm:$0xff] %v8620_v3 }
 0x82f   :  { %v5502_v57 = vmul.f32 -1.442695, %v1844_v56  ;;  %v1843_v61 = vadd.f32 %v1839_v59, %v10491_v18  ;;  %v1858_v18 = vrot.slane %v8447_v60, 6  ;;  %v8475_v60 = vld [vmem:[#allocation9 + $0x2c0] sm:$0xff]  ;;  %v8592_v56 = vld [vmem:[#allocation9 + $0x1b0] sm:$0xff] }
 0x830   :  { %10501 = vst [vmem:[#allocation19_spill] sm:$0xff] %v8592_v56  ;;  %v8598_v59 = vld [vmem:[#allocation9 + $0x1c0] sm:$0xff] }
 0x831   :  { %7034 = vpow2.f32 %v5502_v57  ;;  %v5501_v62 = vmul.f32 -1.442695, %v1843_v61  ;;  %v8596_v57 = vld [vmem:[#allocation9 + $0x1a0] sm:$0xff]  ;;  %10503 = vst [vmem:[#allocation20_spill] sm:$0xff] %v8598_v59  ;;  %v8602_v61 = vld [vmem:[#allocation9 + $0x198] sm:$0xff] }
 0x832   :  { %10502 = vst [vmem:[#allocation18_spill] sm:$0xff] %v8596_v57  ;;  %10504 = vst [vmem:[#allocation21_spill] sm:$0xff] %v8602_v61 }
 0x833   :  { %7036 = vpow2.f32 %v5501_v62  ;;  %v8606_v62 = vld [vmem:[#allocation9 + $0x188] sm:$0xff] }
 0x834   :  { %10505 = vst [vmem:[#allocation22_spill] sm:$0xff] %v8606_v62 }
 0x83e   :  { %v7035_v63 = vpop.eup %7034 }
 0x83f   :  { %v1852_v0 = vadd.f32 1.0, %v7035_v63  ;;  %v8608_v63 = vld [vmem:[#allocation9 + $0x1a8] sm:$0xff] }
 0x840   :  { %v7037_v2 = vpop.eup %7036  ;;  %10506 = vst [vmem:[#allocation29_spill] sm:$0xff] %v8608_v63 }
 0x841   :  { %7038 = vrcp.f32 %v1852_v0  ;;  %v1851_v4 = vadd.f32 1.0, %v7037_v2  ;;  %v8612_v0 = vld [vmem:[#allocation9 + $0x180] sm:$0xff]  ;;  %v8616_v2 = vld [vmem:[#allocation6 + $0x2] sm:$0x3] }
 0x842   :  { %10507 = vst [vmem:[#allocation38_spill] sm:$0xff] %v8612_v0 }
 0x843   :  { %7040 = vrcp.f32 %v1851_v4  ;;  %v5504_v4 = vld [vmem:[%s10277_s4 + $0x3] sm:$0x7] }
 0x84e   :  { %v7039_v6 = vpop.eup %7038 }
 0x84f   :  { %v1865_v7 = vmul.f32 %v7039_v6, %v1863_v5  ;;  %v10509_v5 = vld [vmem:[#allocation26_spill] sm:$0xff] }
 0x850   :  { %v7041_v21 = vpop.eup %7040  ;;  %v1986_v6 = vrot.slane %v5504_v4, %v10509_v5 }
 0x851   :  { %v1866_v13 = vadd.f32 %v1865_v7, %v10492_v22  ;;  %v1857_v38 = vsub.f32 1.0, %v7041_v21  ;;  %v1860_v11 = vmul.f32 %v7041_v21, %v1858_v18  ;;  %v8470_v22 = vld [vmem:[#allocation9 + $0x2f8] sm:$0xff] }
 0x852   :  { %v10510_v7 = vld [vmem:[#allocation25_spill] sm:$0xff] }
 0x853   :  { %7042 = vtanh.f32 %v1866_v13  ;;  %v1994_v13 = vrot.slane %v5504_v4, %v10510_v7 }
 0x860   :  { %v7043_v25 = vpop.eup %7042 }
 0x861   :  { %v1868_v10 = vmul.f32 %v7043_v25, %v1857_v38  ;;  %v10511_v38 = vld [vmem:[#allocation28_spill] sm:$0xff] }
 0x862   :  { %v1990_v18 = vrot.slane %v5504_v4, %v10511_v38 }
 0x863   :  { %v1869_v12 = vadd.f32 %v1868_v10, %v1860_v11 }
 0x865   :  { %1870 = vst.msk [vmem:[#allocation2 + $0x8] sm:$0xc0] %vm1144_vm10, %v1869_v12 }
 0x866   :  { %1871 = vst.msk [vmem:[#allocation2 - $0x6] sm:$0xc0] %vm1146_vm11, %v1869_v12 }
 0x86c   :  { %v1873_v15 = vld [vmem:[#allocation2 + $0x8] sm:$0xff] }
 0x86d   :  { %v1872_v23 = vld [vmem:[#allocation2] sm:$0xff] }
 0x86e   :  { %2063 = vmatmul.mubr.f32.vlgmr.msra.gmra.mxu0 %v1872_v23  ;;  %6351 = vmatprep.mubr.f32.mxu1 %v1872_v23 }
 0x86f   :  { %2165 = vmatpush1.msra.mxu0 %v8466_v9  ;;  %6352 = vmatmul.mubr.f32.vlgmr.msra.gmra.mxu1 %v1873_v15 }
 0x870   :  { %2166 = vmatprep.subr.mxu0 %v8468_v24  ;;  %6355 = vmatpush3.msra.mxu1 %v8470_v22 }
 0x871   :  { %2167 = vmatpush1.msra.mxu0 %v8472_v16  ;;  %6356 = vmatprep.subr.mxu1 %v10449_v35 }
 0x872   :  { %2068 = vmatprep.mubr.f32.mxu0 %v10449_v35  ;;  %2168 = vmatprep.subr.mxu0 %v8475_v60 }
 0x873   :  { %6357 = vmatpush3.msra.mxu1 %v8479_v8  ;;  %2069 = vmatmul.mubr.f32.gmra.mxu0 %v1873_v15 }
 0x874   :  { %2169 = vmatpush1.msra.mxu0 %v8483_v17  ;;  %6358 = vmatprep.subr.mxu1 %v10449_v35 }
 0x875   :  { %2170 = vmatprep.subr.mxu0 %v8487_v19  ;;  %6359 = vmatpush3.msra.mxu1 %v8489_v14 }
 0x876   :  { %2171 = vmatpush1.msra.mxu0 %v8492_v20  ;;  %6360 = vmatprep.subr.mxu1 %v10449_v35 }
 0x877   :  { %2172 = vmatprep.subr.mxu0 %v8496_v58  ;;  %6361 = vmatpush3.msra.mxu1 %v8498_v26 }
 0x878   :  { %2173 = vmatpush1.msra.mxu0 %v8502_v27  ;;  %6362 = vmatprep.subr.mxu1 %v10449_v35 }
 0x879   :  { %2174 = vmatprep.subr.mxu0 %v8506_v28  ;;  %6363 = vmatpush3.msra.mxu1 %v8508_v30 }
 0x87a   :  { %2175 = vmatpush1.msra.mxu0 %v8512_v37  ;;  %6364 = vmatprep.subr.mxu1 %v10449_v35 }
 0x87b   :  { %2176 = vmatprep.subr.mxu0 %v8516_v42  ;;  %6365 = vmatpush3.msra.mxu1 %v8518_v33 }
 0x87c   :  { %2177 = vmatpush1.msra.mxu0 %v8522_v1  ;;  %6366 = vmatprep.subr.mxu1 %v10449_v35 }
 0x87d   :  { %2178 = vmatprep.subr.mxu0 %v8526_v39  ;;  %6367 = vmatpush3.msra.mxu1 %v8528_v46 }
 0x87e   :  { %2179 = vmatpush1.msra.mxu0 %v8532_v41  ;;  %6368 = vmatprep.subr.mxu1 %v10449_v35 }
 0x87f   :  { %2180 = vmatprep.subr.mxu0 %v8536_v48  ;;  %6369 = vmatpush3.msra.mxu1 %v8538_v50 }
 0x880   :  { %2181 = vmatpush1.msra.mxu0 %v8542_v29  ;;  %6370 = vmatprep.subr.mxu1 %v10449_v35 }
 0x881   :  { %2182 = vmatprep.subr.mxu0 %v8546_v44  ;;  %6371 = vmatpush3.msra.mxu1 %v8548_v43 }
 0x882   :  { %2183 = vmatpush1.msra.mxu0 %v8552_v40  ;;  %6372 = vmatprep.subr.mxu1 %v10449_v35 }
 0x883   :  { %2184 = vmatprep.subr.mxu0 %v8556_v32  ;;  %6373 = vmatpush3.msra.mxu1 %v8558_v36 }
 0x884   :  { %2185 = vmatpush1.msra.mxu0 %v8562_v34  ;;  %6374 = vmatprep.subr.mxu1 %v10449_v35 }
 0x885   :  { %2186 = vmatprep.subr.mxu0 %v8566_v45  ;;  %6375 = vmatpush3.msra.mxu1 %v8568_v51 }
 0x886   :  { %2187 = vmatpush1.msra.mxu0 %v8572_v49  ;;  %6376 = vmatprep.subr.mxu1 %v10449_v35 }
 0x887   :  { %2188 = vmatprep.subr.mxu0 %v8576_v47  ;;  %6377 = vmatpush3.msra.mxu1 %v8578_v52 }
 0x888   :  { %2189 = vmatpush1.msra.mxu0 %v8582_v53  ;;  %6378 = vmatprep.subr.mxu1 %v10449_v35 }
 0x889   :  { %2190 = vmatprep.subr.mxu0 %v8586_v54  ;;  %6379 = vmatpush3.msra.mxu1 %v8588_v55 }
 0x88a   :  { %2191 = vmatpush1.msra.mxu0 %v8592_v56  ;;  %6380 = vmatprep.subr.mxu1 %v10449_v35 }
 0x88b   :  { %2192 = vmatprep.subr.mxu0 %v8596_v57  ;;  %6381 = vmatpush3.msra.mxu1 %v8598_v59 }
 0x88c   :  { %2193 = vmatpush1.msra.mxu0 %v8602_v61  ;;  %6382 = vmatprep.subr.mxu1 %v10449_v35 }
 0x88d   :  { %2194 = vmatprep.subr.mxu0 %v8606_v62  ;;  %6383 = vmatpush3.msra.mxu1 %v8608_v63 }
 0x88e   :  { %2195 = vmatpush1.msra.mxu0 %v8612_v0  ;;  %2228 = vmatprep.mubr.f32.mxu0 %v10449_v35 }
 0x88f   :  { %6384 = vmatprep.subr.mxu1 %v10449_v35  ;;  %2229 = vmatmul.mubr.f32.vlgmr.msra.gmra.mxu0 %v8616_v2 }
 0x890   :  { %6385 = vmatpush3.msra.mxu1 %v8620_v3  ;;  %6386 = vmatprep.mubr.msk.f32.mxu1 %vm7487_vm0, %v10449_v35 }
 0x891   :  { %6387 = vmatmul.mubr.f32.vlgmr.msra.gmra.mxu1 %v8616_v2  ;;  %2338 = vmatprep.subr.mxu0 %v8455_v31 }
 0x892   :  { %6389 = vmatprep.subr.mxu1 %v10449_v35  ;;  %2339 = vmatpush1.msra.mxu0 %v8466_v9 }
 0x893   :  { %6390 = vmatpush3.msra.mxu1 %v8470_v22  ;;  %2340 = vmatprep.subr.mxu0 %v8468_v24 }
 0x894   :  { %6391 = vmatprep.subr.mxu1 %v10449_v35  ;;  %2341 = vmatpush1.msra.mxu0 %v8472_v16 }
 0x895   :  { %6392 = vmatpush3.msra.mxu1 %v8479_v8  ;;  %2342 = vmatprep.subr.mxu0 %v8475_v60 }
 0x896   :  { %6393 = vmatprep.subr.mxu1 %v10449_v35  ;;  %2343 = vmatpush1.msra.mxu0 %v8483_v17 }
 0x897   :  { %6394 = vmatpush3.msra.mxu1 %v8489_v14  ;;  %2344 = vmatprep.subr.mxu0 %v8487_v19 }
 0x898   :  { %6395 = vmatprep.subr.mxu1 %v10449_v35  ;;  %2345 = vmatpush1.msra.mxu0 %v8492_v20 }
 0x899   :  { %6396 = vmatpush3.msra.mxu1 %v8498_v26  ;;  %2346 = vmatprep.subr.mxu0 %v8496_v58 }
 0x89a   :  { %6397 = vmatprep.subr.mxu1 %v10449_v35  ;;  %2347 = vmatpush1.msra.mxu0 %v8502_v27 }
 0x89b   :  { %6398 = vmatpush3.msra.mxu1 %v8508_v30  ;;  %2348 = vmatprep.subr.mxu0 %v8506_v28 }
 0x89c   :  { %6399 = vmatprep.subr.mxu1 %v10449_v35  ;;  %2349 = vmatpush1.msra.mxu0 %v8512_v37 }
 0x89d   :  { %6400 = vmatpush3.msra.mxu1 %v8518_v33  ;;  %2350 = vmatprep.subr.mxu0 %v8516_v42 }
 0x89e   :  { %6401 = vmatprep.subr.mxu1 %v10449_v35  ;;  %2351 = vmatpush1.msra.mxu0 %v8522_v1 }
 0x89f   :  { %6402 = vmatpush3.msra.mxu1 %v8528_v46  ;;  %2352 = vmatprep.subr.mxu0 %v8526_v39 }
 0x8a0   :  { %6403 = vmatprep.subr.mxu1 %v10449_v35  ;;  %2353 = vmatpush1.msra.mxu0 %v8532_v41 }
 0x8a1   :  { %6404 = vmatpush3.msra.mxu1 %v8538_v50  ;;  %2354 = vmatprep.subr.mxu0 %v8536_v48 }
 0x8a2   :  { %6405 = vmatprep.subr.mxu1 %v10449_v35  ;;  %2355 = vmatpush1.msra.mxu0 %v8542_v29 }
 0x8a3   :  { %6406 = vmatpush3.msra.mxu1 %v8548_v43  ;;  %2356 = vmatprep.subr.mxu0 %v8546_v44 }
 0x8a4   :  { %6407 = vmatprep.subr.mxu1 %v10449_v35  ;;  %2357 = vmatpush1.msra.mxu0 %v8552_v40 }
 0x8a5   :  { %6408 = vmatpush3.msra.mxu1 %v8558_v36  ;;  %2358 = vmatprep.subr.mxu0 %v8556_v32 }
 0x8a6   :  { %6409 = vmatprep.subr.mxu1 %v10449_v35  ;;  %2359 = vmatpush1.msra.mxu0 %v8562_v34 }
 0x8a7   :  { %6410 = vmatpush3.msra.mxu1 %v8568_v51  ;;  %2360 = vmatprep.subr.mxu0 %v8566_v45 }
 0x8a8   :  { %6411 = vmatprep.subr.mxu1 %v10449_v35  ;;  %2361 = vmatpush1.msra.mxu0 %v8572_v49 }
 0x8a9   :  { %6412 = vmatpush3.msra.mxu1 %v8578_v52  ;;  %2362 = vmatprep.subr.mxu0 %v8576_v47 }
 0x8aa   :  { %6413 = vmatprep.subr.mxu1 %v10449_v35  ;;  %2363 = vmatpush1.msra.mxu0 %v8582_v53 }
 0x8ab   :  { %6414 = vmatpush3.msra.mxu1 %v8588_v55  ;;  %2364 = vmatprep.subr.mxu0 %v8586_v54 }
 0x8ac   :  { %6415 = vmatprep.subr.mxu1 %v10449_v35  ;;  %2365 = vmatpush1.msra.mxu0 %v8592_v56 }
 0x8ad   :  { %6416 = vmatpush3.msra.mxu1 %v8598_v59  ;;  %2366 = vmatprep.subr.mxu0 %v8596_v57 }
 0x8ae   :  { %6417 = vmatprep.subr.mxu1 %v10449_v35  ;;  %2367 = vmatpush1.msra.mxu0 %v8602_v61 }
 0x8af   :  { %6418 = vmatpush3.msra.mxu1 %v8608_v63  ;;  %2368 = vmatprep.subr.mxu0 %v8606_v62 }
 0x8b0   :  { %6419 = vmatprep.subr.mxu1 %v10449_v35  ;;  %2369 = vmatpush1.msra.mxu0 %v8612_v0 }
 0x8b1   :  { %2402 = vmatprep.mubr.f32.mxu0 %v10449_v35  ;;  %6420 = vmatpush3.msra.mxu1 %v8620_v3 }
 0x8b2   :  { %6421 = vmatprep.mubr.msk.f32.mxu1 %vm7487_vm0, %v10449_v35  ;;  %2518 = vmatprep.subr.mxu0 %v8455_v31 }
 0x8b3   :  { %6424 = vmatprep.subr.mxu1 %v10449_v35 }
 0x92e   :  { %v2064_v21 = vpop.f32.mrf.mxu0 }
 0x92f   :  { %v2065_v25 = vadd.f32 %v2064_v21, %v1986_v6  ;;  %v6353_v11 = vpop.f32.mrf.mxu1 }
 0x930   :  { %v2147_v10 = vadd.f32 %v6353_v11, %v1994_v13  ;;  %v2066_v12 = vpop.f32.mrf.mxu0 }
 0x931   :  { %v2141_v23 = vpop.f32.mrf.mxu1  ;;  %v2067_v15 = vadd.f32 %v2066_v12, %v1990_v18  ;;  %v2876_v0 = vrot.slane %v2065_v25, 6  ;;  %v3053_v63 = vrot.slane %v2065_v25, 2 }
 0x932   :  { %v2142_v31 = vadd.f32 %v2141_v23, %v1994_v13  ;;  %v2331_v3 = vrot.slane %v2147_v10, 2 }
 0x933   :  { %v2070_v62 = vpop.f32.mrf.mxu0  ;;  %v2877_v12 = vrot.slane %v2067_v15, 6 }
 0x934   :  { %v2071_v61 = vadd.f32 %v2070_v62, %v1986_v6  ;;  %v8707_v5 = vsel %vm7806_vm1, %v2142_v31, %v2331_v3  ;;  %v2878_v7 = vrot.slane %v2142_v31, 6  ;;  %v3055_v56 = vrot.slane %v2142_v31, 2 }
 0x935   :  { %10513 = vst [vmem:[#allocation16_spill] sm:$0xff] %v8707_v5  ;;  %v2072_v59 = vpop.f32.mrf.mxu0  ;;  %v3054_v6 = vrot.slane %v2067_v15, 2 }
 0x936   :  { %v2329_v4 = vrot.slane %v2071_v61, 2  ;;  %v8711_v11 = vsel %vm139_vm2, %v2071_v61, %v2876_v0  ;;  %v8715_v13 = vsel %vm139_vm2, %v2071_v61, %v3053_v63  ;;  %v2073_v23 = vadd.f32 %v2072_v59, %v1990_v18 }
 0x937   :  { %10515 = vst [vmem:[#allocation31_spill] sm:$0xff] %v8711_v11  ;;  %10516 = vst [vmem:[#allocation37_spill] sm:$0xff] %v8715_v13  ;;  %v8719_v62 = vsel %vm7806_vm1, %v2147_v10, %v2878_v7  ;;  %v8723_v3 = vsel %vm7806_vm1, %v2147_v10, %v3055_v56  ;;  %v2157_v56 = vrot.slane %v2147_v10, 6 }
 0x938   :  { %10517 = vst [vmem:[#allocation33_spill] sm:$0xff] %v8719_v62  ;;  %10518 = vst [vmem:[#allocation17_spill] sm:$0xff] %v8723_v3  ;;  %v8727_v38 = vsel %vm139_vm2, %v2065_v25, %v2329_v4  ;;  %v2330_v0 = vrot.slane %v2073_v23, 2  ;;  %v8731_v63 = vsel %vm7841_vm3, %v2073_v23, %v2877_v12  ;;  %v8735_v59 = vsel %vm7841_vm3, %v2073_v23, %v3054_v6 }
 0x939   :  { %10519 = vst [vmem:[#allocation15_spill] sm:$0xff] %v8727_v38  ;;  %10521 = vst [vmem:[#allocation39_spill] sm:$0xff] %v8731_v63  ;;  %v8743_v13 = vsel %vm7806_vm1, %v2142_v31, %v2157_v56  ;;  %v2156_v62 = vrot.slane %v2073_v23, 6  ;;  %v8751_v56 = vld [vmem:[#allocation11 + $0x1] ss:$0 sm:$0xff]  ;;  %v2155_v23 = vrot.slane %v2071_v61, 6 }
 0x93a   :  { %10522 = vst [vmem:[#allocation40_spill] sm:$0xff] %v8735_v59  ;;  %v8739_v7 = vsel %vm7841_vm3, %v2067_v15, %v2330_v0  ;;  %10524 = vst [vmem:[#allocation36_spill] sm:$0xff] %v8743_v13  ;;  %v10527_v61 = vld [vmem:[#allocation19_spill] sm:$0xff] }
 0x93b   :  { %10523 = vst [vmem:[#allocation30_spill] sm:$0xff] %v8739_v7  ;;  %v8748_v6 = vsel %vm7841_vm3, %v2067_v15, %v2156_v62  ;;  %v8756_v15 = vsel %vm139_vm2, %v2065_v25, %v2155_v23  ;;  %v10529_v25 = vld [vmem:[#allocation18_spill] sm:$0xff] }
 0x93c   :  { %10525 = vst [vmem:[#allocation32_spill] sm:$0xff] %v8748_v6  ;;  %10526 = vst [vmem:[#allocation42_spill] sm:$0xff] %v8756_v15  ;;  %v10532_v23 = vld [vmem:[#allocation22_spill] sm:$0xff] }
 0x94f   :  { %v2230_v18 = vpop.f32.mrf.mxu0 }
 0x951   :  { %v2301_v4 = vpop.f32.mrf.mxu1  ;;  %v2232_v38 = vpop.f32.mrf.mxu0 }
 0x952   :  { %v2306_v3 = vadd.f32 %v2301_v4, %v8743_v13  ;;  %v2305_v0 = vadd.f32 %v2232_v38, %v8748_v6 }
 0x953   :  { %v6388_v12 = vpop.f32.mrf.mxu1 }
 0x954   :  { %v5506_v63 = vmul.f32 -1.442695, %v2306_v3  ;;  %v5505_v10 = vmul.f32 -1.442695, %v2305_v0  ;;  %v2321_v3 = vadd.f32 %v8751_v56, %v2230_v18  ;;  %v10530_v18 = vld [vmem:[#allocation21_spill] sm:$0xff] }
 0x956   :  { %7044 = vpow2.f32 %v5506_v63 }
 0x957   :  { %7046 = vpow2.f32 %v5505_v10 }
 0x963   :  { %v7045_v59 = vpop.eup %7044 }
 0x964   :  { %v2314_v57 = vadd.f32 1.0, %v7045_v59  ;;  %v7047_v31 = vpop.eup %7046 }
 0x965   :  { %v2313_v4 = vadd.f32 1.0, %v7047_v31 }
 0x966   :  { %7048 = vrcp.f32 %v2314_v57 }
 0x967   :  { %7050 = vrcp.f32 %v2313_v4  ;;  %v10531_v4 = vld [vmem:[#allocation29_spill] sm:$0xff] }
 0x973   :  { %v7049_v12 = vpop.eup %7048 }
 0x974   :  { %v2322_v63 = vmul.f32 %v7049_v12, %v2321_v3  ;;  %v7051_v62 = vpop.eup %7050  ;;  %v10533_v3 = vld [vmem:[#allocation38_spill] sm:$0xff] }
 0x975   :  { %v2319_v59 = vsub.f32 1.0, %v7051_v62  ;;  %v2320_v0 = vmul.f32 %v7051_v62, %v8616_v2  ;;  %v10528_v2 = vld [vmem:[#allocation20_spill] sm:$0xff]  ;;  %v10534_v12 = vld [vmem:[#allocation34_spill] sm:$0xff] }
 0x976   :  { %v2323_v38 = vadd.f32 %v2322_v63, %v8756_v15  ;;  %v10535_v63 = vld [vmem:[#allocation41_spill] sm:$0xff] }
 0x978   :  { %7052 = vtanh.f32 %v2323_v38 }
 0x985   :  { %v7053_v57 = vpop.eup %7052 }
 0x986   :  { %v2325_v10 = vmul.f32 %v7053_v57, %v2319_v59 }
 0x988   :  { %v8760_v31 = vadd.f32 %v2325_v10, %v2320_v0 }
 0x98a   :  { %2327 = vst.msk [vmem:[#allocation2] sm:$0x3] %vm594_vm4, %v8760_v31  ;;  %2403 = vmatmul.mubr.f32.vlgmr.msra.gmra.mxu0 %v8760_v31  ;;  %6422 = vmatmul.mubr.f32.vlgmr.msra.gmra.mxu1 %v8760_v31 }
 0x98b   :  { %2328 = vst.msk [vmem:[#allocation2 + $0xe] sm:$0x3] %vm596_vm5, %v8760_v31  ;;  %2519 = vmatpush1.msra.mxu0 %v8466_v9  ;;  %6425 = vmatpush3.msra.mxu1 %v8470_v22 }
 0x98c   :  { %2520 = vmatprep.subr.mxu0 %v8468_v24  ;;  %6426 = vmatprep.subr.mxu1 %v10449_v35 }
 0x98d   :  { %2521 = vmatpush1.msra.mxu0 %v8472_v16  ;;  %6427 = vmatpush3.msra.mxu1 %v8479_v8 }
 0x98e   :  { %2522 = vmatprep.subr.mxu0 %v8475_v60  ;;  %6428 = vmatprep.subr.mxu1 %v10449_v35 }
 0x98f   :  { %2523 = vmatpush1.msra.mxu0 %v8483_v17  ;;  %6429 = vmatpush3.msra.mxu1 %v8489_v14 }
 0x990   :  { %2524 = vmatprep.subr.mxu0 %v8487_v19  ;;  %6430 = vmatprep.subr.mxu1 %v10449_v35 }
 0x991   :  { %2525 = vmatpush1.msra.mxu0 %v8492_v20  ;;  %6431 = vmatpush3.msra.mxu1 %v8498_v26 }
 0x992   :  { %2526 = vmatprep.subr.mxu0 %v8496_v58  ;;  %6432 = vmatprep.subr.mxu1 %v10449_v35 }
 0x993   :  { %2527 = vmatpush1.msra.mxu0 %v8502_v27  ;;  %6433 = vmatpush3.msra.mxu1 %v8508_v30 }
 0x994   :  { %2528 = vmatprep.subr.mxu0 %v8506_v28  ;;  %6434 = vmatprep.subr.mxu1 %v10449_v35 }
 0x995   :  { %2529 = vmatpush1.msra.mxu0 %v8512_v37  ;;  %6435 = vmatpush3.msra.mxu1 %v8518_v33 }
 0x996   :  { %2530 = vmatprep.subr.mxu0 %v8516_v42  ;;  %6436 = vmatprep.subr.mxu1 %v10449_v35 }
 0x997   :  { %2531 = vmatpush1.msra.mxu0 %v8522_v1  ;;  %6437 = vmatpush3.msra.mxu1 %v8528_v46 }
 0x998   :  { %2532 = vmatprep.subr.mxu0 %v8526_v39  ;;  %6438 = vmatprep.subr.mxu1 %v10449_v35 }
 0x999   :  { %2533 = vmatpush1.msra.mxu0 %v8532_v41  ;;  %6439 = vmatpush3.msra.mxu1 %v8538_v50 }
 0x99a   :  { %2534 = vmatprep.subr.mxu0 %v8536_v48  ;;  %6440 = vmatprep.subr.mxu1 %v10449_v35 }
 0x99b   :  { %2535 = vmatpush1.msra.mxu0 %v8542_v29  ;;  %6441 = vmatpush3.msra.mxu1 %v8548_v43 }
 0x99c   :  { %2536 = vmatprep.subr.mxu0 %v8546_v44  ;;  %6442 = vmatprep.subr.mxu1 %v10449_v35 }
 0x99d   :  { %2537 = vmatpush1.msra.mxu0 %v8552_v40  ;;  %6443 = vmatpush3.msra.mxu1 %v8558_v36 }
 0x99e   :  { %2538 = vmatprep.subr.mxu0 %v8556_v32  ;;  %6444 = vmatprep.subr.mxu1 %v10449_v35 }
 0x99f   :  { %2539 = vmatpush1.msra.mxu0 %v8562_v34  ;;  %6445 = vmatpush3.msra.mxu1 %v8568_v51 }
 0x9a0   :  { %2540 = vmatprep.subr.mxu0 %v8566_v45  ;;  %6446 = vmatprep.subr.mxu1 %v10449_v35 }
 0x9a1   :  { %2541 = vmatpush1.msra.mxu0 %v8572_v49  ;;  %6447 = vmatpush3.msra.mxu1 %v8578_v52 }
 0x9a2   :  { %2542 = vmatprep.subr.mxu0 %v8576_v47  ;;  %6448 = vmatprep.subr.mxu1 %v10449_v35 }
 0x9a3   :  { %2543 = vmatpush1.msra.mxu0 %v8582_v53  ;;  %6449 = vmatpush3.msra.mxu1 %v8588_v55 }
 0x9a4   :  { %2544 = vmatprep.subr.mxu0 %v8586_v54  ;;  %6450 = vmatprep.subr.mxu1 %v10449_v35 }
 0x9a5   :  { %2545 = vmatpush1.msra.mxu0 %v10527_v61  ;;  %6451 = vmatpush3.msra.mxu1 %v10528_v2 }
 0x9a6   :  { %2546 = vmatprep.subr.mxu0 %v10529_v25  ;;  %6452 = vmatprep.subr.mxu1 %v10449_v35 }
 0x9a7   :  { %2547 = vmatpush1.msra.mxu0 %v10530_v18  ;;  %6453 = vmatpush3.msra.mxu1 %v10531_v4 }
 0x9a8   :  { %2548 = vmatprep.subr.mxu0 %v10532_v23  ;;  %6454 = vmatprep.subr.mxu1 %v10449_v35 }
 0x9a9   :  { %2549 = vmatpush1.msra.mxu0 %v10533_v3  ;;  %2582 = vmatprep.mubr.f32.mxu0 %v10449_v35 }
 0x9aa   :  { %6455 = vmatpush3.msra.mxu1 %v10534_v12  ;;  %6456 = vmatprep.mubr.msk.f32.mxu1 %vm7487_vm0, %v10449_v35 }
 0x9ab   :  { %2697 = vmatprep.subr.mxu0 %v10535_v63  ;;  %6459 = vmatprep.subr.mxu1 %v10449_v35 }
 0xa4a   :  { %v2404_v38 = vpop.f32.mrf.mxu0  ;;  %v2475_v62 = vpop.f32.mrf.mxu1 }
 0xa4b   :  { %v2482_v59 = vrot.slane %v2475_v62, 6  ;;  %v2504_v3 = vadd.f32 %v8751_v56, %v2404_v38 }
 0xa4c   :  { %v2406_v57 = vpop.f32.mrf.mxu0  ;;  %v6423_v0 = vpop.f32.mrf.mxu1 }
 0xa4d   :  { %v2486_v10 = vadd.f32 %v2482_v59, %v8707_v5  ;;  %v2481_v21 = vrot.slane %v2406_v57, 6  ;;  %v2506_v4 = vrot.slane %v2504_v3, 6  ;;  %v10536_v0 = vld [vmem:[#allocation15_spill] sm:$0xff]  ;;  %v10540_v3 = vld [vmem:[#allocation38_spill] sm:$0xff] }
 0xa4f   :  { %v5508_v11 = vmul.f32 -1.442695, %v2486_v10  ;;  %v2485_v15 = vadd.f32 %v2481_v21, %v8739_v7  ;;  %v2501_v21 = vrot.slane %v8760_v31, 6  ;;  %v10537_v31 = vld [vmem:[#allocation21_spill] sm:$0xff] }
 0xa51   :  { %7054 = vpow2.f32 %v5508_v11  ;;  %v5507_v6 = vmul.f32 -1.442695, %v2485_v15 }
 0xa53   :  { %7056 = vpow2.f32 %v5507_v6 }
 0xa5e   :  { %v7055_v13 = vpop.eup %7054 }
 0xa5f   :  { %v2494_v12 = vadd.f32 1.0, %v7055_v13 }
 0xa60   :  { %v7057_v63 = vpop.eup %7056 }
 0xa61   :  { %7058 = vrcp.f32 %v2494_v12  ;;  %v2493_v23 = vadd.f32 1.0, %v7057_v63  ;;  %v10541_v12 = vld [vmem:[#allocation34_spill] sm:$0xff]  ;;  %v10542_v63 = vld [vmem:[#allocation41_spill] sm:$0xff] }
 0xa63   :  { %7060 = vrcp.f32 %v2493_v23  ;;  %v10539_v23 = vld [vmem:[#allocation22_spill] sm:$0xff] }
 0xa6e   :  { %v7059_v62 = vpop.eup %7058 }
 0xa6f   :  { %v2508_v18 = vmul.f32 %v7059_v62, %v2506_v4 }
 0xa70   :  { %v7061_v57 = vpop.eup %7060 }
 0xa71   :  { %v2509_v59 = vadd.f32 %v2508_v18, %v10536_v0  ;;  %v2499_v11 = vsub.f32 1.0, %v7061_v57  ;;  %v2503_v6 = vmul.f32 %v7061_v57, %v2501_v21  ;;  %v10538_v18 = vld [vmem:[#allocation29_spill] sm:$0xff]  ;;  %v10543_v21 = vld [vmem:[#allocation36_spill] sm:$0xff] }
 0xa73   :  { %7062 = vtanh.f32 %v2509_v59 }
 0xa80   :  { %v7063_v15 = vpop.eup %7062 }
 0xa81   :  { %v2511_v10 = vmul.f32 %v7063_v15, %v2499_v11 }
 0xa83   :  { %v8840_v13 = vadd.f32 %v2511_v10, %v2503_v6 }
 0xa85   :  { %2513 = vst.msk [vmem:[#allocation2] sm:$0xc] %vm782_vm6, %v8840_v13  ;;  %v2516_v4 = vrot.slane %v8840_v13, 2 }
 0xa86   :  { %2514 = vst.msk [vmem:[#allocation2 + $0xa] sm:$0xc] %vm784_vm7, %v8840_v13 }
 0xa87   :  { %2583 = vmatmul.mubr.f32.vlgmr.msra.gmra.mxu0 %v2516_v4  ;;  %6457 = vmatmul.mubr.f32.vlgmr.msra.gmra.mxu1 %v2516_v4  ;;  %v10544_v4 = vld [vmem:[#allocation32_spill] sm:$0xff] }
 0xa88   :  { %2698 = vmatpush1.msra.mxu0 %v8466_v9  ;;  %6460 = vmatpush3.msra.mxu1 %v8470_v22 }
 0xa89   :  { %2699 = vmatprep.subr.mxu0 %v8468_v24  ;;  %6461 = vmatprep.subr.mxu1 %v10449_v35 }
 0xa8a   :  { %2700 = vmatpush1.msra.mxu0 %v8472_v16  ;;  %6462 = vmatpush3.msra.mxu1 %v8479_v8 }
 0xa8b   :  { %2701 = vmatprep.subr.mxu0 %v8475_v60  ;;  %6463 = vmatprep.subr.mxu1 %v10449_v35 }
 0xa8c   :  { %2702 = vmatpush1.msra.mxu0 %v8483_v17  ;;  %6464 = vmatpush3.msra.mxu1 %v8489_v14 }
 0xa8d   :  { %2703 = vmatprep.subr.mxu0 %v8487_v19  ;;  %6465 = vmatprep.subr.mxu1 %v10449_v35 }
 0xa8e   :  { %2704 = vmatpush1.msra.mxu0 %v8492_v20  ;;  %6466 = vmatpush3.msra.mxu1 %v8498_v26 }
 0xa8f   :  { %2705 = vmatprep.subr.mxu0 %v8496_v58  ;;  %6467 = vmatprep.subr.mxu1 %v10449_v35 }
 0xa90   :  { %2706 = vmatpush1.msra.mxu0 %v8502_v27  ;;  %6468 = vmatpush3.msra.mxu1 %v8508_v30 }
 0xa91   :  { %2707 = vmatprep.subr.mxu0 %v8506_v28  ;;  %6469 = vmatprep.subr.mxu1 %v10449_v35 }
 0xa92   :  { %2708 = vmatpush1.msra.mxu0 %v8512_v37  ;;  %6470 = vmatpush3.msra.mxu1 %v8518_v33 }
 0xa93   :  { %2709 = vmatprep.subr.mxu0 %v8516_v42  ;;  %6471 = vmatprep.subr.mxu1 %v10449_v35 }
 0xa94   :  { %2710 = vmatpush1.msra.mxu0 %v8522_v1  ;;  %6472 = vmatpush3.msra.mxu1 %v8528_v46 }
 0xa95   :  { %2711 = vmatprep.subr.mxu0 %v8526_v39  ;;  %6473 = vmatprep.subr.mxu1 %v10449_v35 }
 0xa96   :  { %2712 = vmatpush1.msra.mxu0 %v8532_v41  ;;  %6474 = vmatpush3.msra.mxu1 %v8538_v50 }
 0xa97   :  { %2713 = vmatprep.subr.mxu0 %v8536_v48  ;;  %6475 = vmatprep.subr.mxu1 %v10449_v35 }
 0xa98   :  { %2714 = vmatpush1.msra.mxu0 %v8542_v29  ;;  %6476 = vmatpush3.msra.mxu1 %v8548_v43 }
 0xa99   :  { %2715 = vmatprep.subr.mxu0 %v8546_v44  ;;  %6477 = vmatprep.subr.mxu1 %v10449_v35 }
 0xa9a   :  { %2716 = vmatpush1.msra.mxu0 %v8552_v40  ;;  %6478 = vmatpush3.msra.mxu1 %v8558_v36 }
 0xa9b   :  { %2717 = vmatprep.subr.mxu0 %v8556_v32  ;;  %6479 = vmatprep.subr.mxu1 %v10449_v35 }
 0xa9c   :  { %2718 = vmatpush1.msra.mxu0 %v8562_v34  ;;  %6480 = vmatpush3.msra.mxu1 %v8568_v51 }
 0xa9d   :  { %2719 = vmatprep.subr.mxu0 %v8566_v45  ;;  %6481 = vmatprep.subr.mxu1 %v10449_v35 }
 0xa9e   :  { %2720 = vmatpush1.msra.mxu0 %v8572_v49  ;;  %6482 = vmatpush3.msra.mxu1 %v8578_v52 }
 0xa9f   :  { %2721 = vmatprep.subr.mxu0 %v8576_v47  ;;  %6483 = vmatprep.subr.mxu1 %v10449_v35 }
 0xaa0   :  { %2722 = vmatpush1.msra.mxu0 %v8582_v53  ;;  %6484 = vmatpush3.msra.mxu1 %v8588_v55 }
 0xaa1   :  { %2723 = vmatprep.subr.mxu0 %v8586_v54  ;;  %6485 = vmatprep.subr.mxu1 %v10449_v35 }
 0xaa2   :  { %2724 = vmatpush1.msra.mxu0 %v10527_v61  ;;  %6486 = vmatpush3.msra.mxu1 %v10528_v2 }
 0xaa3   :  { %2725 = vmatprep.subr.mxu0 %v10529_v25  ;;  %6487 = vmatprep.subr.mxu1 %v10449_v35 }
 0xaa4   :  { %2726 = vmatpush1.msra.mxu0 %v10537_v31  ;;  %6488 = vmatpush3.msra.mxu1 %v10538_v18 }
 0xaa5   :  { %2727 = vmatprep.subr.mxu0 %v10539_v23  ;;  %6489 = vmatprep.subr.mxu1 %v10449_v35 }
 0xaa6   :  { %2728 = vmatpush1.msra.mxu0 %v10540_v3  ;;  %2761 = vmatprep.mubr.f32.mxu0 %v10449_v35 }
 0xaa7   :  { %6490 = vmatpush3.msra.mxu1 %v10541_v12  ;;  %6491 = vmatprep.mubr.msk.f32.mxu1 %vm7487_vm0, %v10449_v35 }
 0xaa8   :  { %2888 = vmatprep.subr.mxu0 %v10542_v63  ;;  %6494 = vmatprep.subr.mxu1 %v10449_v35 }
 0xb47   :  { %v2584_v38 = vpop.f32.mrf.mxu0  ;;  %v2655_v62 = vpop.f32.mrf.mxu1 }
 0xb48   :  { %v2662_v59 = vrot.slane %v2655_v62, 4  ;;  %v2683_v3 = vadd.f32 %v8751_v56, %v2584_v38  ;;  %v9042_v38 = vld [vmem:[#allocation9 + $0x290] sm:$0xff] }
 0xb49   :  { %v2586_v57 = vpop.f32.mrf.mxu0  ;;  %v6458_v11 = vpop.f32.mrf.mxu1 }
 0xb4a   :  { %v2666_v15 = vadd.f32 %v2662_v59, %v10543_v21  ;;  %v2661_v10 = vrot.slane %v2586_v57, 4  ;;  %v2685_v18 = vrot.slane %v2683_v3, 4  ;;  %v10545_v11 = vld [vmem:[#allocation42_spill] sm:$0xff] }
 0xb4b   :  { %v9036_v3 = vld [vmem:[#allocation9 + $0x2a0] sm:$0xff] }
 0xb4c   :  { %v5510_v6 = vmul.f32 -1.442695, %v2666_v15  ;;  %v2665_v0 = vadd.f32 %v2661_v10, %v10544_v4  ;;  %v2680_v15 = vrot.slane %v8840_v13, 6  ;;  %v9026_v13 = vld [vmem:[#allocation9 + $0x2b8] sm:$0xff]  ;;  %v9046_v10 = vld [vmem:[#allocation9 + $0x288] sm:$0xff] }
 0xb4d   :  { %v9049_v4 = vld [vmem:[#allocation9 + $0x298] sm:$0xff] }
 0xb4e   :  { %7064 = vpow2.f32 %v5510_v6  ;;  %v5509_v7 = vmul.f32 -1.442695, %v2665_v0 }
 0xb50   :  { %7066 = vpow2.f32 %v5509_v7 }
 0xb5b   :  { %v7065_v5 = vpop.eup %7064 }
 0xb5c   :  { %v2674_v12 = vadd.f32 1.0, %v7065_v5 }
 0xb5d   :  { %v7067_v63 = vpop.eup %7066 }
 0xb5e   :  { %7068 = vrcp.f32 %v2674_v12  ;;  %v2673_v23 = vadd.f32 1.0, %v7067_v63  ;;  %v9039_v12 = vld [vmem:[#allocation9 + $0x2b0] sm:$0xff]  ;;  %v9052_v63 = vld [vmem:[#allocation9 + $0x278] sm:$0xff] }
 0xb60   :  { %7070 = vrcp.f32 %v2673_v23  ;;  %v9032_v23 = vld [vmem:[#allocation9 + $0x2a8] sm:$0xff] }
 0xb6b   :  { %v7069_v62 = vpop.eup %7068 }
 0xb6c   :  { %v2687_v31 = vmul.f32 %v7069_v62, %v2685_v18  ;;  %v9056_v62 = vld [vmem:[#allocation9 + $0x270] sm:$0xff] }
 0xb6d   :  { %v7071_v57 = vpop.eup %7070 }
 0xb6e   :  { %v2688_v59 = vadd.f32 %v2687_v31, %v10545_v11  ;;  %v2679_v21 = vsub.f32 1.0, %v7071_v57  ;;  %v2682_v7 = vmul.f32 %v7071_v57, %v2680_v15  ;;  %v9029_v31 = vld [vmem:[#allocation9 + $0x2c8] sm:$0xff]  ;;  %v9059_v11 = vld [vmem:[#allocation9 + $0x280] sm:$0xff]  ;;  %v9066_v57 = vld [vmem:[#allocation9 + $0x258] sm:$0xff] }
 0xb6f   :  { %v9072_v15 = vld [vmem:[#allocation9 + $0x248] sm:$0xff] }
 0xb70   :  { %7072 = vtanh.f32 %v2688_v59  ;;  %v9062_v59 = vld [vmem:[#allocation9 + $0x260] sm:$0xff] }
 0xb7d   :  { %v7073_v0 = vpop.eup %7072 }
 0xb7e   :  { %v2690_v6 = vmul.f32 %v7073_v0, %v2679_v21  ;;  %v9069_v21 = vld [vmem:[#allocation9 + $0x268] sm:$0xff]  ;;  %v9076_v0 = vld [vmem:[#allocation9 + $0x240] sm:$0xff] }
 0xb80   :  { %v8919_v5 = vadd.f32 %v2690_v6, %v2682_v7  ;;  %v9079_v7 = vld [vmem:[#allocation9 + $0x250] sm:$0xff] }
 0xb81   :  { %v9082_v6 = vld [vmem:[#allocation9 + $0x230] sm:$0xff] }
 0xb82   :  { %2692 = vst.msk [vmem:[#allocation2] sm:$0x30] %vm963_vm8, %v8919_v5  ;;  %v2695_v18 = vrot.slane %v8919_v5, 4 }
 0xb83   :  { %2693 = vst.msk [vmem:[#allocation2 + $0x6] sm:$0x30] %vm965_vm9, %v8919_v5 }
 0xb84   :  { %2762 = vmatmul.mubr.f32.vlgmr.msra.gmra.mxu0 %v2695_v18  ;;  %6492 = vmatmul.mubr.f32.vlgmr.msra.gmra.mxu1 %v2695_v18  ;;  %v9089_v18 = vld [vmem:[#allocation9 + $0x238] sm:$0xff] }
 0xb85   :  { %2889 = vmatpush1.msra.mxu0 %v8466_v9  ;;  %6495 = vmatpush3.msra.mxu1 %v8470_v22  ;;  %v10546_v9 = vld [vmem:[#allocation21_spill] sm:$0xff]  ;;  %v10548_v22 = vld [vmem:[#allocation22_spill] sm:$0xff] }
 0xb86   :  { %2890 = vmatprep.subr.mxu0 %v8468_v24  ;;  %6496 = vmatprep.subr.mxu1 %v10449_v35  ;;  %v10547_v24 = vld [vmem:[#allocation29_spill] sm:$0xff] }
 0xb87   :  { %2891 = vmatpush1.msra.mxu0 %v8472_v16  ;;  %6497 = vmatpush3.msra.mxu1 %v8479_v8  ;;  %v10549_v16 = vld [vmem:[#allocation38_spill] sm:$0xff]  ;;  %v8991_v8 = vld [vmem:[#allocation9 + $0x2f0] sm:$0xff] }
 0xb88   :  { %2892 = vmatprep.subr.mxu0 %v8475_v60  ;;  %6498 = vmatprep.subr.mxu1 %v10449_v35  ;;  %v10550_v60 = vld [vmem:[#allocation34_spill] sm:$0xff]  ;;  %10551 = vst [vmem:[#allocation19_spill] sm:$0xff] %v8991_v8 }
 0xb89   :  { %2893 = vmatpush1.msra.mxu0 %v8483_v17  ;;  %6499 = vmatpush3.msra.mxu1 %v8489_v14 }
 0xb8a   :  { %2894 = vmatprep.subr.mxu0 %v8487_v19  ;;  %6500 = vmatprep.subr.mxu1 %v10449_v35 }
 0xb8b   :  { %2895 = vmatpush1.msra.mxu0 %v8492_v20  ;;  %6501 = vmatpush3.msra.mxu1 %v8498_v26  ;;  %v10552_v26 = vld [vmem:[#allocation16_spill] sm:$0xff] }
 0xb8c   :  { %2896 = vmatprep.subr.mxu0 %v8496_v58  ;;  %6502 = vmatprep.subr.mxu1 %v10449_v35 }
 0xb8d   :  { %2897 = vmatpush1.msra.mxu0 %v8502_v27  ;;  %6503 = vmatpush3.msra.mxu1 %v8508_v30 }
 0xb8e   :  { %2898 = vmatprep.subr.mxu0 %v8506_v28  ;;  %6504 = vmatprep.subr.mxu1 %v10449_v35 }
 0xb8f   :  { %2899 = vmatpush1.msra.mxu0 %v8512_v37  ;;  %6505 = vmatpush3.msra.mxu1 %v8518_v33  ;;  %v10553_v37 = vld [vmem:[#allocation30_spill] sm:$0xff] }
 0xb90   :  { %2900 = vmatprep.subr.mxu0 %v8516_v42  ;;  %6506 = vmatprep.subr.mxu1 %v10449_v35 }
 0xb91   :  { %2901 = vmatpush1.msra.mxu0 %v8522_v1  ;;  %6507 = vmatpush3.msra.mxu1 %v8528_v46 }
 0xb92   :  { %2902 = vmatprep.subr.mxu0 %v8526_v39  ;;  %6508 = vmatprep.subr.mxu1 %v10449_v35 }
 0xb93   :  { %2903 = vmatpush1.msra.mxu0 %v8532_v41  ;;  %6509 = vmatpush3.msra.mxu1 %v8538_v50 }
 0xb94   :  { %2904 = vmatprep.subr.mxu0 %v8536_v48  ;;  %6510 = vmatprep.subr.mxu1 %v10449_v35 }
 0xb95   :  { %2905 = vmatpush1.msra.mxu0 %v8542_v29  ;;  %6511 = vmatpush3.msra.mxu1 %v8548_v43  ;;  %v10554_v43 = vld [vmem:[#allocation15_spill] sm:$0xff] }
 0xb96   :  { %2906 = vmatprep.subr.mxu0 %v8546_v44  ;;  %6512 = vmatprep.subr.mxu1 %v10449_v35 }
 0xb97   :  { %2907 = vmatpush1.msra.mxu0 %v8552_v40  ;;  %6513 = vmatpush3.msra.mxu1 %v8558_v36 }
 0xb98   :  { %2908 = vmatprep.subr.mxu0 %v8556_v32  ;;  %6514 = vmatprep.subr.mxu1 %v10449_v35 }
 0xb99   :  { %2909 = vmatpush1.msra.mxu0 %v8562_v34  ;;  %6515 = vmatpush3.msra.mxu1 %v8568_v51  ;;  %v2859_v34 = vrot.slane %v8919_v5, 6  ;;  %v9086_v5 = vld [vmem:[#allocation9 + $0x228] sm:$0xff] }
 0xb9a   :  { %2910 = vmatprep.subr.mxu0 %v8566_v45  ;;  %6516 = vmatprep.subr.mxu1 %v10449_v35 }
 0xb9b   :  { %2911 = vmatpush1.msra.mxu0 %v8572_v49  ;;  %6517 = vmatpush3.msra.mxu1 %v8578_v52 }
 0xb9c   :  { %2912 = vmatprep.subr.mxu0 %v8576_v47  ;;  %6518 = vmatprep.subr.mxu1 %v10449_v35 }
 0xb9d   :  { %2913 = vmatpush1.msra.mxu0 %v8582_v53  ;;  %6519 = vmatpush3.msra.mxu1 %v8588_v55  ;;  %v9006_v53 = vld [vmem:[#allocation9 + $0x2e8] sm:$0xff]  ;;  %v9012_v55 = vld [vmem:[#allocation9 + $0x2d8] sm:$0xff] }
 0xb9e   :  { %2914 = vmatprep.subr.mxu0 %v8586_v54  ;;  %6520 = vmatprep.subr.mxu1 %v10449_v35  ;;  %v9009_v54 = vld [vmem:[#allocation9 + $0x2f8] sm:$0xff] }
 0xb9f   :  { %2915 = vmatpush1.msra.mxu0 %v10527_v61  ;;  %6521 = vmatpush3.msra.mxu1 %v10528_v2  ;;  %v9016_v61 = vld [vmem:[#allocation9 + $0x2d0] sm:$0xff]  ;;  %v9019_v2 = vld [vmem:[#allocation9 + $0x2e0] sm:$0xff] }
 0xba0   :  { %2916 = vmatprep.subr.mxu0 %v10529_v25  ;;  %6522 = vmatprep.subr.mxu1 %v10449_v35  ;;  %v9022_v25 = vld [vmem:[#allocation9 + $0x2c0] sm:$0xff] }
 0xba1   :  { %2917 = vmatpush1.msra.mxu0 %v10546_v9  ;;  %6523 = vmatpush3.msra.mxu1 %v10547_v24  ;;  %v9092_v9 = vld [vmem:[#allocation9 + $0x218] sm:$0xff]  ;;  %v9096_v24 = vld [vmem:[#allocation9 + $0x210] sm:$0xff] }
 0xba2   :  { %2918 = vmatprep.subr.mxu0 %v10548_v22  ;;  %6524 = vmatprep.subr.mxu1 %v10449_v35  ;;  %v9099_v22 = vld [vmem:[#allocation9 + $0x220] sm:$0xff] }
 0xba3   :  { %2919 = vmatpush1.msra.mxu0 %v10549_v16  ;;  %2952 = vmatprep.mubr.f32.mxu0 %v10449_v35  ;;  %v9102_v16 = vld [vmem:[#allocation9 + $0x200] sm:$0xff] }
 0xba4   :  { %6525 = vmatpush3.msra.mxu1 %v10550_v60  ;;  %6526 = vmatprep.mubr.msk.f32.mxu1 %vm7487_vm0, %v10449_v35  ;;  %v9106_v60 = vld [vmem:[#allocation9 + $0x1f8] sm:$0xff] }
 0xba5   :  { %3062 = vmatprep.subr.mxu0 %v8991_v8  ;;  %6529 = vmatprep.subr.mxu1 %v10449_v35 }
 0xc44   :  { %v2763_v17 = vpop.f32.mrf.mxu0  ;;  %v2834_v19 = vpop.f32.mrf.mxu1 }
 0xc45   :  { %v2841_v14 = vrot.slane %v2834_v19, 2  ;;  %v2862_v41 = vadd.f32 %v8751_v56, %v2763_v17  ;;  %v9109_v17 = vld [vmem:[#allocation9 + $0x208] sm:$0xff] }
 0xc46   :  { %v2765_v20 = vpop.f32.mrf.mxu0  ;;  %v6493_v58 = vpop.f32.mrf.mxu1  ;;  %v9112_v19 = vld [vmem:[#allocation9 + $0x1e8] sm:$0xff] }
 0xc47   :  { %v2845_v27 = vadd.f32 %v2841_v14, %v10552_v26  ;;  %v2840_v30 = vrot.slane %v2765_v20, 2  ;;  %v2864_v50 = vrot.slane %v2862_v41, 2  ;;  %v9116_v14 = vld [vmem:[#allocation9 + $0x1e0] sm:$0xff]  ;;  %v9119_v20 = vld [vmem:[#allocation9 + $0x1f0] sm:$0xff]  ;;  %v9126_v26 = vld [vmem:[#allocation9 + $0x1c8] sm:$0xff] }
 0xc48   :  { %v9122_v58 = vld [vmem:[#allocation9 + $0x1d0] sm:$0xff] }
 0xc49   :  { %v5512_v28 = vmul.f32 -1.442695, %v2845_v27  ;;  %v2844_v42 = vadd.f32 %v2840_v30, %v10553_v37  ;;  %v9129_v27 = vld [vmem:[#allocation9 + $0x1d8] sm:$0xff]  ;;  %v9136_v30 = vld [vmem:[#allocation9 + $0x1b0] sm:$0xff]  ;;  %v9139_v37 = vld [vmem:[#allocation9 + $0x1c0] sm:$0xff] }
 0xc4a   :  { %v9160_v41 = vld [vmem:[#allocation9 + $0x190] sm:$0xff] }
 0xc4b   :  { %7074 = vpow2.f32 %v5512_v28  ;;  %v5511_v33 = vmul.f32 -1.442695, %v2844_v42  ;;  %v9132_v28 = vld [vmem:[#allocation9 + $0x1b8] sm:$0xff]  ;;  %v9142_v42 = vld [vmem:[#allocation9 + $0x1a0] sm:$0xff]  ;;  %10559 = vst [vmem:[#allocation32_spill] sm:$0xff] %v9160_v41 }
 0xc4d   :  { %7076 = vpow2.f32 %v5511_v33  ;;  %v9146_v33 = vld [vmem:[#allocation9 + $0x198] sm:$0xff] }
 0xc4e   :  { %10555 = vst [vmem:[#allocation20_spill] sm:$0xff] %v9146_v33 }
 0xc58   :  { %v7075_v1 = vpop.eup %7074 }
 0xc59   :  { %v2853_v39 = vadd.f32 1.0, %v7075_v1  ;;  %v9149_v1 = vld [vmem:[#allocation9 + $0x1a8] sm:$0xff] }
 0xc5a   :  { %v7077_v46 = vpop.eup %7076  ;;  %10556 = vst [vmem:[#allocation18_spill] sm:$0xff] %v9149_v1 }
 0xc5b   :  { %7078 = vrcp.f32 %v2853_v39  ;;  %v2852_v48 = vadd.f32 1.0, %v7077_v46  ;;  %v9152_v39 = vld [vmem:[#allocation9 + $0x188] sm:$0xff]  ;;  %v9156_v46 = vld [vmem:[#allocation9 + $0x180] sm:$0xff] }
 0xc5c   :  { %10557 = vst [vmem:[#allocation41_spill] sm:$0xff] %v9152_v39  ;;  %10558 = vst [vmem:[#allocation36_spill] sm:$0xff] %v9156_v46 }
 0xc5d   :  { %7080 = vrcp.f32 %v2852_v48 }
 0xc68   :  { %v7079_v29 = vpop.eup %7078 }
 0xc69   :  { %v2866_v44 = vmul.f32 %v7079_v29, %v2864_v50  ;;  %v10560_v29 = vld [vmem:[#allocation33_spill] sm:$0xff] }
 0xc6a   :  { %v7081_v32 = vpop.eup %7080 }
 0xc6b   :  { %v2867_v40 = vadd.f32 %v2866_v44, %v10554_v43  ;;  %v2858_v36 = vsub.f32 1.0, %v7081_v32  ;;  %v2861_v51 = vmul.f32 %v7081_v32, %v2859_v34 }
 0xc6d   :  { %7082 = vtanh.f32 %v2867_v40 }
 0xc7a   :  { %v7083_v45 = vpop.eup %7082 }
 0xc7b   :  { %v2869_v49 = vmul.f32 %v7083_v45, %v2858_v36  ;;  %v10561_v36 = vld [vmem:[#allocation39_spill] sm:$0xff] }
 0xc7d   :  { %v2870_v47 = vadd.f32 %v2869_v49, %v2861_v51 }
 0xc7f   :  { %2871 = vst.msk [vmem:[#allocation2] sm:$0xc0] %vm1144_vm10, %v2870_v47  ;;  %v9002_v52 = vrot.slane %v2870_v47, 6 }
 0xc80   :  { %2872 = vst.msk [vmem:[#allocation2 + $0x2] sm:$0xc0] %vm1146_vm11, %v2870_v47 }
 0xc81   :  { %2953 = vmatmul.mubr.f32.vlgmr.msra.gmra.mxu0 %v9002_v52  ;;  %6527 = vmatmul.mubr.f32.vlgmr.msra.gmra.mxu1 %v9002_v52 }
 0xc82   :  { %3063 = vmatpush1.msra.mxu0 %v9006_v53  ;;  %6530 = vmatpush3.msra.mxu1 %v9009_v54 }
 0xc83   :  { %3064 = vmatprep.subr.mxu0 %v9012_v55  ;;  %6531 = vmatprep.subr.mxu1 %v10449_v35 }
 0xc84   :  { %3065 = vmatpush1.msra.mxu0 %v9016_v61  ;;  %6532 = vmatpush3.msra.mxu1 %v9019_v2 }
 0xc85   :  { %3066 = vmatprep.subr.mxu0 %v9022_v25  ;;  %6533 = vmatprep.subr.mxu1 %v10449_v35 }
 0xc86   :  { %3067 = vmatpush1.msra.mxu0 %v9026_v13  ;;  %6534 = vmatpush3.msra.mxu1 %v9029_v31 }
 0xc87   :  { %3068 = vmatprep.subr.mxu0 %v9032_v23  ;;  %6535 = vmatprep.subr.mxu1 %v10449_v35 }
 0xc88   :  { %3069 = vmatpush1.msra.mxu0 %v9036_v3  ;;  %6536 = vmatpush3.msra.mxu1 %v9039_v12 }
 0xc89   :  { %3070 = vmatprep.subr.mxu0 %v9042_v38  ;;  %6537 = vmatprep.subr.mxu1 %v10449_v35 }
 0xc8a   :  { %3071 = vmatpush1.msra.mxu0 %v9046_v10  ;;  %6538 = vmatpush3.msra.mxu1 %v9049_v4 }
 0xc8b   :  { %3072 = vmatprep.subr.mxu0 %v9052_v63  ;;  %6539 = vmatprep.subr.mxu1 %v10449_v35 }
 0xc8c   :  { %3073 = vmatpush1.msra.mxu0 %v9056_v62  ;;  %6540 = vmatpush3.msra.mxu1 %v9059_v11 }
 0xc8d   :  { %3074 = vmatprep.subr.mxu0 %v9062_v59  ;;  %6541 = vmatprep.subr.mxu1 %v10449_v35 }
 0xc8e   :  { %3075 = vmatpush1.msra.mxu0 %v9066_v57  ;;  %6542 = vmatpush3.msra.mxu1 %v9069_v21 }
 0xc8f   :  { %3076 = vmatprep.subr.mxu0 %v9072_v15  ;;  %6543 = vmatprep.subr.mxu1 %v10449_v35 }
 0xc90   :  { %3077 = vmatpush1.msra.mxu0 %v9076_v0  ;;  %6544 = vmatpush3.msra.mxu1 %v9079_v7 }
 0xc91   :  { %3078 = vmatprep.subr.mxu0 %v9082_v6  ;;  %6545 = vmatprep.subr.mxu1 %v10449_v35 }
 0xc92   :  { %3079 = vmatpush1.msra.mxu0 %v9086_v5  ;;  %6546 = vmatpush3.msra.mxu1 %v9089_v18 }
 0xc93   :  { %3080 = vmatprep.subr.mxu0 %v9092_v9  ;;  %6547 = vmatprep.subr.mxu1 %v10449_v35 }
 0xc94   :  { %3081 = vmatpush1.msra.mxu0 %v9096_v24  ;;  %6548 = vmatpush3.msra.mxu1 %v9099_v22 }
 0xc95   :  { %3082 = vmatprep.subr.mxu0 %v9102_v16  ;;  %6549 = vmatprep.subr.mxu1 %v10449_v35 }
 0xc96   :  { %3083 = vmatpush1.msra.mxu0 %v9106_v60  ;;  %6550 = vmatpush3.msra.mxu1 %v9109_v17 }
 0xc97   :  { %3084 = vmatprep.subr.mxu0 %v9112_v19  ;;  %6551 = vmatprep.subr.mxu1 %v10449_v35 }
 0xc98   :  { %3085 = vmatpush1.msra.mxu0 %v9116_v14  ;;  %6552 = vmatpush3.msra.mxu1 %v9119_v20 }
 0xc99   :  { %3086 = vmatprep.subr.mxu0 %v9122_v58  ;;  %6553 = vmatprep.subr.mxu1 %v10449_v35 }
 0xc9a   :  { %3087 = vmatpush1.msra.mxu0 %v9126_v26  ;;  %6554 = vmatpush3.msra.mxu1 %v9129_v27 }
 0xc9b   :  { %3088 = vmatprep.subr.mxu0 %v9132_v28  ;;  %6555 = vmatprep.subr.mxu1 %v10449_v35 }
 0xc9c   :  { %3089 = vmatpush1.msra.mxu0 %v9136_v30  ;;  %6556 = vmatpush3.msra.mxu1 %v9139_v37 }
 0xc9d   :  { %3090 = vmatprep.subr.mxu0 %v9142_v42  ;;  %6557 = vmatprep.subr.mxu1 %v10449_v35 }
 0xc9e   :  { %3091 = vmatpush1.msra.mxu0 %v9146_v33  ;;  %6558 = vmatpush3.msra.mxu1 %v9149_v1  ;;  %v10562_v1 = vld [vmem:[#allocation31_spill] sm:$0xff] }
 0xc9f   :  { %3092 = vmatprep.subr.mxu0 %v9152_v39  ;;  %6559 = vmatprep.subr.mxu1 %v10449_v35 }
 0xca0   :  { %3093 = vmatpush1.msra.mxu0 %v9156_v46  ;;  %3126 = vmatprep.mubr.f32.mxu0 %v10449_v35 }
 0xca1   :  { %6560 = vmatpush3.msra.mxu1 %v9160_v41  ;;  %6561 = vmatprep.mubr.msk.f32.mxu1 %vm7487_vm0, %v10449_v35 }
 0xca2   :  { %3242 = vmatprep.subr.mxu0 %v8991_v8  ;;  %6564 = vmatprep.subr.mxu1 %v10449_v35 }
 0xd41   :  { %v2954_v48 = vpop.f32.mrf.mxu0  ;;  %v3025_v50 = vpop.f32.mrf.mxu1 }
 0xd42   :  { %v3030_v44 = vadd.f32 %v3025_v50, %v10560_v29  ;;  %v3045_v8 = vadd.f32 %v8751_v56, %v2954_v48 }
 0xd43   :  { %v6528_v43 = vpop.f32.mrf.mxu1  ;;  %v2956_v32 = vpop.f32.mrf.mxu0 }
 0xd44   :  { %v5514_v40 = vmul.f32 -1.442695, %v3030_v44  ;;  %v3029_v34 = vadd.f32 %v2956_v32, %v10561_v36 }
 0xd46   :  { %7084 = vpow2.f32 %v5514_v40  ;;  %v5513_v45 = vmul.f32 -1.442695, %v3029_v34 }
 0xd48   :  { %7086 = vpow2.f32 %v5513_v45 }
 0xd53   :  { %v7085_v51 = vpop.eup %7084 }
 0xd54   :  { %v3038_v49 = vadd.f32 1.0, %v7085_v51 }
 0xd55   :  { %v7087_v47 = vpop.eup %7086 }
 0xd56   :  { %7088 = vrcp.f32 %v3038_v49  ;;  %v3037_v41 = vadd.f32 1.0, %v7087_v47 }
 0xd58   :  { %7090 = vrcp.f32 %v3037_v41  ;;  %v10567_v41 = vld [vmem:[#allocation19_spill] sm:$0xff] }
 0xd63   :  { %v7089_v46 = vpop.eup %7088 }
 0xd64   :  { %v3046_v39 = vmul.f32 %v7089_v46, %v3045_v8  ;;  %v10563_v8 = vld [vmem:[#allocation18_spill] sm:$0xff]  ;;  %v10566_v46 = vld [vmem:[#allocation32_spill] sm:$0xff] }
 0xd65   :  { %v7091_v44 = vpop.eup %7090 }
 0xd66   :  { %v3047_v50 = vadd.f32 %v3046_v39, %v10562_v1  ;;  %v3043_v43 = vsub.f32 1.0, %v7091_v44  ;;  %v3044_v32 = vmul.f32 %v7091_v44, %v9002_v52  ;;  %v10564_v52 = vld [vmem:[#allocation41_spill] sm:$0xff]  ;;  %v10565_v39 = vld [vmem:[#allocation36_spill] sm:$0xff] }
 0xd67   :  { %v10568_v44 = vld [vmem:[#allocation17_spill] sm:$0xff] }
 0xd68   :  { %7092 = vtanh.f32 %v3047_v50 }
 0xd75   :  { %v7093_v40 = vpop.eup %7092 }
 0xd76   :  { %v3049_v34 = vmul.f32 %v7093_v40, %v3043_v43 }
 0xd78   :  { %v9172_v45 = vadd.f32 %v3049_v34, %v3044_v32  ;;  %v10569_v34 = vld [vmem:[#allocation40_spill] sm:$0xff] }
 0xd7a   :  { %3051 = vst.msk [vmem:[#allocation2 + $0x8] sm:$0x3] %vm594_vm4, %v9172_v45  ;;  %3127 = vmatmul.mubr.f32.vlgmr.msra.gmra.mxu0 %v9172_v45  ;;  %6562 = vmatmul.mubr.f32.vlgmr.msra.gmra.mxu1 %v9172_v45 }
 0xd7b   :  { %3052 = vst.msk [vmem:[#allocation2 + $0x6] sm:$0x3] %vm596_vm5, %v9172_v45  ;;  %3243 = vmatpush1.msra.mxu0 %v9006_v53  ;;  %6565 = vmatpush3.msra.mxu1 %v9009_v54 }
 0xd7c   :  { %3244 = vmatprep.subr.mxu0 %v9012_v55  ;;  %6566 = vmatprep.subr.mxu1 %v10449_v35 }
 0xd7d   :  { %3245 = vmatpush1.msra.mxu0 %v9016_v61  ;;  %6567 = vmatpush3.msra.mxu1 %v9019_v2 }
 0xd7e   :  { %3246 = vmatprep.subr.mxu0 %v9022_v25  ;;  %6568 = vmatprep.subr.mxu1 %v10449_v35 }
 0xd7f   :  { %3247 = vmatpush1.msra.mxu0 %v9026_v13  ;;  %6569 = vmatpush3.msra.mxu1 %v9029_v31 }
 0xd80   :  { %3248 = vmatprep.subr.mxu0 %v9032_v23  ;;  %6570 = vmatprep.subr.mxu1 %v10449_v35 }
 0xd81   :  { %3249 = vmatpush1.msra.mxu0 %v9036_v3  ;;  %6571 = vmatpush3.msra.mxu1 %v9039_v12 }
 0xd82   :  { %3250 = vmatprep.subr.mxu0 %v9042_v38  ;;  %6572 = vmatprep.subr.mxu1 %v10449_v35 }
 0xd83   :  { %3251 = vmatpush1.msra.mxu0 %v9046_v10  ;;  %6573 = vmatpush3.msra.mxu1 %v9049_v4 }
 0xd84   :  { %3252 = vmatprep.subr.mxu0 %v9052_v63  ;;  %6574 = vmatprep.subr.mxu1 %v10449_v35 }
 0xd85   :  { %3253 = vmatpush1.msra.mxu0 %v9056_v62  ;;  %6575 = vmatpush3.msra.mxu1 %v9059_v11 }
 0xd86   :  { %3254 = vmatprep.subr.mxu0 %v9062_v59  ;;  %6576 = vmatprep.subr.mxu1 %v10449_v35 }
 0xd87   :  { %3255 = vmatpush1.msra.mxu0 %v9066_v57  ;;  %6577 = vmatpush3.msra.mxu1 %v9069_v21 }
 0xd88   :  { %3256 = vmatprep.subr.mxu0 %v9072_v15  ;;  %6578 = vmatprep.subr.mxu1 %v10449_v35 }
 0xd89   :  { %3257 = vmatpush1.msra.mxu0 %v9076_v0  ;;  %6579 = vmatpush3.msra.mxu1 %v9079_v7 }
 0xd8a   :  { %3258 = vmatprep.subr.mxu0 %v9082_v6  ;;  %6580 = vmatprep.subr.mxu1 %v10449_v35 }
 0xd8b   :  { %3259 = vmatpush1.msra.mxu0 %v9086_v5  ;;  %6581 = vmatpush3.msra.mxu1 %v9089_v18 }
 0xd8c   :  { %3260 = vmatprep.subr.mxu0 %v9092_v9  ;;  %6582 = vmatprep.subr.mxu1 %v10449_v35 }
 0xd8d   :  { %3261 = vmatpush1.msra.mxu0 %v9096_v24  ;;  %6583 = vmatpush3.msra.mxu1 %v9099_v22 }
 0xd8e   :  { %3262 = vmatprep.subr.mxu0 %v9102_v16  ;;  %6584 = vmatprep.subr.mxu1 %v10449_v35 }
 0xd8f   :  { %3263 = vmatpush1.msra.mxu0 %v9106_v60  ;;  %6585 = vmatpush3.msra.mxu1 %v9109_v17 }
 0xd90   :  { %3264 = vmatprep.subr.mxu0 %v9112_v19  ;;  %6586 = vmatprep.subr.mxu1 %v10449_v35 }
 0xd91   :  { %3265 = vmatpush1.msra.mxu0 %v9116_v14  ;;  %6587 = vmatpush3.msra.mxu1 %v9119_v20 }
 0xd92   :  { %3266 = vmatprep.subr.mxu0 %v9122_v58  ;;  %6588 = vmatprep.subr.mxu1 %v10449_v35 }
 0xd93   :  { %3267 = vmatpush1.msra.mxu0 %v9126_v26  ;;  %6589 = vmatpush3.msra.mxu1 %v9129_v27 }
 0xd94   :  { %3268 = vmatprep.subr.mxu0 %v9132_v28  ;;  %6590 = vmatprep.subr.mxu1 %v10449_v35 }
 0xd95   :  { %3269 = vmatpush1.msra.mxu0 %v9136_v30  ;;  %6591 = vmatpush3.msra.mxu1 %v9139_v37 }
 0xd96   :  { %3270 = vmatprep.subr.mxu0 %v9142_v42  ;;  %6592 = vmatprep.subr.mxu1 %v10449_v35 }
 0xd97   :  { %3271 = vmatpush1.msra.mxu0 %v9146_v33  ;;  %6593 = vmatpush3.msra.mxu1 %v10563_v8 }
 0xd98   :  { %3272 = vmatprep.subr.mxu0 %v10564_v52  ;;  %6594 = vmatprep.subr.mxu1 %v10449_v35 }
 0xd99   :  { %3273 = vmatpush1.msra.mxu0 %v10565_v39  ;;  %3306 = vmatprep.mubr.f32.mxu0 %v10449_v35 }
 0xd9a   :  { %6595 = vmatpush3.msra.mxu1 %v10566_v46  ;;  %6596 = vmatprep.mubr.msk.f32.mxu1 %vm7487_vm0, %v10449_v35 }
 0xd9b   :  { %3421 = vmatprep.subr.mxu0 %v10567_v41  ;;  %6599 = vmatprep.subr.mxu1 %v10449_v35 }
 0xe3a   :  { %v3128_v48 = vpop.f32.mrf.mxu0  ;;  %v3199_v51 = vpop.f32.mrf.mxu1 }
 0xe3b   :  { %v3206_v49 = vrot.slane %v3199_v51, 6  ;;  %v3228_v39 = vadd.f32 %v8751_v56, %v3128_v48  ;;  %v3691_v48 = vld [vmem:[#allocation8 + $0x410] sm:$0xff] }
 0xe3c   :  { %v3130_v47 = vpop.f32.mrf.mxu0  ;;  %v6563_v50 = vpop.f32.mrf.mxu1 }
 0xe3d   :  { %v3210_v43 = vadd.f32 %v3206_v49, %v10568_v44  ;;  %v3205_v32 = vrot.slane %v3130_v47, 6  ;;  %v3230_v8 = vrot.slane %v3228_v39, 6  ;;  %v10570_v50 = vld [vmem:[#allocation37_spill] sm:$0xff]  ;;  %v3693_v39 = vld [vmem:[#allocation8 + $0x420] sm:$0xff] }
 0xe3f   :  { %v5516_v40 = vmul.f32 -1.442695, %v3210_v43  ;;  %v3209_v1 = vadd.f32 %v3205_v32, %v10569_v34 }
 0xe41   :  { %7094 = vpow2.f32 %v5516_v40  ;;  %v5515_v36 = vmul.f32 -1.442695, %v3209_v1  ;;  %v3225_v40 = vrot.slane %v9172_v45, 6  ;;  %v3696_v45 = vld [vmem:[#allocation8 + $0x438] sm:$0xff] }
 0xe43   :  { %7096 = vpow2.f32 %v5515_v36 }
 0xe4e   :  { %v7095_v29 = vpop.eup %7094 }
 0xe4f   :  { %v3218_v46 = vadd.f32 1.0, %v7095_v29 }
 0xe50   :  { %v7097_v41 = vpop.eup %7096 }
 0xe51   :  { %7098 = vrcp.f32 %v3218_v46  ;;  %v3217_v52 = vadd.f32 1.0, %v7097_v41  ;;  %v3695_v46 = vld [vmem:[#allocation8 + $0x430] sm:$0xff]  ;;  %v3690_v41 = vld [vmem:[#allocation8 + $0x408] sm:$0xff] }
 0xe53   :  { %7100 = vrcp.f32 %v3217_v52  ;;  %v3694_v52 = vld [vmem:[#allocation8 + $0x428] sm:$0xff] }
 0xe5e   :  { %v7099_v51 = vpop.eup %7098 }
 0xe5f   :  { %v3232_v33 = vmul.f32 %v7099_v51, %v3230_v8  ;;  %v3698_v8 = vld [vmem:[#allocation8 + $0x448] sm:$0xff]  ;;  %v3692_v51 = vld [vmem:[#allocation8 + $0x418] sm:$0xff] }
 0xe60   :  { %v7101_v47 = vpop.eup %7100 }
 0xe61   :  { %v3233_v49 = vadd.f32 %v3232_v33, %v10570_v50  ;;  %v3223_v43 = vsub.f32 1.0, %v7101_v47  ;;  %v3227_v36 = vmul.f32 %v7101_v47, %v3225_v40  ;;  %v3697_v33 = vld [vmem:[#allocation8 + $0x440] sm:$0xff]  ;;  %v3687_v47 = vld [vmem:[#allocation8 + $0x3f0] sm:$0xff] }
 0xe62   :  { %v3685_v40 = vld [vmem:[#allocation8 + $0x3e0] sm:$0xff] }
 0xe63   :  { %7102 = vtanh.f32 %v3233_v49  ;;  %v3688_v49 = vld [vmem:[#allocation8 + $0x3f8] sm:$0xff] }
 0xe70   :  { %v7103_v1 = vpop.eup %7102 }
 0xe71   :  { %v3235_v32 = vmul.f32 %v7103_v1, %v3223_v43  ;;  %v3689_v43 = vld [vmem:[#allocation8 + $0x400] sm:$0xff]  ;;  %v3684_v1 = vld [vmem:[#allocation8 + $0x3d8] sm:$0xff] }
 0xe73   :  { %v9252_v29 = vadd.f32 %v3235_v32, %v3227_v36  ;;  %v3686_v36 = vld [vmem:[#allocation8 + $0x3e8] sm:$0xff] }
 0xe74   :  { %v3682_v32 = vld [vmem:[#allocation8 + $0x3c8] sm:$0xff] }
 0xe75   :  { %3237 = vst.msk [vmem:[#allocation2 + $0x8] sm:$0xc] %vm782_vm6, %v9252_v29  ;;  %v3240_v56 = vrot.slane %v9252_v29, 2 }
 0xe76   :  { %3238 = vst.msk [vmem:[#allocation2 + $0x2] sm:$0xc] %vm784_vm7, %v9252_v29 }
 0xe77   :  { %3307 = vmatmul.mubr.f32.vlgmr.msra.gmra.mxu0 %v3240_v56  ;;  %6597 = vmatmul.mubr.f32.vlgmr.msra.gmra.mxu1 %v3240_v56  ;;  %v3683_v56 = vld [vmem:[#allocation8 + $0x3d0] sm:$0xff] }
 0xe78   :  { %3422 = vmatpush1.msra.mxu0 %v9006_v53  ;;  %6600 = vmatpush3.msra.mxu1 %v9009_v54  ;;  %v10571_v53 = vld [vmem:[#allocation20_spill] sm:$0xff]  ;;  %v10572_v54 = vld [vmem:[#allocation18_spill] sm:$0xff] }
 0xe79   :  { %3423 = vmatprep.subr.mxu0 %v9012_v55  ;;  %6601 = vmatprep.subr.mxu1 %v10449_v35  ;;  %v10573_v55 = vld [vmem:[#allocation41_spill] sm:$0xff] }
 0xe7a   :  { %3424 = vmatpush1.msra.mxu0 %v9016_v61  ;;  %6602 = vmatpush3.msra.mxu1 %v9019_v2  ;;  %v10574_v61 = vld [vmem:[#allocation36_spill] sm:$0xff] }
 0xe7b   :  { %3425 = vmatprep.subr.mxu0 %v9022_v25  ;;  %6603 = vmatprep.subr.mxu1 %v10449_v35  ;;  %v10575_v2 = vld [vmem:[#allocation32_spill] sm:$0xff] }
 0xe7c   :  { %3426 = vmatpush1.msra.mxu0 %v9026_v13  ;;  %6604 = vmatpush3.msra.mxu1 %v9029_v31 }
 0xe7d   :  { %3427 = vmatprep.subr.mxu0 %v9032_v23  ;;  %6605 = vmatprep.subr.mxu1 %v10449_v35 }
 0xe7e   :  { %3428 = vmatpush1.msra.mxu0 %v9036_v3  ;;  %6606 = vmatpush3.msra.mxu1 %v9039_v12  ;;  %v10576_v12 = vld [vmem:[#allocation33_spill] sm:$0xff] }
 0xe7f   :  { %3429 = vmatprep.subr.mxu0 %v9042_v38  ;;  %6607 = vmatprep.subr.mxu1 %v10449_v35 }
 0xe80   :  { %3430 = vmatpush1.msra.mxu0 %v9046_v10  ;;  %6608 = vmatpush3.msra.mxu1 %v9049_v4 }
 0xe81   :  { %3431 = vmatprep.subr.mxu0 %v9052_v63  ;;  %6609 = vmatprep.subr.mxu1 %v10449_v35  ;;  %v10577_v63 = vld [vmem:[#allocation39_spill] sm:$0xff] }
 0xe82   :  { %3432 = vmatpush1.msra.mxu0 %v9056_v62  ;;  %6610 = vmatpush3.msra.mxu1 %v9059_v11 }
 0xe83   :  { %3433 = vmatprep.subr.mxu0 %v9062_v59  ;;  %6611 = vmatprep.subr.mxu1 %v10449_v35 }
 0xe84   :  { %3434 = vmatpush1.msra.mxu0 %v9066_v57  ;;  %6612 = vmatpush3.msra.mxu1 %v9069_v21 }
 0xe85   :  { %3435 = vmatprep.subr.mxu0 %v9072_v15  ;;  %6613 = vmatprep.subr.mxu1 %v10449_v35  ;;  %v9326_v15 = vld [vmem:[#allocation11 + $0x1] ss:$0 sm:$0xff] }
 0xe86   :  { %3436 = vmatpush1.msra.mxu0 %v9076_v0  ;;  %6614 = vmatpush3.msra.mxu1 %v9079_v7 }
 0xe87   :  { %3437 = vmatprep.subr.mxu0 %v9082_v6  ;;  %6615 = vmatprep.subr.mxu1 %v10449_v35 }
 0xe88   :  { %3438 = vmatpush1.msra.mxu0 %v9086_v5  ;;  %6616 = vmatpush3.msra.mxu1 %v9089_v18 }
 0xe89   :  { %3439 = vmatprep.subr.mxu0 %v9092_v9  ;;  %6617 = vmatprep.subr.mxu1 %v10449_v35  ;;  %v10578_v9 = vld [vmem:[#allocation31_spill] sm:$0xff] }
 0xe8a   :  { %3440 = vmatpush1.msra.mxu0 %v9096_v24  ;;  %6618 = vmatpush3.msra.mxu1 %v9099_v22 }
 0xe8b   :  { %3441 = vmatprep.subr.mxu0 %v9102_v16  ;;  %6619 = vmatprep.subr.mxu1 %v10449_v35 }
 0xe8c   :  { %3442 = vmatpush1.msra.mxu0 %v9106_v60  ;;  %6620 = vmatpush3.msra.mxu1 %v9109_v17  ;;  %v3404_v60 = vrot.slane %v9252_v29, 6  ;;  %v3681_v29 = vld [vmem:[#allocation8 + $0x3c0] sm:$0xff] }
 0xe8d   :  { %3443 = vmatprep.subr.mxu0 %v9112_v19  ;;  %6621 = vmatprep.subr.mxu1 %v10449_v35 }
 0xe8e   :  { %3444 = vmatpush1.msra.mxu0 %v9116_v14  ;;  %6622 = vmatpush3.msra.mxu1 %v9119_v20 }
 0xe8f   :  { %3445 = vmatprep.subr.mxu0 %v9122_v58  ;;  %6623 = vmatprep.subr.mxu1 %v10449_v35 }
 0xe90   :  { %3446 = vmatpush1.msra.mxu0 %v9126_v26  ;;  %6624 = vmatpush3.msra.mxu1 %v9129_v27  ;;  %v3703_v26 = vld [vmem:[#allocation8 + $0x470] sm:$0xff]  ;;  %v3702_v27 = vld [vmem:[#allocation8 + $0x468] sm:$0xff] }
 0xe91   :  { %3447 = vmatprep.subr.mxu0 %v9132_v28  ;;  %6625 = vmatprep.subr.mxu1 %v10449_v35  ;;  %v3704_v28 = vld [vmem:[#allocation8 + $0x478] sm:$0xff] }
 0xe92   :  { %3448 = vmatpush1.msra.mxu0 %v9136_v30  ;;  %6626 = vmatpush3.msra.mxu1 %v9139_v37  ;;  %v3700_v30 = vld [vmem:[#allocation8 + $0x458] sm:$0xff]  ;;  %v3699_v37 = vld [vmem:[#allocation8 + $0x450] sm:$0xff] }
 0xe93   :  { %3449 = vmatprep.subr.mxu0 %v9142_v42  ;;  %6627 = vmatprep.subr.mxu1 %v10449_v35  ;;  %v3701_v42 = vld [vmem:[#allocation8 + $0x460] sm:$0xff] }
 0xe94   :  { %3450 = vmatpush1.msra.mxu0 %v10571_v53  ;;  %6628 = vmatpush3.msra.mxu1 %v10572_v54  ;;  %v3679_v53 = vld [vmem:[#allocation8 + $0x3b0] sm:$0xff]  ;;  %v3678_v54 = vld [vmem:[#allocation8 + $0x3a8] sm:$0xff] }
 0xe95   :  { %3451 = vmatprep.subr.mxu0 %v10573_v55  ;;  %6629 = vmatprep.subr.mxu1 %v10449_v35  ;;  %v3680_v55 = vld [vmem:[#allocation8 + $0x3b8] sm:$0xff] }
 0xe96   :  { %3452 = vmatpush1.msra.mxu0 %v10574_v61  ;;  %3485 = vmatprep.mubr.f32.mxu0 %v10449_v35  ;;  %v3676_v61 = vld [vmem:[#allocation8 + $0x398] sm:$0xff] }
 0xe97   :  { %6630 = vmatpush3.msra.mxu1 %v10575_v2  ;;  %6631 = vmatprep.mubr.msk.f32.mxu1 %vm7487_vm0, %v10449_v35  ;;  %v3675_v2 = vld [vmem:[#allocation8 + $0x390] sm:$0xff] }
 0xe98   :  { %3723 = vmatprep.subr.mxu0 %v3703_v26  ;;  %6634 = vmatprep.subr.mxu1 %v3704_v28 }
 0xf37   :  { %v3308_v25 = vpop.f32.mrf.mxu0  ;;  %v3379_v13 = vpop.f32.mrf.mxu1 }
 0xf38   :  { %v3386_v31 = vrot.slane %v3379_v13, 4  ;;  %v3407_v0 = vadd.f32 %v9326_v15, %v3308_v25  ;;  %v3677_v25 = vld [vmem:[#allocation8 + $0x3a0] sm:$0xff] }
 0xf39   :  { %v3310_v23 = vpop.f32.mrf.mxu0  ;;  %v6598_v3 = vpop.f32.mrf.mxu1  ;;  %v3673_v13 = vld [vmem:[#allocation8 + $0x380] sm:$0xff] }
 0xf3a   :  { %v3390_v38 = vadd.f32 %v3386_v31, %v10576_v12  ;;  %v3385_v4 = vrot.slane %v3310_v23, 4  ;;  %v3409_v6 = vrot.slane %v3407_v0, 4  ;;  %v3672_v31 = vld [vmem:[#allocation8 + $0x378] sm:$0xff]  ;;  %v3674_v23 = vld [vmem:[#allocation8 + $0x388] sm:$0xff]  ;;  %v3669_v12 = vld [vmem:[#allocation8 + $0x360] sm:$0xff] }
 0xf3b   :  { %v3670_v3 = vld [vmem:[#allocation8 + $0x368] sm:$0xff] }
 0xf3c   :  { %v5518_v10 = vmul.f32 -1.442695, %v3390_v38  ;;  %v3389_v62 = vadd.f32 %v3385_v4, %v10577_v63  ;;  %v3671_v38 = vld [vmem:[#allocation8 + $0x370] sm:$0xff]  ;;  %v3666_v4 = vld [vmem:[#allocation8 + $0x348] sm:$0xff]  ;;  %v3668_v63 = vld [vmem:[#allocation8 + $0x358] sm:$0xff] }
 0xf3d   :  { %v3662_v0 = vld [vmem:[#allocation8 + $0x328] sm:$0xff] }
 0xf3e   :  { %7104 = vpow2.f32 %v5518_v10  ;;  %v5517_v11 = vmul.f32 -1.442695, %v3389_v62  ;;  %v3667_v10 = vld [vmem:[#allocation8 + $0x350] sm:$0xff]  ;;  %v3664_v62 = vld [vmem:[#allocation8 + $0x338] sm:$0xff] }
 0xf40   :  { %7106 = vpow2.f32 %v5517_v11  ;;  %v3663_v11 = vld [vmem:[#allocation8 + $0x330] sm:$0xff] }
 0xf4b   :  { %v7105_v59 = vpop.eup %7104 }
 0xf4c   :  { %v3398_v57 = vadd.f32 1.0, %v7105_v59  ;;  %v3665_v59 = vld [vmem:[#allocation8 + $0x340] sm:$0xff] }
 0xf4d   :  { %v7107_v21 = vpop.eup %7106 }
 0xf4e   :  { %7108 = vrcp.f32 %v3398_v57  ;;  %v3397_v7 = vadd.f32 1.0, %v7107_v21  ;;  %v3661_v57 = vld [vmem:[#allocation8 + $0x320] sm:$0xff]  ;;  %v3660_v21 = vld [vmem:[#allocation8 + $0x318] sm:$0xff] }
 0xf50   :  { %7110 = vrcp.f32 %v3397_v7  ;;  %v3658_v7 = vld [vmem:[#allocation8 + $0x308] sm:$0xff] }
 0xf5b   :  { %v7109_v5 = vpop.eup %7108 }
 0xf5c   :  { %v3411_v18 = vmul.f32 %v7109_v5, %v3409_v6  ;;  %v3657_v6 = vld [vmem:[#allocation8 + $0x300] sm:$0xff]  ;;  %v3659_v5 = vld [vmem:[#allocation8 + $0x310] sm:$0xff] }
 0xf5d   :  { %v7111_v22 = vpop.eup %7110 }
 0xf5e   :  { %v3412_v24 = vadd.f32 %v3411_v18, %v10578_v9  ;;  %v3403_v16 = vsub.f32 1.0, %v7111_v22  ;;  %v3406_v19 = vmul.f32 %v7111_v22, %v3404_v60  ;;  %v9339_v18 = vld [vmem:[#allocation9 + $0x470] sm:$0xff] }
 0xf5f   :  { %10579 = vst [vmem:[#allocation42_spill] sm:$0xff] %v9339_v18 }
 0xf60   :  { %7112 = vtanh.f32 %v3412_v24 }
 0xf6d   :  { %v7113_v17 = vpop.eup %7112 }
 0xf6e   :  { %v3414_v14 = vmul.f32 %v7113_v17, %v3403_v16 }
 0xf70   :  { %v9331_v20 = vadd.f32 %v3414_v14, %v3406_v19 }
 0xf72   :  { %3416 = vst.msk [vmem:[#allocation2 + $0x8] sm:$0x30] %vm963_vm8, %v9331_v20  ;;  %v3419_v58 = vrot.slane %v9331_v20, 4 }
 0xf73   :  { %3417 = vst.msk [vmem:[#allocation2 - $0x2] sm:$0x30] %vm965_vm9, %v9331_v20 }
 0xf74   :  { %3486 = vmatmul.mubr.f32.vlgmr.msra.gmra.mxu0 %v3419_v58  ;;  %6632 = vmatmul.mubr.f32.vlgmr.msra.gmra.mxu1 %v3419_v58 }
 0xf75   :  { %3787 = vmatprep.mubr.f32.mxu0 %v10449_v35  ;;  %3724 = vmatpush1.msra.mxu0 %v3702_v27 }
 0xf76   :  { %3725 = vmatprep.subr.mxu0 %v3700_v30  ;;  %6635 = vmatpush3.msra.mxu1 %v3704_v28 }
 0xf77   :  { %3726 = vmatpush1.msra.mxu0 %v3699_v37  ;;  %6636 = vmatprep.subr.mxu1 %v3701_v42 }
 0xf78   :  { %3727 = vmatprep.subr.mxu0 %v3697_v33  ;;  %6637 = vmatpush3.msra.mxu1 %v3701_v42 }
 0xf79   :  { %3728 = vmatpush1.msra.mxu0 %v3696_v45  ;;  %6638 = vmatprep.subr.mxu1 %v3698_v8 }
 0xf7a   :  { %3729 = vmatprep.subr.mxu0 %v3694_v52  ;;  %6639 = vmatpush3.msra.mxu1 %v3698_v8 }
 0xf7b   :  { %3730 = vmatpush1.msra.mxu0 %v3693_v39  ;;  %6640 = vmatprep.subr.mxu1 %v3695_v46 }
 0xf7c   :  { %3731 = vmatprep.subr.mxu0 %v3691_v48  ;;  %6641 = vmatpush3.msra.mxu1 %v3695_v46 }
 0xf7d   :  { %3732 = vmatpush1.msra.mxu0 %v3690_v41  ;;  %6642 = vmatprep.subr.mxu1 %v3692_v51 }
 0xf7e   :  { %3733 = vmatprep.subr.mxu0 %v3688_v49  ;;  %6643 = vmatpush3.msra.mxu1 %v3692_v51  ;;  %v9352_v49 = vld [vmem:[#allocation9 + $0x458] sm:$0xff] }
 0xf7f   :  { %3734 = vmatpush1.msra.mxu0 %v3687_v47  ;;  %6644 = vmatprep.subr.mxu1 %v3689_v43 }
 0xf80   :  { %3735 = vmatprep.subr.mxu0 %v3685_v40  ;;  %6645 = vmatpush3.msra.mxu1 %v3689_v43  ;;  %v9356_v40 = vld [vmem:[#allocation9 + $0x450] sm:$0xff] }
 0xf81   :  { %3736 = vmatpush1.msra.mxu0 %v3684_v1  ;;  %6646 = vmatprep.subr.mxu1 %v3686_v36  ;;  %v9363_v1 = vld [vmem:[#allocation9 + $0x460] sm:$0xff] }
 0xf82   :  { %3737 = vmatprep.subr.mxu0 %v3682_v32  ;;  %6647 = vmatpush3.msra.mxu1 %v3686_v36  ;;  %v9367_v36 = vld [vmem:[#allocation9 + $0x438] sm:$0xff]  ;;  %v9371_v32 = vld [vmem:[#allocation9 + $0x428] sm:$0xff] }
 0xf83   :  { %3738 = vmatpush1.msra.mxu0 %v3681_v29  ;;  %6648 = vmatprep.subr.mxu1 %v3683_v56  ;;  %v9373_v29 = vld [vmem:[#allocation9 + $0x448] sm:$0xff] }
 0xf84   :  { %3739 = vmatprep.subr.mxu0 %v3679_v53  ;;  %6649 = vmatpush3.msra.mxu1 %v3683_v56  ;;  %v9376_v56 = vld [vmem:[#allocation9 + $0x420] sm:$0xff]  ;;  %v9380_v53 = vld [vmem:[#allocation9 + $0x410] sm:$0xff] }
 0xf85   :  { %3740 = vmatpush1.msra.mxu0 %v3678_v54  ;;  %6650 = vmatprep.subr.mxu1 %v3680_v55  ;;  %v9382_v54 = vld [vmem:[#allocation9 + $0x430] sm:$0xff] }
 0xf86   :  { %3741 = vmatprep.subr.mxu0 %v3676_v61  ;;  %6651 = vmatpush3.msra.mxu1 %v3680_v55  ;;  %v9386_v55 = vld [vmem:[#allocation9 + $0x408] sm:$0xff]  ;;  %v9390_v61 = vld [vmem:[#allocation9 + $0x3f8] sm:$0xff] }
 0xf87   :  { %3742 = vmatpush1.msra.mxu0 %v3675_v2  ;;  %6652 = vmatprep.subr.mxu1 %v3677_v25  ;;  %v9392_v2 = vld [vmem:[#allocation9 + $0x418] sm:$0xff] }
 0xf88   :  { %3743 = vmatprep.subr.mxu0 %v3673_v13  ;;  %6653 = vmatpush3.msra.mxu1 %v3677_v25  ;;  %v9396_v25 = vld [vmem:[#allocation9 + $0x3f0] sm:$0xff]  ;;  %v9400_v13 = vld [vmem:[#allocation9 + $0x3e0] sm:$0xff] }
 0xf89   :  { %3744 = vmatpush1.msra.mxu0 %v3672_v31  ;;  %6654 = vmatprep.subr.mxu1 %v3674_v23  ;;  %v9402_v31 = vld [vmem:[#allocation9 + $0x400] sm:$0xff] }
 0xf8a   :  { %3745 = vmatprep.subr.mxu0 %v3670_v3  ;;  %6655 = vmatpush3.msra.mxu1 %v3674_v23  ;;  %v9406_v23 = vld [vmem:[#allocation9 + $0x3d8] sm:$0xff]  ;;  %v9410_v3 = vld [vmem:[#allocation9 + $0x3c8] sm:$0xff] }
 0xf8b   :  { %3746 = vmatpush1.msra.mxu0 %v3669_v12  ;;  %6656 = vmatprep.subr.mxu1 %v3671_v38  ;;  %v9412_v12 = vld [vmem:[#allocation9 + $0x3e8] sm:$0xff] }
 0xf8c   :  { %3747 = vmatprep.subr.mxu0 %v3667_v10  ;;  %6657 = vmatpush3.msra.mxu1 %v3671_v38  ;;  %v9416_v38 = vld [vmem:[#allocation9 + $0x3c0] sm:$0xff]  ;;  %v9420_v10 = vld [vmem:[#allocation9 + $0x3b0] sm:$0xff] }
 0xf8d   :  { %3748 = vmatpush1.msra.mxu0 %v3666_v4  ;;  %6658 = vmatprep.subr.mxu1 %v3668_v63  ;;  %v9422_v4 = vld [vmem:[#allocation9 + $0x3d0] sm:$0xff] }
 0xf8e   :  { %3749 = vmatprep.subr.mxu0 %v3664_v62  ;;  %6659 = vmatpush3.msra.mxu1 %v3668_v63  ;;  %v9426_v63 = vld [vmem:[#allocation9 + $0x3a8] sm:$0xff]  ;;  %v9430_v62 = vld [vmem:[#allocation9 + $0x398] sm:$0xff] }
 0xf8f   :  { %3750 = vmatpush1.msra.mxu0 %v3663_v11  ;;  %6660 = vmatprep.subr.mxu1 %v3665_v59  ;;  %v9432_v11 = vld [vmem:[#allocation9 + $0x3b8] sm:$0xff] }
 0xf90   :  { %3751 = vmatprep.subr.mxu0 %v3661_v57  ;;  %6661 = vmatpush3.msra.mxu1 %v3665_v59  ;;  %v9436_v59 = vld [vmem:[#allocation9 + $0x390] sm:$0xff]  ;;  %v9440_v57 = vld [vmem:[#allocation9 + $0x380] sm:$0xff] }
 0xf91   :  { %3752 = vmatpush1.msra.mxu0 %v3660_v21  ;;  %6662 = vmatprep.subr.mxu1 %v3662_v0  ;;  %v9442_v21 = vld [vmem:[#allocation9 + $0x3a0] sm:$0xff] }
 0xf92   :  { %3753 = vmatprep.subr.mxu0 %v3658_v7  ;;  %6663 = vmatpush3.msra.mxu1 %v3662_v0  ;;  %v9446_v0 = vld [vmem:[#allocation9 + $0x378] sm:$0xff]  ;;  %v9450_v7 = vld [vmem:[#allocation9 + $0x368] sm:$0xff] }
 0xf93   :  { %3754 = vmatpush1.msra.mxu0 %v3657_v6  ;;  %6664 = vmatprep.subr.mxu1 %v3659_v5  ;;  %v9452_v6 = vld [vmem:[#allocation9 + $0x388] sm:$0xff] }
 0xf94   :  { %6665 = vmatpush3.msra.mxu1 %v3659_v5  ;;  %3889 = vmatprep.subr.mxu0 %v9339_v18  ;;  %v9456_v5 = vld [vmem:[#allocation9 + $0x360] sm:$0xff] }
 0xf95   :  { %6669 = vmatprep.subr.mxu1 %v10449_v35 }
0x1034   :  { %v3487_v9 = vpop.f32.mrf.mxu0  ;;  %v3558_v24 = vpop.f32.mrf.mxu1 }
0x1035   :  { %v3565_v22 = vrot.slane %v3558_v24, 2  ;;  %v3586_v37 = vadd.f32 %v9326_v15, %v3487_v9  ;;  %v9350_v15 = vld [vmem:[#allocation9 + $0x468] sm:$0xff]  ;;  %v9460_v9 = vld [vmem:[#allocation9 + $0x350] sm:$0xff] }
0x1036   :  { %v3489_v16 = vpop.f32.mrf.mxu0  ;;  %v6633_v60 = vpop.f32.mrf.mxu1  ;;  %v9462_v24 = vld [vmem:[#allocation9 + $0x370] sm:$0xff] }
0x1037   :  { %v3569_v17 = vadd.f32 %v3565_v22, %v10568_v44  ;;  %v3564_v14 = vrot.slane %v3489_v16, 2  ;;  %v3588_v33 = vrot.slane %v3586_v37, 2  ;;  %v9466_v22 = vld [vmem:[#allocation9 + $0x348] sm:$0xff]  ;;  %v9470_v16 = vld [vmem:[#allocation9 + $0x338] sm:$0xff]  ;;  %v9504_v37 = vld [vmem:[#allocation9 + $0x310] sm:$0xff] }
0x1038   :  { %v9472_v60 = vld [vmem:[#allocation9 + $0x358] sm:$0xff]  ;;  %10587 = vst [vmem:[#allocation15_spill] sm:$0xff] %v9504_v37 }
0x1039   :  { %v5520_v19 = vmul.f32 -1.442695, %v3569_v17  ;;  %v3568_v58 = vadd.f32 %v3564_v14, %v10569_v34  ;;  %v3583_v34 = vrot.slane %v9331_v20, 6  ;;  %v9359_v20 = vld [vmem:[#allocation9 + $0x440] sm:$0xff]  ;;  %v9476_v17 = vld [vmem:[#allocation9 + $0x330] sm:$0xff] }
0x103a   :  { %10580 = vst [vmem:[#allocation21_spill] sm:$0xff] %v9476_v17  ;;  %v9482_v14 = vld [vmem:[#allocation9 + $0x340] sm:$0xff] }
0x103b   :  { %7114 = vpow2.f32 %v5520_v19  ;;  %v5519_v26 = vmul.f32 -1.442695, %v3568_v58  ;;  %v9480_v19 = vld [vmem:[#allocation9 + $0x320] sm:$0xff]  ;;  %10582 = vst [vmem:[#allocation22_spill] sm:$0xff] %v9482_v14  ;;  %v9486_v58 = vld [vmem:[#allocation9 + $0x318] sm:$0xff] }
0x103c   :  { %10581 = vst [vmem:[#allocation29_spill] sm:$0xff] %v9480_v19  ;;  %10583 = vst [vmem:[#allocation38_spill] sm:$0xff] %v9486_v58 }
0x103d   :  { %7116 = vpow2.f32 %v5519_v26  ;;  %v9490_v26 = vld [vmem:[#allocation9 + $0x308] sm:$0xff] }
0x103e   :  { %10584 = vst [vmem:[#allocation34_spill] sm:$0xff] %v9490_v26 }
0x1048   :  { %v7115_v27 = vpop.eup %7114 }
0x1049   :  { %v3577_v28 = vadd.f32 1.0, %v7115_v27  ;;  %v9492_v27 = vld [vmem:[#allocation9 + $0x328] sm:$0xff] }
0x104a   :  { %v7117_v30 = vpop.eup %7116  ;;  %10585 = vst [vmem:[#allocation16_spill] sm:$0xff] %v9492_v27 }
0x104b   :  { %7118 = vrcp.f32 %v3577_v28  ;;  %v3576_v42 = vadd.f32 1.0, %v7117_v30  ;;  %v9496_v28 = vld [vmem:[#allocation9 + $0x300] sm:$0xff]  ;;  %v9500_v30 = vld [vmem:[#allocation6 + $0x4] sm:$0x3] }
0x104c   :  { %10586 = vst [vmem:[#allocation30_spill] sm:$0xff] %v9496_v28 }
0x104d   :  { %7120 = vrcp.f32 %v3576_v42  ;;  %v5522_v42 = vld [vmem:[%s10277_s4 + $0x6] sm:$0x7] }
0x1058   :  { %v7119_v45 = vpop.eup %7118 }
0x1059   :  { %v3590_v8 = vmul.f32 %v7119_v45, %v3588_v33  ;;  %v10588_v33 = vld [vmem:[#allocation26_spill] sm:$0xff] }
0x105a   :  { %v7121_v52 = vpop.eup %7120  ;;  %v3711_v45 = vrot.slane %v5522_v42, %v10588_v33 }
0x105b   :  { %v3591_v44 = vadd.f32 %v3590_v8, %v10570_v50  ;;  %v3582_v39 = vsub.f32 1.0, %v7121_v52  ;;  %v3585_v48 = vmul.f32 %v7121_v52, %v3583_v34  ;;  %v9354_v50 = vld [vmem:[#allocation9 + $0x478] sm:$0xff] }
0x105c   :  { %v10589_v8 = vld [vmem:[#allocation25_spill] sm:$0xff] }
0x105d   :  { %7122 = vtanh.f32 %v3591_v44  ;;  %v3719_v44 = vrot.slane %v5522_v42, %v10589_v8 }
0x106a   :  { %v7123_v46 = vpop.eup %7122 }
0x106b   :  { %v3593_v41 = vmul.f32 %v7123_v46, %v3582_v39  ;;  %v10590_v39 = vld [vmem:[#allocation28_spill] sm:$0xff] }
0x106c   :  { %v3715_v34 = vrot.slane %v5522_v42, %v10590_v39 }
0x106d   :  { %v3594_v51 = vadd.f32 %v3593_v41, %v3585_v48 }
0x106f   :  { %3595 = vst.msk [vmem:[#allocation2 + $0x8] sm:$0xc0] %vm1144_vm10, %v3594_v51 }
0x1070   :  { %3596 = vst.msk [vmem:[#allocation2 - $0x6] sm:$0xc0] %vm1146_vm11, %v3594_v51 }
0x1076   :  { %v3598_v43 = vld [vmem:[#allocation2 + $0x8] sm:$0xff] }
0x1077   :  { %v3597_v47 = vld [vmem:[#allocation2] sm:$0xff] }
0x1078   :  { %3788 = vmatmul.mubr.f32.vlgmr.msra.gmra.mxu0 %v3597_v47  ;;  %6666 = vmatprep.mubr.f32.mxu1 %v3597_v47 }
0x1079   :  { %3890 = vmatpush1.msra.mxu0 %v9350_v15  ;;  %6667 = vmatmul.mubr.f32.vlgmr.msra.gmra.mxu1 %v3598_v43 }
0x107a   :  { %3891 = vmatprep.subr.mxu0 %v9352_v49  ;;  %6670 = vmatpush3.msra.mxu1 %v9354_v50 }
0x107b   :  { %3892 = vmatpush1.msra.mxu0 %v9356_v40  ;;  %6671 = vmatprep.subr.mxu1 %v10449_v35 }
0x107c   :  { %3793 = vmatprep.mubr.f32.mxu0 %v10449_v35  ;;  %3893 = vmatprep.subr.mxu0 %v9359_v20 }
0x107d   :  { %6672 = vmatpush3.msra.mxu1 %v9363_v1  ;;  %3794 = vmatmul.mubr.f32.gmra.mxu0 %v3598_v43 }
0x107e   :  { %3894 = vmatpush1.msra.mxu0 %v9367_v36  ;;  %6673 = vmatprep.subr.mxu1 %v10449_v35 }
0x107f   :  { %3895 = vmatprep.subr.mxu0 %v9371_v32  ;;  %6674 = vmatpush3.msra.mxu1 %v9373_v29 }
0x1080   :  { %3896 = vmatpush1.msra.mxu0 %v9376_v56  ;;  %6675 = vmatprep.subr.mxu1 %v10449_v35 }
0x1081   :  { %3897 = vmatprep.subr.mxu0 %v9380_v53  ;;  %6676 = vmatpush3.msra.mxu1 %v9382_v54 }
0x1082   :  { %3898 = vmatpush1.msra.mxu0 %v9386_v55  ;;  %6677 = vmatprep.subr.mxu1 %v10449_v35 }
0x1083   :  { %3899 = vmatprep.subr.mxu0 %v9390_v61  ;;  %6678 = vmatpush3.msra.mxu1 %v9392_v2 }
0x1084   :  { %3900 = vmatpush1.msra.mxu0 %v9396_v25  ;;  %6679 = vmatprep.subr.mxu1 %v10449_v35 }
0x1085   :  { %3901 = vmatprep.subr.mxu0 %v9400_v13  ;;  %6680 = vmatpush3.msra.mxu1 %v9402_v31 }
0x1086   :  { %3902 = vmatpush1.msra.mxu0 %v9406_v23  ;;  %6681 = vmatprep.subr.mxu1 %v10449_v35 }
0x1087   :  { %3903 = vmatprep.subr.mxu0 %v9410_v3  ;;  %6682 = vmatpush3.msra.mxu1 %v9412_v12 }
0x1088   :  { %3904 = vmatpush1.msra.mxu0 %v9416_v38  ;;  %6683 = vmatprep.subr.mxu1 %v10449_v35 }
0x1089   :  { %3905 = vmatprep.subr.mxu0 %v9420_v10  ;;  %6684 = vmatpush3.msra.mxu1 %v9422_v4 }
0x108a   :  { %3906 = vmatpush1.msra.mxu0 %v9426_v63  ;;  %6685 = vmatprep.subr.mxu1 %v10449_v35 }
0x108b   :  { %3907 = vmatprep.subr.mxu0 %v9430_v62  ;;  %6686 = vmatpush3.msra.mxu1 %v9432_v11 }
0x108c   :  { %3908 = vmatpush1.msra.mxu0 %v9436_v59  ;;  %6687 = vmatprep.subr.mxu1 %v10449_v35 }
0x108d   :  { %3909 = vmatprep.subr.mxu0 %v9440_v57  ;;  %6688 = vmatpush3.msra.mxu1 %v9442_v21 }
0x108e   :  { %3910 = vmatpush1.msra.mxu0 %v9446_v0  ;;  %6689 = vmatprep.subr.mxu1 %v10449_v35 }
0x108f   :  { %3911 = vmatprep.subr.mxu0 %v9450_v7  ;;  %6690 = vmatpush3.msra.mxu1 %v9452_v6 }
0x1090   :  { %3912 = vmatpush1.msra.mxu0 %v9456_v5  ;;  %6691 = vmatprep.subr.mxu1 %v10449_v35 }
0x1091   :  { %3913 = vmatprep.subr.mxu0 %v9460_v9  ;;  %6692 = vmatpush3.msra.mxu1 %v9462_v24 }
0x1092   :  { %3914 = vmatpush1.msra.mxu0 %v9466_v22  ;;  %6693 = vmatprep.subr.mxu1 %v10449_v35 }
0x1093   :  { %3915 = vmatprep.subr.mxu0 %v9470_v16  ;;  %6694 = vmatpush3.msra.mxu1 %v9472_v60 }
0x1094   :  { %3916 = vmatpush1.msra.mxu0 %v9476_v17  ;;  %6695 = vmatprep.subr.mxu1 %v10449_v35 }
0x1095   :  { %3917 = vmatprep.subr.mxu0 %v9480_v19  ;;  %6696 = vmatpush3.msra.mxu1 %v9482_v14 }
0x1096   :  { %3918 = vmatpush1.msra.mxu0 %v9486_v58  ;;  %6697 = vmatprep.subr.mxu1 %v10449_v35 }
0x1097   :  { %3919 = vmatprep.subr.mxu0 %v9490_v26  ;;  %6698 = vmatpush3.msra.mxu1 %v9492_v27 }
0x1098   :  { %3920 = vmatpush1.msra.mxu0 %v9496_v28  ;;  %3953 = vmatprep.mubr.f32.mxu0 %v10449_v35 }
0x1099   :  { %6699 = vmatprep.subr.mxu1 %v10449_v35  ;;  %3954 = vmatmul.mubr.f32.vlgmr.msra.gmra.mxu0 %v9500_v30 }
0x109a   :  { %6700 = vmatpush3.msra.mxu1 %v9504_v37  ;;  %6701 = vmatprep.mubr.msk.f32.mxu1 %vm7487_vm0, %v10449_v35 }
0x109b   :  { %6702 = vmatmul.mubr.f32.vlgmr.msra.gmra.mxu1 %v9500_v30  ;;  %4063 = vmatprep.subr.mxu0 %v9339_v18 }
0x109c   :  { %6704 = vmatprep.subr.mxu1 %v10449_v35  ;;  %4064 = vmatpush1.msra.mxu0 %v9350_v15 }
0x109d   :  { %6705 = vmatpush3.msra.mxu1 %v9354_v50  ;;  %4065 = vmatprep.subr.mxu0 %v9352_v49 }
0x109e   :  { %6706 = vmatprep.subr.mxu1 %v10449_v35  ;;  %4066 = vmatpush1.msra.mxu0 %v9356_v40 }
0x109f   :  { %6707 = vmatpush3.msra.mxu1 %v9363_v1  ;;  %4067 = vmatprep.subr.mxu0 %v9359_v20 }
0x10a0   :  { %6708 = vmatprep.subr.mxu1 %v10449_v35  ;;  %4068 = vmatpush1.msra.mxu0 %v9367_v36 }
0x10a1   :  { %6709 = vmatpush3.msra.mxu1 %v9373_v29  ;;  %4069 = vmatprep.subr.mxu0 %v9371_v32 }
0x10a2   :  { %6710 = vmatprep.subr.mxu1 %v10449_v35  ;;  %4070 = vmatpush1.msra.mxu0 %v9376_v56 }
0x10a3   :  { %6711 = vmatpush3.msra.mxu1 %v9382_v54  ;;  %4071 = vmatprep.subr.mxu0 %v9380_v53 }
0x10a4   :  { %6712 = vmatprep.subr.mxu1 %v10449_v35  ;;  %4072 = vmatpush1.msra.mxu0 %v9386_v55 }
0x10a5   :  { %6713 = vmatpush3.msra.mxu1 %v9392_v2  ;;  %4073 = vmatprep.subr.mxu0 %v9390_v61 }
0x10a6   :  { %6714 = vmatprep.subr.mxu1 %v10449_v35  ;;  %4074 = vmatpush1.msra.mxu0 %v9396_v25 }
0x10a7   :  { %6715 = vmatpush3.msra.mxu1 %v9402_v31  ;;  %4075 = vmatprep.subr.mxu0 %v9400_v13 }
0x10a8   :  { %6716 = vmatprep.subr.mxu1 %v10449_v35  ;;  %4076 = vmatpush1.msra.mxu0 %v9406_v23 }
0x10a9   :  { %6717 = vmatpush3.msra.mxu1 %v9412_v12  ;;  %4077 = vmatprep.subr.mxu0 %v9410_v3 }
0x10aa   :  { %6718 = vmatprep.subr.mxu1 %v10449_v35  ;;  %4078 = vmatpush1.msra.mxu0 %v9416_v38 }
0x10ab   :  { %6719 = vmatpush3.msra.mxu1 %v9422_v4  ;;  %4079 = vmatprep.subr.mxu0 %v9420_v10 }
0x10ac   :  { %6720 = vmatprep.subr.mxu1 %v10449_v35  ;;  %4080 = vmatpush1.msra.mxu0 %v9426_v63 }
0x10ad   :  { %6721 = vmatpush3.msra.mxu1 %v9432_v11  ;;  %4081 = vmatprep.subr.mxu0 %v9430_v62 }
0x10ae   :  { %6722 = vmatprep.subr.mxu1 %v10449_v35  ;;  %4082 = vmatpush1.msra.mxu0 %v9436_v59 }
0x10af   :  { %6723 = vmatpush3.msra.mxu1 %v9442_v21  ;;  %4083 = vmatprep.subr.mxu0 %v9440_v57 }
0x10b0   :  { %6724 = vmatprep.subr.mxu1 %v10449_v35  ;;  %4084 = vmatpush1.msra.mxu0 %v9446_v0 }
0x10b1   :  { %6725 = vmatpush3.msra.mxu1 %v9452_v6  ;;  %4085 = vmatprep.subr.mxu0 %v9450_v7 }
0x10b2   :  { %6726 = vmatprep.subr.mxu1 %v10449_v35  ;;  %4086 = vmatpush1.msra.mxu0 %v9456_v5 }
0x10b3   :  { %6727 = vmatpush3.msra.mxu1 %v9462_v24  ;;  %4087 = vmatprep.subr.mxu0 %v9460_v9 }
0x10b4   :  { %6728 = vmatprep.subr.mxu1 %v10449_v35  ;;  %4088 = vmatpush1.msra.mxu0 %v9466_v22 }
0x10b5   :  { %6729 = vmatpush3.msra.mxu1 %v9472_v60  ;;  %4089 = vmatprep.subr.mxu0 %v9470_v16 }
0x10b6   :  { %6730 = vmatprep.subr.mxu1 %v10449_v35  ;;  %4090 = vmatpush1.msra.mxu0 %v9476_v17 }
0x10b7   :  { %6731 = vmatpush3.msra.mxu1 %v9482_v14  ;;  %4091 = vmatprep.subr.mxu0 %v9480_v19 }
0x10b8   :  { %6732 = vmatprep.subr.mxu1 %v10449_v35  ;;  %4092 = vmatpush1.msra.mxu0 %v9486_v58 }
0x10b9   :  { %6733 = vmatpush3.msra.mxu1 %v9492_v27  ;;  %4093 = vmatprep.subr.mxu0 %v9490_v26 }
0x10ba   :  { %6734 = vmatprep.subr.mxu1 %v10449_v35  ;;  %4094 = vmatpush1.msra.mxu0 %v9496_v28 }
0x10bb   :  { %4127 = vmatprep.mubr.f32.mxu0 %v10449_v35  ;;  %6735 = vmatpush3.msra.mxu1 %v9504_v37 }
0x10bc   :  { %6736 = vmatprep.mubr.msk.f32.mxu1 %vm7487_vm0, %v10449_v35  ;;  %4243 = vmatprep.subr.mxu0 %v9339_v18 }
0x10bd   :  { %6739 = vmatprep.subr.mxu1 %v10449_v35 }
0x1138   :  { %v3789_v52 = vpop.f32.mrf.mxu0 }
0x1139   :  { %v3790_v46 = vadd.f32 %v3789_v52, %v3711_v45  ;;  %v6668_v48 = vpop.f32.mrf.mxu1  ;;  %v10609_v52 = vld [vmem:[#allocation38_spill] sm:$0xff] }
0x113a   :  { %v3872_v41 = vadd.f32 %v6668_v48, %v3719_v44  ;;  %v3791_v51 = vpop.f32.mrf.mxu0 }
0x113b   :  { %v3866_v47 = vpop.f32.mrf.mxu1  ;;  %v3792_v43 = vadd.f32 %v3791_v51, %v3715_v34  ;;  %v4601_v28 = vrot.slane %v3790_v46, 6  ;;  %v4778_v27 = vrot.slane %v3790_v46, 2 }
0x113c   :  { %v3867_v18 = vadd.f32 %v3866_v47, %v3719_v44  ;;  %v4056_v37 = vrot.slane %v3872_v41, 2 }
0x113d   :  { %v3795_v26 = vpop.f32.mrf.mxu0  ;;  %v4602_v48 = vrot.slane %v3792_v43, 6 }
0x113e   :  { %v3796_v58 = vadd.f32 %v3795_v26, %v3711_v45  ;;  %v9591_v33 = vsel %vm7806_vm1, %v3867_v18, %v4056_v37  ;;  %v4603_v8 = vrot.slane %v3867_v18, 6  ;;  %v4780_v17 = vrot.slane %v3867_v18, 2 }
0x113f   :  { %10592 = vst [vmem:[#allocation19_spill] sm:$0xff] %v9591_v33  ;;  %v3797_v14 = vpop.f32.mrf.mxu0  ;;  %v4779_v45 = vrot.slane %v3792_v43, 2 }
0x1140   :  { %v4054_v42 = vrot.slane %v3796_v58, 2  ;;  %v9595_v39 = vsel %vm139_vm2, %v3796_v58, %v4601_v28  ;;  %v9599_v44 = vsel %vm139_vm2, %v3796_v58, %v4778_v27  ;;  %v3798_v51 = vadd.f32 %v3797_v14, %v3715_v34 }
0x1141   :  { %10594 = vst [vmem:[#allocation17_spill] sm:$0xff] %v9595_v39  ;;  %10595 = vst [vmem:[#allocation40_spill] sm:$0xff] %v9599_v44  ;;  %v9603_v26 = vsel %vm7806_vm1, %v3872_v41, %v4603_v8  ;;  %v9607_v37 = vsel %vm7806_vm1, %v3872_v41, %v4780_v17  ;;  %v3882_v17 = vrot.slane %v3872_v41, 6 }
0x1142   :  { %10596 = vst [vmem:[#allocation37_spill] sm:$0xff] %v9603_v26  ;;  %10597 = vst [vmem:[#allocation20_spill] sm:$0xff] %v9607_v37  ;;  %v9611_v47 = vsel %vm139_vm2, %v3790_v46, %v4054_v42  ;;  %v4055_v28 = vrot.slane %v3798_v51, 2  ;;  %v9615_v27 = vsel %vm7841_vm3, %v3798_v51, %v4602_v48  ;;  %v9619_v14 = vsel %vm7841_vm3, %v3798_v51, %v4779_v45 }
0x1143   :  { %10598 = vst [vmem:[#allocation18_spill] sm:$0xff] %v9611_v47  ;;  %10600 = vst [vmem:[#allocation41_spill] sm:$0xff] %v9615_v27  ;;  %v9627_v44 = vsel %vm7806_vm1, %v3867_v18, %v3882_v17  ;;  %v3881_v26 = vrot.slane %v3798_v51, 6  ;;  %v9635_v17 = vld [vmem:[#allocation11 + $0x2] ss:$0 sm:$0xff]  ;;  %v3880_v51 = vrot.slane %v3796_v58, 6 }
0x1144   :  { %10601 = vst [vmem:[#allocation36_spill] sm:$0xff] %v9619_v14  ;;  %v9623_v34 = vsel %vm7841_vm3, %v3792_v43, %v4055_v28  ;;  %10603 = vst [vmem:[#allocation33_spill] sm:$0xff] %v9627_v44  ;;  %v10606_v58 = vld [vmem:[#allocation21_spill] sm:$0xff]  ;;  %vm5459_vm1 = vcmask 1041408  }
0x1145   :  { %10602 = vst [vmem:[#allocation32_spill] sm:$0xff] %v9623_v34  ;;  %v9632_v45 = vsel %vm7841_vm3, %v3792_v43, %v3881_v26  ;;  %v9640_v43 = vsel %vm139_vm2, %v3790_v46, %v3880_v51  ;;  %v10608_v46 = vld [vmem:[#allocation29_spill] sm:$0xff]  ;;  %v10613_v51 = vld [vmem:[#allocation15_spill] sm:$0xff]  ;;  %vm5477_vm2 = vcmask 1024  }
0x1146   :  { %10604 = vst [vmem:[#allocation39_spill] sm:$0xff] %v9632_v45  ;;  %10605 = vst [vmem:[#allocation31_spill] sm:$0xff] %v9640_v43 }
0x1159   :  { %v3955_v8 = vpop.f32.mrf.mxu0 }
0x115b   :  { %v4026_v42 = vpop.f32.mrf.mxu1  ;;  %v3957_v47 = vpop.f32.mrf.mxu0 }
0x115c   :  { %v4031_v37 = vadd.f32 %v4026_v42, %v9627_v44  ;;  %v4030_v28 = vadd.f32 %v3957_v47, %v9632_v45 }
0x115d   :  { %v6703_v48 = vpop.f32.mrf.mxu1 }
0x115e   :  { %v5524_v27 = vmul.f32 -1.442695, %v4031_v37  ;;  %v5523_v41 = vmul.f32 -1.442695, %v4030_v28  ;;  %v4046_v37 = vadd.f32 %v9635_v17, %v3955_v8  ;;  %v10610_v8 = vld [vmem:[#allocation16_spill] sm:$0xff] }
0x1160   :  { %7124 = vpow2.f32 %v5524_v27 }
0x1161   :  { %7126 = vpow2.f32 %v5523_v41 }
0x116d   :  { %v7125_v14 = vpop.eup %7124 }
0x116e   :  { %v4039_v19 = vadd.f32 1.0, %v7125_v14  ;;  %v7127_v18 = vpop.eup %7126 }
0x116f   :  { %v4038_v42 = vadd.f32 1.0, %v7127_v18  ;;  %v10611_v18 = vld [vmem:[#allocation34_spill] sm:$0xff] }
0x1170   :  { %7128 = vrcp.f32 %v4039_v19 }
0x1171   :  { %7130 = vrcp.f32 %v4038_v42  ;;  %v10612_v42 = vld [vmem:[#allocation30_spill] sm:$0xff] }
0x117d   :  { %v7129_v48 = vpop.eup %7128 }
0x117e   :  { %v4047_v27 = vmul.f32 %v7129_v48, %v4046_v37  ;;  %v7131_v26 = vpop.eup %7130  ;;  %v10614_v37 = vld [vmem:[#allocation42_spill] sm:$0xff] }
0x117f   :  { %v4044_v47 = vsub.f32 1.0, %v7131_v26  ;;  %v4045_v28 = vmul.f32 %v7131_v26, %v9500_v30  ;;  %v10607_v30 = vld [vmem:[#allocation22_spill] sm:$0xff] }
0x1180   :  { %v4048_v39 = vadd.f32 %v4047_v27, %v9640_v43 }
0x1182   :  { %7132 = vtanh.f32 %v4048_v39 }
0x118f   :  { %v7133_v14 = vpop.eup %7132 }
0x1190   :  { %v4050_v41 = vmul.f32 %v7133_v14, %v4044_v47 }
0x1192   :  { %v9644_v19 = vadd.f32 %v4050_v41, %v4045_v28 }
0x1194   :  { %4052 = vst.msk [vmem:[#allocation2] sm:$0x3] %vm594_vm4, %v9644_v19  ;;  %4128 = vmatmul.mubr.f32.vlgmr.msra.gmra.mxu0 %v9644_v19  ;;  %6737 = vmatmul.mubr.f32.vlgmr.msra.gmra.mxu1 %v9644_v19 }
0x1195   :  { %4053 = vst.msk [vmem:[#allocation2 + $0xe] sm:$0x3] %vm596_vm5, %v9644_v19  ;;  %4244 = vmatpush1.msra.mxu0 %v9350_v15  ;;  %6740 = vmatpush3.msra.mxu1 %v9354_v50 }
0x1196   :  { %4245 = vmatprep.subr.mxu0 %v9352_v49  ;;  %6741 = vmatprep.subr.mxu1 %v10449_v35 }
0x1197   :  { %4246 = vmatpush1.msra.mxu0 %v9356_v40  ;;  %6742 = vmatpush3.msra.mxu1 %v9363_v1 }
0x1198   :  { %4247 = vmatprep.subr.mxu0 %v9359_v20  ;;  %6743 = vmatprep.subr.mxu1 %v10449_v35 }
0x1199   :  { %4248 = vmatpush1.msra.mxu0 %v9367_v36  ;;  %6744 = vmatpush3.msra.mxu1 %v9373_v29 }
0x119a   :  { %4249 = vmatprep.subr.mxu0 %v9371_v32  ;;  %6745 = vmatprep.subr.mxu1 %v10449_v35 }
0x119b   :  { %4250 = vmatpush1.msra.mxu0 %v9376_v56  ;;  %6746 = vmatpush3.msra.mxu1 %v9382_v54 }
0x119c   :  { %4251 = vmatprep.subr.mxu0 %v9380_v53  ;;  %6747 = vmatprep.subr.mxu1 %v10449_v35 }
0x119d   :  { %4252 = vmatpush1.msra.mxu0 %v9386_v55  ;;  %6748 = vmatpush3.msra.mxu1 %v9392_v2 }
0x119e   :  { %4253 = vmatprep.subr.mxu0 %v9390_v61  ;;  %6749 = vmatprep.subr.mxu1 %v10449_v35 }
0x119f   :  { %4254 = vmatpush1.msra.mxu0 %v9396_v25  ;;  %6750 = vmatpush3.msra.mxu1 %v9402_v31 }
0x11a0   :  { %4255 = vmatprep.subr.mxu0 %v9400_v13  ;;  %6751 = vmatprep.subr.mxu1 %v10449_v35 }
0x11a1   :  { %4256 = vmatpush1.msra.mxu0 %v9406_v23  ;;  %6752 = vmatpush3.msra.mxu1 %v9412_v12 }
0x11a2   :  { %4257 = vmatprep.subr.mxu0 %v9410_v3  ;;  %6753 = vmatprep.subr.mxu1 %v10449_v35 }
0x11a3   :  { %4258 = vmatpush1.msra.mxu0 %v9416_v38  ;;  %6754 = vmatpush3.msra.mxu1 %v9422_v4 }
0x11a4   :  { %4259 = vmatprep.subr.mxu0 %v9420_v10  ;;  %6755 = vmatprep.subr.mxu1 %v10449_v35 }
0x11a5   :  { %4260 = vmatpush1.msra.mxu0 %v9426_v63  ;;  %6756 = vmatpush3.msra.mxu1 %v9432_v11 }
0x11a6   :  { %4261 = vmatprep.subr.mxu0 %v9430_v62  ;;  %6757 = vmatprep.subr.mxu1 %v10449_v35 }
0x11a7   :  { %4262 = vmatpush1.msra.mxu0 %v9436_v59  ;;  %6758 = vmatpush3.msra.mxu1 %v9442_v21 }
0x11a8   :  { %4263 = vmatprep.subr.mxu0 %v9440_v57  ;;  %6759 = vmatprep.subr.mxu1 %v10449_v35 }
0x11a9   :  { %4264 = vmatpush1.msra.mxu0 %v9446_v0  ;;  %6760 = vmatpush3.msra.mxu1 %v9452_v6 }
0x11aa   :  { %4265 = vmatprep.subr.mxu0 %v9450_v7  ;;  %6761 = vmatprep.subr.mxu1 %v10449_v35 }
0x11ab   :  { %4266 = vmatpush1.msra.mxu0 %v9456_v5  ;;  %6762 = vmatpush3.msra.mxu1 %v9462_v24 }
0x11ac   :  { %4267 = vmatprep.subr.mxu0 %v9460_v9  ;;  %6763 = vmatprep.subr.mxu1 %v10449_v35 }
0x11ad   :  { %4268 = vmatpush1.msra.mxu0 %v9466_v22  ;;  %6764 = vmatpush3.msra.mxu1 %v9472_v60 }
0x11ae   :  { %4269 = vmatprep.subr.mxu0 %v9470_v16  ;;  %6765 = vmatprep.subr.mxu1 %v10449_v35 }
0x11af   :  { %4270 = vmatpush1.msra.mxu0 %v10606_v58  ;;  %6766 = vmatpush3.msra.mxu1 %v10607_v30 }
0x11b0   :  { %4271 = vmatprep.subr.mxu0 %v10608_v46  ;;  %6767 = vmatprep.subr.mxu1 %v10449_v35 }
0x11b1   :  { %4272 = vmatpush1.msra.mxu0 %v10609_v52  ;;  %6768 = vmatpush3.msra.mxu1 %v10610_v8 }
0x11b2   :  { %4273 = vmatprep.subr.mxu0 %v10611_v18  ;;  %6769 = vmatprep.subr.mxu1 %v10449_v35 }
0x11b3   :  { %4274 = vmatpush1.msra.mxu0 %v10612_v42  ;;  %4307 = vmatprep.mubr.f32.mxu0 %v10449_v35 }
0x11b4   :  { %6770 = vmatpush3.msra.mxu1 %v10613_v51  ;;  %6771 = vmatprep.mubr.msk.f32.mxu1 %vm7487_vm0, %v10449_v35 }
0x11b5   :  { %4422 = vmatprep.subr.mxu0 %v10614_v37  ;;  %6774 = vmatprep.subr.mxu1 %v10449_v35 }
0x1254   :  { %v4129_v48 = vpop.f32.mrf.mxu0  ;;  %v4200_v27 = vpop.f32.mrf.mxu1 }
0x1255   :  { %v4207_v39 = vrot.slane %v4200_v27, 6  ;;  %v4229_v42 = vadd.f32 %v9635_v17, %v4129_v48 }
0x1256   :  { %v4131_v26 = vpop.f32.mrf.mxu0  ;;  %v6738_v47 = vpop.f32.mrf.mxu1 }
0x1257   :  { %v4211_v14 = vadd.f32 %v4207_v39, %v9591_v33  ;;  %v4206_v41 = vrot.slane %v4131_v26, 6  ;;  %v4231_v8 = vrot.slane %v4229_v42, 6  ;;  %v10615_v47 = vld [vmem:[#allocation18_spill] sm:$0xff] }
0x1258   :  { %v10619_v42 = vld [vmem:[#allocation30_spill] sm:$0xff] }
0x1259   :  { %v5526_v28 = vmul.f32 -1.442695, %v4211_v14  ;;  %v4210_v43 = vadd.f32 %v4206_v41, %v9623_v34 }
0x125b   :  { %7134 = vpow2.f32 %v5526_v28  ;;  %v5525_v45 = vmul.f32 -1.442695, %v4210_v43  ;;  %v4226_v28 = vrot.slane %v9644_v19, 6  ;;  %v10616_v19 = vld [vmem:[#allocation38_spill] sm:$0xff] }
0x125d   :  { %7136 = vpow2.f32 %v5525_v45 }
0x1268   :  { %v7135_v44 = vpop.eup %7134 }
0x1269   :  { %v4219_v51 = vadd.f32 1.0, %v7135_v44 }
0x126a   :  { %v7137_v37 = vpop.eup %7136 }
0x126b   :  { %7138 = vrcp.f32 %v4219_v51  ;;  %v4218_v18 = vadd.f32 1.0, %v7137_v37  ;;  %v10620_v51 = vld [vmem:[#allocation15_spill] sm:$0xff]  ;;  %v10621_v37 = vld [vmem:[#allocation42_spill] sm:$0xff] }
0x126d   :  { %7140 = vrcp.f32 %v4218_v18  ;;  %v10618_v18 = vld [vmem:[#allocation34_spill] sm:$0xff] }
0x1278   :  { %v7139_v27 = vpop.eup %7138 }
0x1279   :  { %v4233_v52 = vmul.f32 %v7139_v27, %v4231_v8 }
0x127a   :  { %v7141_v26 = vpop.eup %7140 }
0x127b   :  { %v4234_v39 = vadd.f32 %v4233_v52, %v10615_v47  ;;  %v4224_v14 = vsub.f32 1.0, %v7141_v26  ;;  %v4228_v45 = vmul.f32 %v7141_v26, %v4226_v28  ;;  %v10617_v52 = vld [vmem:[#allocation16_spill] sm:$0xff]  ;;  %v10622_v28 = vld [vmem:[#allocation33_spill] sm:$0xff] }
0x127d   :  { %7142 = vtanh.f32 %v4234_v39 }
0x128a   :  { %v7143_v43 = vpop.eup %7142 }
0x128b   :  { %v4236_v41 = vmul.f32 %v7143_v43, %v4224_v14 }
0x128d   :  { %v9724_v44 = vadd.f32 %v4236_v41, %v4228_v45 }
0x128f   :  { %4238 = vst.msk [vmem:[#allocation2] sm:$0xc] %vm782_vm6, %v9724_v44  ;;  %v4241_v8 = vrot.slane %v9724_v44, 2 }
0x1290   :  { %4239 = vst.msk [vmem:[#allocation2 + $0xa] sm:$0xc] %vm784_vm7, %v9724_v44 }
0x1291   :  { %4308 = vmatmul.mubr.f32.vlgmr.msra.gmra.mxu0 %v4241_v8  ;;  %6772 = vmatmul.mubr.f32.vlgmr.msra.gmra.mxu1 %v4241_v8  ;;  %v10623_v8 = vld [vmem:[#allocation39_spill] sm:$0xff] }
0x1292   :  { %4423 = vmatpush1.msra.mxu0 %v9350_v15  ;;  %6775 = vmatpush3.msra.mxu1 %v9354_v50 }
0x1293   :  { %4424 = vmatprep.subr.mxu0 %v9352_v49  ;;  %6776 = vmatprep.subr.mxu1 %v10449_v35 }
0x1294   :  { %4425 = vmatpush1.msra.mxu0 %v9356_v40  ;;  %6777 = vmatpush3.msra.mxu1 %v9363_v1 }
0x1295   :  { %4426 = vmatprep.subr.mxu0 %v9359_v20  ;;  %6778 = vmatprep.subr.mxu1 %v10449_v35 }
0x1296   :  { %4427 = vmatpush1.msra.mxu0 %v9367_v36  ;;  %6779 = vmatpush3.msra.mxu1 %v9373_v29 }
0x1297   :  { %4428 = vmatprep.subr.mxu0 %v9371_v32  ;;  %6780 = vmatprep.subr.mxu1 %v10449_v35 }
0x1298   :  { %4429 = vmatpush1.msra.mxu0 %v9376_v56  ;;  %6781 = vmatpush3.msra.mxu1 %v9382_v54 }
0x1299   :  { %4430 = vmatprep.subr.mxu0 %v9380_v53  ;;  %6782 = vmatprep.subr.mxu1 %v10449_v35 }
0x129a   :  { %4431 = vmatpush1.msra.mxu0 %v9386_v55  ;;  %6783 = vmatpush3.msra.mxu1 %v9392_v2 }
0x129b   :  { %4432 = vmatprep.subr.mxu0 %v9390_v61  ;;  %6784 = vmatprep.subr.mxu1 %v10449_v35 }
0x129c   :  { %4433 = vmatpush1.msra.mxu0 %v9396_v25  ;;  %6785 = vmatpush3.msra.mxu1 %v9402_v31 }
0x129d   :  { %4434 = vmatprep.subr.mxu0 %v9400_v13  ;;  %6786 = vmatprep.subr.mxu1 %v10449_v35 }
0x129e   :  { %4435 = vmatpush1.msra.mxu0 %v9406_v23  ;;  %6787 = vmatpush3.msra.mxu1 %v9412_v12 }
0x129f   :  { %4436 = vmatprep.subr.mxu0 %v9410_v3  ;;  %6788 = vmatprep.subr.mxu1 %v10449_v35 }
0x12a0   :  { %4437 = vmatpush1.msra.mxu0 %v9416_v38  ;;  %6789 = vmatpush3.msra.mxu1 %v9422_v4 }
0x12a1   :  { %4438 = vmatprep.subr.mxu0 %v9420_v10  ;;  %6790 = vmatprep.subr.mxu1 %v10449_v35 }
0x12a2   :  { %4439 = vmatpush1.msra.mxu0 %v9426_v63  ;;  %6791 = vmatpush3.msra.mxu1 %v9432_v11 }
0x12a3   :  { %4440 = vmatprep.subr.mxu0 %v9430_v62  ;;  %6792 = vmatprep.subr.mxu1 %v10449_v35 }
0x12a4   :  { %4441 = vmatpush1.msra.mxu0 %v9436_v59  ;;  %6793 = vmatpush3.msra.mxu1 %v9442_v21 }
0x12a5   :  { %4442 = vmatprep.subr.mxu0 %v9440_v57  ;;  %6794 = vmatprep.subr.mxu1 %v10449_v35 }
0x12a6   :  { %4443 = vmatpush1.msra.mxu0 %v9446_v0  ;;  %6795 = vmatpush3.msra.mxu1 %v9452_v6 }
0x12a7   :  { %4444 = vmatprep.subr.mxu0 %v9450_v7  ;;  %6796 = vmatprep.subr.mxu1 %v10449_v35 }
0x12a8   :  { %4445 = vmatpush1.msra.mxu0 %v9456_v5  ;;  %6797 = vmatpush3.msra.mxu1 %v9462_v24 }
0x12a9   :  { %4446 = vmatprep.subr.mxu0 %v9460_v9  ;;  %6798 = vmatprep.subr.mxu1 %v10449_v35 }
0x12aa   :  { %4447 = vmatpush1.msra.mxu0 %v9466_v22  ;;  %6799 = vmatpush3.msra.mxu1 %v9472_v60 }
0x12ab   :  { %4448 = vmatprep.subr.mxu0 %v9470_v16  ;;  %6800 = vmatprep.subr.mxu1 %v10449_v35 }
0x12ac   :  { %4449 = vmatpush1.msra.mxu0 %v10606_v58  ;;  %6801 = vmatpush3.msra.mxu1 %v10607_v30 }
0x12ad   :  { %4450 = vmatprep.subr.mxu0 %v10608_v46  ;;  %6802 = vmatprep.subr.mxu1 %v10449_v35 }
0x12ae   :  { %4451 = vmatpush1.msra.mxu0 %v10616_v19  ;;  %6803 = vmatpush3.msra.mxu1 %v10617_v52 }
0x12af   :  { %4452 = vmatprep.subr.mxu0 %v10618_v18  ;;  %6804 = vmatprep.subr.mxu1 %v10449_v35 }
0x12b0   :  { %4453 = vmatpush1.msra.mxu0 %v10619_v42  ;;  %4486 = vmatprep.mubr.f32.mxu0 %v10449_v35 }
0x12b1   :  { %6805 = vmatpush3.msra.mxu1 %v10620_v51  ;;  %6806 = vmatprep.mubr.msk.f32.mxu1 %vm7487_vm0, %v10449_v35 }
0x12b2   :  { %4613 = vmatprep.subr.mxu0 %v10621_v37  ;;  %6809 = vmatprep.subr.mxu1 %v10449_v35 }
0x1351   :  { %v4309_v48 = vpop.f32.mrf.mxu0  ;;  %v4380_v27 = vpop.f32.mrf.mxu1 }
0x1352   :  { %v4387_v39 = vrot.slane %v4380_v27, 4  ;;  %v4408_v42 = vadd.f32 %v9635_v17, %v4309_v48  ;;  %v9926_v48 = vld [vmem:[#allocation9 + $0x410] sm:$0xff] }
0x1353   :  { %v4311_v26 = vpop.f32.mrf.mxu0  ;;  %v6773_v14 = vpop.f32.mrf.mxu1 }
0x1354   :  { %v4391_v43 = vadd.f32 %v4387_v39, %v10622_v28  ;;  %v4386_v41 = vrot.slane %v4311_v26, 4  ;;  %v4410_v52 = vrot.slane %v4408_v42, 4  ;;  %v10624_v14 = vld [vmem:[#allocation31_spill] sm:$0xff] }
0x1355   :  { %v9920_v42 = vld [vmem:[#allocation9 + $0x420] sm:$0xff] }
0x1356   :  { %v5528_v45 = vmul.f32 -1.442695, %v4391_v43  ;;  %v4390_v47 = vadd.f32 %v4386_v41, %v10623_v8  ;;  %v4405_v43 = vrot.slane %v9724_v44, 6  ;;  %v9910_v44 = vld [vmem:[#allocation9 + $0x438] sm:$0xff]  ;;  %v9930_v41 = vld [vmem:[#allocation9 + $0x408] sm:$0xff] }
0x1357   :  { %v9933_v8 = vld [vmem:[#allocation9 + $0x418] sm:$0xff] }
0x1358   :  { %7144 = vpow2.f32 %v5528_v45  ;;  %v5527_v34 = vmul.f32 -1.442695, %v4390_v47 }
0x135a   :  { %7146 = vpow2.f32 %v5527_v34 }
0x1365   :  { %v7145_v33 = vpop.eup %7144 }
0x1366   :  { %v4399_v51 = vadd.f32 1.0, %v7145_v33 }
0x1367   :  { %v7147_v37 = vpop.eup %7146 }
0x1368   :  { %7148 = vrcp.f32 %v4399_v51  ;;  %v4398_v18 = vadd.f32 1.0, %v7147_v37  ;;  %v9923_v51 = vld [vmem:[#allocation9 + $0x430] sm:$0xff]  ;;  %v9936_v37 = vld [vmem:[#allocation9 + $0x3f8] sm:$0xff] }
0x136a   :  { %7150 = vrcp.f32 %v4398_v18  ;;  %v9916_v18 = vld [vmem:[#allocation9 + $0x428] sm:$0xff] }
0x1375   :  { %v7149_v27 = vpop.eup %7148 }
0x1376   :  { %v4412_v19 = vmul.f32 %v7149_v27, %v4410_v52  ;;  %v9940_v27 = vld [vmem:[#allocation9 + $0x3f0] sm:$0xff] }
0x1377   :  { %v7151_v26 = vpop.eup %7150 }
0x1378   :  { %v4413_v39 = vadd.f32 %v4412_v19, %v10624_v14  ;;  %v4404_v28 = vsub.f32 1.0, %v7151_v26  ;;  %v4407_v34 = vmul.f32 %v7151_v26, %v4405_v43  ;;  %v9913_v19 = vld [vmem:[#allocation9 + $0x448] sm:$0xff]  ;;  %v9943_v14 = vld [vmem:[#allocation9 + $0x400] sm:$0xff]  ;;  %v9950_v26 = vld [vmem:[#allocation9 + $0x3d8] sm:$0xff] }
0x1379   :  { %v9956_v43 = vld [vmem:[#allocation9 + $0x3c8] sm:$0xff] }
0x137a   :  { %7152 = vtanh.f32 %v4413_v39  ;;  %v9946_v39 = vld [vmem:[#allocation9 + $0x3e0] sm:$0xff] }
0x1387   :  { %v7153_v47 = vpop.eup %7152 }
0x1388   :  { %v4415_v45 = vmul.f32 %v7153_v47, %v4404_v28  ;;  %v9953_v28 = vld [vmem:[#allocation9 + $0x3e8] sm:$0xff]  ;;  %v9960_v47 = vld [vmem:[#allocation9 + $0x3c0] sm:$0xff] }
0x138a   :  { %v9803_v33 = vadd.f32 %v4415_v45, %v4407_v34  ;;  %v9963_v34 = vld [vmem:[#allocation9 + $0x3d0] sm:$0xff] }
0x138b   :  { %v9966_v45 = vld [vmem:[#allocation9 + $0x3b0] sm:$0xff] }
0x138c   :  { %4417 = vst.msk [vmem:[#allocation2] sm:$0x30] %vm963_vm8, %v9803_v33  ;;  %v4420_v52 = vrot.slane %v9803_v33, 4 }
0x138d   :  { %4418 = vst.msk [vmem:[#allocation2 + $0x6] sm:$0x30] %vm965_vm9, %v9803_v33 }
0x138e   :  { %4487 = vmatmul.mubr.f32.vlgmr.msra.gmra.mxu0 %v4420_v52  ;;  %6807 = vmatmul.mubr.f32.vlgmr.msra.gmra.mxu1 %v4420_v52  ;;  %v9973_v52 = vld [vmem:[#allocation9 + $0x3b8] sm:$0xff] }
0x138f   :  { %4614 = vmatpush1.msra.mxu0 %v9350_v15  ;;  %6810 = vmatpush3.msra.mxu1 %v9354_v50  ;;  %v10625_v15 = vld [vmem:[#allocation38_spill] sm:$0xff] }
0x1390   :  { %4615 = vmatprep.subr.mxu0 %v9352_v49  ;;  %6811 = vmatprep.subr.mxu1 %v10449_v35  ;;  %v10626_v49 = vld [vmem:[#allocation16_spill] sm:$0xff]  ;;  %v10627_v50 = vld [vmem:[#allocation34_spill] sm:$0xff] }
0x1391   :  { %4616 = vmatpush1.msra.mxu0 %v9356_v40  ;;  %6812 = vmatpush3.msra.mxu1 %v9363_v1  ;;  %v10628_v40 = vld [vmem:[#allocation30_spill] sm:$0xff]  ;;  %v9875_v1 = vld [vmem:[#allocation9 + $0x470] sm:$0xff] }
0x1392   :  { %4617 = vmatprep.subr.mxu0 %v9359_v20  ;;  %6813 = vmatprep.subr.mxu1 %v10449_v35  ;;  %v10629_v20 = vld [vmem:[#allocation15_spill] sm:$0xff]  ;;  %10630 = vst [vmem:[#allocation26_spill] sm:$0xff] %v9875_v1 }
0x1393   :  { %4618 = vmatpush1.msra.mxu0 %v9367_v36  ;;  %6814 = vmatpush3.msra.mxu1 %v9373_v29 }
0x1394   :  { %4619 = vmatprep.subr.mxu0 %v9371_v32  ;;  %6815 = vmatprep.subr.mxu1 %v10449_v35 }
0x1395   :  { %4620 = vmatpush1.msra.mxu0 %v9376_v56  ;;  %6816 = vmatpush3.msra.mxu1 %v9382_v54  ;;  %v10631_v54 = vld [vmem:[#allocation19_spill] sm:$0xff] }
0x1396   :  { %4621 = vmatprep.subr.mxu0 %v9380_v53  ;;  %6817 = vmatprep.subr.mxu1 %v10449_v35 }
0x1397   :  { %4622 = vmatpush1.msra.mxu0 %v9386_v55  ;;  %6818 = vmatpush3.msra.mxu1 %v9392_v2 }
0x1398   :  { %4623 = vmatprep.subr.mxu0 %v9390_v61  ;;  %6819 = vmatprep.subr.mxu1 %v10449_v35 }
0x1399   :  { %4624 = vmatpush1.msra.mxu0 %v9396_v25  ;;  %6820 = vmatpush3.msra.mxu1 %v9402_v31  ;;  %v10632_v25 = vld [vmem:[#allocation32_spill] sm:$0xff] }
0x139a   :  { %4625 = vmatprep.subr.mxu0 %v9400_v13  ;;  %6821 = vmatprep.subr.mxu1 %v10449_v35 }
0x139b   :  { %4626 = vmatpush1.msra.mxu0 %v9406_v23  ;;  %6822 = vmatpush3.msra.mxu1 %v9412_v12 }
0x139c   :  { %4627 = vmatprep.subr.mxu0 %v9410_v3  ;;  %6823 = vmatprep.subr.mxu1 %v10449_v35 }
0x139d   :  { %4628 = vmatpush1.msra.mxu0 %v9416_v38  ;;  %6824 = vmatpush3.msra.mxu1 %v9422_v4 }
0x139e   :  { %4629 = vmatprep.subr.mxu0 %v9420_v10  ;;  %6825 = vmatprep.subr.mxu1 %v10449_v35 }
0x139f   :  { %4630 = vmatpush1.msra.mxu0 %v9426_v63  ;;  %6826 = vmatpush3.msra.mxu1 %v9432_v11  ;;  %v10633_v11 = vld [vmem:[#allocation18_spill] sm:$0xff] }
0x13a0   :  { %4631 = vmatprep.subr.mxu0 %v9430_v62  ;;  %6827 = vmatprep.subr.mxu1 %v10449_v35 }
0x13a1   :  { %4632 = vmatpush1.msra.mxu0 %v9436_v59  ;;  %6828 = vmatpush3.msra.mxu1 %v9442_v21 }
0x13a2   :  { %4633 = vmatprep.subr.mxu0 %v9440_v57  ;;  %6829 = vmatprep.subr.mxu1 %v10449_v35 }
0x13a3   :  { %4634 = vmatpush1.msra.mxu0 %v9446_v0  ;;  %6830 = vmatpush3.msra.mxu1 %v9452_v6  ;;  %v4584_v0 = vrot.slane %v9803_v33, 6  ;;  %v9970_v33 = vld [vmem:[#allocation9 + $0x3a8] sm:$0xff] }
0x13a4   :  { %4635 = vmatprep.subr.mxu0 %v9450_v7  ;;  %6831 = vmatprep.subr.mxu1 %v10449_v35 }
0x13a5   :  { %4636 = vmatpush1.msra.mxu0 %v9456_v5  ;;  %6832 = vmatpush3.msra.mxu1 %v9462_v24 }
0x13a6   :  { %4637 = vmatprep.subr.mxu0 %v9460_v9  ;;  %6833 = vmatprep.subr.mxu1 %v10449_v35 }
0x13a7   :  { %4638 = vmatpush1.msra.mxu0 %v9466_v22  ;;  %6834 = vmatpush3.msra.mxu1 %v9472_v60  ;;  %v9890_v22 = vld [vmem:[#allocation9 + $0x468] sm:$0xff]  ;;  %v9896_v60 = vld [vmem:[#allocation9 + $0x458] sm:$0xff] }
0x13a8   :  { %4639 = vmatprep.subr.mxu0 %v9470_v16  ;;  %6835 = vmatprep.subr.mxu1 %v10449_v35  ;;  %v9893_v16 = vld [vmem:[#allocation9 + $0x478] sm:$0xff] }
0x13a9   :  { %4640 = vmatpush1.msra.mxu0 %v10606_v58  ;;  %6836 = vmatpush3.msra.mxu1 %v10607_v30  ;;  %v9900_v58 = vld [vmem:[#allocation9 + $0x450] sm:$0xff]  ;;  %v9903_v30 = vld [vmem:[#allocation9 + $0x460] sm:$0xff] }
0x13aa   :  { %4641 = vmatprep.subr.mxu0 %v10608_v46  ;;  %6837 = vmatprep.subr.mxu1 %v10449_v35  ;;  %v9906_v46 = vld [vmem:[#allocation9 + $0x440] sm:$0xff] }
0x13ab   :  { %4642 = vmatpush1.msra.mxu0 %v10625_v15  ;;  %6838 = vmatpush3.msra.mxu1 %v10626_v49  ;;  %v9976_v15 = vld [vmem:[#allocation9 + $0x398] sm:$0xff]  ;;  %v9980_v49 = vld [vmem:[#allocation9 + $0x390] sm:$0xff] }
0x13ac   :  { %4643 = vmatprep.subr.mxu0 %v10627_v50  ;;  %6839 = vmatprep.subr.mxu1 %v10449_v35  ;;  %v9983_v50 = vld [vmem:[#allocation9 + $0x3a0] sm:$0xff] }
0x13ad   :  { %4644 = vmatpush1.msra.mxu0 %v10628_v40  ;;  %4677 = vmatprep.mubr.f32.mxu0 %v10449_v35  ;;  %v9986_v40 = vld [vmem:[#allocation9 + $0x380] sm:$0xff] }
0x13ae   :  { %6840 = vmatpush3.msra.mxu1 %v10629_v20  ;;  %6841 = vmatprep.mubr.msk.f32.mxu1 %vm7487_vm0, %v10449_v35  ;;  %v9990_v20 = vld [vmem:[#allocation9 + $0x378] sm:$0xff] }
0x13af   :  { %4787 = vmatprep.subr.mxu0 %v9875_v1  ;;  %6844 = vmatprep.subr.mxu1 %v10449_v35 }
0x144e   :  { %v4488_v36 = vpop.f32.mrf.mxu0  ;;  %v4559_v32 = vpop.f32.mrf.mxu1 }
0x144f   :  { %v4566_v29 = vrot.slane %v4559_v32, 2  ;;  %v4587_v38 = vadd.f32 %v9635_v17, %v4488_v36  ;;  %v9993_v36 = vld [vmem:[#allocation9 + $0x388] sm:$0xff] }
0x1450   :  { %v4490_v56 = vpop.f32.mrf.mxu0  ;;  %v6808_v53 = vpop.f32.mrf.mxu1  ;;  %v9996_v32 = vld [vmem:[#allocation9 + $0x368] sm:$0xff] }
0x1451   :  { %v4570_v55 = vadd.f32 %v4566_v29, %v10631_v54  ;;  %v4565_v2 = vrot.slane %v4490_v56, 2  ;;  %v4589_v4 = vrot.slane %v4587_v38, 2  ;;  %v10000_v29 = vld [vmem:[#allocation9 + $0x360] sm:$0xff]  ;;  %v10003_v56 = vld [vmem:[#allocation9 + $0x370] sm:$0xff]  ;;  %v10010_v54 = vld [vmem:[#allocation9 + $0x348] sm:$0xff] }
0x1452   :  { %v10006_v53 = vld [vmem:[#allocation9 + $0x350] sm:$0xff] }
0x1453   :  { %v5530_v61 = vmul.f32 -1.442695, %v4570_v55  ;;  %v4569_v13 = vadd.f32 %v4565_v2, %v10632_v25  ;;  %v10013_v55 = vld [vmem:[#allocation9 + $0x358] sm:$0xff]  ;;  %v10020_v2 = vld [vmem:[#allocation9 + $0x330] sm:$0xff]  ;;  %v10023_v25 = vld [vmem:[#allocation9 + $0x340] sm:$0xff] }
0x1454   :  { %v10044_v38 = vld [vmem:[#allocation9 + $0x310] sm:$0xff] }
0x1455   :  { %7154 = vpow2.f32 %v5530_v61  ;;  %v5529_v31 = vmul.f32 -1.442695, %v4569_v13  ;;  %v10016_v61 = vld [vmem:[#allocation9 + $0x338] sm:$0xff]  ;;  %v10026_v13 = vld [vmem:[#allocation9 + $0x320] sm:$0xff]  ;;  %10638 = vst [vmem:[#allocation35_spill] sm:$0xff] %v10044_v38 }
0x1457   :  { %7156 = vpow2.f32 %v5529_v31  ;;  %v10030_v31 = vld [vmem:[#allocation9 + $0x318] sm:$0xff] }
0x1458   :  { %10634 = vst [vmem:[#allocation25_spill] sm:$0xff] %v10030_v31 }
0x1462   :  { %v7155_v23 = vpop.eup %7154 }
0x1463   :  { %v4578_v3 = vadd.f32 1.0, %v7155_v23  ;;  %v10033_v23 = vld [vmem:[#allocation9 + $0x328] sm:$0xff] }
0x1464   :  { %v7157_v12 = vpop.eup %7156  ;;  %10635 = vst [vmem:[#allocation28_spill] sm:$0xff] %v10033_v23 }
0x1465   :  { %7158 = vrcp.f32 %v4578_v3  ;;  %v4577_v10 = vadd.f32 1.0, %v7157_v12  ;;  %v10036_v3 = vld [vmem:[#allocation9 + $0x308] sm:$0xff]  ;;  %v10040_v12 = vld [vmem:[#allocation9 + $0x300] sm:$0xff] }
0x1466   :  { %10636 = vst [vmem:[#allocation27_spill] sm:$0xff] %v10036_v3  ;;  %10637 = vst [vmem:[#allocation24_spill] sm:$0xff] %v10040_v12 }
0x1467   :  { %7160 = vrcp.f32 %v4577_v10 }
0x1472   :  { %v7159_v63 = vpop.eup %7158 }
0x1473   :  { %v4591_v62 = vmul.f32 %v7159_v63, %v4589_v4  ;;  %v10639_v63 = vld [vmem:[#allocation37_spill] sm:$0xff] }
0x1474   :  { %v7161_v57 = vpop.eup %7160 }
0x1475   :  { %v4592_v59 = vadd.f32 %v4591_v62, %v10633_v11  ;;  %v4583_v21 = vsub.f32 1.0, %v7161_v57  ;;  %v4586_v6 = vmul.f32 %v7161_v57, %v4584_v0 }
0x1477   :  { %7162 = vtanh.f32 %v4592_v59 }
0x1484   :  { %v7163_v7 = vpop.eup %7162 }
0x1485   :  { %v4594_v5 = vmul.f32 %v7163_v7, %v4583_v21  ;;  %v10640_v21 = vld [vmem:[#allocation41_spill] sm:$0xff] }
0x1487   :  { %v4595_v9 = vadd.f32 %v4594_v5, %v4586_v6 }
0x1489   :  { %4596 = vst.msk [vmem:[#allocation2] sm:$0xc0] %vm1144_vm10, %v4595_v9  ;;  %v9886_v24 = vrot.slane %v4595_v9, 6 }
0x148a   :  { %4597 = vst.msk [vmem:[#allocation2 + $0x2] sm:$0xc0] %vm1146_vm11, %v4595_v9 }
0x148b   :  { %4678 = vmatmul.mubr.f32.vlgmr.msra.gmra.mxu0 %v9886_v24  ;;  %6842 = vmatmul.mubr.f32.vlgmr.msra.gmra.mxu1 %v9886_v24 }
0x148c   :  { %4788 = vmatpush1.msra.mxu0 %v9890_v22  ;;  %6845 = vmatpush3.msra.mxu1 %v9893_v16 }
0x148d   :  { %4789 = vmatprep.subr.mxu0 %v9896_v60  ;;  %6846 = vmatprep.subr.mxu1 %v10449_v35 }
0x148e   :  { %4790 = vmatpush1.msra.mxu0 %v9900_v58  ;;  %6847 = vmatpush3.msra.mxu1 %v9903_v30 }
0x148f   :  { %4791 = vmatprep.subr.mxu0 %v9906_v46  ;;  %6848 = vmatprep.subr.mxu1 %v10449_v35 }
0x1490   :  { %4792 = vmatpush1.msra.mxu0 %v9910_v44  ;;  %6849 = vmatpush3.msra.mxu1 %v9913_v19 }
0x1491   :  { %4793 = vmatprep.subr.mxu0 %v9916_v18  ;;  %6850 = vmatprep.subr.mxu1 %v10449_v35 }
0x1492   :  { %4794 = vmatpush1.msra.mxu0 %v9920_v42  ;;  %6851 = vmatpush3.msra.mxu1 %v9923_v51 }
0x1493   :  { %4795 = vmatprep.subr.mxu0 %v9926_v48  ;;  %6852 = vmatprep.subr.mxu1 %v10449_v35 }
0x1494   :  { %4796 = vmatpush1.msra.mxu0 %v9930_v41  ;;  %6853 = vmatpush3.msra.mxu1 %v9933_v8 }
0x1495   :  { %4797 = vmatprep.subr.mxu0 %v9936_v37  ;;  %6854 = vmatprep.subr.mxu1 %v10449_v35 }
0x1496   :  { %4798 = vmatpush1.msra.mxu0 %v9940_v27  ;;  %6855 = vmatpush3.msra.mxu1 %v9943_v14 }
0x1497   :  { %4799 = vmatprep.subr.mxu0 %v9946_v39  ;;  %6856 = vmatprep.subr.mxu1 %v10449_v35 }
0x1498   :  { %4800 = vmatpush1.msra.mxu0 %v9950_v26  ;;  %6857 = vmatpush3.msra.mxu1 %v9953_v28 }
0x1499   :  { %4801 = vmatprep.subr.mxu0 %v9956_v43  ;;  %6858 = vmatprep.subr.mxu1 %v10449_v35 }
0x149a   :  { %4802 = vmatpush1.msra.mxu0 %v9960_v47  ;;  %6859 = vmatpush3.msra.mxu1 %v9963_v34 }
0x149b   :  { %4803 = vmatprep.subr.mxu0 %v9966_v45  ;;  %6860 = vmatprep.subr.mxu1 %v10449_v35 }
0x149c   :  { %4804 = vmatpush1.msra.mxu0 %v9970_v33  ;;  %6861 = vmatpush3.msra.mxu1 %v9973_v52 }
0x149d   :  { %4805 = vmatprep.subr.mxu0 %v9976_v15  ;;  %6862 = vmatprep.subr.mxu1 %v10449_v35 }
0x149e   :  { %4806 = vmatpush1.msra.mxu0 %v9980_v49  ;;  %6863 = vmatpush3.msra.mxu1 %v9983_v50 }
0x149f   :  { %4807 = vmatprep.subr.mxu0 %v9986_v40  ;;  %6864 = vmatprep.subr.mxu1 %v10449_v35 }
0x14a0   :  { %4808 = vmatpush1.msra.mxu0 %v9990_v20  ;;  %6865 = vmatpush3.msra.mxu1 %v9993_v36 }
0x14a1   :  { %4809 = vmatprep.subr.mxu0 %v9996_v32  ;;  %6866 = vmatprep.subr.mxu1 %v10449_v35 }
0x14a2   :  { %4810 = vmatpush1.msra.mxu0 %v10000_v29  ;;  %6867 = vmatpush3.msra.mxu1 %v10003_v56 }
0x14a3   :  { %4811 = vmatprep.subr.mxu0 %v10006_v53  ;;  %6868 = vmatprep.subr.mxu1 %v10449_v35 }
0x14a4   :  { %4812 = vmatpush1.msra.mxu0 %v10010_v54  ;;  %6869 = vmatpush3.msra.mxu1 %v10013_v55 }
0x14a5   :  { %4813 = vmatprep.subr.mxu0 %v10016_v61  ;;  %6870 = vmatprep.subr.mxu1 %v10449_v35 }
0x14a6   :  { %4814 = vmatpush1.msra.mxu0 %v10020_v2  ;;  %6871 = vmatpush3.msra.mxu1 %v10023_v25 }
0x14a7   :  { %4815 = vmatprep.subr.mxu0 %v10026_v13  ;;  %6872 = vmatprep.subr.mxu1 %v10449_v35 }
0x14a8   :  { %4816 = vmatpush1.msra.mxu0 %v10030_v31  ;;  %6873 = vmatpush3.msra.mxu1 %v10033_v23  ;;  %v10641_v23 = vld [vmem:[#allocation17_spill] sm:$0xff] }
0x14a9   :  { %4817 = vmatprep.subr.mxu0 %v10036_v3  ;;  %6874 = vmatprep.subr.mxu1 %v10449_v35 }
0x14aa   :  { %4818 = vmatpush1.msra.mxu0 %v10040_v12  ;;  %4851 = vmatprep.mubr.f32.mxu0 %v10449_v35 }
0x14ab   :  { %6875 = vmatpush3.msra.mxu1 %v10044_v38  ;;  %6876 = vmatprep.mubr.msk.f32.mxu1 %vm7487_vm0, %v10449_v35 }
0x14ac   :  { %4967 = vmatprep.subr.mxu0 %v9875_v1  ;;  %6879 = vmatprep.subr.mxu1 %v10449_v35 }
0x154b   :  { %v4679_v10 = vpop.f32.mrf.mxu0  ;;  %v4750_v4 = vpop.f32.mrf.mxu1 }
0x154c   :  { %v4755_v62 = vadd.f32 %v4750_v4, %v10639_v63  ;;  %v4770_v1 = vadd.f32 %v9635_v17, %v4679_v10 }
0x154d   :  { %v6843_v11 = vpop.f32.mrf.mxu1  ;;  %v4681_v57 = vpop.f32.mrf.mxu0 }
0x154e   :  { %v5532_v59 = vmul.f32 -1.442695, %v4755_v62  ;;  %v4754_v0 = vadd.f32 %v4681_v57, %v10640_v21 }
0x1550   :  { %7164 = vpow2.f32 %v5532_v59  ;;  %v5531_v7 = vmul.f32 -1.442695, %v4754_v0 }
0x1552   :  { %7166 = vpow2.f32 %v5531_v7 }
0x155d   :  { %v7165_v6 = vpop.eup %7164 }
0x155e   :  { %v4763_v5 = vadd.f32 1.0, %v7165_v6 }
0x155f   :  { %v7167_v9 = vpop.eup %7166 }
0x1560   :  { %7168 = vrcp.f32 %v4763_v5  ;;  %v4762_v38 = vadd.f32 1.0, %v7167_v9 }
0x1562   :  { %7170 = vrcp.f32 %v4762_v38  ;;  %v10646_v38 = vld [vmem:[#allocation26_spill] sm:$0xff] }
0x156d   :  { %v7169_v12 = vpop.eup %7168 }
0x156e   :  { %v4771_v3 = vmul.f32 %v7169_v12, %v4770_v1  ;;  %v10642_v1 = vld [vmem:[#allocation28_spill] sm:$0xff]  ;;  %v10645_v12 = vld [vmem:[#allocation35_spill] sm:$0xff] }
0x156f   :  { %v7171_v62 = vpop.eup %7170 }
0x1570   :  { %v4772_v4 = vadd.f32 %v4771_v3, %v10641_v23  ;;  %v4768_v11 = vsub.f32 1.0, %v7171_v62  ;;  %v4769_v57 = vmul.f32 %v7171_v62, %v9886_v24  ;;  %v10643_v24 = vld [vmem:[#allocation27_spill] sm:$0xff]  ;;  %v10644_v3 = vld [vmem:[#allocation24_spill] sm:$0xff] }
0x1571   :  { %v10647_v62 = vld [vmem:[#allocation20_spill] sm:$0xff] }
0x1572   :  { %7172 = vtanh.f32 %v4772_v4 }
0x157f   :  { %v7173_v59 = vpop.eup %7172 }
0x1580   :  { %v4774_v0 = vmul.f32 %v7173_v59, %v4768_v11 }
0x1582   :  { %v10056_v7 = vadd.f32 %v4774_v0, %v4769_v57  ;;  %v10648_v0 = vld [vmem:[#allocation36_spill] sm:$0xff] }
0x1584   :  { %4776 = vst.msk [vmem:[#allocation2 + $0x8] sm:$0x3] %vm594_vm4, %v10056_v7  ;;  %4852 = vmatmul.mubr.f32.vlgmr.msra.gmra.mxu0 %v10056_v7  ;;  %6877 = vmatmul.mubr.f32.vlgmr.msra.gmra.mxu1 %v10056_v7 }
0x1585   :  { %4777 = vst.msk [vmem:[#allocation2 + $0x6] sm:$0x3] %vm596_vm5, %v10056_v7  ;;  %4968 = vmatpush1.msra.mxu0 %v9890_v22  ;;  %6880 = vmatpush3.msra.mxu1 %v9893_v16 }
0x1586   :  { %4969 = vmatprep.subr.mxu0 %v9896_v60  ;;  %6881 = vmatprep.subr.mxu1 %v10449_v35 }
0x1587   :  { %4970 = vmatpush1.msra.mxu0 %v9900_v58  ;;  %6882 = vmatpush3.msra.mxu1 %v9903_v30 }
0x1588   :  { %4971 = vmatprep.subr.mxu0 %v9906_v46  ;;  %6883 = vmatprep.subr.mxu1 %v10449_v35 }
0x1589   :  { %4972 = vmatpush1.msra.mxu0 %v9910_v44  ;;  %6884 = vmatpush3.msra.mxu1 %v9913_v19 }
0x158a   :  { %4973 = vmatprep.subr.mxu0 %v9916_v18  ;;  %6885 = vmatprep.subr.mxu1 %v10449_v35 }
0x158b   :  { %4974 = vmatpush1.msra.mxu0 %v9920_v42  ;;  %6886 = vmatpush3.msra.mxu1 %v9923_v51 }
0x158c   :  { %4975 = vmatprep.subr.mxu0 %v9926_v48  ;;  %6887 = vmatprep.subr.mxu1 %v10449_v35 }
0x158d   :  { %4976 = vmatpush1.msra.mxu0 %v9930_v41  ;;  %6888 = vmatpush3.msra.mxu1 %v9933_v8 }
0x158e   :  { %4977 = vmatprep.subr.mxu0 %v9936_v37  ;;  %6889 = vmatprep.subr.mxu1 %v10449_v35 }
0x158f   :  { %4978 = vmatpush1.msra.mxu0 %v9940_v27  ;;  %6890 = vmatpush3.msra.mxu1 %v9943_v14 }
0x1590   :  { %4979 = vmatprep.subr.mxu0 %v9946_v39  ;;  %6891 = vmatprep.subr.mxu1 %v10449_v35 }
0x1591   :  { %4980 = vmatpush1.msra.mxu0 %v9950_v26  ;;  %6892 = vmatpush3.msra.mxu1 %v9953_v28 }
0x1592   :  { %4981 = vmatprep.subr.mxu0 %v9956_v43  ;;  %6893 = vmatprep.subr.mxu1 %v10449_v35 }
0x1593   :  { %4982 = vmatpush1.msra.mxu0 %v9960_v47  ;;  %6894 = vmatpush3.msra.mxu1 %v9963_v34 }
0x1594   :  { %4983 = vmatprep.subr.mxu0 %v9966_v45  ;;  %6895 = vmatprep.subr.mxu1 %v10449_v35 }
0x1595   :  { %4984 = vmatpush1.msra.mxu0 %v9970_v33  ;;  %6896 = vmatpush3.msra.mxu1 %v9973_v52 }
0x1596   :  { %4985 = vmatprep.subr.mxu0 %v9976_v15  ;;  %6897 = vmatprep.subr.mxu1 %v10449_v35 }
0x1597   :  { %4986 = vmatpush1.msra.mxu0 %v9980_v49  ;;  %6898 = vmatpush3.msra.mxu1 %v9983_v50 }
0x1598   :  { %4987 = vmatprep.subr.mxu0 %v9986_v40  ;;  %6899 = vmatprep.subr.mxu1 %v10449_v35 }
0x1599   :  { %4988 = vmatpush1.msra.mxu0 %v9990_v20  ;;  %6900 = vmatpush3.msra.mxu1 %v9993_v36 }
0x159a   :  { %4989 = vmatprep.subr.mxu0 %v9996_v32  ;;  %6901 = vmatprep.subr.mxu1 %v10449_v35 }
0x159b   :  { %4990 = vmatpush1.msra.mxu0 %v10000_v29  ;;  %6902 = vmatpush3.msra.mxu1 %v10003_v56 }
0x159c   :  { %4991 = vmatprep.subr.mxu0 %v10006_v53  ;;  %6903 = vmatprep.subr.mxu1 %v10449_v35 }
0x159d   :  { %4992 = vmatpush1.msra.mxu0 %v10010_v54  ;;  %6904 = vmatpush3.msra.mxu1 %v10013_v55 }
0x159e   :  { %4993 = vmatprep.subr.mxu0 %v10016_v61  ;;  %6905 = vmatprep.subr.mxu1 %v10449_v35 }
0x159f   :  { %4994 = vmatpush1.msra.mxu0 %v10020_v2  ;;  %6906 = vmatpush3.msra.mxu1 %v10023_v25 }
0x15a0   :  { %4995 = vmatprep.subr.mxu0 %v10026_v13  ;;  %6907 = vmatprep.subr.mxu1 %v10449_v35 }
0x15a1   :  { %4996 = vmatpush1.msra.mxu0 %v10030_v31  ;;  %6908 = vmatpush3.msra.mxu1 %v10642_v1 }
0x15a2   :  { %4997 = vmatprep.subr.mxu0 %v10643_v24  ;;  %6909 = vmatprep.subr.mxu1 %v10449_v35 }
0x15a3   :  { %4998 = vmatpush1.msra.mxu0 %v10644_v3  ;;  %5031 = vmatprep.mubr.f32.mxu0 %v10449_v35 }
0x15a4   :  { %6910 = vmatpush3.msra.mxu1 %v10645_v12  ;;  %6911 = vmatprep.mubr.msk.f32.mxu1 %vm7487_vm0, %v10449_v35 }
0x15a5   :  { %5146 = vmatprep.subr.mxu0 %v10646_v38  ;;  %6914 = vmatprep.subr.mxu1 %v10449_v35 }
0x1644   :  { %v4853_v10 = vpop.f32.mrf.mxu0  ;;  %v4924_v6 = vpop.f32.mrf.mxu1 }
0x1645   :  { %v4931_v5 = vrot.slane %v4924_v6, 6  ;;  %v4953_v3 = vadd.f32 %v9635_v17, %v4853_v10 }
0x1646   :  { %v4855_v9 = vpop.f32.mrf.mxu0  ;;  %v6878_v4 = vpop.f32.mrf.mxu1 }
0x1647   :  { %v4935_v11 = vadd.f32 %v4931_v5, %v10647_v62  ;;  %v4930_v57 = vrot.slane %v4855_v9, 6  ;;  %v4955_v1 = vrot.slane %v4953_v3, 6  ;;  %v10649_v4 = vld [vmem:[#allocation40_spill] sm:$0xff] }
0x1649   :  { %v5534_v59 = vmul.f32 -1.442695, %v4935_v11  ;;  %v4934_v23 = vadd.f32 %v4930_v57, %v10648_v0 }
0x164b   :  { %7174 = vpow2.f32 %v5534_v59  ;;  %v5533_v21 = vmul.f32 -1.442695, %v4934_v23  ;;  %v4950_v59 = vrot.slane %v10056_v7, 6 }
0x164d   :  { %7176 = vpow2.f32 %v5533_v21 }
0x1658   :  { %v7175_v63 = vpop.eup %7174 }
0x1659   :  { %v4943_v12 = vadd.f32 1.0, %v7175_v63 }
0x165a   :  { %v7177_v38 = vpop.eup %7176 }
0x165b   :  { %7178 = vrcp.f32 %v4943_v12  ;;  %v4942_v24 = vadd.f32 1.0, %v7177_v38 }
0x165d   :  { %7180 = vrcp.f32 %v4942_v24 }
0x1668   :  { %v7179_v6 = vpop.eup %7178 }
0x1669   :  { %v4957_v31 = vmul.f32 %v7179_v6, %v4955_v1 }
0x166a   :  { %v7181_v9 = vpop.eup %7180 }
0x166b   :  { %v4958_v5 = vadd.f32 %v4957_v31, %v10649_v4  ;;  %v4948_v11 = vsub.f32 1.0, %v7181_v9  ;;  %v4952_v21 = vmul.f32 %v7181_v9, %v4950_v59 }
0x166d   :  { %7182 = vtanh.f32 %v4958_v5 }
0x167a   :  { %v7183_v23 = vpop.eup %7182 }
0x167b   :  { %v4960_v57 = vmul.f32 %v7183_v23, %v4948_v11 }
0x167d   :  { %v10136_v63 = vadd.f32 %v4960_v57, %v4952_v21 }
0x167f   :  { %4962 = vst.msk [vmem:[#allocation2 + $0x8] sm:$0xc] %vm782_vm6, %v10136_v63  ;;  %v4965_v17 = vrot.slane %v10136_v63, 2 }
0x1680   :  { %4963 = vst.msk [vmem:[#allocation2 + $0x2] sm:$0xc] %vm784_vm7, %v10136_v63 }
0x1681   :  { %5032 = vmatmul.mubr.f32.vlgmr.msra.gmra.mxu0 %v4965_v17  ;;  %6912 = vmatmul.mubr.f32.vlgmr.msra.gmra.mxu1 %v4965_v17  ;;  %v10658_v17 = vld [vmem:[#allocation23_spill] sm:$0xff] }
0x1682   :  { %5147 = vmatpush1.msra.mxu0 %v9890_v22  ;;  %6915 = vmatpush3.msra.mxu1 %v9893_v16  ;;  %v10650_v22 = vld [vmem:[#allocation25_spill] sm:$0xff]  ;;  %v10651_v16 = vld [vmem:[#allocation28_spill] sm:$0xff] }
0x1683   :  { %5148 = vmatprep.subr.mxu0 %v9896_v60  ;;  %6916 = vmatprep.subr.mxu1 %v10449_v35  ;;  %v10652_v60 = vld [vmem:[#allocation27_spill] sm:$0xff] }
0x1684   :  { %5149 = vmatpush1.msra.mxu0 %v9900_v58  ;;  %6917 = vmatpush3.msra.mxu1 %v9903_v30  ;;  %v10653_v58 = vld [vmem:[#allocation24_spill] sm:$0xff]  ;;  %v10654_v30 = vld [vmem:[#allocation35_spill] sm:$0xff] }
0x1685   :  { %5150 = vmatprep.subr.mxu0 %v9906_v46  ;;  %6918 = vmatprep.subr.mxu1 %v10449_v35 }
0x1686   :  { %5151 = vmatpush1.msra.mxu0 %v9910_v44  ;;  %6919 = vmatpush3.msra.mxu1 %v9913_v19 }
0x1687   :  { %5152 = vmatprep.subr.mxu0 %v9916_v18  ;;  %6920 = vmatprep.subr.mxu1 %v10449_v35 }
0x1688   :  { %5153 = vmatpush1.msra.mxu0 %v9920_v42  ;;  %6921 = vmatpush3.msra.mxu1 %v9923_v51  ;;  %v10655_v51 = vld [vmem:[#allocation37_spill] sm:$0xff] }
0x1689   :  { %5154 = vmatprep.subr.mxu0 %v9926_v48  ;;  %6922 = vmatprep.subr.mxu1 %v10449_v35 }
0x168a   :  { %5155 = vmatpush1.msra.mxu0 %v9930_v41  ;;  %6923 = vmatpush3.msra.mxu1 %v9933_v8 }
0x168b   :  { %5156 = vmatprep.subr.mxu0 %v9936_v37  ;;  %6924 = vmatprep.subr.mxu1 %v10449_v35  ;;  %v10656_v37 = vld [vmem:[#allocation41_spill] sm:$0xff] }
0x168c   :  { %5157 = vmatpush1.msra.mxu0 %v9940_v27  ;;  %6925 = vmatpush3.msra.mxu1 %v9943_v14 }
0x168d   :  { %5158 = vmatprep.subr.mxu0 %v9946_v39  ;;  %6926 = vmatprep.subr.mxu1 %v10449_v35 }
0x168e   :  { %5159 = vmatpush1.msra.mxu0 %v9950_v26  ;;  %6927 = vmatpush3.msra.mxu1 %v9953_v28 }
0x168f   :  { %5160 = vmatprep.subr.mxu0 %v9956_v43  ;;  %6928 = vmatprep.subr.mxu1 %v10449_v35  ;;  %v7366_v43 = vld [vmem:[#allocation11 + $0x2] ss:$0 sm:$0xff] }
0x1690   :  { %5161 = vmatpush1.msra.mxu0 %v9960_v47  ;;  %6929 = vmatpush3.msra.mxu1 %v9963_v34 }
0x1691   :  { %5162 = vmatprep.subr.mxu0 %v9966_v45  ;;  %6930 = vmatprep.subr.mxu1 %v10449_v35 }
0x1692   :  { %5163 = vmatpush1.msra.mxu0 %v9970_v33  ;;  %6931 = vmatpush3.msra.mxu1 %v9973_v52  ;;  %v10657_v52 = vld [vmem:[#allocation17_spill] sm:$0xff] }
0x1693   :  { %5164 = vmatprep.subr.mxu0 %v9976_v15  ;;  %6932 = vmatprep.subr.mxu1 %v10449_v35 }
0x1694   :  { %5165 = vmatpush1.msra.mxu0 %v9980_v49  ;;  %6933 = vmatpush3.msra.mxu1 %v9983_v50 }
0x1695   :  { %5166 = vmatprep.subr.mxu0 %v9986_v40  ;;  %6934 = vmatprep.subr.mxu1 %v10449_v35  ;;  %v5129_v40 = vrot.slane %v10136_v63, 6 }
0x1696   :  { %5167 = vmatpush1.msra.mxu0 %v9990_v20  ;;  %6935 = vmatpush3.msra.mxu1 %v9993_v36 }
0x1697   :  { %5168 = vmatprep.subr.mxu0 %v9996_v32  ;;  %6936 = vmatprep.subr.mxu1 %v10449_v35 }
0x1698   :  { %5169 = vmatpush1.msra.mxu0 %v10000_v29  ;;  %6937 = vmatpush3.msra.mxu1 %v10003_v56 }
0x1699   :  { %5170 = vmatprep.subr.mxu0 %v10006_v53  ;;  %6938 = vmatprep.subr.mxu1 %v10449_v35 }
0x169a   :  { %5171 = vmatpush1.msra.mxu0 %v10010_v54  ;;  %6939 = vmatpush3.msra.mxu1 %v10013_v55 }
0x169b   :  { %5172 = vmatprep.subr.mxu0 %v10016_v61  ;;  %6940 = vmatprep.subr.mxu1 %v10449_v35 }
0x169c   :  { %5173 = vmatpush1.msra.mxu0 %v10020_v2  ;;  %6941 = vmatpush3.msra.mxu1 %v10023_v25 }
0x169d   :  { %5174 = vmatprep.subr.mxu0 %v10026_v13  ;;  %6942 = vmatprep.subr.mxu1 %v10449_v35 }
0x169e   :  { %5175 = vmatpush1.msra.mxu0 %v10650_v22  ;;  %6943 = vmatpush3.msra.mxu1 %v10651_v16  ;;  %v5404_v22 = vsub.s32 7, %v10658_v17  ;;  %v5355_v16 = vsub.s32 6, %v10658_v17 }
0x169f   :  { %5176 = vmatprep.subr.mxu0 %v10652_v60  ;;  %6944 = vmatprep.subr.mxu1 %v10449_v35 }
0x16a0   :  { %5177 = vmatpush1.msra.mxu0 %v10653_v58  ;;  %5210 = vmatprep.mubr.f32.mxu0 %v10449_v35 }
0x16a1   :  { %6945 = vmatpush3.msra.mxu1 %v10654_v30  ;;  %6946 = vmatprep.mubr.msk.f32.mxu1 %vm7487_vm0, %v10449_v35  ;;  %vm5449_vm0 = vcmask 1040384  }
0x1741   :  { %v5033_v46 = vpop.f32.mrf.mxu0  ;;  %v5104_v44 = vpop.f32.mrf.mxu1 }
0x1742   :  { %v5111_v19 = vrot.slane %v5104_v44, 4  ;;  %v5132_v35 = vadd.f32 %v7366_v43, %v5033_v46 }
0x1743   :  { %v5035_v18 = vpop.f32.mrf.mxu0  ;;  %v6913_v42 = vpop.f32.mrf.mxu1 }
0x1744   :  { %v5115_v48 = vadd.f32 %v5111_v19, %v10655_v51  ;;  %v5110_v8 = vrot.slane %v5035_v18, 4  ;;  %v5134_v34 = vrot.slane %v5132_v35, 4  ;;  %v5326_v42 = vadd.s32 8, %v10658_v17 }
0x1745   :  { %v5331_v51 = vand.u32 1, %v10658_v17 }
0x1746   :  { %v5536_v41 = vmul.f32 -1.442695, %v5115_v48  ;;  %v5114_v27 = vadd.f32 %v5110_v8, %v10656_v37  ;;  %v5338_v8 = vand.u32 1, %v5326_v42 }
0x1747   :  { %vm10231_vm12 = vcmp.eq.s32.totalorder %v5331_v51, 1  ;;  %vm10235_vm13 = vcmp.eq.s32.totalorder %v5331_v51, 0 }
0x1748   :  { %7184 = vpow2.f32 %v5536_v41  ;;  %v5535_v14 = vmul.f32 -1.442695, %v5114_v27  ;;  %vm10239_vm14 = vcmp.eq.s32.totalorder %v5338_v8, 1  ;;  %vm10243_vm15 = vcmp.eq.s32.totalorder %v5338_v8, 0 }
0x174a   :  { %7186 = vpow2.f32 %v5535_v14 }
0x1755   :  { %v7185_v39 = vpop.eup %7184 }
0x1756   :  { %v5123_v26 = vadd.f32 1.0, %v7185_v39 }
0x1757   :  { %v7187_v28 = vpop.eup %7186 }
0x1758   :  { %7188 = vrcp.f32 %v5123_v26  ;;  %v5122_v47 = vadd.f32 1.0, %v7187_v28 }
0x175a   :  { %7190 = vrcp.f32 %v5122_v47 }
0x1765   :  { %v7189_v45 = vpop.eup %7188 }
0x1766   :  { %v5136_v33 = vmul.f32 %v7189_v45, %v5134_v34 }
0x1767   :  { %v7191_v49 = vpop.eup %7190 }
0x1768   :  { %v5137_v15 = vadd.f32 %v5136_v33, %v10657_v52  ;;  %v5128_v50 = vsub.f32 1.0, %v7191_v49  ;;  %v5131_v36 = vmul.f32 %v7191_v49, %v5129_v40 }
0x176a   :  { %7192 = vtanh.f32 %v5137_v15 }
0x1777   :  { %v7193_v20 = vpop.eup %7192 }
0x1778   :  { %v5139_v32 = vmul.f32 %v7193_v20, %v5128_v50 }
0x177a   :  { %v5140_v29 = vadd.f32 %v5139_v32, %v5131_v36 }
0x177c   :  { %5141 = vst.msk [vmem:[#allocation2 + $0x8] sm:$0x30] %vm963_vm8, %v5140_v29  ;;  %v5144_v56 = vrot.slane %v5140_v29, 4  ;;  %v5308_v23 = vrot.slane %v5140_v29, 6 }
0x177d   :  { %5142 = vst.msk [vmem:[#allocation2 - $0x2] sm:$0x30] %vm965_vm9, %v5140_v29 }
0x177e   :  { %5211 = vmatmul.mubr.f32.vlgmr.msra.gmra.mxu0 %v5144_v56  ;;  %6947 = vmatmul.mubr.f32.vlgmr.msra.gmra.mxu1 %v5144_v56 }
0x183e   :  { %v5212_v53 = vpop.f32.mrf.mxu0  ;;  %v5283_v54 = vpop.f32.mrf.mxu1 }
0x183f   :  { %v5290_v55 = vrot.slane %v5283_v54, 2  ;;  %v5311_v10 = vadd.f32 %v7366_v43, %v5212_v53 }
0x1840   :  { %v5214_v61 = vpop.f32.mrf.mxu0  ;;  %v6948_v2 = vpop.f32.mrf.mxu1 }
0x1841   :  { %v5294_v25 = vadd.f32 %v5290_v55, %v10647_v62  ;;  %v5289_v31 = vrot.slane %v5214_v61, 2  ;;  %v5313_v6 = vrot.slane %v5311_v10, 2 }
0x1843   :  { %v5538_v13 = vmul.f32 -1.442695, %v5294_v25  ;;  %v5293_v7 = vadd.f32 %v5289_v31, %v10648_v0 }
0x1845   :  { %7194 = vpow2.f32 %v5538_v13  ;;  %v5537_v1 = vmul.f32 -1.442695, %v5293_v7 }
0x1847   :  { %7196 = vpow2.f32 %v5537_v1 }
0x1852   :  { %v7195_v24 = vpop.eup %7194 }
0x1853   :  { %v5302_v3 = vadd.f32 1.0, %v7195_v24 }
0x1854   :  { %v7197_v12 = vpop.eup %7196 }
0x1855   :  { %7198 = vrcp.f32 %v5302_v3  ;;  %v5301_v38 = vadd.f32 1.0, %v7197_v12 }
0x1857   :  { %7200 = vrcp.f32 %v5301_v38 }
0x1862   :  { %v7199_v5 = vpop.eup %7198 }
0x1863   :  { %v5315_v9 = vmul.f32 %v7199_v5, %v5313_v6 }
0x1864   :  { %v7201_v62 = vpop.eup %7200 }
0x1865   :  { %v5316_v11 = vadd.f32 %v5315_v9, %v10649_v4  ;;  %v5307_v59 = vsub.f32 1.0, %v7201_v62  ;;  %v5310_v0 = vmul.f32 %v7201_v62, %v5308_v23 }
0x1867   :  { %7202 = vtanh.f32 %v5316_v11 }
0x1874   :  { %v7203_v21 = vpop.eup %7202 }
0x1875   :  { %v5318_v57 = vmul.f32 %v7203_v21, %v5307_v59 }
0x1877   :  { %v5319_v63 = vadd.f32 %v5318_v57, %v5310_v0 }
0x1879   :  { %5320 = vst.msk [vmem:[#allocation2 + $0x8] sm:$0xc0] %vm1144_vm10, %v5319_v63  ;;  %v5405_v60 = vrot.slane %v5319_v63, %v5404_v22  ;;  %v5356_v58 = vrot.slane %v5319_v63, %v5355_v16 }
0x187a   :  { %5321 = vst.msk [vmem:[#allocation2 - $0x6] sm:$0xc0] %vm1146_vm11, %v5319_v63 }
0x1880   :  { %v10225_v44 = vld [vmem:[#allocation2 + $0x8] sm:$0xff] }
0x1881   :  { %v10221_v30 = vld [vmem:[#allocation2] sm:$0xff]  ;;  %v5407_v19 = vmul.f32 %v5405_v60, %v10225_v44  ;;  %v5358_v18 = vmul.f32 %v5356_v58, %v10225_v44 }
0x1882   :  { %v5406_v4 = vmul.f32 %v5405_v60, %v10221_v30  ;;  %v5357_v46 = vmul.f32 %v5356_v58, %v10221_v30 }
0x1884   :  { %5408 = vadd.xlane.f32.xlu1 %v5406_v4  ;;  %5359 = vadd.xlane.f32.xlu0 %v5357_v46 }
0x1888   :  { %5410 = vadd.xlane.f32.xlu1 %v5407_v19  ;;  %5361 = vadd.xlane.f32.xlu0 %v5358_v18 }
0x190d   :  { %v5409_v48 = vpop.xlane.xlu1 %5408  ;;  %v5360_v41 = vpop.xlane.xlu0 %5359 }
0x190e   :  { %v5412_v37 = vmul.f32 0.125, %v5409_v48  ;;  %v5363_v14 = vmul.f32 0.125, %v5360_v41 }
0x1910   :  { %v5414_v45 = vsel %vm10231_vm12, %v5412_v37, -1e+30  ;;  %v5365_v33 = vsel %vm10235_vm13, %v5363_v14, -1e+30 }
0x1911   :  { %v5411_v28 = vpop.xlane.xlu1 %5410  ;;  %v5362_v35 = vpop.xlane.xlu0 %5361 }
0x1912   :  { %v5413_v47 = vmul.f32 0.125, %v5411_v28  ;;  %v5364_v34 = vmul.f32 0.125, %v5362_v35 }
0x1914   :  { %v5415_v52 = vsel %vm10239_vm14, %v5413_v47, -1e+30  ;;  %v5366_v15 = vsel %vm10243_vm15, %v5364_v34, -1e+30 }
0x1915   :  { %v5416_v49 = vmax.f32 %v5414_v45, %v5415_v52  ;;  %v5367_v50 = vmax.f32 %v5365_v33, %v5366_v15 }
0x1917   :  { %v5417_v40 = vrot.slane %v5416_v49, 4  ;;  %v5368_v20 = vrot.slane %v5367_v50, 4 }
0x1919   :  { %v5418_v36 = vmax.f32 %v5416_v49, %v5417_v40  ;;  %v5369_v32 = vmax.f32 %v5367_v50, %v5368_v20  ;;  %v5539_v40 = vld [vmem:[%s10279_s6] ss:$0 sm:$0xff] }
0x191b   :  { %v5419_v29 = vrot.slane %v5418_v36, 2  ;;  %v5370_v56 = vrot.slane %v5369_v32, 2 }
0x191d   :  { %v5420_v53 = vmax.f32 %v5418_v36, %v5419_v29  ;;  %v5371_v54 = vmax.f32 %v5369_v32, %v5370_v56  ;;  %v5540_v29 = vld [vmem:[#allocation3] ss:$0 sm:$0xff] }
0x191f   :  { %v5421_v55 = vrot.slane %v5420_v53, 1  ;;  %v5372_v61 = vrot.slane %v5371_v54, 1 }
0x1921   :  { %v5422_v2 = vmax.f32 %v5420_v53, %v5421_v55  ;;  %v5373_v25 = vmax.f32 %v5371_v54, %v5372_v61 }
0x1923   :  { %v5423_v13 = vsub.f32 %v5414_v45, %v5422_v2  ;;  %v5424_v31 = vsub.f32 %v5415_v52, %v5422_v2  ;;  %v5374_v7 = vsub.f32 %v5365_v33, %v5373_v25  ;;  %v5375_v1 = vsub.f32 %v5366_v15, %v5373_v25 }
0x1925   :  { %v5425_v24 = vmul.f32 1.442695, %v5423_v13  ;;  %v5427_v3 = vmul.f32 1.442695, %v5424_v31  ;;  %v5376_v12 = vmul.f32 1.442695, %v5374_v7 }
0x1926   :  { %v5378_v10 = vmul.f32 1.442695, %v5375_v1 }
0x1927   :  { %7204 = vpow2.f32 %v5425_v24 }
0x1928   :  { %7206 = vpow2.f32 %v5427_v3 }
0x1929   :  { %7208 = vpow2.f32 %v5376_v12 }
0x192a   :  { %7210 = vpow2.f32 %v5378_v10 }
0x1934   :  { %v7205_v38 = vpop.eup %7204 }
0x1935   :  { %v7207_v6 = vpop.eup %7206  ;;  %v5429_v5 = vsel %vm10231_vm12, %v7205_v38, 0.0 }
0x1936   :  { %v7209_v9 = vpop.eup %7208  ;;  %v5430_v11 = vsel %vm10239_vm14, %v7207_v6, 0.0  ;;  %v5431_v62 = vmul.f32 %v5429_v5, %v10221_v30 }
0x1937   :  { %v7211_v59 = vpop.eup %7210  ;;  %v5432_v23 = vmul.f32 %v5430_v11, %v10225_v44  ;;  %v5440_v21 = vadd.f32 %v5430_v11, %v5429_v5  ;;  %v5380_v0 = vsel %vm10235_vm13, %v7209_v9, 0.0 }
0x1938   :  { %v5381_v57 = vsel %vm10243_vm15, %v7211_v59, 0.0  ;;  %v5382_v63 = vmul.f32 %v5380_v0, %v10221_v30 }
0x1939   :  { %v5433_v17 = vadd.f32 %v5432_v23, %v5431_v62  ;;  %v5441_v22 = vrot.slane %v5440_v21, 4  ;;  %v5383_v16 = vmul.f32 %v5381_v57, %v10225_v44  ;;  %v5391_v60 = vadd.f32 %v5381_v57, %v5380_v0 }
0x193b   :  { %v5442_v58 = vadd.f32 %v5441_v22, %v5440_v21  ;;  %v5384_v4 = vadd.f32 %v5383_v16, %v5382_v63  ;;  %v5392_v46 = vrot.slane %v5391_v60, 4  ;;  %v5434_v19 = vrot.slane %v5433_v17, 4 }
0x193d   :  { %v5443_v18 = vrot.slane %v5442_v58, 2  ;;  %v5393_v42 = vadd.f32 %v5392_v46, %v5391_v60  ;;  %v5385_v48 = vrot.slane %v5384_v4, 4  ;;  %v5435_v8 = vadd.f32 %v5434_v19, %v5433_v17 }
0x193f   :  { %v5444_v51 = vadd.f32 %v5443_v18, %v5442_v58  ;;  %v5394_v41 = vrot.slane %v5393_v42, 2  ;;  %v5386_v39 = vadd.f32 %v5385_v48, %v5384_v4  ;;  %v5436_v26 = vrot.slane %v5435_v8, 2 }
0x1941   :  { %v5445_v37 = vrot.slane %v5444_v51, 1  ;;  %v5395_v27 = vadd.f32 %v5394_v41, %v5393_v42  ;;  %v5387_v44 = vrot.slane %v5386_v39, 2  ;;  %v5437_v43 = vadd.f32 %v5436_v26, %v5435_v8 }
0x1943   :  { %v5446_v14 = vadd.f32 %v5445_v37, %v5444_v51  ;;  %v5396_v30 = vrot.slane %v5395_v27, 1  ;;  %v5388_v35 = vadd.f32 %v5387_v44, %v5386_v39  ;;  %v5438_v47 = vrot.slane %v5437_v43, 1 }
0x1945   :  { %7212 = vrcp.f32 %v5446_v14  ;;  %v5397_v28 = vadd.f32 %v5396_v30, %v5395_v27  ;;  %v5389_v34 = vrot.slane %v5388_v35, 1  ;;  %v5439_v45 = vadd.f32 %v5438_v47, %v5437_v43 }
0x1947   :  { %7214 = vrcp.f32 %v5397_v28  ;;  %v5390_v52 = vadd.f32 %v5389_v34, %v5388_v35 }
0x1952   :  { %v7213_v33 = vpop.eup %7212 }
0x1953   :  { %v5448_v15 = vmul.f32 %v7213_v33, %v5439_v45 }
0x1954   :  { %v7215_v49 = vpop.eup %7214 }
0x1955   :  { %v5399_v50 = vmul.f32 %v7215_v49, %v5390_v52 }
0x1957   :  { %v5450_v20 = vsel %vm5449_vm0, %v5399_v50, %v5448_v15 }
0x1958   :  { %v5458_v36 = vmul.f32 %v5539_v40, %v5450_v20 }
0x195a   :  { %v5460_v32 = vsel %vm5459_vm1, %v5458_v36, 0.0 }
0x195b   :  { %5461 = vadd.xlane.f32.xlu0 %v5460_v32 }
0x19e4   :  { %v5462_v56 = vpop.xlane.xlu0 %5461 }
0x19e5   :  { %v5470_v53 = vadd.f32 %v5540_v29, %v5462_v56 }
0x19e7   :  { %v5541_v54 = vmul.f32 -1.442695, %v5470_v53 }
0x19e9   :  { %7216 = vpow2.f32 %v5541_v54 }
0x19f6   :  { %v7217_v55 = vpop.eup %7216 }
0x19f7   :  { %v5474_v61 = vadd.f32 1.0, %v7217_v55 }
0x19f9   :  { %7218 = vrcp.f32 %v5474_v61 }
0x1a06   :  { %v7219_v2 = vpop.eup %7218 }
0x1a07   :  { %5478 = vst.msk [vmem:[%s10281_s8] sm:$0x3] %vm5477_vm2, %v7219_v2 }
0x1a08   :  { %5483 = vsyncpa [#allocation5], 1 }
0x1a09   :  { %5484 = vsyncpa [#allocation7], 1 }
0x1a0a   :  { %5485 = vsyncpa [#allocation10], 1 }

</bundles_post_ra>
